<compile_context>
chip_gen: v7x
topology: tpu7x:2x2x1
jax: 0.10.0
libtpu: 0.0.40
codegen_flags: <defaults>
</compile_context>

<pallas_src>
import functools

import jax
import jax.numpy as jnp
from jax.experimental import pallas as pl
from jax.experimental.pallas import tpu as pltpu

# Small synthetic model dimensions (stand-ins for the 4096-dim NV-Embed model).
B = 8            # batch of "sentences"  (B*S = 128 rows -> fills MXU rows)
S = 16           # sequence length (tokens per sentence)
D = 128          # hidden size  (lane-dense: 1 x 128 lanes)
H = 4            # attention heads (head dim = 32)
F = 256          # MLP hidden size
L = 3            # number of transformer layers
VOCAB = 64       # vocabulary size
ABLATION_LAYER = 1
LN_EPS = 1e-5

PARAM_ORDER = ("wq", "bq", "wk", "bk", "wv", "bv",
               "wo", "bo", "w1", "b1", "w2", "b2")


# --------------------------------------------------------------------------
# Fused Pallas kernel: all active transformer layers + mean-pool + L2-norm.
# grid = (batch_tiles, num_active_layers); residual carried in f32 scratch.
# --------------------------------------------------------------------------
def _fused_encoder_kernel(x_ref, wq, bq, wk, bk, wv, bv, wo, bo,
                          w1, b1, w2, b2, o_ref, acc_ref, *,
                          num_heads, seq_len):
    l = pl.program_id(1)
    nl = pl.num_programs(1)

    # Load this batch-tile's bf16 token embeddings into the f32 residual
    # accumulator at the first layer step.
    @pl.when(l == 0)
    def _():
        acc_ref[...] = x_ref[...].astype(jnp.float32)

    x = acc_ref[...]                                    # (M, D) f32
    m, d = x.shape
    hd = d // num_heads
    b = m // seq_len

    # ---- LayerNorm 1 (gamma/beta folded into QKV weights host-side) ----
    mu = jnp.mean(x, axis=-1, keepdims=True)
    var = jnp.mean((x - mu) ** 2, axis=-1, keepdims=True)
    xn = ((x - mu) * jax.lax.rsqrt(var + LN_EPS)).astype(jnp.bfloat16)

    # ---- multi-head bidirectional self-attention (no slices / concats) ----
    attn = jnp.zeros((m, d), jnp.float32)
    for h in range(num_heads):                          # static, 4 iterations
        q = jnp.dot(xn, wq[l, h], preferred_element_type=jnp.float32) + bq[l, h]
        k = jnp.dot(xn, wk[l, h], preferred_element_type=jnp.float32) + bk[l, h]
        v = jnp.dot(xn, wv[l, h], preferred_element_type=jnp.float32) + bv[l, h]
        qh = q.reshape(b, seq_len, hd).astype(jnp.bfloat16)
        kh = k.reshape(b, seq_len, hd).astype(jnp.bfloat16)
        vh = v.reshape(b, seq_len, hd).astype(jnp.bfloat16)

        # 1/sqrt(hd) already folded into wq/bq host-side.
        sc = jnp.einsum("bqd,bkd->bqk", qh, kh,
                        preferred_element_type=jnp.float32)      # (b, s, s)
        sc = sc - jnp.max(sc, axis=-1, keepdims=True)
        p = jnp.exp(sc)
        p = p * pl.reciprocal(jnp.sum(p, axis=-1, keepdims=True), approx=True)
        oh = jnp.einsum("bqk,bkd->bqd", p.astype(jnp.bfloat16), vh,
                        preferred_element_type=jnp.float32)      # (b, s, hd)

        # Per-head slice of the (D, D) output projection, accumulated in f32.
        attn = attn + jnp.dot(oh.reshape(m, hd).astype(jnp.bfloat16), wo[l, h],
                              preferred_element_type=jnp.float32)
    attn = attn + bo[l]
    x = x + attn                                        # residual (f32)

    # ---- LayerNorm 2 (affine folded into W1/b1) + MLP ----
    mu2 = jnp.mean(x, axis=-1, keepdims=True)
    var2 = jnp.mean((x - mu2) ** 2, axis=-1, keepdims=True)
    xn2 = ((x - mu2) * jax.lax.rsqrt(var2 + LN_EPS)).astype(jnp.bfloat16)

    h1 = jnp.dot(xn2, w1[l], preferred_element_type=jnp.float32) + b1[l]
    h1 = jax.nn.gelu(h1)
    h2 = jnp.dot(h1.astype(jnp.bfloat16), w2[l],
                 preferred_element_type=jnp.float32) + b2[l]
    x = x + h2                                          # residual (f32)

    acc_ref[...] = x                                    # carry to next layer

    # ---- final layer: mean-pool over sequence + L2-normalize -> embedding ----
    @pl.when(l == nl - 1)
    def _():
        xe = x.reshape(b, seq_len, d)
        pooled = jnp.mean(xe, axis=1)                   # (b, D)
        inv = jax.lax.rsqrt(jnp.sum(pooled * pooled, axis=-1, keepdims=True)
                            + 1e-12)
        o_ref[...] = (pooled * inv).astype(o_ref.dtype)


# --------------------------------------------------------------------------
# pallas_call wrapper (single fused launch) + jitted forward
# --------------------------------------------------------------------------
def _encode_fused(x, stacked, *, batch, seq):
    """x: bf16 [batch*seq, D] embeddings; stacked: dict of [NL, ...] params."""
    nl = stacked["wq"].shape[0]
    d = x.shape[-1]
    bt = batch                   # one batch tile at toy size; >1 shards on v7x
    num_bt = batch // bt
    m_rows = bt * seq
    args = [stacked[name] for name in PARAM_ORDER]

    def resident_spec(a):
        nd = a.ndim
        return pl.BlockSpec(a.shape, lambda i, l, _nd=nd: (0,) * _nd)

    in_specs = [pl.BlockSpec((m_rows, d), lambda i, l: (i, 0))]
    in_specs += [resident_spec(a) for a in args]

    # Advisory cost estimate (helps XLA schedule around a microsecond kernel).
    flops_layer = m_rows * (8 * d * d + 4 * seq * d + 4 * d * F)
    flops = int(nl * num_bt * flops_layer)
    transcendentals = int(nl * num_bt * (bt * H * seq * seq + m_rows * F
                                         + 4 * m_rows))
    param_bytes = sum(int(a.size) * a.dtype.itemsize for a in args)
    bytes_accessed = int(x.size * x.dtype.itemsize + batch * d * 2 + param_bytes)

    return pl.pallas_call(
        functools.partial(_fused_encoder_kernel, num_heads=H, seq_len=seq),
        out_shape=jax.ShapeDtypeStruct((batch, d), jnp.bfloat16),
        grid_spec=pltpu.PrefetchScalarGridSpec(
            num_scalar_prefetch=0,
            grid=(num_bt, nl),
            in_specs=in_specs,
            out_specs=pl.BlockSpec((bt, d), lambda i, l: (i, 0)),
            scratch_shapes=[pltpu.VMEM((m_rows, d), jnp.float32)],
        ),
        compiler_params=pltpu.CompilerParams(
            dimension_semantics=("parallel", "arbitrary")),
        cost_estimate=pl.CostEstimate(flops=flops,
                                      transcendentals=transcendentals,
                                      bytes_accessed=bytes_accessed),
    )(x, *args)


@jax.jit
def _forward(token_ids, embed_table, stacked):
    """token_ids: int32 [batch, seq] -> bf16 [batch, D] embeddings."""
    batch, seq = token_ids.shape
    x = jnp.take(embed_table, token_ids.reshape(-1), axis=0)   # (batch*seq, D)
    return _encode_fused(x, stacked, batch=batch, seq=seq)


# --------------------------------------------------------------------------
# Parameter init (deterministic, synthetic stand-in for the frozen checkpoint)
# --------------------------------------------------------------------------
def init_params(key, ablation_layer):
    embed_key, layer_key = jax.random.split(key)
    embed_table = (0.02 * jax.random.normal(embed_key, (VOCAB, D))).astype(jnp.bfloat16)

    layers = []
    for l in range(L):
        k = jax.random.fold_in(layer_key, l)
        ks = jax.random.split(k, 4)
        p = dict(
            ln1_g=jnp.ones((1, D), jnp.bfloat16),
            ln1_b=jnp.zeros((1, D), jnp.bfloat16),
            wqkv=(0.02 * jax.random.normal(ks[0], (D, 3 * D))).astype(jnp.bfloat16),
            bqkv=jnp.zeros((1, 3 * D), jnp.bfloat16),
            wo=(0.02 * jax.random.normal(ks[1], (D, D))).astype(jnp.bfloat16),
            bo=jnp.zeros((1, D), jnp.bfloat16),
            ln2_g=jnp.ones((1, D), jnp.bfloat16),
            ln2_b=jnp.zeros((1, D), jnp.bfloat16),
            w1=(0.02 * jax.random.normal(ks[2], (D, F))).astype(jnp.bfloat16),
            b1=jnp.zeros((1, F), jnp.bfloat16),
            w2=(0.02 * jax.random.normal(ks[3], (F, D))).astype(jnp.bfloat16),
            b2=jnp.zeros((1, D), jnp.bfloat16),
        )
        layers.append(p)

    # `param.data.zero_()` on the ablated layer: zero every tensor (incl. LN).
    layers[ablation_layer] = {
        name: jnp.zeros_like(v) for name, v in layers[ablation_layer].items()
    }
    return embed_table, layers


def prepare_active_params(layers, ablation_layer):
    """Host-side (exact, frozen-weight) prep:
       * skip the zeroed layer (pre-LN with gamma=beta=0 -> exact identity),
       * fold LN1 affine + 1/sqrt(hd) into QKV weights/biases,
       * fold LN2 affine into W1/b1,
       * split QKV / Wo per head so the kernel needs no lane slicing,
       * stack active layers along a leading axis."""
    active = [p for i, p in enumerate(layers) if i != ablation_layer]
    hd = D // H
    scale = 1.0 / (hd ** 0.5)

    def split_w(w):          # (D, D) -> (H, D, hd), head-major columns
        return jnp.transpose(w.reshape(D, H, hd), (1, 0, 2))

    def split_b(bvec):       # (D,) -> (H, 1, hd)
        return bvec.reshape(H, 1, hd)

    prepped = []
    for p in active:
        g1 = p["ln1_g"][0].astype(jnp.float32)
        b1v = p["ln1_b"][0].astype(jnp.float32)
        wqkv = p["wqkv"].astype(jnp.float32)            # (D, 3D)
        bqkv = p["bqkv"][0].astype(jnp.float32)         # (3D,)
        w_fold = wqkv * g1[:, None]
        b_fold = b1v @ wqkv + bqkv

        g2 = p["ln2_g"][0].astype(jnp.float32)
        b2v = p["ln2_b"][0].astype(jnp.float32)
        w1f = p["w1"].astype(jnp.float32)
        w1_fold = w1f * g2[:, None]
        b1_fold = b2v @ w1f + p["b1"][0].astype(jnp.float32)

        prepped.append(dict(
            wq=split_w(w_fold[:, :D] * scale).astype(jnp.bfloat16),
            bq=split_b(b_fold[:D] * scale),
            wk=split_w(w_fold[:, D:2 * D]).astype(jnp.bfloat16),
            bk=split_b(b_fold[D:2 * D]),
            wv=split_w(w_fold[:, 2 * D:]).astype(jnp.bfloat16),
            bv=split_b(b_fold[2 * D:]),
            wo=p["wo"].astype(jnp.float32).reshape(H, hd, D).astype(jnp.bfloat16),
            bo=p["bo"].astype(jnp.float32),             # (1, D) f32
            w1=w1_fold.astype(jnp.bfloat16),
            b1=b1_fold.reshape(1, F),                   # f32
            w2=p["w2"].astype(jnp.bfloat16),
            b2=p["b2"].astype(jnp.float32),             # (1, D) f32
        ))
    assert len(prepped) >= 1
    return {name: jnp.stack([q[name] for q in prepped], axis=0)
            for name in PARAM_ORDER}


# --------------------------------------------------------------------------
# Module-level wrapper (mirrors AblationLayerEstimator.forward / encode)
# --------------------------------------------------------------------------
class AblationLayerEstimator:
    def __init__(self, ablation_layer: int, key):
        # TODO(synk): pretrained NV-Embed-v2 weights / HF tokenizer cannot be
        # loaded here; a deterministic synthetic encoder is used instead.
        self.ablation_layer = ablation_layer
        self.embed_table, self.layers = init_params(key, ablation_layer)
        self.stacked = prepare_active_params(self.layers, ablation_layer)

    def forward(self, token_ids):
        return _forward(token_ids, self.embed_table, self.stacked)

    def encode(self, token_ids, batch_size: int = 128):
        outs = []
        for i in range(0, token_ids.shape[0], batch_size):
            outs.append(self.forward(token_ids[i:i + batch_size]))
        return jnp.concatenate(outs, axis=0)


if __name__ == "__main__":
    key = jax.random.PRNGKey(0)
    model = AblationLayerEstimator(ABLATION_LAYER, key)

    tok_key = jax.random.fold_in(key, 1234)
    token_ids = jax.random.randint(tok_key, (B, S), 0, VOCAB, dtype=jnp.int32)

    emb = model.encode(token_ids, batch_size=128)
    emb = jax.block_until_ready(emb)

    assert emb.shape == (B, D)
    emb_f32 = emb.astype(jnp.float32)
    assert bool(jnp.all(jnp.isfinite(emb_f32)))
    # embeddings are L2-normalized (bf16 output rounding tolerance)
    norms = jnp.sqrt(jnp.sum(emb_f32 * emb_f32, axis=-1))
    assert bool(jnp.all(jnp.abs(norms - 1.0) < 5e-2))
    print("KERNEL_OK")
</pallas_src>

<mosaic_0001>
module attributes {stable_mosaic.version = 11 : i64} {
  func.func @_fused_encoder_kernel(%arg0: i32, %arg1: i32, %arg2: memref<128x128xbf16, #tpu.memory_space<vmem>>, %arg3: memref<2x4x128x32xbf16, #tpu.memory_space<vmem>>, %arg4: memref<2x4x1x32xf32, #tpu.memory_space<vmem>>, %arg5: memref<2x4x128x32xbf16, #tpu.memory_space<vmem>>, %arg6: memref<2x4x1x32xf32, #tpu.memory_space<vmem>>, %arg7: memref<2x4x128x32xbf16, #tpu.memory_space<vmem>>, %arg8: memref<2x4x1x32xf32, #tpu.memory_space<vmem>>, %arg9: memref<2x4x32x128xbf16, #tpu.memory_space<vmem>>, %arg10: memref<2x1x128xf32, #tpu.memory_space<vmem>>, %arg11: memref<2x128x256xbf16, #tpu.memory_space<vmem>>, %arg12: memref<2x1x256xf32, #tpu.memory_space<vmem>>, %arg13: memref<2x256x128xbf16, #tpu.memory_space<vmem>>, %arg14: memref<2x1x128xf32, #tpu.memory_space<vmem>>, %arg15: memref<8x128xbf16, #tpu.memory_space<vmem>>, %arg16: memref<128x128xf32, #tpu.memory_space<vmem>>) attributes {dimension_semantics = [#tpu.dimension_semantics<parallel>, #tpu.dimension_semantics<arbitrary>], iteration_bounds = array<i64: 1, 2>, scalar_prefetch = 0 : i64, scratch_operands = 1 : i64, tpu.core_type = #tpu.core_type<tc>, window_params = [{transform_indices = @transform_0, window_bounds = array<i64: 128, 128>}, {pipeline_mode = #tpu.pipeline_mode<synchronous>, transform_indices = @transform_1, window_bounds = array<i64: 2, 4, 128, 32>}, {pipeline_mode = #tpu.pipeline_mode<synchronous>, transform_indices = @transform_2, window_bounds = array<i64: 2, 4, 1, 32>}, {pipeline_mode = #tpu.pipeline_mode<synchronous>, transform_indices = @transform_3, window_bounds = array<i64: 2, 4, 128, 32>}, {pipeline_mode = #tpu.pipeline_mode<synchronous>, transform_indices = @transform_4, window_bounds = array<i64: 2, 4, 1, 32>}, {pipeline_mode = #tpu.pipeline_mode<synchronous>, transform_indices = @transform_5, window_bounds = array<i64: 2, 4, 128, 32>}, {pipeline_mode = #tpu.pipeline_mode<synchronous>, transform_indices = @transform_6, window_bounds = array<i64: 2, 4, 1, 32>}, {pipeline_mode = #tpu.pipeline_mode<synchronous>, transform_indices = @transform_7, window_bounds = array<i64: 2, 4, 32, 128>}, {pipeline_mode = #tpu.pipeline_mode<synchronous>, transform_indices = @transform_8, window_bounds = array<i64: 2, 1, 128>}, {pipeline_mode = #tpu.pipeline_mode<synchronous>, transform_indices = @transform_9, window_bounds = array<i64: 2, 128, 256>}, {pipeline_mode = #tpu.pipeline_mode<synchronous>, transform_indices = @transform_10, window_bounds = array<i64: 2, 1, 256>}, {pipeline_mode = #tpu.pipeline_mode<synchronous>, transform_indices = @transform_11, window_bounds = array<i64: 2, 256, 128>}, {pipeline_mode = #tpu.pipeline_mode<synchronous>, transform_indices = @transform_12, window_bounds = array<i64: 2, 1, 128>}, {transform_indices = @transform_13, window_bounds = array<i64: 8, 128>}]} {
    %c0_i32 = arith.constant 0 : i32
    %0 = arith.cmpi eq, %arg1, %c0_i32 : i32
    %1 = arith.extui %0 : i1 to i32
    %c0_i32_0 = arith.constant 0 : i32
    %2 = arith.cmpi ne, %1, %c0_i32_0 : i32
    scf.if %2 {
      %c0_144 = arith.constant 0 : index
      %c0_145 = arith.constant 0 : index
      %298 = vector.load %arg2[%c0_144, %c0_145] : memref<128x128xbf16, #tpu.memory_space<vmem>>, vector<128x128xbf16>
      %299 = arith.extf %298 : vector<128x128xbf16> to vector<128x128xf32>
      %c0_146 = arith.constant 0 : index
      %c0_147 = arith.constant 0 : index
      %300 = vector.load %arg16[%c0_146, %c0_147] : memref<128x128xf32, #tpu.memory_space<vmem>>, vector<128x128xf32>
      tpu.vector_store %arg16[%c0_146, %c0_147], %299 {strides = array<i32>} : memref<128x128xf32, #tpu.memory_space<vmem>>, vector<128x128xf32>,
    } else {
    }
    %c0 = arith.constant 0 : index
    %c0_1 = arith.constant 0 : index
    %3 = vector.load %arg16[%c0, %c0_1] : memref<128x128xf32, #tpu.memory_space<vmem>>, vector<128x128xf32>
    %cst = arith.constant dense<0.000000e+00> : vector<128xf32>
    %4 = vector.multi_reduction <add>, %3, %cst [1] : vector<128x128xf32> to vector<128xf32>
    %5 = vector.shape_cast %4 : vector<128xf32> to vector<128x1xf32>
    %cst_2 = arith.constant 1.280000e+02 : f32
    %6 = vector.broadcast %cst_2 : f32 to vector<128x1xf32>
    %7 = arith.divf %5, %6 : vector<128x1xf32>
    %8 = vector.broadcast %7 : vector<128x1xf32> to vector<128x128xf32>
    %9 = arith.subf %3, %8 : vector<128x128xf32>
    %10 = arith.mulf %9, %9 : vector<128x128xf32>
    %cst_3 = arith.constant dense<0.000000e+00> : vector<128xf32>
    %11 = vector.multi_reduction <add>, %10, %cst_3 [1] : vector<128x128xf32> to vector<128xf32>
    %12 = vector.shape_cast %11 : vector<128xf32> to vector<128x1xf32>
    %cst_4 = arith.constant 1.280000e+02 : f32
    %13 = vector.broadcast %cst_4 : f32 to vector<128x1xf32>
    %14 = arith.divf %12, %13 : vector<128x1xf32>
    %15 = vector.broadcast %7 : vector<128x1xf32> to vector<128x128xf32>
    %16 = arith.subf %3, %15 : vector<128x128xf32>
    %cst_5 = arith.constant 9.99999974E-6 : f32
    %17 = vector.broadcast %cst_5 : f32 to vector<128x1xf32>
    %18 = arith.addf %14, %17 : vector<128x1xf32>
    %19 = math.rsqrt %18 : vector<128x1xf32>
    %20 = vector.broadcast %19 : vector<128x1xf32> to vector<128x128xf32>
    %21 = arith.mulf %16, %20 : vector<128x128xf32>
    %22 = arith.truncf %21 : vector<128x128xf32> to vector<128x128xbf16>
    %cst_6 = arith.constant 0.000000e+00 : f32
    %23 = vector.broadcast %cst_6 : f32 to vector<128x128xf32>
    %24 = arith.index_cast %arg1 : i32 to index
    %c0_7 = arith.constant 0 : index
    %c0_8 = arith.constant 0 : index
    %c0_9 = arith.constant 0 : index
    %25 = vector.load %arg3[%24, %c0_7, %c0_8, %c0_9] : memref<2x4x128x32xbf16, #tpu.memory_space<vmem>>, vector<1x1x128x32xbf16>
    %26 = vector.shape_cast %25 : vector<1x1x128x32xbf16> to vector<128x32xbf16>
    %cst_10 = arith.constant dense<0.000000e+00> : vector<128x32xf32>
    %27 = tpu.matmul %22, %26, %cst_10 {dimension_numbers = #tpu.dot_dimension_numbers<[1], [0], [0], [1], [0, 0, 1, 1], [], []>} : vector<128x128xbf16>, vector<128x32xbf16>, vector<128x32xf32> -> vector<128x32xf32>
    %28 = arith.index_cast %arg1 : i32 to index
    %c0_11 = arith.constant 0 : index
    %c0_12 = arith.constant 0 : index
    %c0_13 = arith.constant 0 : index
    %29 = vector.load %arg4[%28, %c0_11, %c0_12, %c0_13] : memref<2x4x1x32xf32, #tpu.memory_space<vmem>>, vector<1x1x1x32xf32>
    %30 = vector.shape_cast %29 : vector<1x1x1x32xf32> to vector<1x32xf32>
    %31 = vector.broadcast %30 : vector<1x32xf32> to vector<128x32xf32>
    %32 = arith.addf %27, %31 : vector<128x32xf32>
    %33 = arith.index_cast %arg1 : i32 to index
    %c0_14 = arith.constant 0 : index
    %c0_15 = arith.constant 0 : index
    %c0_16 = arith.constant 0 : index
    %34 = vector.load %arg5[%33, %c0_14, %c0_15, %c0_16] : memref<2x4x128x32xbf16, #tpu.memory_space<vmem>>, vector<1x1x128x32xbf16>
    %35 = vector.shape_cast %34 : vector<1x1x128x32xbf16> to vector<128x32xbf16>
    %cst_17 = arith.constant dense<0.000000e+00> : vector<128x32xf32>
    %36 = tpu.matmul %22, %35, %cst_17 {dimension_numbers = #tpu.dot_dimension_numbers<[1], [0], [0], [1], [0, 0, 1, 1], [], []>} : vector<128x128xbf16>, vector<128x32xbf16>, vector<128x32xf32> -> vector<128x32xf32>
    %37 = arith.index_cast %arg1 : i32 to index
    %c0_18 = arith.constant 0 : index
    %c0_19 = arith.constant 0 : index
    %c0_20 = arith.constant 0 : index
    %38 = vector.load %arg6[%37, %c0_18, %c0_19, %c0_20] : memref<2x4x1x32xf32, #tpu.memory_space<vmem>>, vector<1x1x1x32xf32>
    %39 = vector.shape_cast %38 : vector<1x1x1x32xf32> to vector<1x32xf32>
    %40 = vector.broadcast %39 : vector<1x32xf32> to vector<128x32xf32>
    %41 = arith.addf %36, %40 : vector<128x32xf32>
    %42 = arith.index_cast %arg1 : i32 to index
    %c0_21 = arith.constant 0 : index
    %c0_22 = arith.constant 0 : index
    %c0_23 = arith.constant 0 : index
    %43 = vector.load %arg7[%42, %c0_21, %c0_22, %c0_23] : memref<2x4x128x32xbf16, #tpu.memory_space<vmem>>, vector<1x1x128x32xbf16>
    %44 = vector.shape_cast %43 : vector<1x1x128x32xbf16> to vector<128x32xbf16>
    %cst_24 = arith.constant dense<0.000000e+00> : vector<128x32xf32>
    %45 = tpu.matmul %22, %44, %cst_24 {dimension_numbers = #tpu.dot_dimension_numbers<[1], [0], [0], [1], [0, 0, 1, 1], [], []>} : vector<128x128xbf16>, vector<128x32xbf16>, vector<128x32xf32> -> vector<128x32xf32>
    %46 = arith.index_cast %arg1 : i32 to index
    %c0_25 = arith.constant 0 : index
    %c0_26 = arith.constant 0 : index
    %c0_27 = arith.constant 0 : index
    %47 = vector.load %arg8[%46, %c0_25, %c0_26, %c0_27] : memref<2x4x1x32xf32, #tpu.memory_space<vmem>>, vector<1x1x1x32xf32>
    %48 = vector.shape_cast %47 : vector<1x1x1x32xf32> to vector<1x32xf32>
    %49 = vector.broadcast %48 : vector<1x32xf32> to vector<128x32xf32>
    %50 = arith.addf %45, %49 : vector<128x32xf32>
    %51 = vector.shape_cast %32 : vector<128x32xf32> to vector<8x16x32xf32>
    %52 = arith.truncf %51 : vector<8x16x32xf32> to vector<8x16x32xbf16>
    %53 = vector.shape_cast %41 : vector<128x32xf32> to vector<8x16x32xf32>
    %54 = arith.truncf %53 : vector<8x16x32xf32> to vector<8x16x32xbf16>
    %55 = vector.shape_cast %50 : vector<128x32xf32> to vector<8x16x32xf32>
    %56 = arith.truncf %55 : vector<8x16x32xf32> to vector<8x16x32xbf16>
    "tpu.trace_start"() <{level = 10 : i32, message = "bqd,bkd->bqk"}> : () -> ()
    %cst_28 = arith.constant dense<0.000000e+00> : vector<8x16x16xf32>
    %57 = tpu.matmul %52, %54, %cst_28 {dimension_numbers = #tpu.dot_dimension_numbers<[2], [2], [1], [1], [0, 0, 0, 1, 1, 1], [0], [0]>} : vector<8x16x32xbf16>, vector<8x16x32xbf16>, vector<8x16x16xf32> -> vector<8x16x16xf32>
    "tpu.trace_stop"() : () -> ()
    %cst_29 = arith.constant dense<0xFF800000> : vector<8x16xf32>
    %58 = vector.multi_reduction <maximumf>, %57, %cst_29 [2] : vector<8x16x16xf32> to vector<8x16xf32>
    %59 = vector.shape_cast %58 : vector<8x16xf32> to vector<8x16x1xf32>
    %60 = vector.broadcast %59 : vector<8x16x1xf32> to vector<8x16x16xf32>
    %61 = arith.subf %57, %60 : vector<8x16x16xf32>
    %62 = math.exp %61 : vector<8x16x16xf32>
    %cst_30 = arith.constant dense<0.000000e+00> : vector<8x16xf32>
    %63 = vector.multi_reduction <add>, %62, %cst_30 [2] : vector<8x16x16xf32> to vector<8x16xf32>
    %64 = vector.shape_cast %63 : vector<8x16xf32> to vector<8x16x1xf32>
    %65 = tpu.reciprocal %64 {approx = true} : vector<8x16x1xf32> -> vector<8x16x1xf32>
    %66 = vector.broadcast %65 : vector<8x16x1xf32> to vector<8x16x16xf32>
    %67 = arith.mulf %62, %66 : vector<8x16x16xf32>
    %68 = arith.truncf %67 : vector<8x16x16xf32> to vector<8x16x16xbf16>
    "tpu.trace_start"() <{level = 10 : i32, message = "bqk,bkd->bqd"}> : () -> ()
    %cst_31 = arith.constant dense<0.000000e+00> : vector<8x16x32xf32>
    %69 = tpu.matmul %68, %56, %cst_31 {dimension_numbers = #tpu.dot_dimension_numbers<[2], [1], [1], [2], [0, 0, 0, 1, 1, 2], [0], [0]>} : vector<8x16x16xbf16>, vector<8x16x32xbf16>, vector<8x16x32xf32> -> vector<8x16x32xf32>
    "tpu.trace_stop"() : () -> ()
    %70 = vector.shape_cast %69 : vector<8x16x32xf32> to vector<128x32xf32>
    %71 = arith.truncf %70 : vector<128x32xf32> to vector<128x32xbf16>
    %72 = arith.index_cast %arg1 : i32 to index
    %c0_32 = arith.constant 0 : index
    %c0_33 = arith.constant 0 : index
    %c0_34 = arith.constant 0 : index
    %73 = vector.load %arg9[%72, %c0_32, %c0_33, %c0_34] : memref<2x4x32x128xbf16, #tpu.memory_space<vmem>>, vector<1x1x32x128xbf16>
    %74 = vector.shape_cast %73 : vector<1x1x32x128xbf16> to vector<32x128xbf16>
    %cst_35 = arith.constant dense<0.000000e+00> : vector<128x128xf32>
    %75 = tpu.matmul %71, %74, %cst_35 {dimension_numbers = #tpu.dot_dimension_numbers<[1], [0], [0], [1], [0, 0, 1, 1], [], []>} : vector<128x32xbf16>, vector<32x128xbf16>, vector<128x128xf32> -> vector<128x128xf32>
    %76 = arith.addf %23, %75 : vector<128x128xf32>
    %77 = arith.index_cast %arg1 : i32 to index
    %c1 = arith.constant 1 : index
    %c0_36 = arith.constant 0 : index
    %c0_37 = arith.constant 0 : index
    %78 = vector.load %arg3[%77, %c1, %c0_36, %c0_37] : memref<2x4x128x32xbf16, #tpu.memory_space<vmem>>, vector<1x1x128x32xbf16>
    %79 = vector.shape_cast %78 : vector<1x1x128x32xbf16> to vector<128x32xbf16>
    %cst_38 = arith.constant dense<0.000000e+00> : vector<128x32xf32>
    %80 = tpu.matmul %22, %79, %cst_38 {dimension_numbers = #tpu.dot_dimension_numbers<[1], [0], [0], [1], [0, 0, 1, 1], [], []>} : vector<128x128xbf16>, vector<128x32xbf16>, vector<128x32xf32> -> vector<128x32xf32>
    %81 = arith.index_cast %arg1 : i32 to index
    %c1_39 = arith.constant 1 : index
    %c0_40 = arith.constant 0 : index
    %c0_41 = arith.constant 0 : index
    %82 = vector.load %arg4[%81, %c1_39, %c0_40, %c0_41] : memref<2x4x1x32xf32, #tpu.memory_space<vmem>>, vector<1x1x1x32xf32>
    %83 = vector.shape_cast %82 : vector<1x1x1x32xf32> to vector<1x32xf32>
    %84 = vector.broadcast %83 : vector<1x32xf32> to vector<128x32xf32>
    %85 = arith.addf %80, %84 : vector<128x32xf32>
    %86 = arith.index_cast %arg1 : i32 to index
    %c1_42 = arith.constant 1 : index
    %c0_43 = arith.constant 0 : index
    %c0_44 = arith.constant 0 : index
    %87 = vector.load %arg5[%86, %c1_42, %c0_43, %c0_44] : memref<2x4x128x32xbf16, #tpu.memory_space<vmem>>, vector<1x1x128x32xbf16>
    %88 = vector.shape_cast %87 : vector<1x1x128x32xbf16> to vector<128x32xbf16>
    %cst_45 = arith.constant dense<0.000000e+00> : vector<128x32xf32>
    %89 = tpu.matmul %22, %88, %cst_45 {dimension_numbers = #tpu.dot_dimension_numbers<[1], [0], [0], [1], [0, 0, 1, 1], [], []>} : vector<128x128xbf16>, vector<128x32xbf16>, vector<128x32xf32> -> vector<128x32xf32>
    %90 = arith.index_cast %arg1 : i32 to index
    %c1_46 = arith.constant 1 : index
    %c0_47 = arith.constant 0 : index
    %c0_48 = arith.constant 0 : index
    %91 = vector.load %arg6[%90, %c1_46, %c0_47, %c0_48] : memref<2x4x1x32xf32, #tpu.memory_space<vmem>>, vector<1x1x1x32xf32>
    %92 = vector.shape_cast %91 : vector<1x1x1x32xf32> to vector<1x32xf32>
    %93 = vector.broadcast %92 : vector<1x32xf32> to vector<128x32xf32>
    %94 = arith.addf %89, %93 : vector<128x32xf32>
    %95 = arith.index_cast %arg1 : i32 to index
    %c1_49 = arith.constant 1 : index
    %c0_50 = arith.constant 0 : index
    %c0_51 = arith.constant 0 : index
    %96 = vector.load %arg7[%95, %c1_49, %c0_50, %c0_51] : memref<2x4x128x32xbf16, #tpu.memory_space<vmem>>, vector<1x1x128x32xbf16>
    %97 = vector.shape_cast %96 : vector<1x1x128x32xbf16> to vector<128x32xbf16>
    %cst_52 = arith.constant dense<0.000000e+00> : vector<128x32xf32>
    %98 = tpu.matmul %22, %97, %cst_52 {dimension_numbers = #tpu.dot_dimension_numbers<[1], [0], [0], [1], [0, 0, 1, 1], [], []>} : vector<128x128xbf16>, vector<128x32xbf16>, vector<128x32xf32> -> vector<128x32xf32>
    %99 = arith.index_cast %arg1 : i32 to index
    %c1_53 = arith.constant 1 : index
    %c0_54 = arith.constant 0 : index
    %c0_55 = arith.constant 0 : index
    %100 = vector.load %arg8[%99, %c1_53, %c0_54, %c0_55] : memref<2x4x1x32xf32, #tpu.memory_space<vmem>>, vector<1x1x1x32xf32>
    %101 = vector.shape_cast %100 : vector<1x1x1x32xf32> to vector<1x32xf32>
    %102 = vector.broadcast %101 : vector<1x32xf32> to vector<128x32xf32>
    %103 = arith.addf %98, %102 : vector<128x32xf32>
    %104 = vector.shape_cast %85 : vector<128x32xf32> to vector<8x16x32xf32>
    %105 = arith.truncf %104 : vector<8x16x32xf32> to vector<8x16x32xbf16>
    %106 = vector.shape_cast %94 : vector<128x32xf32> to vector<8x16x32xf32>
    %107 = arith.truncf %106 : vector<8x16x32xf32> to vector<8x16x32xbf16>
    %108 = vector.shape_cast %103 : vector<128x32xf32> to vector<8x16x32xf32>
    %109 = arith.truncf %108 : vector<8x16x32xf32> to vector<8x16x32xbf16>
    "tpu.trace_start"() <{level = 10 : i32, message = "bqd,bkd->bqk"}> : () -> ()
    %cst_56 = arith.constant dense<0.000000e+00> : vector<8x16x16xf32>
    %110 = tpu.matmul %105, %107, %cst_56 {dimension_numbers = #tpu.dot_dimension_numbers<[2], [2], [1], [1], [0, 0, 0, 1, 1, 1], [0], [0]>} : vector<8x16x32xbf16>, vector<8x16x32xbf16>, vector<8x16x16xf32> -> vector<8x16x16xf32>
    "tpu.trace_stop"() : () -> ()
    %cst_57 = arith.constant dense<0xFF800000> : vector<8x16xf32>
    %111 = vector.multi_reduction <maximumf>, %110, %cst_57 [2] : vector<8x16x16xf32> to vector<8x16xf32>
    %112 = vector.shape_cast %111 : vector<8x16xf32> to vector<8x16x1xf32>
    %113 = vector.broadcast %112 : vector<8x16x1xf32> to vector<8x16x16xf32>
    %114 = arith.subf %110, %113 : vector<8x16x16xf32>
    %115 = math.exp %114 : vector<8x16x16xf32>
    %cst_58 = arith.constant dense<0.000000e+00> : vector<8x16xf32>
    %116 = vector.multi_reduction <add>, %115, %cst_58 [2] : vector<8x16x16xf32> to vector<8x16xf32>
    %117 = vector.shape_cast %116 : vector<8x16xf32> to vector<8x16x1xf32>
    %118 = tpu.reciprocal %117 {approx = true} : vector<8x16x1xf32> -> vector<8x16x1xf32>
    %119 = vector.broadcast %118 : vector<8x16x1xf32> to vector<8x16x16xf32>
    %120 = arith.mulf %115, %119 : vector<8x16x16xf32>
    %121 = arith.truncf %120 : vector<8x16x16xf32> to vector<8x16x16xbf16>
    "tpu.trace_start"() <{level = 10 : i32, message = "bqk,bkd->bqd"}> : () -> ()
    %cst_59 = arith.constant dense<0.000000e+00> : vector<8x16x32xf32>
    %122 = tpu.matmul %121, %109, %cst_59 {dimension_numbers = #tpu.dot_dimension_numbers<[2], [1], [1], [2], [0, 0, 0, 1, 1, 2], [0], [0]>} : vector<8x16x16xbf16>, vector<8x16x32xbf16>, vector<8x16x32xf32> -> vector<8x16x32xf32>
    "tpu.trace_stop"() : () -> ()
    %123 = vector.shape_cast %122 : vector<8x16x32xf32> to vector<128x32xf32>
    %124 = arith.truncf %123 : vector<128x32xf32> to vector<128x32xbf16>
    %125 = arith.index_cast %arg1 : i32 to index
    %c1_60 = arith.constant 1 : index
    %c0_61 = arith.constant 0 : index
    %c0_62 = arith.constant 0 : index
    %126 = vector.load %arg9[%125, %c1_60, %c0_61, %c0_62] : memref<2x4x32x128xbf16, #tpu.memory_space<vmem>>, vector<1x1x32x128xbf16>
    %127 = vector.shape_cast %126 : vector<1x1x32x128xbf16> to vector<32x128xbf16>
    %cst_63 = arith.constant dense<0.000000e+00> : vector<128x128xf32>
    %128 = tpu.matmul %124, %127, %cst_63 {dimension_numbers = #tpu.dot_dimension_numbers<[1], [0], [0], [1], [0, 0, 1, 1], [], []>} : vector<128x32xbf16>, vector<32x128xbf16>, vector<128x128xf32> -> vector<128x128xf32>
    %129 = arith.addf %76, %128 : vector<128x128xf32>
    %130 = arith.index_cast %arg1 : i32 to index
    %c2 = arith.constant 2 : index
    %c0_64 = arith.constant 0 : index
    %c0_65 = arith.constant 0 : index
    %131 = vector.load %arg3[%130, %c2, %c0_64, %c0_65] : memref<2x4x128x32xbf16, #tpu.memory_space<vmem>>, vector<1x1x128x32xbf16>
    %132 = vector.shape_cast %131 : vector<1x1x128x32xbf16> to vector<128x32xbf16>
    %cst_66 = arith.constant dense<0.000000e+00> : vector<128x32xf32>
    %133 = tpu.matmul %22, %132, %cst_66 {dimension_numbers = #tpu.dot_dimension_numbers<[1], [0], [0], [1], [0, 0, 1, 1], [], []>} : vector<128x128xbf16>, vector<128x32xbf16>, vector<128x32xf32> -> vector<128x32xf32>
    %134 = arith.index_cast %arg1 : i32 to index
    %c2_67 = arith.constant 2 : index
    %c0_68 = arith.constant 0 : index
    %c0_69 = arith.constant 0 : index
    %135 = vector.load %arg4[%134, %c2_67, %c0_68, %c0_69] : memref<2x4x1x32xf32, #tpu.memory_space<vmem>>, vector<1x1x1x32xf32>
    %136 = vector.shape_cast %135 : vector<1x1x1x32xf32> to vector<1x32xf32>
    %137 = vector.broadcast %136 : vector<1x32xf32> to vector<128x32xf32>
    %138 = arith.addf %133, %137 : vector<128x32xf32>
    %139 = arith.index_cast %arg1 : i32 to index
    %c2_70 = arith.constant 2 : index
    %c0_71 = arith.constant 0 : index
    %c0_72 = arith.constant 0 : index
    %140 = vector.load %arg5[%139, %c2_70, %c0_71, %c0_72] : memref<2x4x128x32xbf16, #tpu.memory_space<vmem>>, vector<1x1x128x32xbf16>
    %141 = vector.shape_cast %140 : vector<1x1x128x32xbf16> to vector<128x32xbf16>
    %cst_73 = arith.constant dense<0.000000e+00> : vector<128x32xf32>
    %142 = tpu.matmul %22, %141, %cst_73 {dimension_numbers = #tpu.dot_dimension_numbers<[1], [0], [0], [1], [0, 0, 1, 1], [], []>} : vector<128x128xbf16>, vector<128x32xbf16>, vector<128x32xf32> -> vector<128x32xf32>
    %143 = arith.index_cast %arg1 : i32 to index
    %c2_74 = arith.constant 2 : index
    %c0_75 = arith.constant 0 : index
    %c0_76 = arith.constant 0 : index
    %144 = vector.load %arg6[%143, %c2_74, %c0_75, %c0_76] : memref<2x4x1x32xf32, #tpu.memory_space<vmem>>, vector<1x1x1x32xf32>
    %145 = vector.shape_cast %144 : vector<1x1x1x32xf32> to vector<1x32xf32>
    %146 = vector.broadcast %145 : vector<1x32xf32> to vector<128x32xf32>
    %147 = arith.addf %142, %146 : vector<128x32xf32>
    %148 = arith.index_cast %arg1 : i32 to index
    %c2_77 = arith.constant 2 : index
    %c0_78 = arith.constant 0 : index
    %c0_79 = arith.constant 0 : index
    %149 = vector.load %arg7[%148, %c2_77, %c0_78, %c0_79] : memref<2x4x128x32xbf16, #tpu.memory_space<vmem>>, vector<1x1x128x32xbf16>
    %150 = vector.shape_cast %149 : vector<1x1x128x32xbf16> to vector<128x32xbf16>
    %cst_80 = arith.constant dense<0.000000e+00> : vector<128x32xf32>
    %151 = tpu.matmul %22, %150, %cst_80 {dimension_numbers = #tpu.dot_dimension_numbers<[1], [0], [0], [1], [0, 0, 1, 1], [], []>} : vector<128x128xbf16>, vector<128x32xbf16>, vector<128x32xf32> -> vector<128x32xf32>
    %152 = arith.index_cast %arg1 : i32 to index
    %c2_81 = arith.constant 2 : index
    %c0_82 = arith.constant 0 : index
    %c0_83 = arith.constant 0 : index
    %153 = vector.load %arg8[%152, %c2_81, %c0_82, %c0_83] : memref<2x4x1x32xf32, #tpu.memory_space<vmem>>, vector<1x1x1x32xf32>
    %154 = vector.shape_cast %153 : vector<1x1x1x32xf32> to vector<1x32xf32>
    %155 = vector.broadcast %154 : vector<1x32xf32> to vector<128x32xf32>
    %156 = arith.addf %151, %155 : vector<128x32xf32>
    %157 = vector.shape_cast %138 : vector<128x32xf32> to vector<8x16x32xf32>
    %158 = arith.truncf %157 : vector<8x16x32xf32> to vector<8x16x32xbf16>
    %159 = vector.shape_cast %147 : vector<128x32xf32> to vector<8x16x32xf32>
    %160 = arith.truncf %159 : vector<8x16x32xf32> to vector<8x16x32xbf16>
    %161 = vector.shape_cast %156 : vector<128x32xf32> to vector<8x16x32xf32>
    %162 = arith.truncf %161 : vector<8x16x32xf32> to vector<8x16x32xbf16>
    "tpu.trace_start"() <{level = 10 : i32, message = "bqd,bkd->bqk"}> : () -> ()
    %cst_84 = arith.constant dense<0.000000e+00> : vector<8x16x16xf32>
    %163 = tpu.matmul %158, %160, %cst_84 {dimension_numbers = #tpu.dot_dimension_numbers<[2], [2], [1], [1], [0, 0, 0, 1, 1, 1], [0], [0]>} : vector<8x16x32xbf16>, vector<8x16x32xbf16>, vector<8x16x16xf32> -> vector<8x16x16xf32>
    "tpu.trace_stop"() : () -> ()
    %cst_85 = arith.constant dense<0xFF800000> : vector<8x16xf32>
    %164 = vector.multi_reduction <maximumf>, %163, %cst_85 [2] : vector<8x16x16xf32> to vector<8x16xf32>
    %165 = vector.shape_cast %164 : vector<8x16xf32> to vector<8x16x1xf32>
    %166 = vector.broadcast %165 : vector<8x16x1xf32> to vector<8x16x16xf32>
    %167 = arith.subf %163, %166 : vector<8x16x16xf32>
    %168 = math.exp %167 : vector<8x16x16xf32>
    %cst_86 = arith.constant dense<0.000000e+00> : vector<8x16xf32>
    %169 = vector.multi_reduction <add>, %168, %cst_86 [2] : vector<8x16x16xf32> to vector<8x16xf32>
    %170 = vector.shape_cast %169 : vector<8x16xf32> to vector<8x16x1xf32>
    %171 = tpu.reciprocal %170 {approx = true} : vector<8x16x1xf32> -> vector<8x16x1xf32>
    %172 = vector.broadcast %171 : vector<8x16x1xf32> to vector<8x16x16xf32>
    %173 = arith.mulf %168, %172 : vector<8x16x16xf32>
    %174 = arith.truncf %173 : vector<8x16x16xf32> to vector<8x16x16xbf16>
    "tpu.trace_start"() <{level = 10 : i32, message = "bqk,bkd->bqd"}> : () -> ()
    %cst_87 = arith.constant dense<0.000000e+00> : vector<8x16x32xf32>
    %175 = tpu.matmul %174, %162, %cst_87 {dimension_numbers = #tpu.dot_dimension_numbers<[2], [1], [1], [2], [0, 0, 0, 1, 1, 2], [0], [0]>} : vector<8x16x16xbf16>, vector<8x16x32xbf16>, vector<8x16x32xf32> -> vector<8x16x32xf32>
    "tpu.trace_stop"() : () -> ()
    %176 = vector.shape_cast %175 : vector<8x16x32xf32> to vector<128x32xf32>
    %177 = arith.truncf %176 : vector<128x32xf32> to vector<128x32xbf16>
    %178 = arith.index_cast %arg1 : i32 to index
    %c2_88 = arith.constant 2 : index
    %c0_89 = arith.constant 0 : index
    %c0_90 = arith.constant 0 : index
    %179 = vector.load %arg9[%178, %c2_88, %c0_89, %c0_90] : memref<2x4x32x128xbf16, #tpu.memory_space<vmem>>, vector<1x1x32x128xbf16>
    %180 = vector.shape_cast %179 : vector<1x1x32x128xbf16> to vector<32x128xbf16>
    %cst_91 = arith.constant dense<0.000000e+00> : vector<128x128xf32>
    %181 = tpu.matmul %177, %180, %cst_91 {dimension_numbers = #tpu.dot_dimension_numbers<[1], [0], [0], [1], [0, 0, 1, 1], [], []>} : vector<128x32xbf16>, vector<32x128xbf16>, vector<128x128xf32> -> vector<128x128xf32>
    %182 = arith.addf %129, %181 : vector<128x128xf32>
    %183 = arith.index_cast %arg1 : i32 to index
    %c3 = arith.constant 3 : index
    %c0_92 = arith.constant 0 : index
    %c0_93 = arith.constant 0 : index
    %184 = vector.load %arg3[%183, %c3, %c0_92, %c0_93] : memref<2x4x128x32xbf16, #tpu.memory_space<vmem>>, vector<1x1x128x32xbf16>
    %185 = vector.shape_cast %184 : vector<1x1x128x32xbf16> to vector<128x32xbf16>
    %cst_94 = arith.constant dense<0.000000e+00> : vector<128x32xf32>
    %186 = tpu.matmul %22, %185, %cst_94 {dimension_numbers = #tpu.dot_dimension_numbers<[1], [0], [0], [1], [0, 0, 1, 1], [], []>} : vector<128x128xbf16>, vector<128x32xbf16>, vector<128x32xf32> -> vector<128x32xf32>
    %187 = arith.index_cast %arg1 : i32 to index
    %c3_95 = arith.constant 3 : index
    %c0_96 = arith.constant 0 : index
    %c0_97 = arith.constant 0 : index
    %188 = vector.load %arg4[%187, %c3_95, %c0_96, %c0_97] : memref<2x4x1x32xf32, #tpu.memory_space<vmem>>, vector<1x1x1x32xf32>
    %189 = vector.shape_cast %188 : vector<1x1x1x32xf32> to vector<1x32xf32>
    %190 = vector.broadcast %189 : vector<1x32xf32> to vector<128x32xf32>
    %191 = arith.addf %186, %190 : vector<128x32xf32>
    %192 = arith.index_cast %arg1 : i32 to index
    %c3_98 = arith.constant 3 : index
    %c0_99 = arith.constant 0 : index
    %c0_100 = arith.constant 0 : index
    %193 = vector.load %arg5[%192, %c3_98, %c0_99, %c0_100] : memref<2x4x128x32xbf16, #tpu.memory_space<vmem>>, vector<1x1x128x32xbf16>
    %194 = vector.shape_cast %193 : vector<1x1x128x32xbf16> to vector<128x32xbf16>
    %cst_101 = arith.constant dense<0.000000e+00> : vector<128x32xf32>
    %195 = tpu.matmul %22, %194, %cst_101 {dimension_numbers = #tpu.dot_dimension_numbers<[1], [0], [0], [1], [0, 0, 1, 1], [], []>} : vector<128x128xbf16>, vector<128x32xbf16>, vector<128x32xf32> -> vector<128x32xf32>
    %196 = arith.index_cast %arg1 : i32 to index
    %c3_102 = arith.constant 3 : index
    %c0_103 = arith.constant 0 : index
    %c0_104 = arith.constant 0 : index
    %197 = vector.load %arg6[%196, %c3_102, %c0_103, %c0_104] : memref<2x4x1x32xf32, #tpu.memory_space<vmem>>, vector<1x1x1x32xf32>
    %198 = vector.shape_cast %197 : vector<1x1x1x32xf32> to vector<1x32xf32>
    %199 = vector.broadcast %198 : vector<1x32xf32> to vector<128x32xf32>
    %200 = arith.addf %195, %199 : vector<128x32xf32>
    %201 = arith.index_cast %arg1 : i32 to index
    %c3_105 = arith.constant 3 : index
    %c0_106 = arith.constant 0 : index
    %c0_107 = arith.constant 0 : index
    %202 = vector.load %arg7[%201, %c3_105, %c0_106, %c0_107] : memref<2x4x128x32xbf16, #tpu.memory_space<vmem>>, vector<1x1x128x32xbf16>
    %203 = vector.shape_cast %202 : vector<1x1x128x32xbf16> to vector<128x32xbf16>
    %cst_108 = arith.constant dense<0.000000e+00> : vector<128x32xf32>
    %204 = tpu.matmul %22, %203, %cst_108 {dimension_numbers = #tpu.dot_dimension_numbers<[1], [0], [0], [1], [0, 0, 1, 1], [], []>} : vector<128x128xbf16>, vector<128x32xbf16>, vector<128x32xf32> -> vector<128x32xf32>
    %205 = arith.index_cast %arg1 : i32 to index
    %c3_109 = arith.constant 3 : index
    %c0_110 = arith.constant 0 : index
    %c0_111 = arith.constant 0 : index
    %206 = vector.load %arg8[%205, %c3_109, %c0_110, %c0_111] : memref<2x4x1x32xf32, #tpu.memory_space<vmem>>, vector<1x1x1x32xf32>
    %207 = vector.shape_cast %206 : vector<1x1x1x32xf32> to vector<1x32xf32>
    %208 = vector.broadcast %207 : vector<1x32xf32> to vector<128x32xf32>
    %209 = arith.addf %204, %208 : vector<128x32xf32>
    %210 = vector.shape_cast %191 : vector<128x32xf32> to vector<8x16x32xf32>
    %211 = arith.truncf %210 : vector<8x16x32xf32> to vector<8x16x32xbf16>
    %212 = vector.shape_cast %200 : vector<128x32xf32> to vector<8x16x32xf32>
    %213 = arith.truncf %212 : vector<8x16x32xf32> to vector<8x16x32xbf16>
    %214 = vector.shape_cast %209 : vector<128x32xf32> to vector<8x16x32xf32>
    %215 = arith.truncf %214 : vector<8x16x32xf32> to vector<8x16x32xbf16>
    "tpu.trace_start"() <{level = 10 : i32, message = "bqd,bkd->bqk"}> : () -> ()
    %cst_112 = arith.constant dense<0.000000e+00> : vector<8x16x16xf32>
    %216 = tpu.matmul %211, %213, %cst_112 {dimension_numbers = #tpu.dot_dimension_numbers<[2], [2], [1], [1], [0, 0, 0, 1, 1, 1], [0], [0]>} : vector<8x16x32xbf16>, vector<8x16x32xbf16>, vector<8x16x16xf32> -> vector<8x16x16xf32>
    "tpu.trace_stop"() : () -> ()
    %cst_113 = arith.constant dense<0xFF800000> : vector<8x16xf32>
    %217 = vector.multi_reduction <maximumf>, %216, %cst_113 [2] : vector<8x16x16xf32> to vector<8x16xf32>
    %218 = vector.shape_cast %217 : vector<8x16xf32> to vector<8x16x1xf32>
    %219 = vector.broadcast %218 : vector<8x16x1xf32> to vector<8x16x16xf32>
    %220 = arith.subf %216, %219 : vector<8x16x16xf32>
    %221 = math.exp %220 : vector<8x16x16xf32>
    %cst_114 = arith.constant dense<0.000000e+00> : vector<8x16xf32>
    %222 = vector.multi_reduction <add>, %221, %cst_114 [2] : vector<8x16x16xf32> to vector<8x16xf32>
    %223 = vector.shape_cast %222 : vector<8x16xf32> to vector<8x16x1xf32>
    %224 = tpu.reciprocal %223 {approx = true} : vector<8x16x1xf32> -> vector<8x16x1xf32>
    %225 = vector.broadcast %224 : vector<8x16x1xf32> to vector<8x16x16xf32>
    %226 = arith.mulf %221, %225 : vector<8x16x16xf32>
    %227 = arith.truncf %226 : vector<8x16x16xf32> to vector<8x16x16xbf16>
    "tpu.trace_start"() <{level = 10 : i32, message = "bqk,bkd->bqd"}> : () -> ()
    %cst_115 = arith.constant dense<0.000000e+00> : vector<8x16x32xf32>
    %228 = tpu.matmul %227, %215, %cst_115 {dimension_numbers = #tpu.dot_dimension_numbers<[2], [1], [1], [2], [0, 0, 0, 1, 1, 2], [0], [0]>} : vector<8x16x16xbf16>, vector<8x16x32xbf16>, vector<8x16x32xf32> -> vector<8x16x32xf32>
    "tpu.trace_stop"() : () -> ()
    %229 = vector.shape_cast %228 : vector<8x16x32xf32> to vector<128x32xf32>
    %230 = arith.truncf %229 : vector<128x32xf32> to vector<128x32xbf16>
    %231 = arith.index_cast %arg1 : i32 to index
    %c3_116 = arith.constant 3 : index
    %c0_117 = arith.constant 0 : index
    %c0_118 = arith.constant 0 : index
    %232 = vector.load %arg9[%231, %c3_116, %c0_117, %c0_118] : memref<2x4x32x128xbf16, #tpu.memory_space<vmem>>, vector<1x1x32x128xbf16>
    %233 = vector.shape_cast %232 : vector<1x1x32x128xbf16> to vector<32x128xbf16>
    %cst_119 = arith.constant dense<0.000000e+00> : vector<128x128xf32>
    %234 = tpu.matmul %230, %233, %cst_119 {dimension_numbers = #tpu.dot_dimension_numbers<[1], [0], [0], [1], [0, 0, 1, 1], [], []>} : vector<128x32xbf16>, vector<32x128xbf16>, vector<128x128xf32> -> vector<128x128xf32>
    %235 = arith.addf %182, %234 : vector<128x128xf32>
    %236 = arith.index_cast %arg1 : i32 to index
    %c0_120 = arith.constant 0 : index
    %c0_121 = arith.constant 0 : index
    %237 = vector.load %arg10[%236, %c0_120, %c0_121] : memref<2x1x128xf32, #tpu.memory_space<vmem>>, vector<1x1x128xf32>
    %238 = vector.shape_cast %237 : vector<1x1x128xf32> to vector<1x128xf32>
    %239 = vector.broadcast %238 : vector<1x128xf32> to vector<128x128xf32>
    %240 = arith.addf %235, %239 : vector<128x128xf32>
    %241 = arith.addf %3, %240 : vector<128x128xf32>
    %cst_122 = arith.constant dense<0.000000e+00> : vector<128xf32>
    %242 = vector.multi_reduction <add>, %241, %cst_122 [1] : vector<128x128xf32> to vector<128xf32>
    %243 = vector.shape_cast %242 : vector<128xf32> to vector<128x1xf32>
    %cst_123 = arith.constant 1.280000e+02 : f32
    %244 = vector.broadcast %cst_123 : f32 to vector<128x1xf32>
    %245 = arith.divf %243, %244 : vector<128x1xf32>
    %246 = vector.broadcast %245 : vector<128x1xf32> to vector<128x128xf32>
    %247 = arith.subf %241, %246 : vector<128x128xf32>
    %248 = arith.mulf %247, %247 : vector<128x128xf32>
    %cst_124 = arith.constant dense<0.000000e+00> : vector<128xf32>
    %249 = vector.multi_reduction <add>, %248, %cst_124 [1] : vector<128x128xf32> to vector<128xf32>
    %250 = vector.shape_cast %249 : vector<128xf32> to vector<128x1xf32>
    %cst_125 = arith.constant 1.280000e+02 : f32
    %251 = vector.broadcast %cst_125 : f32 to vector<128x1xf32>
    %252 = arith.divf %250, %251 : vector<128x1xf32>
    %253 = vector.broadcast %245 : vector<128x1xf32> to vector<128x128xf32>
    %254 = arith.subf %241, %253 : vector<128x128xf32>
    %cst_126 = arith.constant 9.99999974E-6 : f32
    %255 = vector.broadcast %cst_126 : f32 to vector<128x1xf32>
    %256 = arith.addf %252, %255 : vector<128x1xf32>
    %257 = math.rsqrt %256 : vector<128x1xf32>
    %258 = vector.broadcast %257 : vector<128x1xf32> to vector<128x128xf32>
    %259 = arith.mulf %254, %258 : vector<128x128xf32>
    %260 = arith.truncf %259 : vector<128x128xf32> to vector<128x128xbf16>
    %261 = arith.index_cast %arg1 : i32 to index
    %c0_127 = arith.constant 0 : index
    %c0_128 = arith.constant 0 : index
    %262 = vector.load %arg11[%261, %c0_127, %c0_128] : memref<2x128x256xbf16, #tpu.memory_space<vmem>>, vector<1x128x256xbf16>
    %263 = vector.shape_cast %262 : vector<1x128x256xbf16> to vector<128x256xbf16>
    %cst_129 = arith.constant dense<0.000000e+00> : vector<128x256xf32>
    %264 = tpu.matmul %260, %263, %cst_129 {dimension_numbers = #tpu.dot_dimension_numbers<[1], [0], [0], [1], [0, 0, 1, 1], [], []>} : vector<128x128xbf16>, vector<128x256xbf16>, vector<128x256xf32> -> vector<128x256xf32>
    %265 = arith.index_cast %arg1 : i32 to index
    %c0_130 = arith.constant 0 : index
    %c0_131 = arith.constant 0 : index
    %266 = vector.load %arg12[%265, %c0_130, %c0_131] : memref<2x1x256xf32, #tpu.memory_space<vmem>>, vector<1x1x256xf32>
    %267 = vector.shape_cast %266 : vector<1x1x256xf32> to vector<1x256xf32>
    %268 = vector.broadcast %267 : vector<1x256xf32> to vector<128x256xf32>
    %269 = arith.addf %264, %268 : vector<128x256xf32>
    %270 = arith.mulf %269, %269 : vector<128x256xf32>
    %271 = arith.mulf %269, %270 : vector<128x256xf32>
    %cst_132 = arith.constant 4.471500e-02 : f32
    %272 = vector.broadcast %cst_132 : f32 to vector<128x256xf32>
    %273 = arith.mulf %272, %271 : vector<128x256xf32>
    %274 = arith.addf %269, %273 : vector<128x256xf32>
    %cst_133 = arith.constant 0.797884583 : f32
    %275 = vector.broadcast %cst_133 : f32 to vector<128x256xf32>
    %276 = arith.mulf %275, %274 : vector<128x256xf32>
    %277 = math.tanh %276 : vector<128x256xf32>
    %cst_134 = arith.constant 1.000000e+00 : f32
    %278 = vector.broadcast %cst_134 : f32 to vector<128x256xf32>
    %279 = arith.addf %278, %277 : vector<128x256xf32>
    %cst_135 = arith.constant 5.000000e-01 : f32
    %280 = vector.broadcast %cst_135 : f32 to vector<128x256xf32>
    %281 = arith.mulf %280, %279 : vector<128x256xf32>
    %282 = arith.mulf %269, %281 : vector<128x256xf32>
    %283 = arith.truncf %282 : vector<128x256xf32> to vector<128x256xbf16>
    %284 = arith.index_cast %arg1 : i32 to index
    %c0_136 = arith.constant 0 : index
    %c0_137 = arith.constant 0 : index
    %285 = vector.load %arg13[%284, %c0_136, %c0_137] : memref<2x256x128xbf16, #tpu.memory_space<vmem>>, vector<1x256x128xbf16>
    %286 = vector.shape_cast %285 : vector<1x256x128xbf16> to vector<256x128xbf16>
    %cst_138 = arith.constant dense<0.000000e+00> : vector<128x128xf32>
    %287 = tpu.matmul %283, %286, %cst_138 {dimension_numbers = #tpu.dot_dimension_numbers<[1], [0], [0], [1], [0, 0, 1, 1], [], []>} : vector<128x256xbf16>, vector<256x128xbf16>, vector<128x128xf32> -> vector<128x128xf32>
    %288 = arith.index_cast %arg1 : i32 to index
    %c0_139 = arith.constant 0 : index
    %c0_140 = arith.constant 0 : index
    %289 = vector.load %arg14[%288, %c0_139, %c0_140] : memref<2x1x128xf32, #tpu.memory_space<vmem>>, vector<1x1x128xf32>
    %290 = vector.shape_cast %289 : vector<1x1x128xf32> to vector<1x128xf32>
    %291 = vector.broadcast %290 : vector<1x128xf32> to vector<128x128xf32>
    %292 = arith.addf %287, %291 : vector<128x128xf32>
    %293 = arith.addf %241, %292 : vector<128x128xf32>
    %c0_141 = arith.constant 0 : index
    %c0_142 = arith.constant 0 : index
    %294 = vector.load %arg16[%c0_141, %c0_142] : memref<128x128xf32, #tpu.memory_space<vmem>>, vector<128x128xf32>
    tpu.vector_store %arg16[%c0_141, %c0_142], %293 {strides = array<i32>} : memref<128x128xf32, #tpu.memory_space<vmem>>, vector<128x128xf32>,
    %c1_i32 = arith.constant 1 : i32
    %295 = arith.cmpi eq, %arg1, %c1_i32 : i32
    %296 = arith.extui %295 : i1 to i32
    %c0_i32_143 = arith.constant 0 : i32
    %297 = arith.cmpi ne, %296, %c0_i32_143 : i32
    scf.if %297 {
      %298 = vector.shape_cast %293 : vector<128x128xf32> to vector<8x16x128xf32>
      %cst_144 = arith.constant dense<0.000000e+00> : vector<8x128xf32>
      %299 = vector.multi_reduction <add>, %298, %cst_144 [1] : vector<8x16x128xf32> to vector<8x128xf32>
      %cst_145 = arith.constant 1.600000e+01 : f32
      %300 = vector.broadcast %cst_145 : f32 to vector<8x128xf32>
      %301 = arith.divf %299, %300 : vector<8x128xf32>
      %302 = arith.mulf %301, %301 : vector<8x128xf32>
      %cst_146 = arith.constant dense<0.000000e+00> : vector<8xf32>
      %303 = vector.multi_reduction <add>, %302, %cst_146 [1] : vector<8x128xf32> to vector<8xf32>
      %304 = vector.shape_cast %303 : vector<8xf32> to vector<8x1xf32>
      %cst_147 = arith.constant 9.99999996E-13 : f32
      %305 = vector.broadcast %cst_147 : f32 to vector<8x1xf32>
      %306 = arith.addf %304, %305 : vector<8x1xf32>
      %307 = math.rsqrt %306 : vector<8x1xf32>
      %308 = vector.broadcast %307 : vector<8x1xf32> to vector<8x128xf32>
      %309 = arith.mulf %301, %308 : vector<8x128xf32>
      %310 = arith.truncf %309 : vector<8x128xf32> to vector<8x128xbf16>
      %c0_148 = arith.constant 0 : index
      %c0_149 = arith.constant 0 : index
      %311 = vector.load %arg15[%c0_148, %c0_149] : memref<8x128xbf16, #tpu.memory_space<vmem>>, vector<8x128xbf16>
      tpu.vector_store %arg15[%c0_148, %c0_149], %310 {strides = array<i32>} : memref<8x128xbf16, #tpu.memory_space<vmem>>, vector<8x128xbf16>,
    } else {
    }
    return
  }
  func.func @transform_0(%arg0: i32, %arg1: i32) -> (i32, i32) {
    %c0_i32 = arith.constant 0 : i32
    %c0_i32_0 = arith.constant 0 : i32
    return %arg0, %c0_i32 : i32, i32
  }
  func.func @transform_1(%arg0: i32, %arg1: i32) -> (i32, i32, i32, i32) {
    %c0_i32 = arith.constant 0 : i32
    %c0_i32_0 = arith.constant 0 : i32
    %c0_i32_1 = arith.constant 0 : i32
    %c0_i32_2 = arith.constant 0 : i32
    %c0_i32_3 = arith.constant 0 : i32
    return %c0_i32, %c0_i32_0, %c0_i32_1, %c0_i32_2 : i32, i32, i32, i32
  }
  func.func @transform_2(%arg0: i32, %arg1: i32) -> (i32, i32, i32, i32) {
    %c0_i32 = arith.constant 0 : i32
    %c0_i32_0 = arith.constant 0 : i32
    %c0_i32_1 = arith.constant 0 : i32
    %c0_i32_2 = arith.constant 0 : i32
    %c0_i32_3 = arith.constant 0 : i32
    return %c0_i32, %c0_i32_0, %c0_i32_1, %c0_i32_2 : i32, i32, i32, i32
  }
  func.func @transform_3(%arg0: i32, %arg1: i32) -> (i32, i32, i32, i32) {
    %c0_i32 = arith.constant 0 : i32
    %c0_i32_0 = arith.constant 0 : i32
    %c0_i32_1 = arith.constant 0 : i32
    %c0_i32_2 = arith.constant 0 : i32
    %c0_i32_3 = arith.constant 0 : i32
    return %c0_i32, %c0_i32_0, %c0_i32_1, %c0_i32_2 : i32, i32, i32, i32
  }
  func.func @transform_4(%arg0: i32, %arg1: i32) -> (i32, i32, i32, i32) {
    %c0_i32 = arith.constant 0 : i32
    %c0_i32_0 = arith.constant 0 : i32
    %c0_i32_1 = arith.constant 0 : i32
    %c0_i32_2 = arith.constant 0 : i32
    %c0_i32_3 = arith.constant 0 : i32
    return %c0_i32, %c0_i32_0, %c0_i32_1, %c0_i32_2 : i32, i32, i32, i32
  }
  func.func @transform_5(%arg0: i32, %arg1: i32) -> (i32, i32, i32, i32) {
    %c0_i32 = arith.constant 0 : i32
    %c0_i32_0 = arith.constant 0 : i32
    %c0_i32_1 = arith.constant 0 : i32
    %c0_i32_2 = arith.constant 0 : i32
    %c0_i32_3 = arith.constant 0 : i32
    return %c0_i32, %c0_i32_0, %c0_i32_1, %c0_i32_2 : i32, i32, i32, i32
  }
  func.func @transform_6(%arg0: i32, %arg1: i32) -> (i32, i32, i32, i32) {
    %c0_i32 = arith.constant 0 : i32
    %c0_i32_0 = arith.constant 0 : i32
    %c0_i32_1 = arith.constant 0 : i32
    %c0_i32_2 = arith.constant 0 : i32
    %c0_i32_3 = arith.constant 0 : i32
    return %c0_i32, %c0_i32_0, %c0_i32_1, %c0_i32_2 : i32, i32, i32, i32
  }
  func.func @transform_7(%arg0: i32, %arg1: i32) -> (i32, i32, i32, i32) {
    %c0_i32 = arith.constant 0 : i32
    %c0_i32_0 = arith.constant 0 : i32
    %c0_i32_1 = arith.constant 0 : i32
    %c0_i32_2 = arith.constant 0 : i32
    %c0_i32_3 = arith.constant 0 : i32
    return %c0_i32, %c0_i32_0, %c0_i32_1, %c0_i32_2 : i32, i32, i32, i32
  }
  func.func @transform_8(%arg0: i32, %arg1: i32) -> (i32, i32, i32) {
    %c0_i32 = arith.constant 0 : i32
    %c0_i32_0 = arith.constant 0 : i32
    %c0_i32_1 = arith.constant 0 : i32
    %c0_i32_2 = arith.constant 0 : i32
    return %c0_i32, %c0_i32_0, %c0_i32_1 : i32, i32, i32
  }
  func.func @transform_9(%arg0: i32, %arg1: i32) -> (i32, i32, i32) {
    %c0_i32 = arith.constant 0 : i32
    %c0_i32_0 = arith.constant 0 : i32
    %c0_i32_1 = arith.constant 0 : i32
    %c0_i32_2 = arith.constant 0 : i32
    return %c0_i32, %c0_i32_0, %c0_i32_1 : i32, i32, i32
  }
  func.func @transform_10(%arg0: i32, %arg1: i32) -> (i32, i32, i32) {
    %c0_i32 = arith.constant 0 : i32
    %c0_i32_0 = arith.constant 0 : i32
    %c0_i32_1 = arith.constant 0 : i32
    %c0_i32_2 = arith.constant 0 : i32
    return %c0_i32, %c0_i32_0, %c0_i32_1 : i32, i32, i32
  }
  func.func @transform_11(%arg0: i32, %arg1: i32) -> (i32, i32, i32) {
    %c0_i32 = arith.constant 0 : i32
    %c0_i32_0 = arith.constant 0 : i32
    %c0_i32_1 = arith.constant 0 : i32
    %c0_i32_2 = arith.constant 0 : i32
    return %c0_i32, %c0_i32_0, %c0_i32_1 : i32, i32, i32
  }
  func.func @transform_12(%arg0: i32, %arg1: i32) -> (i32, i32, i32) {
    %c0_i32 = arith.constant 0 : i32
    %c0_i32_0 = arith.constant 0 : i32
    %c0_i32_1 = arith.constant 0 : i32
    %c0_i32_2 = arith.constant 0 : i32
    return %c0_i32, %c0_i32_0, %c0_i32_1 : i32, i32, i32
  }
  func.func @transform_13(%arg0: i32, %arg1: i32) -> (i32, i32) {
    %c0_i32 = arith.constant 0 : i32
    %c0_i32_0 = arith.constant 0 : i32
    return %arg0, %c0_i32 : i32, i32
  }
}

</mosaic_0001>

<bundles_post_ra>
// kernel: _forward.1
= control target key start
LH: loop header
LB: loop body
LE: loop exit
PB: predicated region body
PF: predicated region fallthrough
CT: control target
= control target key end

     0   :  { %18 = vsyncpa [#allocation4], 0  ;;  %s11061_s25 = smov 0   ;;  %s11063_s26 = smov 0   ;;  %s13763_s0 = inlined_call_operand.vmem [shape: bf16[128,128], index: 0, kind: input, shape index: {}]   ;;  %s13764_s1 = inlined_call_operand.vmem [shape: bf16[2,4,128,32], index: 1, kind: input, shape index: {}]   ;;  %s13765_s2 = inlined_call_operand.vmem [shape: f32[2,4,1,32], index: 2, kind: input, shape index: {}]   ;;  %s13766_s3 = inlined_call_operand.vmem [shape: bf16[2,4,128,32], index: 3, kind: input, shape index: {}]   ;;  %s13767_s4 = inlined_call_operand.vmem [shape: f32[2,4,1,32], index: 4, kind: input, shape index: {}]   ;;  %s13768_s5 = inlined_call_operand.vmem [shape: bf16[2,4,128,32], index: 5, kind: input, shape index: {}]   ;;  %s13769_s6 = inlined_call_operand.vmem [shape: f32[2,4,1,32], index: 6, kind: input, shape index: {}]   ;;  %s13770_s7 = inlined_call_operand.vmem [shape: bf16[2,4,32,128], index: 7, kind: input, shape index: {}]   ;;  %s13771_s8 = inlined_call_operand.vmem [shape: f32[2,1,128], index: 8, kind: input, shape index: {}]   ;;  %s13772_s9 = inlined_call_operand.vmem [shape: bf16[2,128,256], index: 9, kind: input, shape index: {}]   ;;  %s13773_s10 = inlined_call_operand.vmem [shape: f32[2,1,256], index: 10, kind: input, shape index: {}]   ;;  %s13774_s11 = inlined_call_operand.vmem [shape: bf16[2,256,128], index: 11, kind: input, shape index: {}]   ;;  %s13775_s12 = inlined_call_operand.vmem [shape: f32[2,1,128], index: 12, kind: input, shape index: {}]   ;;  %s13776_s13 = inlined_call_operand.hbm [shape: bf16[8,128], index: 13, kind: output, shape index: {}]  }
   0x1   :  { %s11065_s27 = smov 0  }
   0x2 LB: > { %s8495_s28 = sadd.s32 4294967295, %s10985_s27   ;;  %s33_s29 = sadd.s32 1, %s10981_s26  ;;  %s10985_s27 = sphi %s11065_s27, %s24_s27   ;;  %s10981_s26 = sphi %s11063_s26, %s13826_s26   ;;  %s10977_s25 = sphi %s11061_s25, %s13825_s25  }
   0x3   : > { %p34_p0 = scmp.ge.s32.totalorder %s33_s29, 2  ;;  %p8498_p1 = scmp.ge.s32.totalorder %s10985_s27, 1 }
   0x4   : > { %p401_p2 = scmp.lt.s32.totalorder %s10985_s27, 3 }
   0x5   : > { %s13828_s29 = smov (%p34_p0, %s33_s29), 0 }
   0x6   : > { %p402_p3 = pnand %p8498_p1, %p401_p2 }
   0x8   : > { %405 = sbr.rel (%p402_p3) target bundleno = 5318 (0x14c6), region = 72 }
   0xf   : > { %p8499_p4 = scmp.ne.s32.totalorder %s10977_s25, 0 }
  0x10   : > { %v8995_v0 = vld [vmem:[%s13763_s0] sm:$0xff] (!%p8499_p4)   ;;  %v9026_v1 = vld [vmem:[%s13763_s0 + $0x8] sm:$0xff] (!%p8499_p4)   ;;  %v9027_v2 = vld [vmem:[%s13763_s0 + $0x10] sm:$0xff] (!%p8499_p4)  }
  0x11   : > { %450 = sbr.rel (%p8499_p4) target bundleno = 27 (0x1b), region = 76  ;;  %v8996_v3 = vunpack.c.l.bf16 (!%p8499_p4), %v8995_v0  ;;  %v8997_v4 = vunpack.c.h.bf16 (!%p8499_p4), %v8995_v0  ;;  %v9000_v5 = vunpack.c.l.bf16 (!%p8499_p4), %v9026_v1  ;;  %v9001_v6 = vunpack.c.h.bf16 (!%p8499_p4), %v9026_v1  ;;  %v9028_v7 = vld [vmem:[%s13763_s0 + $0x18] sm:$0xff] (!%p8499_p4)   ;;  %v9029_v8 = vld [vmem:[%s13763_s0 + $0x20] sm:$0xff] (!%p8499_p4)   ;;  %v9030_v9 = vld [vmem:[%s13763_s0 + $0x28] sm:$0xff] (!%p8499_p4)  }
  0x12   : > { %v9004_v10 = vunpack.c.l.bf16 (!%p8499_p4), %v9027_v2  ;;  %v9005_v11 = vunpack.c.h.bf16 (!%p8499_p4), %v9027_v2  ;;  %v9008_v12 = vunpack.c.l.bf16 (!%p8499_p4), %v9028_v7  ;;  %v9009_v13 = vunpack.c.h.bf16 (!%p8499_p4), %v9028_v7  ;;  %v9031_v14 = vld [vmem:[%s13763_s0 + $0x30] sm:$0xff] (!%p8499_p4)   ;;  %v9032_v15 = vld [vmem:[%s13763_s0 + $0x38] sm:$0xff] (!%p8499_p4)  }
  0x13   : > { %483 = vst [vmem:[#allocation2] sm:$0xff] (!%p8499_p4), %v8996_v3  ;;  %484 = vst [vmem:[#allocation2 + $0x8] sm:$0xff] (!%p8499_p4), %v8997_v4  ;;  %v9012_v16 = vunpack.c.l.bf16 (!%p8499_p4), %v9029_v8  ;;  %v9013_v17 = vunpack.c.h.bf16 (!%p8499_p4), %v9029_v8  ;;  %v9016_v18 = vunpack.c.l.bf16 (!%p8499_p4), %v9030_v9  ;;  %v9017_v19 = vunpack.c.h.bf16 (!%p8499_p4), %v9030_v9 }
  0x14   : > { %485 = vst [vmem:[#allocation2 + $0x10] sm:$0xff] (!%p8499_p4), %v9000_v5  ;;  %486 = vst [vmem:[#allocation2 + $0x18] sm:$0xff] (!%p8499_p4), %v9001_v6  ;;  %v9020_v20 = vunpack.c.l.bf16 (!%p8499_p4), %v9031_v14  ;;  %v9021_v21 = vunpack.c.h.bf16 (!%p8499_p4), %v9031_v14  ;;  %v9024_v22 = vunpack.c.l.bf16 (!%p8499_p4), %v9032_v15  ;;  %v9025_v23 = vunpack.c.h.bf16 (!%p8499_p4), %v9032_v15 }
  0x15   : > { %487 = vst [vmem:[#allocation2 + $0x20] sm:$0xff] (!%p8499_p4), %v9004_v10  ;;  %488 = vst [vmem:[#allocation2 + $0x28] sm:$0xff] (!%p8499_p4), %v9005_v11 }
  0x16   : > { %489 = vst [vmem:[#allocation2 + $0x30] sm:$0xff] (!%p8499_p4), %v9008_v12  ;;  %490 = vst [vmem:[#allocation2 + $0x38] sm:$0xff] (!%p8499_p4), %v9009_v13 }
  0x17   : > { %491 = vst [vmem:[#allocation2 + $0x40] sm:$0xff] (!%p8499_p4), %v9012_v16  ;;  %492 = vst [vmem:[#allocation2 + $0x48] sm:$0xff] (!%p8499_p4), %v9013_v17 }
  0x18   : > { %493 = vst [vmem:[#allocation2 + $0x50] sm:$0xff] %v9016_v18  ;;  %494 = vst [vmem:[#allocation2 + $0x58] sm:$0xff] %v9017_v19 }
  0x19   : > { %495 = vst [vmem:[#allocation2 + $0x60] sm:$0xff] %v9020_v20  ;;  %496 = vst [vmem:[#allocation2 + $0x68] sm:$0xff] %v9021_v21 }
  0x1a   : > { %497 = vst [vmem:[#allocation2 + $0x70] sm:$0xff] %v9024_v22  ;;  %498 = vst [vmem:[#allocation2 + $0x78] sm:$0xff] %v9025_v23 }
  0x1b PF: > { %s11138_s17 = sshll.u32 %s10977_s25, 8  ;;  %vm10988_vm0 = vmmov 0   ;;  %s11323_s15 = sshll.u32 %s10977_s25, 2  ;;  %vm1239_vm1 = vcmask 261120   ;;  %vm1616_vm2 = vcmask 130048  }
  0x1c   : > { %s11144_s20 = scalar_lea.vmem %s13764_s1, %s11138_s17  ;;  %s11150_s23 = scalar_lea.vmem %s13766_s3, %s11138_s17 }
  0x1d   : > { %v499_v24 = vld [vmem:[#allocation2] sm:$0xff]  ;;  %v500_v26 = vld [vmem:[#allocation2 + $0x8] sm:$0xff]  ;;  %v10391_v23 = vld [vmem:[%s11144_s20 + $0x10] sm:$0xff]   ;;  %s11246_s14 = scalar_lea.vmem %s13768_s5, %s11138_s17  ;;  %s11329_s18 = scalar_lea.vmem %s13765_s2, %s11323_s15 }
  0x1e   : > { %v501_v25 = vld [vmem:[#allocation2 + $0x10] sm:$0xff]  ;;  %515 = vadd.xlane.f32.xlu0 %v499_v24  ;;  %v502_v27 = vld [vmem:[#allocation2 + $0x18] sm:$0xff]  ;;  %v10387_v40 = vld [vmem:[%s11144_s20] sm:$0xff]   ;;  %s11335_s22 = scalar_lea.vmem %s13767_s4, %s11323_s15  ;;  %s11435_s16 = scalar_lea.vmem %s13769_s6, %s11323_s15 }
  0x1f   : > { %519 = vadd.xlane.f32.xlu1 %v501_v25  ;;  %v503_v28 = vld [vmem:[#allocation2 + $0x20] sm:$0xff]  ;;  %v504_v29 = vld [vmem:[#allocation2 + $0x28] sm:$0xff]  ;;  %9457 = vmatprep.subr.bf16.mxu0 %v10387_v40  ;;  %s8971_s15 = sshll.u32 %s10977_s25, 6  ;;  %s8920_s19 = sshll.u32 %s10977_s25, 1 }
  0x20   : > { %v11107_v30 = vld [vmem:[#allocation2 + $0x30] sm:$0xff]  ;;  %v11109_v31 = vld [vmem:[#allocation2 + $0x38] sm:$0xff]  ;;  %v11125_v36 = vld [vmem:[#allocation2 + $0x60] sm:$0xff]  ;;  %9458 = vmatpush3.bf16.msra.mxu0 %v10387_v40  ;;  %s12208_s21 = scalar_lea.vmem %s13770_s7, %s8971_s15  ;;  %p8955_p5 = scmp.ne.s32.totalorder %s10977_s25, 1 }
  0x21   : > { %v11113_v32 = vld [vmem:[#allocation2 + $0x40] sm:$0xff]  ;;  %v11115_v33 = vld [vmem:[#allocation2 + $0x48] sm:$0xff]  ;;  %v11131_v38 = vld [vmem:[#allocation2 + $0x70] sm:$0xff]  ;;  %vm8236_vm3 = vcmask (!%p8955_p5), 1041409   ;;  %vm8238_vm4 = vcmask (!%p8955_p5), 1042434   ;;  %vm8240_vm5 = vcmask (!%p8955_p5), 1043459  }
  0x22   : > { %517 = vadd.xlane.f32.xlu0 %v500_v26  ;;  %v11119_v34 = vld [vmem:[#allocation2 + $0x50] sm:$0xff]  ;;  %v11121_v35 = vld [vmem:[#allocation2 + $0x58] sm:$0xff]  ;;  %v11127_v37 = vld [vmem:[#allocation2 + $0x68] sm:$0xff]  ;;  %vm8242_vm6 = vcmask (!%p8955_p5), 1044484   ;;  %vm8244_vm7 = vcmask (!%p8955_p5), 1045509   ;;  %vm8246_vm8 = vcmask (!%p8955_p5), 1046534  }
  0x23   : > { %521 = vadd.xlane.f32.xlu1 %v502_v27  ;;  %v11133_v39 = vld [vmem:[#allocation2 + $0x78] sm:$0xff]  ;;  %v10388_v41 = vld [vmem:[%s11150_s23] sm:$0xff]   ;;  %v10389_v42 = vld [vmem:[%s11144_s20 + $0x8] sm:$0xff]   ;;  %vm8248_vm9 = vcmask (!%p8955_p5), 1047559  }
  0x24   : > { %9489 = vmatprep.subr.bf16.mxu1 %v10388_v41  ;;  %v10390_v43 = vld [vmem:[%s11150_s23 + $0x8] sm:$0xff]   ;;  %9459 = vmatprep.subr.bf16.mxu0 %v10389_v42  ;;  %v10393_v40 = vld [vmem:[%s11144_s20 + $0x18] sm:$0xff]  }
  0x25   : > { %9490 = vmatpush3.bf16.msra.mxu1 %v10388_v41  ;;  %9460 = vmatpush3.bf16.msra.mxu0 %v10389_v42  ;;  %v10394_v41 = vld [vmem:[%s11150_s23 + $0x18] sm:$0xff]  }
  0x26   : > { %523 = vadd.xlane.f32.xlu0 %v503_v28  ;;  %9491 = vmatprep.subr.bf16.mxu1 %v10390_v43 }
  0x27   : > { %525 = vadd.xlane.f32.xlu1 %v504_v29  ;;  %9461 = vmatprep.subr.bf16.mxu0 %v10391_v23 }
  0x29   : > { %9492 = vmatpush3.bf16.msra.mxu1 %v10390_v43  ;;  %9462 = vmatpush3.bf16.msra.mxu0 %v10391_v23 }
  0x2a   : > { %527 = vadd.xlane.f32.xlu0 %v11107_v30  ;;  %9463 = vmatprep.subr.bf16.mxu0 %v10393_v40 }
  0x2b   : > { %529 = vadd.xlane.f32.xlu1 %v11109_v31 }
  0x2d   : > { %9464 = vmatpush3.bf16.msra.mxu0 %v10393_v40 }
  0x2e   : > { %531 = vadd.xlane.f32.xlu0 %v11113_v32 }
  0x2f   : > { %533 = vadd.xlane.f32.xlu1 %v11115_v33 }
  0x32   : > { %535 = vadd.xlane.f32.xlu0 %v11119_v34 }
  0x33   : > { %537 = vadd.xlane.f32.xlu1 %v11121_v35 }
  0x36   : > { %539 = vadd.xlane.f32.xlu0 %v11125_v36 }
  0x37   : > { %541 = vadd.xlane.f32.xlu1 %v11127_v37 }
  0x3a   : > { %543 = vadd.xlane.f32.xlu0 %v11131_v38 }
  0x3b   : > { %545 = vadd.xlane.f32.xlu1 %v11133_v39 }
  0xab   : > { %v516_v44 = vpop.xlane.xlu0 %515 }
  0xac   : > { %v520_v45 = vpop.xlane.xlu1 %519  ;;  %v548_v46 = vmul.f32 0.0078125, %v516_v44 }
  0xad   : > { %v550_v47 = vmul.f32 0.0078125, %v520_v45 }
  0xae   : > { %v11156_v48 = vsub.f32 %v499_v24, %v548_v46  ;;  %v10392_v24 = vld [vmem:[%s11150_s23 + $0x10] sm:$0xff]  }
  0xaf   : > { %v11158_v49 = vsub.f32 %v501_v25, %v550_v47  ;;  %v518_v50 = vpop.xlane.xlu0 %517  ;;  %9493 = vmatprep.subr.bf16.mxu1 %v10392_v24 }
  0xb0   : > { %v522_v51 = vpop.xlane.xlu1 %521  ;;  %v549_v52 = vmul.f32 0.0078125, %v518_v50  ;;  %v580_v53 = vmul.f32 %v11156_v48, %v11156_v48  ;;  %9494 = vmatpush3.bf16.msra.mxu1 %v10392_v24  ;;  %v10395_v50 = vld [vmem:[%s11144_s20 + $0x20] sm:$0xff]  }
  0xb1   : > { %v551_v54 = vmul.f32 0.0078125, %v522_v51  ;;  %v582_v55 = vmul.f32 %v11158_v49, %v11158_v49  ;;  %9495 = vmatprep.subr.bf16.mxu1 %v10394_v41  ;;  %v10396_v51 = vld [vmem:[%s11150_s23 + $0x20] sm:$0xff]   ;;  %9465 = vmatprep.subr.bf16.mxu0 %v10395_v50 }
  0xb2   : > { %596 = vadd.xlane.f32.xlu0 %v580_v53  ;;  %v11164_v56 = vsub.f32 %v500_v26, %v549_v52  ;;  %9466 = vmatpush3.bf16.msra.mxu0 %v10395_v50  ;;  %v10398_v53 = vld [vmem:[%s11150_s23 + $0x28] sm:$0xff]  }
  0xb3   : > { %v11166_v57 = vsub.f32 %v502_v27, %v551_v54  ;;  %v524_v58 = vpop.xlane.xlu0 %523  ;;  %v10399_v54 = vld [vmem:[%s11144_s20 + $0x30] sm:$0xff]  }
  0xb4   : > { %v526_v59 = vpop.xlane.xlu1 %525  ;;  %v552_v60 = vmul.f32 0.0078125, %v524_v58  ;;  %v581_v61 = vmul.f32 %v11164_v56, %v11164_v56  ;;  %9496 = vmatpush3.bf16.msra.mxu1 %v10394_v41  ;;  %v10401_v58 = vld [vmem:[%s11144_s20 + $0x38] sm:$0xff]  }
  0xb5   : > { %v553_v62 = vmul.f32 0.0078125, %v526_v59  ;;  %v583_v63 = vmul.f32 %v11166_v57, %v11166_v57  ;;  %9497 = vmatprep.subr.bf16.mxu1 %v10396_v51  ;;  %v10402_v59 = vld [vmem:[%s11150_s23 + $0x38] sm:$0xff]  }
  0xb6   : > { %600 = vadd.xlane.f32.xlu0 %v582_v55  ;;  %598 = vadd.xlane.f32.xlu1 %v581_v61  ;;  %v11172_v0 = vsub.f32 %v503_v28, %v552_v60  ;;  %v10400_v55 = vld [vmem:[%s11150_s23 + $0x30] sm:$0xff]   ;;  %v11249_v60 = vld [vmem:[%s11246_s14] sm:$0xff]  }
  0xb7   : > { %v11174_v1 = vsub.f32 %v504_v29, %v553_v62  ;;  %v528_v2 = vpop.xlane.xlu0 %527 }
  0xb8   : > { %v530_v3 = vpop.xlane.xlu1 %529  ;;  %v554_v4 = vmul.f32 0.0078125, %v528_v2  ;;  %v584_v5 = vmul.f32 %v11172_v0, %v11172_v0  ;;  %9498 = vmatpush3.bf16.msra.mxu1 %v10396_v51 }
  0xb9   : > { %v555_v6 = vmul.f32 0.0078125, %v530_v3  ;;  %v585_v7 = vmul.f32 %v11174_v1, %v11174_v1  ;;  %9499 = vmatprep.subr.bf16.mxu1 %v10398_v53 }
  0xba   : > { %602 = vadd.xlane.f32.xlu1 %v583_v63  ;;  %604 = vadd.xlane.f32.xlu0 %v584_v5  ;;  %v11181_v8 = vsub.f32 %v11107_v30, %v554_v4 }
  0xbb   : > { %v11184_v9 = vsub.f32 %v11109_v31, %v555_v6  ;;  %v532_v10 = vpop.xlane.xlu0 %531 }
  0xbc   : > { %v534_v11 = vpop.xlane.xlu1 %533  ;;  %v556_v12 = vmul.f32 0.0078125, %v532_v10  ;;  %v586_v13 = vmul.f32 %v11181_v8, %v11181_v8  ;;  %9500 = vmatpush3.bf16.msra.mxu1 %v10398_v53 }
  0xbd   : > { %v557_v14 = vmul.f32 0.0078125, %v534_v11  ;;  %v587_v15 = vmul.f32 %v11184_v9, %v11184_v9  ;;  %9501 = vmatprep.subr.bf16.mxu1 %v10400_v55 }
  0xbe   : > { %606 = vadd.xlane.f32.xlu1 %v585_v7  ;;  %608 = vadd.xlane.f32.xlu0 %v586_v13  ;;  %v11191_v16 = vsub.f32 %v11113_v32, %v556_v12 }
  0xbf   : > { %v11194_v17 = vsub.f32 %v11115_v33, %v557_v14  ;;  %v536_v18 = vpop.xlane.xlu0 %535 }
  0xc0   : > { %v538_v19 = vpop.xlane.xlu1 %537  ;;  %v558_v20 = vmul.f32 0.0078125, %v536_v18  ;;  %v588_v21 = vmul.f32 %v11191_v16, %v11191_v16  ;;  %9502 = vmatpush3.bf16.msra.mxu1 %v10400_v55 }
  0xc1   : > { %v559_v22 = vmul.f32 0.0078125, %v538_v19  ;;  %v589_v25 = vmul.f32 %v11194_v17, %v11194_v17  ;;  %9503 = vmatprep.subr.bf16.mxu1 %v10402_v59 }
  0xc2   : > { %610 = vadd.xlane.f32.xlu1 %v587_v15  ;;  %612 = vadd.xlane.f32.xlu0 %v588_v21  ;;  %v11203_v26 = vsub.f32 %v11119_v34, %v558_v20 }
  0xc3   : > { %v11206_v27 = vsub.f32 %v11121_v35, %v559_v22  ;;  %v540_v28 = vpop.xlane.xlu0 %539 }
  0xc4   : > { %v542_v29 = vpop.xlane.xlu1 %541  ;;  %v560_v30 = vmul.f32 0.0078125, %v540_v28  ;;  %v590_v31 = vmul.f32 %v11203_v26, %v11203_v26  ;;  %9504 = vmatpush3.bf16.msra.mxu1 %v10402_v59  ;;  %v10404_v59 = vld [vmem:[%s11246_s14 + $0x8] sm:$0xff]  }
  0xc5   : > { %v561_v32 = vmul.f32 0.0078125, %v542_v29  ;;  %v591_v33 = vmul.f32 %v11206_v27, %v11206_v27 }
  0xc6   : > { %614 = vadd.xlane.f32.xlu1 %v589_v25  ;;  %616 = vadd.xlane.f32.xlu0 %v590_v31  ;;  %v11213_v34 = vsub.f32 %v11125_v36, %v560_v30 }
  0xc7   : > { %v11216_v35 = vsub.f32 %v11127_v37, %v561_v32  ;;  %v544_v42 = vpop.xlane.xlu0 %543 }
  0xc8   : > { %v546_v43 = vpop.xlane.xlu1 %545  ;;  %v562_v44 = vmul.f32 0.0078125, %v544_v42  ;;  %v592_v45 = vmul.f32 %v11213_v34, %v11213_v34 }
  0xc9   : > { %v563_v46 = vmul.f32 0.0078125, %v546_v43  ;;  %v593_v36 = vmul.f32 %v11216_v35, %v11216_v35 }
  0xca   : > { %618 = vadd.xlane.f32.xlu1 %v591_v33  ;;  %620 = vadd.xlane.f32.xlu0 %v592_v45  ;;  %v11225_v37 = vsub.f32 %v11131_v38, %v562_v44 }
  0xcb   : > { %v11228_v47 = vsub.f32 %v11133_v39, %v563_v46  ;;  %v10397_v39 = vld [vmem:[%s11144_s20 + $0x28] sm:$0xff]  }
  0xcc   : > { %v594_v52 = vmul.f32 %v11225_v37, %v11225_v37  ;;  %9467 = vmatprep.subr.bf16.mxu0 %v10397_v39 }
  0xcd   : > { %v595_v38 = vmul.f32 %v11228_v47, %v11228_v47  ;;  %9468 = vmatpush3.bf16.msra.mxu0 %v10397_v39 }
  0xce   : > { %622 = vadd.xlane.f32.xlu1 %v593_v36  ;;  %624 = vadd.xlane.f32.xlu0 %v594_v52 }
  0xcf   : > { %9469 = vmatprep.subr.bf16.mxu0 %v10399_v54 }
  0xd1   : > { %9470 = vmatpush3.bf16.msra.mxu0 %v10399_v54 }
  0xd2   : > { %626 = vadd.xlane.f32.xlu1 %v595_v38  ;;  %9471 = vmatprep.subr.bf16.mxu0 %v10401_v58 }
  0xd5   : > { %9472 = vmatpush3.bf16.msra.mxu0 %v10401_v58 }
  0xd6   : > { %9521 = vmatprep.subr.bf16.mxu0 %v11249_v60 }
 0x13f   : > { %v597_v61 = vpop.xlane.xlu0 %596 }
 0x140   : > { %v628_v62 = vmul.f32 0.0078125, %v597_v61 }
 0x142   : > { %v644_v63 = vadd.f32 1e-05, %v628_v62 }
 0x143   : > { %v599_v2 = vpop.xlane.xlu1 %598  ;;  %v601_v3 = vpop.xlane.xlu0 %600 }
 0x144   : > { %v629_v4 = vmul.f32 0.0078125, %v599_v2  ;;  %v630_v5 = vmul.f32 0.0078125, %v601_v3  ;;  %10531 = vrsqrt.f32 %v644_v63 }
 0x146   : > { %v645_v6 = vadd.f32 1e-05, %v629_v4  ;;  %v646_v7 = vadd.f32 1e-05, %v630_v5 }
 0x147   : > { %v603_v10 = vpop.xlane.xlu1 %602  ;;  %v605_v11 = vpop.xlane.xlu0 %604 }
 0x148   : > { %10533 = vrsqrt.f32 %v645_v6  ;;  %v631_v12 = vmul.f32 0.0078125, %v603_v10  ;;  %v632_v13 = vmul.f32 0.0078125, %v605_v11  ;;  %v10405_v10 = vld [vmem:[%s11246_s14 + $0x10] sm:$0xff]  }
 0x149   : > { %10535 = vrsqrt.f32 %v646_v7 }
 0x14a   : > { %v647_v14 = vadd.f32 1e-05, %v631_v12  ;;  %v648_v15 = vadd.f32 1e-05, %v632_v13 }
 0x14b   : > { %v607_v18 = vpop.xlane.xlu1 %606  ;;  %v609_v19 = vpop.xlane.xlu0 %608 }
 0x14c   : > { %10537 = vrsqrt.f32 %v647_v14  ;;  %v633_v20 = vmul.f32 0.0078125, %v607_v18  ;;  %v634_v21 = vmul.f32 0.0078125, %v609_v19  ;;  %v10406_v19 = vld [vmem:[%s11246_s14 + $0x18] sm:$0xff]  }
 0x14d   : > { %10539 = vrsqrt.f32 %v648_v15 }
 0x14e   : > { %v649_v22 = vadd.f32 1e-05, %v633_v20  ;;  %v650_v23 = vadd.f32 1e-05, %v634_v21  ;;  %v10532_v28 = vpop.eup %10531 }
 0x14f   : > { %v611_v24 = vpop.xlane.xlu1 %610  ;;  %v613_v25 = vpop.xlane.xlu0 %612  ;;  %v676_v40 = vmul.f32 %v10532_v28, %v11156_v48 }
 0x150   : > { %10541 = vrsqrt.f32 %v649_v22  ;;  %v635_v29 = vmul.f32 0.0078125, %v611_v24  ;;  %v636_v30 = vmul.f32 0.0078125, %v613_v25  ;;  %v10407_v24 = vld [vmem:[%s11246_s14 + $0x20] sm:$0xff]  }
 0x151   : > { %10543 = vrsqrt.f32 %v650_v23 }
 0x152   : > { %v10534_v31 = vpop.eup %10533  ;;  %v651_v32 = vadd.f32 1e-05, %v635_v29  ;;  %v652_v33 = vadd.f32 1e-05, %v636_v30  ;;  %v10408_v30 = vld [vmem:[%s11246_s14 + $0x28] sm:$0xff]  }
 0x153   : > { %v677_v41 = vmul.f32 %v10534_v31, %v11164_v56  ;;  %v615_v42 = vpop.xlane.xlu1 %614  ;;  %v617_v43 = vpop.xlane.xlu0 %616 }
 0x154   : > { %v10536_v44 = vpop.eup %10535  ;;  %10545 = vrsqrt.f32 %v651_v32  ;;  %v637_v45 = vmul.f32 0.0078125, %v615_v42  ;;  %v638_v46 = vmul.f32 0.0078125, %v617_v43 }
 0x155   : > { %v11254_v36 = vpack.c.bf16 %v677_v41, %v676_v40  ;;  %10547 = vrsqrt.f32 %v652_v33  ;;  %v678_v38 = vmul.f32 %v10536_v44, %v11158_v49  ;;  %v10409_v40 = vld [vmem:[%s11246_s14 + $0x30] sm:$0xff]   ;;  %v11338_v44 = vld [vmem:[%s11329_s18] ss:$0 sm:$0xff] }
 0x156   : > { %v10538_v50 = vpop.eup %10537  ;;  %v653_v51 = vadd.f32 1e-05, %v637_v45  ;;  %v654_v52 = vadd.f32 1e-05, %v638_v46  ;;  %v11341_v46 = vld [vmem:[%s11335_s22] ss:$0 sm:$0xff] }
 0x157   : > { %v679_v39 = vmul.f32 %v10538_v50, %v11166_v57  ;;  %v619_v48 = vpop.xlane.xlu1 %618  ;;  %9473 = vmatprep.mubr.bf16.mxu0 %v11254_v36  ;;  %9505 = vmatprep.mubr.bf16.mxu1 %v11254_v36  ;;  %v621_v56 = vpop.xlane.xlu0 %620 }
 0x158   : > { %v10540_v53 = vpop.eup %10539  ;;  %10549 = vrsqrt.f32 %v653_v51  ;;  %v639_v54 = vmul.f32 0.0078125, %v619_v48  ;;  %v640_v55 = vmul.f32 0.0078125, %v621_v56 }
 0x159   : > { %v11260_v58 = vpack.c.bf16 %v679_v39, %v678_v38  ;;  %10551 = vrsqrt.f32 %v654_v52  ;;  %v680_v57 = vmul.f32 %v10540_v53, %v11172_v0 }
 0x15a   : > { %v10542_v61 = vpop.eup %10541  ;;  %v655_v62 = vadd.f32 1e-05, %v639_v54  ;;  %v656_v49 = vadd.f32 1e-05, %v640_v55 }
 0x15b   : > { %v681_v63 = vmul.f32 %v10542_v61, %v11174_v1  ;;  %v623_v2 = vpop.xlane.xlu1 %622  ;;  %9474 = vmatmul.mubr.bf16.vlgmr.msra.gmra.mrb[0].mxu0 %v11260_v58  ;;  %9506 = vmatmul.mubr.bf16.vlgmr.msra.gmra.mrb[0].mxu1 %v11260_v58  ;;  %v625_v3 = vpop.xlane.xlu0 %624 }
 0x15c   : > { %v10544_v4 = vpop.eup %10543  ;;  %10553 = vrsqrt.f32 %v655_v62  ;;  %v641_v5 = vmul.f32 0.0078125, %v623_v2  ;;  %v642_v6 = vmul.f32 0.0078125, %v625_v3  ;;  %9522 = vmatpush3.bf16.msra.mxu0 %v11249_v60 }
 0x15d   : > { %v11268_v7 = vpack.c.bf16 %v681_v63, %v680_v57  ;;  %9523 = vmatprep.subr.bf16.mxu0 %v10404_v59  ;;  %10555 = vrsqrt.f32 %v656_v49  ;;  %v682_v12 = vmul.f32 %v10544_v4, %v11181_v8 }
 0x15e   : > { %v10546_v0 = vpop.eup %10545  ;;  %v657_v1 = vadd.f32 1e-05, %v641_v5  ;;  %v658_v11 = vadd.f32 1e-05, %v642_v6 }
 0x15f   : > { %v683_v13 = vmul.f32 %v10546_v0, %v11184_v9  ;;  %v627_v14 = vpop.xlane.xlu1 %626  ;;  %9477 = vmatprep.mubr.bf16.mxu0 %v11268_v7  ;;  %9509 = vmatprep.mubr.bf16.mxu1 %v11268_v7  ;;  %v10548_v15 = vpop.eup %10547 }
 0x160   : > { %10557 = vrsqrt.f32 %v657_v1  ;;  %v643_v60 = vmul.f32 0.0078125, %v627_v14  ;;  %9524 = vmatpush3.bf16.msra.mxu0 %v10404_v59  ;;  %v684_v8 = vmul.f32 %v10548_v15, %v11191_v16 }
 0x161   : > { %v11275_v18 = vpack.c.bf16 %v683_v13, %v682_v12  ;;  %9525 = vmatprep.subr.bf16.mxu0 %v10405_v10  ;;  %10559 = vrsqrt.f32 %v658_v11 }
 0x162   : > { %v10550_v20 = vpop.eup %10549  ;;  %v659_v21 = vadd.f32 1e-05, %v643_v60 }
 0x163   : > { %v685_v9 = vmul.f32 %v10550_v20, %v11194_v17  ;;  %9478 = vmatmul.mubr.bf16.gmra.mrb[4].mxu0 %v11275_v18  ;;  %9510 = vmatmul.mubr.bf16.gmra.mrb[4].mxu1 %v11275_v18  ;;  %v10552_v22 = vpop.eup %10551 }
 0x164   : > { %10561 = vrsqrt.f32 %v659_v21  ;;  %9526 = vmatpush3.bf16.msra.mxu0 %v10405_v10  ;;  %v686_v28 = vmul.f32 %v10552_v22, %v11203_v26 }
 0x165   : > { %v11282_v23 = vpack.c.bf16 %v685_v9, %v684_v8  ;;  %9527 = vmatprep.subr.bf16.mxu0 %v10406_v19 }
 0x166   : > { %v10554_v25 = vpop.eup %10553 }
 0x167   : > { %v687_v29 = vmul.f32 %v10554_v25, %v11206_v27  ;;  %9481 = vmatprep.mubr.bf16.mxu0 %v11282_v23  ;;  %9513 = vmatprep.mubr.bf16.mxu1 %v11282_v23  ;;  %v10556_v16 = vpop.eup %10555 }
 0x168   : > { %9528 = vmatpush3.bf16.msra.mxu0 %v10406_v19  ;;  %v688_v32 = vmul.f32 %v10556_v16, %v11213_v34 }
 0x169   : > { %v11289_v17 = vpack.c.bf16 %v687_v29, %v686_v28  ;;  %9529 = vmatprep.subr.bf16.mxu0 %v10407_v24 }
 0x16a   : > { %v10558_v31 = vpop.eup %10557 }
 0x16b   : > { %v689_v33 = vmul.f32 %v10558_v31, %v11216_v35  ;;  %9482 = vmatmul.mubr.bf16.gmra.mrb[8].mxu0 %v11289_v17  ;;  %9514 = vmatmul.mubr.bf16.gmra.mrb[8].mxu1 %v11289_v17  ;;  %v10560_v26 = vpop.eup %10559  ;;  %v10410_v35 = vld [vmem:[%s11246_s14 + $0x38] sm:$0xff]  }
 0x16c   : > { %9530 = vmatpush3.bf16.msra.mxu0 %v10407_v24  ;;  %v690_v42 = vmul.f32 %v10560_v26, %v11225_v37  ;;  %v13777_v37 = vmov 0.0  }
 0x16d   : > { %v11296_v27 = vpack.c.bf16 %v689_v33, %v688_v32  ;;  %9531 = vmatprep.subr.bf16.mxu0 %v10408_v30  ;;  %9553 = vmatprep.subr.bf16.mxu1 %v13777_v37 }
 0x16e   : > { %v10562_v41 = vpop.eup %10561 }
 0x16f   : > { %v691_v43 = vmul.f32 %v10562_v41, %v11228_v47  ;;  %9485 = vmatprep.mubr.bf16.mxu0 %v11296_v27  ;;  %9517 = vmatprep.mubr.bf16.mxu1 %v11296_v27 }
 0x170   : > { %9532 = vmatpush3.bf16.msra.mxu0 %v10408_v30 }
 0x171   : > { %v11303_v34 = vpack.c.bf16 %v691_v43, %v690_v42  ;;  %9533 = vmatprep.subr.bf16.mxu0 %v10409_v40 }
 0x173   : > { %9486 = vmatmul.mubr.bf16.gmra.mrb[12].mxu0 %v11303_v34  ;;  %9518 = vmatmul.mubr.bf16.gmra.mrb[12].mxu1 %v11303_v34 }
 0x174   : > { %9534 = vmatpush3.bf16.msra.mxu0 %v10409_v40  ;;  %9537 = vmatprep.mubr.bf16.mxu0 %v11254_v36 }
 0x175   : > { %9535 = vmatprep.subr.bf16.mxu0 %v10410_v35  ;;  %9555 = vmatprep.mubr.msk.bf16.mxu1 %vm10988_vm0, %v13777_v37 }
 0x178   : > { %9536 = vmatpush3.bf16.msra.mxu0 %v10410_v35 }
 0x179   : > { %9577 = vmatprep.subr.bf16.mxu0 %v13777_v37 }
 0x17b   : > { %9538 = vmatmul.mubr.bf16.vlgmr.msra.gmra.mrb[16].mxu0 %v11260_v58 }
 0x17c   : > { %9541 = vmatprep.mubr.bf16.mxu0 %v11268_v7 }
 0x183   : > { %9542 = vmatmul.mubr.bf16.gmra.mrb[20].mxu0 %v11275_v18 }
 0x184   : > { %9545 = vmatprep.mubr.bf16.mxu0 %v11282_v23 }
 0x18b   : > { %9546 = vmatmul.mubr.bf16.gmra.mrb[24].mxu0 %v11289_v17 }
 0x18c   : > { %9549 = vmatprep.mubr.bf16.mxu0 %v11296_v27 }
 0x193   : > { %9550 = vmatmul.mubr.bf16.gmra.mrb[28].mxu0 %v11303_v34 }
 0x194   : > { %9579 = vmatprep.mubr.msk.bf16.mxu0 %vm10988_vm0, %v13777_v37 }
 0x22e   : > { %v9475_v47 = vpop.f32.mrb[0].mxu0  ;;  %v9507_v45 = vpop.f32.mrb[0].mxu1 }
 0x22f   : > { %v810_v50 = vpop.f32.mrb[1].mxu0  ;;  %v981_v51 = vpop.f32.mrb[1].mxu1  ;;  %v11344_v39 = vadd.f32 %v9475_v47, %v11338_v44  ;;  %v990_v48 = vadd.f32 %v9507_v45, %v11341_v46 }
 0x230   : > { %v9476_v52 = vpop.f32.mrb[2].mxu0  ;;  %v9508_v38 = vpop.f32.mrb[2].mxu1  ;;  %v811_v59 = vadd.f32 %v11338_v44, %v810_v50  ;;  %v982_v61 = vadd.f32 %v11341_v46, %v981_v51 }
 0x231   : > { %v11348_v56 = vadd.f32 %v9476_v52, %v11338_v44  ;;  %v993_v53 = vadd.f32 %v9508_v38, %v11341_v46  ;;  %v813_v54 = vpop.f32.mrb[3].mxu0  ;;  %v984_v55 = vpop.f32.mrb[3].mxu1 }
 0x232   : > { %v814_v62 = vadd.f32 %v11338_v44, %v813_v54  ;;  %v985_v49 = vadd.f32 %v11341_v46, %v984_v55 }
 0x233   : > { %v1216_v57 = vpack.c.bf16 %v11348_v56, %v11344_v39  ;;  %v1224_v63 = vpack.c.bf16 %v993_v53, %v990_v48 }
 0x234   : > { %v1215_v2 = vpack.c.bf16 %v814_v62, %v811_v59  ;;  %v1223_v3 = vpack.c.bf16 %v985_v49, %v982_v61 }
 0x235   : > { %v1291_v30 = vsel %vm1239_vm1, %v1224_v63, 0 }
 0x236   : > { %v9479_v4 = vpop.f32.mrb[4].mxu0  ;;  %v9511_v5 = vpop.f32.mrb[4].mxu1  ;;  %v1244_v6 = vsel %vm1239_vm1, %v1223_v3, 0 }
 0x237   : > { %v826_v10 = vpop.f32.mrb[5].mxu0  ;;  %v997_v0 = vpop.f32.mrb[5].mxu1  ;;  %9554 = vmatpush3.bf16.xpose.msra.mxu1 %v1244_v6  ;;  %v11360_v12 = vadd.f32 %v9479_v4, %v11338_v44  ;;  %v11363_v13 = vadd.f32 %v9511_v5, %v11341_v46 }
 0x238   : > { %v9480_v1 = vpop.f32.mrb[6].mxu0  ;;  %v9512_v11 = vpop.f32.mrb[6].mxu1  ;;  %9559 = vmatprep.subr.bf16.mxu1 %v13777_v37  ;;  %v11372_v20 = vadd.f32 %v11338_v44, %v826_v10  ;;  %v998_v21 = vadd.f32 %v11341_v46, %v997_v0 }
 0x239   : > { %v11366_v14 = vadd.f32 %v9480_v1, %v11338_v44  ;;  %v11369_v15 = vadd.f32 %v9512_v11, %v11341_v46  ;;  %v829_v60 = vpop.f32.mrb[7].mxu0  ;;  %v1000_v19 = vpop.f32.mrb[7].mxu1 }
 0x23a   : > { %v11376_v8 = vadd.f32 %v11338_v44, %v829_v60  ;;  %v1001_v9 = vadd.f32 %v11341_v46, %v1000_v19 }
 0x23b   : > { %v1218_v22 = vpack.c.bf16 %v11366_v14, %v11360_v12  ;;  %v1226_v24 = vpack.c.bf16 %v11369_v15, %v11363_v13 }
 0x23c   : > { %v1217_v25 = vpack.c.bf16 %v11376_v8, %v11372_v20  ;;  %v1225_v28 = vpack.c.bf16 %v1001_v9, %v998_v21  ;;  %v11438_v21 = vld [vmem:[%s11435_s16] ss:$0 sm:$0xff] }
 0x23e   : > { %v9483_v29 = vpop.f32.mrb[8].mxu0  ;;  %v9515_v16 = vpop.f32.mrb[8].mxu1  ;;  %9556 = vmatmul.mubr.msk.bf16.vlgmr.msra.gmra.mrb[16].mxu1 %vm1239_vm1, %v1215_v2  ;;  %v1338_v55 = vsel %vm1239_vm1, %v1225_v28, 0 }
 0x23f   : > { %v842_v31 = vpop.f32.mrb[9].mxu0  ;;  %v1013_v32 = vpop.f32.mrb[9].mxu1  ;;  %9560 = vmatpush3.bf16.xpose.msra.mxu1 %v1291_v30  ;;  %9561 = vmatprep.mubr.msk.bf16.mxu1 %vm10988_vm0, %v13777_v37  ;;  %v11391_v40 = vadd.f32 %v9483_v29, %v11338_v44  ;;  %v11394_v41 = vadd.f32 %v9515_v16, %v11341_v46 }
 0x240   : > { %v9484_v33 = vpop.f32.mrb[10].mxu0  ;;  %v9516_v26 = vpop.f32.mrb[10].mxu1  ;;  %9565 = vmatprep.subr.bf16.mxu1 %v13777_v37  ;;  %v843_v45 = vadd.f32 %v11338_v44, %v842_v31  ;;  %v1014_v50 = vadd.f32 %v11341_v46, %v1013_v32 }
 0x241   : > { %v11397_v42 = vadd.f32 %v9484_v33, %v11338_v44  ;;  %v11400_v43 = vadd.f32 %v9516_v26, %v11341_v46  ;;  %v845_v35 = vpop.f32.mrb[11].mxu0  ;;  %v1016_v47 = vpop.f32.mrb[11].mxu1 }
 0x242   : > { %v846_v51 = vadd.f32 %v11338_v44, %v845_v35  ;;  %v1017_v52 = vadd.f32 %v11341_v46, %v1016_v47 }
 0x243   : > { %v1220_v38 = vpack.c.bf16 %v11397_v42, %v11391_v40  ;;  %v1228_v39 = vpack.c.bf16 %v11400_v43, %v11394_v41 }
 0x244   : > { %v1219_v48 = vpack.c.bf16 %v846_v51, %v843_v45  ;;  %v1227_v56 = vpack.c.bf16 %v1017_v52, %v1014_v50 }
 0x245   : > { %v1479_v33 = vsel %vm1239_vm1, %v1228_v39, 0 }
 0x246   : > { %v9487_v53 = vpop.f32.mrb[12].mxu0  ;;  %v9519_v54 = vpop.f32.mrb[12].mxu1  ;;  %9562 = vmatmul.mubr.msk.bf16.vlgmr.msra.gmra.mrb[20].mxu1 %vm1239_vm1, %v1216_v57  ;;  %v1432_v59 = vsel %vm1239_vm1, %v1227_v56, 0 }
 0x247   : > { %v858_v61 = vpop.f32.mrb[13].mxu0  ;;  %v1029_v62 = vpop.f32.mrb[13].mxu1  ;;  %9566 = vmatpush3.bf16.xpose.msra.mxu1 %v1338_v55  ;;  %9578 = vmatpush3.bf16.xpose.msra.mxu0 %v1432_v59  ;;  %v11417_v2 = vadd.f32 %v9487_v53, %v11338_v44  ;;  %v1038_v57 = vadd.f32 %v9519_v54, %v11341_v46 }
 0x248   : > { %v9488_v49 = vpop.f32.mrb[14].mxu0  ;;  %v9520_v63 = vpop.f32.mrb[14].mxu1  ;;  %9567 = vmatprep.mubr.msk.bf16.mxu1 %vm10988_vm0, %v13777_v37  ;;  %9571 = vmatprep.subr.bf16.mxu1 %v13777_v37  ;;  %v859_v10 = vadd.f32 %v11338_v44, %v858_v61  ;;  %v1030_v0 = vadd.f32 %v11341_v46, %v1029_v62 }
 0x249   : > { %v11421_v3 = vadd.f32 %v9488_v49, %v11338_v44  ;;  %v1041_v4 = vadd.f32 %v9520_v63, %v11341_v46  ;;  %v861_v5 = vpop.f32.mrb[15].mxu0  ;;  %v1032_v6 = vpop.f32.mrb[15].mxu1  ;;  %9589 = vmatprep.subr.bf16.mxu0 %v13777_v37 }
 0x24a   : > { %v862_v1 = vadd.f32 %v11338_v44, %v861_v5  ;;  %v1033_v11 = vadd.f32 %v11341_v46, %v1032_v6  ;;  %v1385_v44 = vsel %vm1239_vm1, %v1226_v24, 0 }
 0x24b   : > { %v1222_v13 = vpack.c.bf16 %v11421_v3, %v11417_v2  ;;  %v1230_v15 = vpack.c.bf16 %v1041_v4, %v1038_v57 }
 0x24c   : > { %v1221_v60 = vpack.c.bf16 %v862_v1, %v859_v10  ;;  %v1229_v19 = vpack.c.bf16 %v1033_v11, %v1030_v0 }
 0x24d   : > { %v1573_v51 = vsel %vm1239_vm1, %v1230_v15, 0 }
 0x24e   : > { %v9539_v20 = vpop.f32.mrb[16].mxu0  ;;  %9568 = vmatmul.mubr.msk.bf16.vlgmr.msra.gmra.mrb[24].mxu1 %vm1239_vm1, %v1217_v25  ;;  %9580 = vmatmul.mubr.msk.bf16.vlgmr.msra.gmra.mrb[32].mxu0 %vm1239_vm1, %v1219_v48  ;;  %v1526_v46 = vsel %vm1239_vm1, %v1229_v19, 0 }
 0x24f   : > { %v1152_v8 = vpop.f32.mrb[17].mxu0  ;;  %9572 = vmatpush3.bf16.xpose.msra.mxu1 %v1385_v44  ;;  %9590 = vmatpush3.bf16.xpose.msra.mxu0 %v1526_v46  ;;  %v1161_v28 = vadd.f32 %v9539_v20, %v11438_v21 }
 0x250   : > { %v9540_v9 = vpop.f32.mrb[18].mxu0  ;;  %9573 = vmatprep.mubr.msk.bf16.mxu1 %vm10988_vm0, %v13777_v37  ;;  %9591 = vmatprep.mubr.msk.bf16.mxu0 %vm10988_vm0, %v13777_v37  ;;  %v1153_v24 = vadd.f32 %v11438_v21, %v1152_v8 }
 0x251   : > { %v1164_v25 = vadd.f32 %v9540_v9, %v11438_v21  ;;  %v1155_v29 = vpop.f32.mrb[19].mxu0  ;;  %9583 = vmatprep.subr.bf16.mxu1 %v13777_v37  ;;  %9601 = vmatprep.subr.bf16.mxu0 %v13777_v37 }
 0x252   : > { %v1156_v16 = vadd.f32 %v11438_v21, %v1155_v29 }
 0x253   : > { %v1232_v30 = vpack.c.bf16 %v1164_v25, %v1161_v28 }
 0x254   : > { %v1231_v31 = vpack.c.bf16 %v1156_v16, %v1153_v24 }
 0x256   : > { %v9543_v32 = vpop.f32.mrb[20].mxu0  ;;  %9574 = vmatmul.mubr.msk.bf16.vlgmr.msra.gmra.mrb[28].mxu1 %vm1239_vm1, %v1218_v22  ;;  %9592 = vmatmul.mubr.msk.bf16.vlgmr.msra.gmra.mrb[36].mxu0 %vm1239_vm1, %v1221_v60 }
 0x257   : > { %v11461_v26 = vadd.f32 %v9543_v32, %v11438_v21  ;;  %v1168_v41 = vpop.f32.mrb[21].mxu0  ;;  %9584 = vmatpush3.bf16.xpose.msra.mxu1 %v1479_v33  ;;  %9602 = vmatpush3.bf16.msra.mxu0 %v1231_v31 }
 0x258   : > { %v11464_v43 = vadd.f32 %v11438_v21, %v1168_v41  ;;  %v9544_v35 = vpop.f32.mrb[22].mxu0  ;;  %9585 = vmatprep.mubr.msk.bf16.mxu1 %vm10988_vm0, %v13777_v37  ;;  %9595 = vmatprep.subr.bf16.mxu1 %v13777_v37 }
 0x259   : > { %v11470_v12 = vadd.f32 %v9544_v35, %v11438_v21  ;;  %v1171_v14 = vpop.f32.mrb[23].mxu0  ;;  %9603 = vmatprep.mubr.msk.bf16.mxu0 %vm10988_vm0, %v13777_v37  ;;  %9613 = vmatprep.subr.bf16.mxu0 %v13777_v37 }
 0x25a   : > { %v11476_v22 = vadd.f32 %v11438_v21, %v1171_v14 }
 0x25b   : > { %v1234_v47 = vpack.c.bf16 %v11470_v12, %v11461_v26 }
 0x25c   : > { %v1233_v45 = vpack.c.bf16 %v11476_v22, %v11464_v43 }
 0x25e   : > { %v9547_v50 = vpop.f32.mrb[24].mxu0  ;;  %9586 = vmatmul.mubr.msk.bf16.vlgmr.msra.gmra.mrb[32].mxu1 %vm1239_vm1, %v1220_v38 }
 0x25f   : > { %v11488_v52 = vadd.f32 %v9547_v50, %v11438_v21  ;;  %v1184_v39 = vpop.f32.mrb[25].mxu0  ;;  %9596 = vmatpush3.bf16.xpose.msra.mxu1 %v1573_v51  ;;  %9597 = vmatprep.mubr.msk.bf16.mxu1 %vm10988_vm0, %v13777_v37 }
 0x260   : > { %v11493_v48 = vadd.f32 %v11438_v21, %v1184_v39  ;;  %v9548_v56 = vpop.f32.mrb[26].mxu0  ;;  %9607 = vmatprep.subr.bf16.mxu1 %v13777_v37 }
 0x261   : > { %v11497_v40 = vadd.f32 %v9548_v56, %v11438_v21  ;;  %v1187_v42 = vpop.f32.mrb[27].mxu0 }
 0x262   : > { %v11500_v38 = vadd.f32 %v11438_v21, %v1187_v42 }
 0x263   : > { %v1236_v53 = vpack.c.bf16 %v11497_v40, %v11488_v52 }
 0x264   : > { %v1235_v54 = vpack.c.bf16 %v11500_v38, %v11493_v48  ;;  %v10412_v38 = vld [vmem:[%s11144_s20 + $0x40] sm:$0xff]  }
 0x266   : > { %v9551_v55 = vpop.f32.mrb[28].mxu0  ;;  %9598 = vmatmul.mubr.msk.bf16.vlgmr.msra.gmra.mrb[36].mxu1 %vm1239_vm1, %v1222_v13 }
 0x267   : > { %v11508_v59 = vadd.f32 %v9551_v55, %v11438_v21  ;;  %v1200_v61 = vpop.f32.mrb[29].mxu0  ;;  %9608 = vmatpush3.bf16.msra.mxu1 %v1232_v30  ;;  %9609 = vmatprep.mubr.msk.bf16.mxu1 %vm10988_vm0, %v13777_v37 }
 0x268   : > { %v11513_v62 = vadd.f32 %v11438_v21, %v1200_v61  ;;  %v9552_v49 = vpop.f32.mrb[30].mxu0  ;;  %9619 = vmatprep.subr.bf16.mxu1 %v13777_v37 }
 0x269   : > { %v11517_v63 = vadd.f32 %v9552_v49, %v11438_v21  ;;  %v1203_v2 = vpop.f32.mrb[31].mxu0 }
 0x26a   : > { %v11520_v57 = vadd.f32 %v11438_v21, %v1203_v2 }
 0x26b   : > { %v1238_v3 = vpack.c.bf16 %v11517_v63, %v11508_v59  ;;  %v10413_v63 = vld [vmem:[%s11150_s23 + $0x48] sm:$0xff]  }
 0x26c   : > { %v1237_v4 = vpack.c.bf16 %v11520_v57, %v11513_v62  ;;  %v10414_v57 = vld [vmem:[%s11144_s20 + $0x48] sm:$0xff]  }
 0x311   : > { %v11526_v5 = vpop.f32.mrb[16].mxu1 }
 0x312   : > { %v9557_v6 = vpop.f32.mrb[17].mxu1  ;;  %v1617_v20 = vsel %vm1616_vm2, %v11526_v5, -inf }
 0x313   : > { %v11528_v10 = vpop.f32.mrb[18].mxu1 }
 0x314   : > { %v9558_v0 = vpop.f32.mrb[19].mxu1  ;;  %v1620_v21 = vsel %vm1616_vm2, %v11528_v10, -inf }
 0x319   : > { %v11530_v1 = vpop.f32.mrb[20].mxu1 }
 0x31a   : > { %v9563_v11 = vpop.f32.mrb[21].mxu1  ;;  %v1623_v13 = vsel %vm1616_vm2, %v11530_v1, -inf }
 0x31b   : > { %1624 = vmax.xlane.f32.xlu0 %v1623_v13  ;;  %v11534_v15 = vpop.f32.mrb[22].mxu1 }
 0x31c   : > { %v9564_v60 = vpop.f32.mrb[23].mxu1  ;;  %v1626_v19 = vsel %vm1616_vm2, %v11534_v15, -inf }
 0x31d   : > { %1627 = vmax.xlane.f32.xlu1 %v1626_v19 }
 0x31f   : > { %1618 = vmax.xlane.f32.xlu0 %v1617_v20 }
 0x321   : > { %1621 = vmax.xlane.f32.xlu1 %v1620_v21  ;;  %v11542_v44 = vpop.f32.mrb[24].mxu1  ;;  %v11544_v46 = vpop.f32.mrb[32].mxu0 }
 0x322   : > { %v9569_v8 = vpop.f32.mrb[25].mxu1  ;;  %v9581_v9 = vpop.f32.mrb[33].mxu0  ;;  %v1629_v39 = vsel %vm1616_vm2, %v11542_v44, -inf  ;;  %v1641_v0 = vsel %vm1616_vm2, %v11544_v46, -inf }
 0x323   : > { %v11546_v28 = vpop.f32.mrb[26].mxu1  ;;  %v11548_v25 = vpop.f32.mrb[34].mxu0 }
 0x324   : > { %v9570_v29 = vpop.f32.mrb[27].mxu1  ;;  %v9582_v24 = vpop.f32.mrb[35].mxu0  ;;  %v1632_v56 = vsel %vm1616_vm2, %v11546_v28, -inf  ;;  %v1644_v11 = vsel %vm1616_vm2, %v11548_v25, -inf }
 0x329   : > { %v11550_v16 = vpop.f32.mrb[28].mxu1  ;;  %v11552_v30 = vpop.f32.mrb[36].mxu0 }
 0x32a   : > { %v9575_v31 = vpop.f32.mrb[29].mxu1  ;;  %v9593_v32 = vpop.f32.mrb[37].mxu0  ;;  %v1635_v33 = vsel %vm1616_vm2, %v11550_v16, -inf  ;;  %v1653_v9 = vsel %vm1616_vm2, %v11552_v30, -inf }
 0x32b   : > { %1636 = vmax.xlane.f32.xlu0 %v1635_v33  ;;  %v11556_v41 = vpop.f32.mrb[30].mxu1  ;;  %v11558_v35 = vpop.f32.mrb[38].mxu0 }
 0x32c   : > { %v9576_v14 = vpop.f32.mrb[31].mxu1  ;;  %v9594_v50 = vpop.f32.mrb[39].mxu0  ;;  %v1638_v51 = vsel %vm1616_vm2, %v11556_v41, -inf  ;;  %v1656_v29 = vsel %vm1616_vm2, %v11558_v35, -inf }
 0x32d   : > { %1639 = vmax.xlane.f32.xlu1 %v1638_v51 }
 0x32f   : > { %1630 = vmax.xlane.f32.xlu0 %v1629_v39 }
 0x331   : > { %1633 = vmax.xlane.f32.xlu1 %v1632_v56  ;;  %v11566_v42 = vpop.f32.mrb[32].mxu1 }
 0x332   : > { %v9587_v55 = vpop.f32.mrb[33].mxu1  ;;  %v1647_v61 = vsel %vm1616_vm2, %v11566_v42, -inf }
 0x333   : > { %1648 = vmax.xlane.f32.xlu0 %v1647_v61  ;;  %v11570_v49 = vpop.f32.mrb[34].mxu1 }
 0x334   : > { %v9588_v2 = vpop.f32.mrb[35].mxu1  ;;  %v1650_v6 = vsel %vm1616_vm2, %v11570_v49, -inf }
 0x335   : > { %1651 = vmax.xlane.f32.xlu1 %v1650_v6 }
 0x337   : > { %1642 = vmax.xlane.f32.xlu0 %v1641_v0 }
 0x339   : > { %v11578_v13 = vpop.f32.mrb[36].mxu1  ;;  %1645 = vmax.xlane.f32.xlu1 %v1644_v11 }
 0x33a   : > { %v9599_v60 = vpop.f32.mrb[37].mxu1  ;;  %v1659_v19 = vsel %vm1616_vm2, %v11578_v13, -inf }
 0x33b   : > { %v11582_v20 = vpop.f32.mrb[38].mxu1  ;;  %1660 = vmax.xlane.f32.xlu0 %v1659_v19 }
 0x33c   : > { %v9600_v21 = vpop.f32.mrb[39].mxu1  ;;  %v1662_v8 = vsel %vm1616_vm2, %v11582_v20, -inf }
 0x33d   : > { %1663 = vmax.xlane.f32.xlu1 %v1662_v8 }
 0x33f   : > { %1654 = vmax.xlane.f32.xlu0 %v1653_v9 }
 0x341   : > { %1657 = vmax.xlane.f32.xlu1 %v1656_v29 }
 0x3a8   : > { %v1625_v24 = vpop.xlane.xlu0 %1624 }
 0x3a9   : > { %v1667_v31 = vsub.f32 %v11530_v1, %v1625_v24 }
 0x3aa   : > { %v1628_v32 = vpop.xlane.xlu1 %1627 }
 0x3ab   : > { %v1685_v33 = vmul.f32 1.442695, %v1667_v31  ;;  %v1668_v14 = vsub.f32 %v11534_v15, %v1628_v32 }
 0x3ac   : > { %v1619_v50 = vpop.xlane.xlu0 %1618 }
 0x3ad   : > { %10563 = vpow2.f32 %v1685_v33  ;;  %v1687_v51 = vmul.f32 1.442695, %v1668_v14  ;;  %v1665_v39 = vsub.f32 %v11526_v5, %v1619_v50 }
 0x3ae   : > { %v1622_v56 = vpop.xlane.xlu1 %1621 }
 0x3af   : > { %10565 = vpow2.f32 %v1687_v51  ;;  %v1681_v55 = vmul.f32 1.442695, %v1665_v39  ;;  %v1666_v61 = vsub.f32 %v11528_v10, %v1622_v56 }
 0x3b1   : > { %10567 = vpow2.f32 %v1681_v55  ;;  %v1683_v2 = vmul.f32 1.442695, %v1666_v61 }
 0x3b3   : > { %10569 = vpow2.f32 %v1683_v2 }
 0x3b7   : > { %v11594_v6 = vpop.eup %10563 }
 0x3b8   : > { %v1637_v1 = vpop.xlane.xlu0 %1636  ;;  %v1719_v0 = vsel %vm1616_vm2, %v11594_v6, 0.0 }
 0x3b9   : > { %v11598_v15 = vpop.eup %10565  ;;  %v1671_v11 = vsub.f32 %v11550_v16, %v1637_v1  ;;  %1720 = vadd.xlane.f32.xlu0 %v1719_v0 }
 0x3ba   : > { %v1640_v5 = vpop.xlane.xlu1 %1639  ;;  %v1722_v60 = vsel %vm1616_vm2, %v11598_v15, 0.0 }
 0x3bb   : > { %v11603_v19 = vpop.eup %10567  ;;  %v1693_v10 = vmul.f32 1.442695, %v1671_v11  ;;  %v1672_v21 = vsub.f32 %v11556_v41, %v1640_v5  ;;  %1723 = vadd.xlane.f32.xlu1 %v1722_v60 }
 0x3bc   : > { %v1631_v8 = vpop.xlane.xlu0 %1630  ;;  %v1713_v9 = vsel %vm1616_vm2, %v11603_v19, 0.0 }
 0x3bd   : > { %v11608_v29 = vpop.eup %10569  ;;  %10571 = vpow2.f32 %v1693_v10  ;;  %v1695_v24 = vmul.f32 1.442695, %v1672_v21  ;;  %v1669_v16 = vsub.f32 %v11542_v44, %v1631_v8  ;;  %1714 = vadd.xlane.f32.xlu0 %v1713_v9 }
 0x3be   : > { %v1634_v31 = vpop.xlane.xlu1 %1633  ;;  %v1716_v32 = vsel %vm1616_vm2, %v11608_v29, 0.0 }
 0x3bf   : > { %10573 = vpow2.f32 %v1695_v24  ;;  %v1689_v33 = vmul.f32 1.442695, %v1669_v16  ;;  %v1670_v41 = vsub.f32 %v11546_v28, %v1634_v31  ;;  %1717 = vadd.xlane.f32.xlu1 %v1716_v32 }
 0x3c0   : > { %v1649_v14 = vpop.xlane.xlu0 %1648 }
 0x3c1   : > { %10575 = vpow2.f32 %v1689_v33  ;;  %v1691_v50 = vmul.f32 1.442695, %v1670_v41  ;;  %v1675_v51 = vsub.f32 %v11566_v42, %v1649_v14 }
 0x3c2   : > { %v1652_v39 = vpop.xlane.xlu1 %1651 }
 0x3c3   : > { %10577 = vpow2.f32 %v1691_v50  ;;  %v1701_v56 = vmul.f32 1.442695, %v1675_v51  ;;  %v1676_v44 = vsub.f32 %v11570_v49, %v1652_v39 }
 0x3c4   : > { %v1643_v55 = vpop.xlane.xlu0 %1642 }
 0x3c5   : > { %10579 = vpow2.f32 %v1701_v56  ;;  %v1703_v61 = vmul.f32 1.442695, %v1676_v44  ;;  %v1673_v2 = vsub.f32 %v11544_v46, %v1643_v55 }
 0x3c6   : > { %v1646_v1 = vpop.xlane.xlu1 %1645 }
 0x3c7   : > { %v11617_v0 = vpop.eup %10571  ;;  %10581 = vpow2.f32 %v1703_v61  ;;  %v1697_v28 = vmul.f32 1.442695, %v1673_v2  ;;  %v1674_v11 = vsub.f32 %v11548_v25, %v1646_v1 }
 0x3c8   : > { %v1661_v5 = vpop.xlane.xlu0 %1660  ;;  %v1731_v42 = vsel %vm1616_vm2, %v11617_v0, 0.0 }
 0x3c9   : > { %v11622_v60 = vpop.eup %10573  ;;  %10583 = vpow2.f32 %v1697_v28  ;;  %v1699_v49 = vmul.f32 1.442695, %v1674_v11  ;;  %v1679_v10 = vsub.f32 %v11578_v13, %v1661_v5  ;;  %1732 = vadd.xlane.f32.xlu0 %v1731_v42 }
 0x3ca   : > { %v1664_v21 = vpop.xlane.xlu1 %1663  ;;  %v1734_v46 = vsel %vm1616_vm2, %v11622_v60, 0.0 }
 0x3cb   : > { %v11627_v8 = vpop.eup %10575  ;;  %10585 = vpow2.f32 %v1699_v49  ;;  %v1709_v9 = vmul.f32 1.442695, %v1679_v10  ;;  %v1680_v25 = vsub.f32 %v11582_v20, %v1664_v21  ;;  %1735 = vadd.xlane.f32.xlu1 %v1734_v46 }
 0x3cc   : > { %v1655_v24 = vpop.xlane.xlu0 %1654  ;;  %v1725_v16 = vsel %vm1616_vm2, %v11627_v8, 0.0 }
 0x3cd   : > { %v11632_v31 = vpop.eup %10577  ;;  %10587 = vpow2.f32 %v1709_v9  ;;  %v1711_v13 = vmul.f32 1.442695, %v1680_v25  ;;  %v1677_v32 = vsub.f32 %v11552_v30, %v1655_v24  ;;  %1726 = vadd.xlane.f32.xlu0 %v1725_v16 }
 0x3ce   : > { %v1658_v33 = vpop.xlane.xlu1 %1657  ;;  %v1728_v41 = vsel %vm1616_vm2, %v11632_v31, 0.0 }
 0x3cf   : > { %v11637_v14 = vpop.eup %10579  ;;  %10589 = vpow2.f32 %v1711_v13  ;;  %v1705_v20 = vmul.f32 1.442695, %v1677_v32  ;;  %v1678_v50 = vsub.f32 %v11558_v35, %v1658_v33  ;;  %1729 = vadd.xlane.f32.xlu1 %v1728_v41 }
 0x3d0   : > { %v1743_v51 = vsel %vm1616_vm2, %v11637_v14, 0.0 }
 0x3d1   : > { %v11642_v39 = vpop.eup %10581  ;;  %10591 = vpow2.f32 %v1705_v20  ;;  %v1707_v56 = vmul.f32 1.442695, %v1678_v50  ;;  %1744 = vadd.xlane.f32.xlu0 %v1743_v51 }
 0x3d2   : > { %v1746_v30 = vsel %vm1616_vm2, %v11642_v39, 0.0 }
 0x3d3   : > { %v11646_v44 = vpop.eup %10583  ;;  %10593 = vpow2.f32 %v1707_v56  ;;  %1747 = vadd.xlane.f32.xlu1 %v1746_v30 }
 0x3d4   : > { %v1737_v55 = vsel %vm1616_vm2, %v11646_v44, 0.0 }
 0x3d5   : > { %v11650_v35 = vpop.eup %10585  ;;  %1738 = vadd.xlane.f32.xlu0 %v1737_v55 }
 0x3d6   : > { %v1740_v61 = vsel %vm1616_vm2, %v11650_v35, 0.0 }
 0x3d7   : > { %v11654_v2 = vpop.eup %10587  ;;  %1741 = vadd.xlane.f32.xlu1 %v1740_v61 }
 0x3d8   : > { %v1755_v1 = vsel %vm1616_vm2, %v11654_v2, 0.0 }
 0x3d9   : > { %v11658_v28 = vpop.eup %10589  ;;  %1756 = vadd.xlane.f32.xlu0 %v1755_v1 }
 0x3da   : > { %v1758_v11 = vsel %vm1616_vm2, %v11658_v28, 0.0 }
 0x3db   : > { %v11662_v5 = vpop.eup %10591  ;;  %1759 = vadd.xlane.f32.xlu1 %v1758_v11 }
 0x3dc   : > { %v1749_v42 = vsel %vm1616_vm2, %v11662_v5, 0.0 }
 0x3dd   : > { %v11666_v49 = vpop.eup %10593  ;;  %1750 = vadd.xlane.f32.xlu0 %v1749_v42 }
 0x3de   : > { %v1752_v10 = vsel %vm1616_vm2, %v11666_v49, 0.0 }
 0x3df   : > { %1753 = vadd.xlane.f32.xlu1 %v1752_v10 }
 0x446   : > { %v1721_v21 = vpop.xlane.xlu0 %1720 }
 0x447   : > { %10595 = vrcp.f32 %v1721_v21 }
 0x448   : > { %v1724_v46 = vpop.xlane.xlu1 %1723 }
 0x449   : > { %10597 = vrcp.f32 %v1724_v46 }
 0x44a   : > { %v1715_v9 = vpop.xlane.xlu0 %1714 }
 0x44b   : > { %10599 = vrcp.f32 %v1715_v9 }
 0x44c   : > { %v1718_v25 = vpop.xlane.xlu1 %1717 }
 0x44d   : > { %10601 = vrcp.f32 %v1718_v25 }
 0x451   : > { %v10596_v24 = vpop.eup %10595 }
 0x452   : > { %v1779_v13 = vmul.f32 %v10596_v24, %v11594_v6 }
 0x453   : > { %v10598_v16 = vpop.eup %10597 }
 0x454   : > { %v1780_v32 = vmul.f32 %v10598_v16, %v11598_v15 }
 0x455   : > { %v10600_v33 = vpop.eup %10599 }
 0x456   : > { %v1733_v41 = vpop.xlane.xlu0 %1732  ;;  %v1794_v20 = vpack.c.bf16 %v1780_v32, %v1779_v13  ;;  %v1777_v51 = vmul.f32 %v10600_v33, %v11603_v19  ;;  %v10418_v33 = vld [vmem:[%s11144_s20 + $0x58] sm:$0xff]  }
 0x457   : > { %v10602_v50 = vpop.eup %10601  ;;  %10603 = vrcp.f32 %v1733_v41  ;;  %v10419_v41 = vld [vmem:[%s11150_s23 + $0x60] sm:$0xff]  }
 0x458   : > { %v1778_v56 = vmul.f32 %v10602_v50, %v11608_v29  ;;  %9610 = vmatmul.mubr.msk.bf16.vlgmr.msra.gmra.mrb[40].mxu1 %vm1616_vm2, %v1794_v20  ;;  %v1736_v30 = vpop.xlane.xlu1 %1735  ;;  %v10420_v20 = vld [vmem:[%s11144_s20 + $0x60] sm:$0xff]   ;;  %v10421_v50 = vld [vmem:[%s11150_s23 + $0x68] sm:$0xff]  }
 0x459   : > { %9620 = vmatpush3.bf16.msra.mxu1 %v1234_v47  ;;  %10605 = vrcp.f32 %v1736_v30  ;;  %9621 = vmatprep.mubr.msk.bf16.mxu1 %vm10988_vm0, %v13777_v37  ;;  %v10424_v30 = vld [vmem:[%s11144_s20 + $0x70] sm:$0xff]  }
 0x45a   : > { %v1727_v6 = vpop.xlane.xlu0 %1726  ;;  %v1793_v15 = vpack.c.bf16 %v1778_v56, %v1777_v51  ;;  %9631 = vmatprep.subr.bf16.mxu1 %v13777_v37  ;;  %v10422_v51 = vld [vmem:[%s11144_s20 + $0x68] sm:$0xff]   ;;  %v10423_v56 = vld [vmem:[%s11150_s23 + $0x70] sm:$0xff]  }
 0x45b   : > { %10607 = vrcp.f32 %v1727_v6  ;;  %v10425_v6 = vld [vmem:[%s11150_s23 + $0x78] sm:$0xff]  }
 0x45c   : > { %9604 = vmatmul.mubr.msk.bf16.vlgmr.msra.gmra.mrb[40].mxu0 %vm1616_vm2, %v1793_v15  ;;  %v1730_v19 = vpop.xlane.xlu1 %1729  ;;  %v10426_v15 = vld [vmem:[%s11144_s20 + $0x78] sm:$0xff]  }
 0x45d   : > { %9614 = vmatpush3.bf16.msra.mxu0 %v1233_v45  ;;  %10609 = vrcp.f32 %v1730_v19  ;;  %9615 = vmatprep.mubr.msk.bf16.mxu0 %vm10988_vm0, %v13777_v37  ;;  %v10427_v19 = vld [vmem:[%s11246_s14 + $0x40] sm:$0xff]  }
 0x45e   : > { %v1745_v26 = vpop.xlane.xlu0 %1744  ;;  %9625 = vmatprep.subr.bf16.mxu0 %v13777_v37 }
 0x45f   : > { %10611 = vrcp.f32 %v1745_v26  ;;  %v10428_v26 = vld [vmem:[%s11246_s14 + $0x48] sm:$0xff]  }
 0x460   : > { %v1748_v12 = vpop.xlane.xlu1 %1747 }
 0x461   : > { %v10604_v47 = vpop.eup %10603  ;;  %10613 = vrcp.f32 %v1748_v12  ;;  %v10429_v12 = vld [vmem:[%s11246_s14 + $0x50] sm:$0xff]  }
 0x462   : > { %v1739_v29 = vpop.xlane.xlu0 %1738  ;;  %v1783_v61 = vmul.f32 %v10604_v47, %v11617_v0  ;;  %v10430_v47 = vld [vmem:[%s11246_s14 + $0x58] sm:$0xff]  }
 0x463   : > { %v10606_v55 = vpop.eup %10605  ;;  %10615 = vrcp.f32 %v1739_v29  ;;  %v10431_v29 = vld [vmem:[%s11246_s14 + $0x60] sm:$0xff]  }
 0x464   : > { %v1784_v1 = vmul.f32 %v10606_v55, %v11622_v60  ;;  %v1742_v43 = vpop.xlane.xlu1 %1741  ;;  %v10432_v55 = vld [vmem:[%s11246_s14 + $0x68] sm:$0xff]  }
 0x465   : > { %v10608_v22 = vpop.eup %10607  ;;  %10617 = vrcp.f32 %v1742_v43 }
 0x466   : > { %v1757_v45 = vpop.xlane.xlu0 %1756  ;;  %v1796_v11 = vpack.c.bf16 %v1784_v1, %v1783_v61  ;;  %v1781_v10 = vmul.f32 %v10608_v22, %v11627_v8  ;;  %v10433_v61 = vld [vmem:[%s11246_s14 + $0x70] sm:$0xff]   ;;  %v10434_v1 = vld [vmem:[%s11246_s14 + $0x78] sm:$0xff]  }
 0x467   : > { %v10610_v42 = vpop.eup %10609  ;;  %10619 = vrcp.f32 %v1757_v45 }
 0x468   : > { %v1782_v21 = vmul.f32 %v10610_v42, %v11632_v31  ;;  %9622 = vmatmul.mubr.msk.bf16.vlgmr.msra.gmra.mrb[44].mxu1 %vm1616_vm2, %v1796_v11  ;;  %v1760_v46 = vpop.xlane.xlu1 %1759 }
 0x469   : > { %v10612_v9 = vpop.eup %10611  ;;  %9632 = vmatpush3.bf16.msra.mxu1 %v1236_v53  ;;  %10621 = vrcp.f32 %v1760_v46  ;;  %9633 = vmatprep.mubr.msk.bf16.mxu1 %vm10988_vm0, %v13777_v37  ;;  %v10411_v53 = vld [vmem:[%s11150_s23 + $0x40] sm:$0xff]  }
 0x46a   : > { %v1751_v0 = vpop.xlane.xlu0 %1750  ;;  %v1795_v60 = vpack.c.bf16 %v1782_v21, %v1781_v10  ;;  %9643 = vmatprep.subr.bf16.mxu1 %v13777_v37  ;;  %v1787_v31 = vmul.f32 %v10612_v9, %v11637_v14 }
 0x46b   : > { %v10614_v8 = vpop.eup %10613  ;;  %10623 = vrcp.f32 %v1751_v0 }
 0x46c   : > { %v1788_v25 = vmul.f32 %v10614_v8, %v11642_v39  ;;  %9616 = vmatmul.mubr.msk.bf16.vlgmr.msra.gmra.mrb[44].mxu0 %vm1616_vm2, %v1795_v60  ;;  %v1754_v24 = vpop.xlane.xlu1 %1753 }
 0x46d   : > { %v10616_v52 = vpop.eup %10615  ;;  %9626 = vmatpush3.bf16.msra.mxu0 %v1235_v54  ;;  %10625 = vrcp.f32 %v1754_v24  ;;  %9627 = vmatprep.mubr.msk.bf16.mxu0 %vm10988_vm0, %v13777_v37 }
 0x46e   : > { %v1798_v40 = vpack.c.bf16 %v1788_v25, %v1787_v31  ;;  %9637 = vmatprep.subr.bf16.mxu0 %v13777_v37  ;;  %v1785_v39 = vmul.f32 %v10616_v52, %v11646_v44 }
 0x46f   : > { %v10618_v14 = vpop.eup %10617 }
 0x470   : > { %v1786_v16 = vmul.f32 %v10618_v14, %v11650_v35  ;;  %9634 = vmatmul.mubr.msk.bf16.vlgmr.msra.gmra.mrb[48].mxu1 %vm1616_vm2, %v1798_v40 }
 0x471   : > { %v10620_v13 = vpop.eup %10619  ;;  %9644 = vmatpush3.bf16.msra.mxu1 %v1238_v3  ;;  %9645 = vmatprep.mubr.msk.bf16.mxu1 %vm10988_vm0, %v13777_v37 }
 0x472   : > { %v1797_v48 = vpack.c.bf16 %v1786_v16, %v1785_v39  ;;  %9681 = vmatprep.subr.bf16.mxu1 %v10411_v53  ;;  %v1791_v32 = vmul.f32 %v10620_v13, %v11654_v2 }
 0x473   : > { %v10622_v54 = vpop.eup %10621 }
 0x474   : > { %v1792_v44 = vmul.f32 %v10622_v54, %v11658_v28  ;;  %9628 = vmatmul.mubr.msk.bf16.vlgmr.msra.gmra.mrb[48].mxu0 %vm1616_vm2, %v1797_v48 }
 0x475   : > { %v10624_v35 = vpop.eup %10623  ;;  %9638 = vmatpush3.bf16.msra.mxu0 %v1237_v4  ;;  %9639 = vmatprep.mubr.msk.bf16.mxu0 %vm10988_vm0, %v13777_v37  ;;  %v10415_v4 = vld [vmem:[%s11150_s23 + $0x50] sm:$0xff]  }
 0x476   : > { %v1800_v59 = vpack.c.bf16 %v1792_v44, %v1791_v32  ;;  %9649 = vmatprep.subr.bf16.mxu0 %v10412_v38  ;;  %v1789_v2 = vmul.f32 %v10624_v35, %v11662_v5  ;;  %v10416_v5 = vld [vmem:[%s11144_s20 + $0x50] sm:$0xff]  }
 0x477   : > { %v10626_v3 = vpop.eup %10625 }
 0x478   : > { %v1790_v28 = vmul.f32 %v10626_v3, %v11666_v49  ;;  %9646 = vmatmul.mubr.msk.bf16.vlgmr.msra.gmra.mrb[52].mxu1 %vm1616_vm2, %v1800_v59  ;;  %v10417_v49 = vld [vmem:[%s11150_s23 + $0x58] sm:$0xff]  }
 0x479   : > { %9682 = vmatpush3.bf16.msra.mxu1 %v10411_v53  ;;  %9697 = vmatprep.mubr.bf16.mxu1 %v11254_v36 }
 0x47a   : > { %9683 = vmatprep.subr.bf16.mxu1 %v10413_v63  ;;  %v1799_v62 = vpack.c.bf16 %v1790_v28, %v1789_v2 }
 0x47c   : > { %9640 = vmatmul.mubr.msk.bf16.vlgmr.msra.gmra.mrb[52].mxu0 %vm1616_vm2, %v1799_v62 }
 0x47d   : > { %9650 = vmatpush3.bf16.msra.mxu0 %v10412_v38  ;;  %9684 = vmatpush3.bf16.msra.mxu1 %v10413_v63 }
 0x47e   : > { %9665 = vmatprep.mubr.bf16.mxu0 %v11254_v36  ;;  %9651 = vmatprep.subr.bf16.mxu0 %v10414_v57 }
 0x47f   : > { %9685 = vmatprep.subr.bf16.mxu1 %v10415_v4 }
 0x481   : > { %9652 = vmatpush3.bf16.msra.mxu0 %v10414_v57  ;;  %9686 = vmatpush3.bf16.msra.mxu1 %v10415_v4 }
 0x482   : > { %9653 = vmatprep.subr.bf16.mxu0 %v10416_v5  ;;  %9687 = vmatprep.subr.bf16.mxu1 %v10417_v49 }
 0x485   : > { %9654 = vmatpush3.bf16.msra.mxu0 %v10416_v5  ;;  %9688 = vmatpush3.bf16.msra.mxu1 %v10417_v49 }
 0x486   : > { %9655 = vmatprep.subr.bf16.mxu0 %v10418_v33  ;;  %9689 = vmatprep.subr.bf16.mxu1 %v10419_v41 }
 0x489   : > { %9656 = vmatpush3.bf16.msra.mxu0 %v10418_v33  ;;  %9690 = vmatpush3.bf16.msra.mxu1 %v10419_v41 }
 0x48a   : > { %9657 = vmatprep.subr.bf16.mxu0 %v10420_v20  ;;  %9691 = vmatprep.subr.bf16.mxu1 %v10421_v50 }
 0x48d   : > { %9658 = vmatpush3.bf16.msra.mxu0 %v10420_v20  ;;  %9692 = vmatpush3.bf16.msra.mxu1 %v10421_v50  ;;  %v11831_v50 = vld [vmem:[%s11335_s22 + $0x1] ss:$0 sm:$0xff] }
 0x48e   : > { %9659 = vmatprep.subr.bf16.mxu0 %v10422_v51  ;;  %9693 = vmatprep.subr.bf16.mxu1 %v10423_v56 }
 0x491   : > { %9660 = vmatpush3.bf16.msra.mxu0 %v10422_v51  ;;  %9694 = vmatpush3.bf16.msra.mxu1 %v10423_v56 }
 0x492   : > { %9661 = vmatprep.subr.bf16.mxu0 %v10424_v30  ;;  %9695 = vmatprep.subr.bf16.mxu1 %v10425_v6 }
 0x495   : > { %9662 = vmatpush3.bf16.msra.mxu0 %v10424_v30  ;;  %9696 = vmatpush3.bf16.msra.mxu1 %v10425_v6 }
 0x496   : > { %9663 = vmatprep.subr.bf16.mxu0 %v10426_v15  ;;  %9745 = vmatprep.subr.bf16.mxu1 %v13777_v37 }
 0x498   : > { %9698 = vmatmul.mubr.bf16.vlgmr.msra.gmra.mrb[56].mxu1 %v11260_v58 }
 0x499   : > { %9664 = vmatpush3.bf16.msra.mxu0 %v10426_v15  ;;  %9701 = vmatprep.mubr.bf16.mxu1 %v11268_v7 }
 0x49a   : > { %9713 = vmatprep.subr.bf16.mxu0 %v10427_v19 }
 0x49c   : > { %9666 = vmatmul.mubr.bf16.vlgmr.msra.gmra.mrb[56].mxu0 %v11260_v58 }
 0x49d   : > { %9669 = vmatprep.mubr.bf16.mxu0 %v11268_v7  ;;  %9714 = vmatpush3.bf16.msra.mxu0 %v10427_v19 }
 0x49e   : > { %9715 = vmatprep.subr.bf16.mxu0 %v10428_v26 }
 0x4a0   : > { %9702 = vmatmul.mubr.bf16.gmra.mrb[60].mxu1 %v11275_v18 }
 0x4a1   : > { %9705 = vmatprep.mubr.bf16.mxu1 %v11282_v23  ;;  %9716 = vmatpush3.bf16.msra.mxu0 %v10428_v26 }
 0x4a2   : > { %9717 = vmatprep.subr.bf16.mxu0 %v10429_v12 }
 0x4a4   : > { %9670 = vmatmul.mubr.bf16.gmra.mrb[60].mxu0 %v11275_v18 }
 0x4a5   : > { %9673 = vmatprep.mubr.bf16.mxu0 %v11282_v23  ;;  %9718 = vmatpush3.bf16.msra.mxu0 %v10429_v12 }
 0x4a6   : > { %9719 = vmatprep.subr.bf16.mxu0 %v10430_v47 }
 0x4a8   : > { %9706 = vmatmul.mubr.bf16.gmra.mrb[64].mxu1 %v11289_v17 }
 0x4a9   : > { %9709 = vmatprep.mubr.bf16.mxu1 %v11296_v27  ;;  %9720 = vmatpush3.bf16.msra.mxu0 %v10430_v47  ;;  %v11838_v47 = vld [vmem:[%s11329_s18 + $0x1] ss:$0 sm:$0xff] }
 0x4aa   : > { %9721 = vmatprep.subr.bf16.mxu0 %v10431_v29 }
 0x4ac   : > { %9674 = vmatmul.mubr.bf16.gmra.mrb[64].mxu0 %v11289_v17 }
 0x4ad   : > { %9677 = vmatprep.mubr.bf16.mxu0 %v11296_v27  ;;  %9722 = vmatpush3.bf16.msra.mxu0 %v10431_v29 }
 0x4ae   : > { %9723 = vmatprep.subr.bf16.mxu0 %v10432_v55 }
 0x4b0   : > { %9710 = vmatmul.mubr.bf16.gmra.mrb[68].mxu1 %v11303_v34 }
 0x4b1   : > { %9724 = vmatpush3.bf16.msra.mxu0 %v10432_v55  ;;  %9747 = vmatprep.mubr.msk.bf16.mxu1 %vm10988_vm0, %v13777_v37 }
 0x4b2   : > { %9725 = vmatprep.subr.bf16.mxu0 %v10433_v61 }
 0x4b4   : > { %9678 = vmatmul.mubr.bf16.gmra.mrb[68].mxu0 %v11303_v34 }
 0x4b5   : > { %9726 = vmatpush3.bf16.msra.mxu0 %v10433_v61  ;;  %9729 = vmatprep.mubr.bf16.mxu0 %v11254_v36 }
 0x4b6   : > { %9727 = vmatprep.subr.bf16.mxu0 %v10434_v1 }
 0x4b9   : > { %9728 = vmatpush3.bf16.msra.mxu0 %v10434_v1 }
 0x4ba   : > { %9769 = vmatprep.subr.bf16.mxu0 %v13777_v37 }
 0x4bc   : > { %9730 = vmatmul.mubr.bf16.vlgmr.msra.gmra.mrb[72].mxu0 %v11260_v58 }
 0x4bd   : > { %9733 = vmatprep.mubr.bf16.mxu0 %v11268_v7 }
 0x4c4   : > { %9734 = vmatmul.mubr.bf16.gmra.mrb[76].mxu0 %v11275_v18 }
 0x4c5   : > { %9737 = vmatprep.mubr.bf16.mxu0 %v11282_v23 }
 0x4cc   : > { %9738 = vmatmul.mubr.bf16.gmra.mrb[80].mxu0 %v11289_v17 }
 0x4cd   : > { %9741 = vmatprep.mubr.bf16.mxu0 %v11296_v27 }
 0x4d4   : > { %9742 = vmatmul.mubr.bf16.gmra.mrb[84].mxu0 %v11303_v34 }
 0x4d5   : > { %9771 = vmatprep.mubr.msk.bf16.mxu0 %vm10988_vm0, %v13777_v37 }
 0x52b   : > { %v11782_v43 = vpop.f32.mrb[40].mxu1 }
 0x52c   : > { %v9611_v22 = vpop.f32.mrb[41].mxu1 }
 0x52d   : > { %v11784_v45 = vpop.f32.mrb[42].mxu1 }
 0x52e   : > { %v9612_v42 = vpop.f32.mrb[43].mxu1 }
 0x52f   : > { %v11788_v10 = vpop.f32.mrb[40].mxu0 }
 0x530   : > { %v9605_v21 = vpop.f32.mrb[41].mxu0 }
 0x531   : > { %v11790_v46 = vpop.f32.mrb[42].mxu0 }
 0x532   : > { %v9606_v0 = vpop.f32.mrb[43].mxu0 }
 0x53b   : > { %v11794_v60 = vpop.f32.mrb[44].mxu1 }
 0x53c   : > { %v9623_v8 = vpop.f32.mrb[45].mxu1 }
 0x53d   : > { %v11796_v31 = vpop.f32.mrb[46].mxu1 }
 0x53e   : > { %v9624_v24 = vpop.f32.mrb[47].mxu1 }
 0x53f   : > { %v11800_v52 = vpop.f32.mrb[44].mxu0 }
 0x540   : > { %v9617_v40 = vpop.f32.mrb[45].mxu0 }
 0x541   : > { %v11802_v53 = vpop.f32.mrb[46].mxu0 }
 0x542   : > { %v9618_v39 = vpop.f32.mrb[47].mxu0 }
 0x543   : > { %v11806_v16 = vpop.f32.mrb[48].mxu1 }
 0x544   : > { %v9635_v13 = vpop.f32.mrb[49].mxu1 }
 0x545   : > { %v11808_v48 = vpop.f32.mrb[50].mxu1 }
 0x546   : > { %v9636_v54 = vpop.f32.mrb[51].mxu1 }
 0x547   : > { %v11812_v32 = vpop.f32.mrb[48].mxu0 }
 0x548   : > { %v9629_v44 = vpop.f32.mrb[49].mxu0 }
 0x549   : > { %v11814_v35 = vpop.f32.mrb[50].mxu0 }
 0x54a   : > { %v9630_v63 = vpop.f32.mrb[51].mxu0 }
 0x54b   : > { %v11818_v3 = vpop.f32.mrb[52].mxu1 }
 0x54c   : > { %13787 = vst [vmem:[#allocation6_spill] sm:$0xff] %v11818_v3  ;;  %v9647_v2 = vpop.f32.mrb[53].mxu1 }
 0x54d   : > { %v11820_v28 = vpop.f32.mrb[54].mxu1 }
 0x54e   : > { %v9648_v57 = vpop.f32.mrb[55].mxu1 }
 0x54f   : > { %v11824_v4 = vpop.f32.mrb[52].mxu0 }
 0x550   : > { %v9641_v5 = vpop.f32.mrb[53].mxu0 }
 0x551   : > { %v11826_v49 = vpop.f32.mrb[54].mxu0 }
 0x552   : > { %v9642_v41 = vpop.f32.mrb[55].mxu0 }
 0x56b   : > { %v9699_v20 = vpop.f32.mrb[56].mxu1 }
 0x56c   : > { %v2449_v51 = vpop.f32.mrb[57].mxu1  ;;  %v2458_v30 = vadd.f32 %v9699_v20, %v11831_v50 }
 0x56d   : > { %v9700_v56 = vpop.f32.mrb[58].mxu1  ;;  %v2450_v19 = vadd.f32 %v11831_v50, %v2449_v51 }
 0x56e   : > { %v2461_v6 = vadd.f32 %v9700_v56, %v11831_v50  ;;  %v2452_v15 = vpop.f32.mrb[59].mxu1 }
 0x56f   : > { %v2453_v26 = vadd.f32 %v11831_v50, %v2452_v15  ;;  %v9667_v12 = vpop.f32.mrb[56].mxu0 }
 0x570   : > { %v2692_v29 = vpack.c.bf16 %v2461_v6, %v2458_v30  ;;  %v2278_v55 = vpop.f32.mrb[57].mxu0  ;;  %v2287_v22 = vadd.f32 %v9667_v12, %v11838_v47 }
 0x571   : > { %v2691_v61 = vpack.c.bf16 %v2453_v26, %v2450_v19  ;;  %v9668_v1 = vpop.f32.mrb[58].mxu0  ;;  %v2279_v0 = vadd.f32 %v11838_v47, %v2278_v55 }
 0x572   : > { %v2290_v42 = vadd.f32 %v9668_v1, %v11838_v47  ;;  %v2281_v21 = vpop.f32.mrb[59].mxu0  ;;  %v2758_v1 = vsel %vm1239_vm1, %v2692_v29, 0 }
 0x573   : > { %v2282_v8 = vadd.f32 %v11838_v47, %v2281_v21  ;;  %v9703_v24 = vpop.f32.mrb[60].mxu1  ;;  %v2711_v40 = vsel %vm1239_vm1, %v2691_v61, 0 }
 0x574   : > { %v2684_v39 = vpack.c.bf16 %v2290_v42, %v2287_v22  ;;  %v2465_v13 = vpop.f32.mrb[61].mxu1  ;;  %9746 = vmatpush3.bf16.xpose.msra.mxu1 %v2711_v40  ;;  %v11847_v63 = vadd.f32 %v9703_v24, %v11831_v50 }
 0x575   : > { %v2683_v54 = vpack.c.bf16 %v2282_v8, %v2279_v0  ;;  %v9704_v44 = vpop.f32.mrb[62].mxu1  ;;  %9751 = vmatprep.subr.bf16.mxu1 %v13777_v37  ;;  %v2466_v5 = vadd.f32 %v11831_v50, %v2465_v13 }
 0x576   : > { %v11850_v2 = vadd.f32 %v9704_v44, %v11831_v50  ;;  %v2468_v57 = vpop.f32.mrb[63].mxu1 }
 0x577   : > { %v2469_v41 = vadd.f32 %v11831_v50, %v2468_v57  ;;  %v9671_v20 = vpop.f32.mrb[60].mxu0 }
 0x578   : > { %v2694_v51 = vpack.c.bf16 %v11850_v2, %v11847_v63  ;;  %v2294_v56 = vpop.f32.mrb[61].mxu0  ;;  %v11857_v15 = vadd.f32 %v9671_v20, %v11838_v47  ;;  %v8628_v63 = vld [vmem:[%s11435_s16 + $0x1] ss:$0 sm:$0xff] }
 0x579   : > { %v2693_v30 = vpack.c.bf16 %v2469_v41, %v2466_v5  ;;  %v9672_v6 = vpop.f32.mrb[62].mxu0  ;;  %v2295_v12 = vadd.f32 %v11838_v47, %v2294_v56 }
 0x57a   : > { %v11860_v19 = vadd.f32 %v9672_v6, %v11838_v47  ;;  %v2297_v26 = vpop.f32.mrb[63].mxu0 }
 0x57b   : > { %v2298_v55 = vadd.f32 %v11838_v47, %v2297_v26  ;;  %v9707_v61 = vpop.f32.mrb[64].mxu1  ;;  %9748 = vmatmul.mubr.msk.bf16.vlgmr.msra.gmra.mrb[72].mxu1 %vm1239_vm1, %v2683_v54 }
 0x57c   : > { %v2686_v22 = vpack.c.bf16 %v11860_v19, %v11857_v15  ;;  %v2481_v42 = vpop.f32.mrb[65].mxu1  ;;  %9752 = vmatpush3.bf16.xpose.msra.mxu1 %v2758_v1  ;;  %9753 = vmatprep.mubr.msk.bf16.mxu1 %vm10988_vm0, %v13777_v37  ;;  %v11872_v8 = vadd.f32 %v9707_v61, %v11831_v50  ;;  %v2805_v61 = vsel %vm1239_vm1, %v2693_v30, 0 }
 0x57d   : > { %v2685_v21 = vpack.c.bf16 %v2298_v55, %v2295_v12  ;;  %v9708_v0 = vpop.f32.mrb[66].mxu1  ;;  %9757 = vmatprep.subr.bf16.mxu1 %v13777_v37  ;;  %v2482_v29 = vadd.f32 %v11831_v50, %v2481_v42 }
 0x57e   : > { %v11875_v24 = vadd.f32 %v9708_v0, %v11831_v50  ;;  %v2484_v40 = vpop.f32.mrb[67].mxu1 }
 0x57f   : > { %v2485_v13 = vadd.f32 %v11831_v50, %v2484_v40  ;;  %v9675_v54 = vpop.f32.mrb[64].mxu0 }
 0x580   : > { %v2696_v44 = vpack.c.bf16 %v11875_v24, %v11872_v8  ;;  %v2310_v57 = vpop.f32.mrb[65].mxu0  ;;  %v11882_v20 = vadd.f32 %v9675_v54, %v11838_v47 }
 0x581   : > { %v2695_v5 = vpack.c.bf16 %v2485_v13, %v2482_v29  ;;  %v9676_v41 = vpop.f32.mrb[66].mxu0  ;;  %v2311_v26 = vadd.f32 %v11838_v47, %v2310_v57 }
 0x582   : > { %v11885_v56 = vadd.f32 %v9676_v41, %v11838_v47  ;;  %v2313_v6 = vpop.f32.mrb[67].mxu0 }
 0x583   : > { %v2314_v12 = vadd.f32 %v11838_v47, %v2313_v6  ;;  %v9711_v55 = vpop.f32.mrb[68].mxu1  ;;  %9754 = vmatmul.mubr.msk.bf16.vlgmr.msra.gmra.mrb[76].mxu1 %vm1239_vm1, %v2684_v39  ;;  %v2899_v1 = vsel %vm1239_vm1, %v2695_v5, 0 }
 0x584   : > { %v2688_v42 = vpack.c.bf16 %v11885_v56, %v11882_v20  ;;  %v2497_v0 = vpop.f32.mrb[69].mxu1  ;;  %9758 = vmatpush3.bf16.xpose.msra.mxu1 %v2805_v61  ;;  %9770 = vmatpush3.bf16.xpose.msra.mxu0 %v2899_v1  ;;  %v2506_v40 = vadd.f32 %v9711_v55, %v11831_v50 }
 0x585   : > { %v2687_v8 = vpack.c.bf16 %v2314_v12, %v2311_v26  ;;  %v9712_v24 = vpop.f32.mrb[70].mxu1  ;;  %9759 = vmatprep.mubr.msk.bf16.mxu1 %vm10988_vm0, %v13777_v37  ;;  %9763 = vmatprep.subr.bf16.mxu1 %v13777_v37  ;;  %v2498_v29 = vadd.f32 %v11831_v50, %v2497_v0 }
 0x586   : > { %v2509_v39 = vadd.f32 %v9712_v24, %v11831_v50  ;;  %v2500_v30 = vpop.f32.mrb[71].mxu1  ;;  %9781 = vmatprep.subr.bf16.mxu0 %v13777_v37 }
 0x587   : > { %v2501_v13 = vadd.f32 %v11831_v50, %v2500_v30  ;;  %v9679_v54 = vpop.f32.mrb[68].mxu0  ;;  %v2852_v50 = vsel %vm1239_vm1, %v2694_v51, 0 }
 0x588   : > { %v2698_v57 = vpack.c.bf16 %v2509_v39, %v2506_v40  ;;  %v2326_v5 = vpop.f32.mrb[69].mxu0  ;;  %v2335_v26 = vadd.f32 %v9679_v54, %v11838_v47 }
 0x589   : > { %v2697_v41 = vpack.c.bf16 %v2501_v13, %v2498_v29  ;;  %v9680_v6 = vpop.f32.mrb[70].mxu0  ;;  %v2327_v55 = vadd.f32 %v11838_v47, %v2326_v5  ;;  %v2946_v13 = vsel %vm1239_vm1, %v2696_v44, 0 }
 0x58a   : > { %v2338_v12 = vadd.f32 %v9680_v6, %v11838_v47  ;;  %v2329_v61 = vpop.f32.mrb[71].mxu0 }
 0x58b   : > { %v2330_v1 = vadd.f32 %v11838_v47, %v2329_v61  ;;  %9760 = vmatmul.mubr.msk.bf16.vlgmr.msra.gmra.mrb[80].mxu1 %vm1239_vm1, %v2685_v21  ;;  %9772 = vmatmul.mubr.msk.bf16.vlgmr.msra.gmra.mrb[88].mxu0 %vm1239_vm1, %v2687_v8  ;;  %v2993_v0 = vsel %vm1239_vm1, %v2697_v41, 0  ;;  %v3040_v61 = vsel %vm1239_vm1, %v2698_v57, 0 }
 0x58c   : > { %v2690_v24 = vpack.c.bf16 %v2338_v12, %v2335_v26  ;;  %9764 = vmatpush3.bf16.xpose.msra.mxu1 %v2852_v50  ;;  %9782 = vmatpush3.bf16.xpose.msra.mxu0 %v2993_v0 }
 0x58d   : > { %v2689_v40 = vpack.c.bf16 %v2330_v1, %v2327_v55  ;;  %9765 = vmatprep.mubr.msk.bf16.mxu1 %vm10988_vm0, %v13777_v37  ;;  %9783 = vmatprep.mubr.msk.bf16.mxu0 %vm10988_vm0, %v13777_v37 }
 0x58e   : > { %9775 = vmatprep.subr.bf16.mxu1 %v13777_v37  ;;  %9793 = vmatprep.subr.bf16.mxu0 %v13777_v37 }
 0x58f   : > { %v9731_v47 = vpop.f32.mrb[72].mxu0 }
 0x590   : > { %v2620_v2 = vpop.f32.mrb[73].mxu0  ;;  %v2629_v21 = vadd.f32 %v9731_v47, %v8628_v63 }
 0x591   : > { %v9732_v51 = vpop.f32.mrb[74].mxu0  ;;  %v2621_v30 = vadd.f32 %v8628_v63, %v2620_v2 }
 0x592   : > { %v2632_v8 = vadd.f32 %v9732_v51, %v8628_v63  ;;  %v2623_v39 = vpop.f32.mrb[75].mxu0 }
 0x593   : > { %v2624_v29 = vadd.f32 %v8628_v63, %v2623_v39  ;;  %9766 = vmatmul.mubr.msk.bf16.vlgmr.msra.gmra.mrb[84].mxu1 %vm1239_vm1, %v2686_v22  ;;  %9784 = vmatmul.mubr.msk.bf16.vlgmr.msra.gmra.mrb[92].mxu0 %vm1239_vm1, %v2689_v40 }
 0x594   : > { %v2700_v54 = vpack.c.bf16 %v2632_v8, %v2629_v21  ;;  %9776 = vmatpush3.bf16.xpose.msra.mxu1 %v2946_v13  ;;  %9777 = vmatprep.mubr.msk.bf16.mxu1 %vm10988_vm0, %v13777_v37 }
 0x595   : > { %v2699_v5 = vpack.c.bf16 %v2624_v29, %v2621_v30  ;;  %9787 = vmatprep.subr.bf16.mxu1 %v13777_v37  ;;  %9795 = vmatprep.mubr.msk.bf16.mxu0 %vm10988_vm0, %v13777_v37 }
 0x597   : > { %v9735_v41 = vpop.f32.mrb[76].mxu0  ;;  %9794 = vmatpush3.bf16.msra.mxu0 %v2699_v5 }
 0x598   : > { %v11931_v15 = vadd.f32 %v9735_v41, %v8628_v63  ;;  %v2636_v19 = vpop.f32.mrb[77].mxu0  ;;  %9805 = vmatprep.subr.bf16.mxu0 %v13777_v37 }
 0x599   : > { %v11934_v22 = vadd.f32 %v8628_v63, %v2636_v19  ;;  %v9736_v44 = vpop.f32.mrb[78].mxu0 }
 0x59a   : > { %v11936_v6 = vadd.f32 %v9736_v44, %v8628_v63  ;;  %v2639_v26 = vpop.f32.mrb[79].mxu0 }
 0x59b   : > { %v11938_v12 = vadd.f32 %v8628_v63, %v2639_v26  ;;  %9778 = vmatmul.mubr.msk.bf16.vlgmr.msra.gmra.mrb[88].mxu1 %vm1239_vm1, %v2688_v42 }
 0x59c   : > { %9788 = vmatpush3.bf16.xpose.msra.mxu1 %v3040_v61  ;;  %9789 = vmatprep.mubr.msk.bf16.mxu1 %vm10988_vm0, %v13777_v37 }
 0x59d   : > { %9799 = vmatprep.subr.bf16.mxu1 %v13777_v37 }
 0x59f   : > { %v9739_v50 = vpop.f32.mrb[80].mxu0 }
 0x5a0   : > { %v11952_v0 = vadd.f32 %v9739_v50, %v8628_v63  ;;  %v2652_v20 = vpop.f32.mrb[81].mxu0 }
 0x5a1   : > { %v11954_v56 = vadd.f32 %v8628_v63, %v2652_v20  ;;  %v9740_v42 = vpop.f32.mrb[82].mxu0 }
 0x5a2   : > { %v11956_v57 = vadd.f32 %v9740_v42, %v8628_v63  ;;  %v2655_v40 = vpop.f32.mrb[83].mxu0 }
 0x5a3   : > { %v11958_v47 = vadd.f32 %v8628_v63, %v2655_v40  ;;  %9790 = vmatmul.mubr.msk.bf16.vlgmr.msra.gmra.mrb[92].mxu1 %vm1239_vm1, %v2690_v24 }
 0x5a4   : > { %9800 = vmatpush3.bf16.msra.mxu1 %v2700_v54  ;;  %9801 = vmatprep.mubr.msk.bf16.mxu1 %vm10988_vm0, %v13777_v37 }
 0x5a5   : > { %9811 = vmatprep.subr.bf16.mxu1 %v13777_v37 }
 0x5a7   : > { %v9743_v21 = vpop.f32.mrb[84].mxu0 }
 0x5a8   : > { %v11968_v8 = vadd.f32 %v9743_v21, %v8628_v63  ;;  %v2668_v39 = vpop.f32.mrb[85].mxu0 }
 0x5a9   : > { %v11970_v30 = vadd.f32 %v8628_v63, %v2668_v39  ;;  %v9744_v29 = vpop.f32.mrb[86].mxu0 }
 0x5aa   : > { %v11972_v24 = vadd.f32 %v9744_v29, %v8628_v63  ;;  %v2671_v13 = vpop.f32.mrb[87].mxu0 }
 0x5ab   : > { %v11974_v5 = vadd.f32 %v8628_v63, %v2671_v13 }
 0x64e   : > { %v11980_v19 = vpop.f32.mrb[72].mxu1 }
 0x64f   : > { %v9749_v44 = vpop.f32.mrb[73].mxu1  ;;  %v3083_v39 = vsel %vm1616_vm2, %v11980_v19, -inf }
 0x650   : > { %v11982_v26 = vpop.f32.mrb[74].mxu1 }
 0x651   : > { %v9750_v61 = vpop.f32.mrb[75].mxu1  ;;  %v3086_v29 = vsel %vm1616_vm2, %v11982_v26, -inf }
 0x656   : > { %v11984_v50 = vpop.f32.mrb[76].mxu1 }
 0x657   : > { %v9755_v20 = vpop.f32.mrb[77].mxu1  ;;  %v3089_v42 = vsel %vm1616_vm2, %v11984_v50, -inf }
 0x658   : > { %3090 = vmax.xlane.f32.xlu0 %v3089_v42  ;;  %v11988_v63 = vpop.f32.mrb[78].mxu1 }
 0x659   : > { %v9756_v40 = vpop.f32.mrb[79].mxu1  ;;  %v3092_v21 = vsel %vm1616_vm2, %v11988_v63, -inf }
 0x65a   : > { %3093 = vmax.xlane.f32.xlu1 %v3092_v21 }
 0x65c   : > { %3084 = vmax.xlane.f32.xlu0 %v3083_v39 }
 0x65e   : > { %v11996_v13 = vpop.f32.mrb[88].mxu0  ;;  %3087 = vmax.xlane.f32.xlu1 %v3086_v29  ;;  %v11998_v44 = vpop.f32.mrb[80].mxu1 }
 0x65f   : > { %v9761_v61 = vpop.f32.mrb[81].mxu1  ;;  %v9773_v20 = vpop.f32.mrb[89].mxu0 }
 0x660   : > { %v12000_v42 = vpop.f32.mrb[82].mxu1  ;;  %v12002_v40 = vpop.f32.mrb[90].mxu0 }
 0x661   : > { %v9762_v62 = vpop.f32.mrb[83].mxu1  ;;  %v9774_v21 = vpop.f32.mrb[91].mxu0 }
 0x662   : > { %v3095_v21 = vsel %vm1616_vm2, %v11998_v44, -inf }
 0x666   : > { %v12004_v33 = vpop.f32.mrb[84].mxu1  ;;  %v12006_v38 = vpop.f32.mrb[92].mxu0 }
 0x667   : > { %v9767_v39 = vpop.f32.mrb[85].mxu1  ;;  %v9785_v59 = vpop.f32.mrb[93].mxu0  ;;  %v3101_v25 = vsel %vm1616_vm2, %v12004_v33, -inf }
 0x668   : > { %v12010_v29 = vpop.f32.mrb[94].mxu0  ;;  %3102 = vmax.xlane.f32.xlu0 %v3101_v25  ;;  %v12012_v61 = vpop.f32.mrb[86].mxu1  ;;  %v3098_v59 = vsel %vm1616_vm2, %v12000_v42, -inf }
 0x669   : > { %v9768_v20 = vpop.f32.mrb[87].mxu1  ;;  %v9786_v14 = vpop.f32.mrb[95].mxu0  ;;  %v3104_v62 = vsel %vm1616_vm2, %v12012_v61, -inf }
 0x66a   : > { %3105 = vmax.xlane.f32.xlu1 %v3104_v62 }
 0x66c   : > { %3096 = vmax.xlane.f32.xlu0 %v3095_v21  ;;  %v3107_v21 = vsel %vm1616_vm2, %v11996_v13, -inf }
 0x66e   : > { %3099 = vmax.xlane.f32.xlu1 %v3098_v59  ;;  %v12020_v39 = vpop.f32.mrb[88].mxu1  ;;  %v3110_v59 = vsel %vm1616_vm2, %v12002_v40, -inf }
 0x66f   : > { %v9779_v11 = vpop.f32.mrb[89].mxu1  ;;  %v3113_v25 = vsel %vm1616_vm2, %v12020_v39, -inf }
 0x670   : > { %3114 = vmax.xlane.f32.xlu0 %v3113_v25  ;;  %v12024_v14 = vpop.f32.mrb[90].mxu1 }
 0x671   : > { %v9780_v20 = vpop.f32.mrb[91].mxu1  ;;  %v3116_v62 = vsel %vm1616_vm2, %v12024_v14, -inf }
 0x672   : > { %3117 = vmax.xlane.f32.xlu1 %v3116_v62 }
 0x674   : > { %3108 = vmax.xlane.f32.xlu0 %v3107_v21  ;;  %v3119_v21 = vsel %vm1616_vm2, %v12006_v38, -inf }
 0x676   : > { %3111 = vmax.xlane.f32.xlu1 %v3110_v59  ;;  %v12032_v11 = vpop.f32.mrb[92].mxu1  ;;  %v3122_v59 = vsel %vm1616_vm2, %v12010_v29, -inf }
 0x677   : > { %v9791_v9 = vpop.f32.mrb[93].mxu1  ;;  %v3125_v25 = vsel %vm1616_vm2, %v12032_v11, -inf }
 0x678   : > { %3126 = vmax.xlane.f32.xlu0 %v3125_v25  ;;  %v12036_v20 = vpop.f32.mrb[94].mxu1 }
 0x679   : > { %v9792_v41 = vpop.f32.mrb[95].mxu1  ;;  %v3128_v62 = vsel %vm1616_vm2, %v12036_v20, -inf }
 0x67a   : > { %3129 = vmax.xlane.f32.xlu1 %v3128_v62 }
 0x67c   : > { %3120 = vmax.xlane.f32.xlu0 %v3119_v21 }
 0x67e   : > { %3123 = vmax.xlane.f32.xlu1 %v3122_v59 }
 0x6e5   : > { %v3091_v9 = vpop.xlane.xlu0 %3090 }
 0x6e6   : > { %v3133_v54 = vsub.f32 %v11984_v50, %v3091_v9 }
 0x6e7   : > { %v3094_v51 = vpop.xlane.xlu1 %3093 }
 0x6e8   : > { %v3151_v25 = vmul.f32 1.442695, %v3133_v54  ;;  %v3134_v2 = vsub.f32 %v11988_v63, %v3094_v51 }
 0x6e9   : > { %v3085_v41 = vpop.xlane.xlu0 %3084 }
 0x6ea   : > { %10627 = vpow2.f32 %v3151_v25  ;;  %v3153_v1 = vmul.f32 1.442695, %v3134_v2  ;;  %v3131_v62 = vsub.f32 %v11980_v19, %v3085_v41 }
 0x6eb   : > { %v3088_v37 = vpop.xlane.xlu1 %3087 }
 0x6ec   : > { %10629 = vpow2.f32 %v3153_v1  ;;  %v3147_v55 = vmul.f32 1.442695, %v3131_v62  ;;  %v3132_v21 = vsub.f32 %v11982_v26, %v3088_v37 }
 0x6ee   : > { %10631 = vpow2.f32 %v3147_v55  ;;  %v3149_v3 = vmul.f32 1.442695, %v3132_v21 }
 0x6f0   : > { %10633 = vpow2.f32 %v3149_v3 }
 0x6f4   : > { %v12048_v59 = vpop.eup %10627 }
 0x6f5   : > { %v3103_v50 = vpop.xlane.xlu0 %3102  ;;  %v3185_v54 = vsel %vm1616_vm2, %v12048_v59, 0.0 }
 0x6f6   : > { %v12052_v51 = vpop.eup %10629  ;;  %v3137_v2 = vsub.f32 %v12004_v33, %v3103_v50  ;;  %3186 = vadd.xlane.f32.xlu0 %v3185_v54 }
 0x6f7   : > { %v3106_v19 = vpop.xlane.xlu1 %3105  ;;  %v3188_v1 = vsel %vm1616_vm2, %v12052_v51, 0.0 }
 0x6f8   : > { %v12057_v63 = vpop.eup %10631  ;;  %v3159_v37 = vmul.f32 1.442695, %v3137_v2  ;;  %v3138_v3 = vsub.f32 %v12012_v61, %v3106_v19  ;;  %3189 = vadd.xlane.f32.xlu1 %v3188_v1 }
 0x6f9   : > { %v3097_v55 = vpop.xlane.xlu0 %3096  ;;  %v3179_v26 = vsel %vm1616_vm2, %v12057_v63, 0.0 }
 0x6fa   : > { %v12062_v9 = vpop.eup %10633  ;;  %10635 = vpow2.f32 %v3159_v37  ;;  %v3161_v25 = vmul.f32 1.442695, %v3138_v3  ;;  %v3135_v33 = vsub.f32 %v11998_v44, %v3097_v55  ;;  %3180 = vadd.xlane.f32.xlu0 %v3179_v26 }
 0x6fb   : > { %v3100_v41 = vpop.xlane.xlu1 %3099  ;;  %v3182_v62 = vsel %vm1616_vm2, %v12062_v9, 0.0 }
 0x6fc   : > { %10637 = vpow2.f32 %v3161_v25  ;;  %v3155_v21 = vmul.f32 1.442695, %v3135_v33  ;;  %v3136_v61 = vsub.f32 %v12000_v42, %v3100_v41  ;;  %3183 = vadd.xlane.f32.xlu1 %v3182_v62 }
 0x6fd   : > { %v3115_v50 = vpop.xlane.xlu0 %3114 }
 0x6fe   : > { %10639 = vpow2.f32 %v3155_v21  ;;  %v3157_v54 = vmul.f32 1.442695, %v3136_v61  ;;  %v3141_v2 = vsub.f32 %v12020_v39, %v3115_v50 }
 0x6ff   : > { %v3118_v19 = vpop.xlane.xlu1 %3117 }
 0x700   : > { %10641 = vpow2.f32 %v3157_v54  ;;  %v3167_v1 = vmul.f32 1.442695, %v3141_v2  ;;  %v3142_v44 = vsub.f32 %v12024_v14, %v3118_v19 }
 0x701   : > { %v3109_v37 = vpop.xlane.xlu0 %3108 }
 0x702   : > { %10643 = vpow2.f32 %v3167_v1  ;;  %v3169_v3 = vmul.f32 1.442695, %v3142_v44  ;;  %v3139_v55 = vsub.f32 %v11996_v13, %v3109_v37 }
 0x703   : > { %v3112_v26 = vpop.xlane.xlu1 %3111 }
 0x704   : > { %v12071_v25 = vpop.eup %10635  ;;  %10645 = vpow2.f32 %v3169_v3  ;;  %v3163_v42 = vmul.f32 1.442695, %v3139_v55  ;;  %v3140_v33 = vsub.f32 %v12002_v40, %v3112_v26 }
 0x705   : > { %v3127_v41 = vpop.xlane.xlu0 %3126  ;;  %v3197_v39 = vsel %vm1616_vm2, %v12071_v25, 0.0 }
 0x706   : > { %v12076_v62 = vpop.eup %10637  ;;  %10647 = vpow2.f32 %v3163_v42  ;;  %v3165_v14 = vmul.f32 1.442695, %v3140_v33  ;;  %v3145_v21 = vsub.f32 %v12032_v11, %v3127_v41  ;;  %3198 = vadd.xlane.f32.xlu0 %v3197_v39 }
 0x707   : > { %v3130_v61 = vpop.xlane.xlu1 %3129  ;;  %v3200_v13 = vsel %vm1616_vm2, %v12076_v62, 0.0 }
 0x708   : > { %v12081_v50 = vpop.eup %10639  ;;  %10649 = vpow2.f32 %v3165_v14  ;;  %v3175_v54 = vmul.f32 1.442695, %v3145_v21  ;;  %v3146_v40 = vsub.f32 %v12036_v20, %v3130_v61  ;;  %3201 = vadd.xlane.f32.xlu1 %v3200_v13 }
 0x709   : > { %v3121_v2 = vpop.xlane.xlu0 %3120  ;;  %v3191_v19 = vsel %vm1616_vm2, %v12081_v50, 0.0 }
 0x70a   : > { %v12086_v1 = vpop.eup %10641  ;;  %10651 = vpow2.f32 %v3175_v54  ;;  %v3177_v11 = vmul.f32 1.442695, %v3146_v40  ;;  %v3143_v44 = vsub.f32 %v12006_v38, %v3121_v2  ;;  %3192 = vadd.xlane.f32.xlu0 %v3191_v19 }
 0x70b   : > { %v3124_v37 = vpop.xlane.xlu1 %3123  ;;  %v3194_v3 = vsel %vm1616_vm2, %v12086_v1, 0.0 }
 0x70c   : > { %v12091_v55 = vpop.eup %10643  ;;  %10653 = vpow2.f32 %v3177_v11  ;;  %v3171_v20 = vmul.f32 1.442695, %v3143_v44  ;;  %v3144_v26 = vsub.f32 %v12010_v29, %v3124_v37  ;;  %3195 = vadd.xlane.f32.xlu1 %v3194_v3 }
 0x70d   : > { %v3209_v42 = vsel %vm1616_vm2, %v12091_v55, 0.0 }
 0x70e   : > { %v12096_v33 = vpop.eup %10645  ;;  %10655 = vpow2.f32 %v3171_v20  ;;  %v3173_v41 = vmul.f32 1.442695, %v3144_v26  ;;  %3210 = vadd.xlane.f32.xlu0 %v3209_v42 }
 0x70f   : > { %v3212_v38 = vsel %vm1616_vm2, %v12096_v33, 0.0 }
 0x710   : > { %v12100_v39 = vpop.eup %10647  ;;  %10657 = vpow2.f32 %v3173_v41  ;;  %3213 = vadd.xlane.f32.xlu1 %v3212_v38 }
 0x711   : > { %v3203_v14 = vsel %vm1616_vm2, %v12100_v39, 0.0 }
 0x712   : > { %v12104_v29 = vpop.eup %10649  ;;  %3204 = vadd.xlane.f32.xlu0 %v3203_v14 }
 0x713   : > { %v3206_v21 = vsel %vm1616_vm2, %v12104_v29, 0.0 }
 0x714   : > { %v12108_v61 = vpop.eup %10651  ;;  %3207 = vadd.xlane.f32.xlu1 %v3206_v21 }
 0x715   : > { %v3221_v13 = vsel %vm1616_vm2, %v12108_v61, 0.0 }
 0x716   : > { %v12112_v54 = vpop.eup %10653  ;;  %3222 = vadd.xlane.f32.xlu0 %v3221_v13 }
 0x717   : > { %v3224_v40 = vsel %vm1616_vm2, %v12112_v54, 0.0 }
 0x718   : > { %v12116_v2 = vpop.eup %10655  ;;  %3225 = vadd.xlane.f32.xlu1 %v3224_v40 }
 0x719   : > { %v3215_v19 = vsel %vm1616_vm2, %v12116_v2, 0.0 }
 0x71a   : > { %v12120_v11 = vpop.eup %10657  ;;  %3216 = vadd.xlane.f32.xlu0 %v3215_v19 }
 0x71b   : > { %v3218_v44 = vsel %vm1616_vm2, %v12120_v11, 0.0 }
 0x71c   : > { %3219 = vadd.xlane.f32.xlu1 %v3218_v44 }
 0x783   : > { %v3187_v37 = vpop.xlane.xlu0 %3186 }
 0x784   : > { %10659 = vrcp.f32 %v3187_v37 }
 0x785   : > { %v3190_v3 = vpop.xlane.xlu1 %3189 }
 0x786   : > { %10661 = vrcp.f32 %v3190_v3 }
 0x787   : > { %v3181_v20 = vpop.xlane.xlu0 %3180 }
 0x788   : > { %10663 = vrcp.f32 %v3181_v20  ;;  %v13788_v20 = vpack.c.bf16 %v11936_v6, %v11931_v15 }
 0x789   : > { %v3184_v26 = vpop.xlane.xlu1 %3183 }
 0x78a   : > { %10665 = vrcp.f32 %v3184_v26 }
 0x78e   : > { %v10660_v42 = vpop.eup %10659 }
 0x78f   : > { %v3245_v38 = vmul.f32 %v10660_v42, %v12048_v59  ;;  %v13789_v59 = vmov 0.0  }
 0x790   : > { %v10662_v41 = vpop.eup %10661 }
 0x791   : > { %v3246_v14 = vmul.f32 %v10662_v41, %v12052_v51 }
 0x792   : > { %v10664_v21 = vpop.eup %10663 }
 0x793   : > { %v3199_v13 = vpop.xlane.xlu0 %3198  ;;  %v3260_v40 = vpack.c.bf16 %v3246_v14, %v3245_v38  ;;  %v3243_v44 = vmul.f32 %v10664_v21, %v12057_v63 }
 0x794   : > { %v10666_v19 = vpop.eup %10665  ;;  %10667 = vrcp.f32 %v3199_v13 }
 0x795   : > { %v3244_v37 = vmul.f32 %v10666_v19, %v12062_v9  ;;  %9802 = vmatmul.mubr.msk.bf16.vlgmr.msra.gmra.mrb[96].mxu1 %vm1616_vm2, %v3260_v40  ;;  %v3202_v3 = vpop.xlane.xlu1 %3201  ;;  %v13790_v9 = vpack.c.bf16 %v11938_v12, %v11934_v22 }
 0x796   : > { %9812 = vmatpush3.bf16.msra.mxu1 %v13788_v20  ;;  %10669 = vrcp.f32 %v3202_v3  ;;  %9813 = vmatprep.mubr.msk.bf16.mxu1 %vm10988_vm0, %v13789_v59 }
 0x797   : > { %v3193_v51 = vpop.xlane.xlu0 %3192  ;;  %v3259_v26 = vpack.c.bf16 %v3244_v37, %v3243_v44  ;;  %9823 = vmatprep.subr.bf16.mxu1 %v13789_v59 }
 0x798   : > { %10671 = vrcp.f32 %v3193_v51 }
 0x799   : > { %9796 = vmatmul.mubr.msk.bf16.vlgmr.msra.gmra.mrb[96].mxu0 %vm1616_vm2, %v3259_v26  ;;  %v3196_v63 = vpop.xlane.xlu1 %3195 }
 0x79a   : > { %9806 = vmatpush3.bf16.msra.mxu0 %v13790_v9  ;;  %10673 = vrcp.f32 %v3196_v63  ;;  %9807 = vmatprep.mubr.msk.bf16.mxu0 %vm10988_vm0, %v13789_v59 }
 0x79b   : > { %v3211_v15 = vpop.xlane.xlu0 %3210  ;;  %9817 = vmatprep.subr.bf16.mxu0 %v13789_v59 }
 0x79c   : > { %10675 = vrcp.f32 %v3211_v15  ;;  %v10435_v15 = vld [vmem:[%s11144_s20 + $0x80] sm:$0xff]  }
 0x79d   : > { %v3214_v6 = vpop.xlane.xlu1 %3213 }
 0x79e   : > { %v10668_v42 = vpop.eup %10667  ;;  %10677 = vrcp.f32 %v3214_v6 }
 0x79f   : > { %v3205_v41 = vpop.xlane.xlu0 %3204  ;;  %v3249_v14 = vmul.f32 %v10668_v42, %v12071_v25  ;;  %v13791_v25 = vpack.c.bf16 %v11956_v57, %v11952_v0  ;;  %v13792_v57 = vpack.c.bf16 %v11958_v47, %v11954_v56  ;;  %v13793_v56 = vpack.c.bf16 %v11972_v24, %v11968_v8  ;;  %v10436_v24 = vld [vmem:[%s11144_s20 + $0x88] sm:$0xff]  }
 0x7a0   : > { %v10670_v38 = vpop.eup %10669  ;;  %10679 = vrcp.f32 %v3205_v41 }
 0x7a1   : > { %v3250_v21 = vmul.f32 %v10670_v38, %v12076_v62  ;;  %v3208_v22 = vpop.xlane.xlu1 %3207 }
 0x7a2   : > { %v10672_v12 = vpop.eup %10671  ;;  %10681 = vrcp.f32 %v3208_v22 }
 0x7a3   : > { %v3223_v13 = vpop.xlane.xlu0 %3222  ;;  %v3262_v40 = vpack.c.bf16 %v3250_v21, %v3249_v14  ;;  %v3247_v44 = vmul.f32 %v10672_v12, %v12081_v50  ;;  %v13794_v14 = vpack.c.bf16 %v11974_v5, %v11970_v30  ;;  %v10437_v5 = vld [vmem:[%s11144_s20 + $0x90] sm:$0xff]  }
 0x7a4   : > { %v10674_v19 = vpop.eup %10673  ;;  %10683 = vrcp.f32 %v3223_v13  ;;  %v10441_v12 = vld [vmem:[%s11144_s20 + $0xb0] sm:$0xff]   ;;  %v10442_v13 = vld [vmem:[%s11144_s20 + $0xb8] sm:$0xff]  }
 0x7a5   : > { %v3248_v37 = vmul.f32 %v10674_v19, %v12086_v1  ;;  %9814 = vmatmul.mubr.msk.bf16.vlgmr.msra.gmra.mrb[100].mxu1 %vm1616_vm2, %v3262_v40  ;;  %v3226_v3 = vpop.xlane.xlu1 %3225  ;;  %v10443_v40 = vld [vmem:[%s11150_s23 + $0x80] sm:$0xff]   ;;  %v10444_v19 = vld [vmem:[%s11150_s23 + $0x88] sm:$0xff]  }
 0x7a6   : > { %v10676_v20 = vpop.eup %10675  ;;  %9824 = vmatpush3.bf16.msra.mxu1 %v13791_v25  ;;  %10685 = vrcp.f32 %v3226_v3  ;;  %9825 = vmatprep.mubr.msk.bf16.mxu1 %vm10988_vm0, %v13789_v59  ;;  %v10447_v3 = vld [vmem:[%s11150_s23 + $0xa0] sm:$0xff]   ;;  %v10449_v25 = vld [vmem:[%s11150_s23 + $0xb0] sm:$0xff]  }
 0x7a7   : > { %v3217_v62 = vpop.xlane.xlu0 %3216  ;;  %v3261_v51 = vpack.c.bf16 %v3248_v37, %v3247_v44  ;;  %9835 = vmatprep.subr.bf16.mxu1 %v13789_v59  ;;  %v3253_v1 = vmul.f32 %v10676_v20, %v12091_v55  ;;  %v10445_v44 = vld [vmem:[%s11150_s23 + $0x90] sm:$0xff]   ;;  %v10446_v37 = vld [vmem:[%s11150_s23 + $0x98] sm:$0xff]   ;;  %v10448_v20 = vld [vmem:[%s11150_s23 + $0xa8] sm:$0xff]  }
 0x7a8   : > { %v10678_v50 = vpop.eup %10677  ;;  %10687 = vrcp.f32 %v3217_v62  ;;  %v10450_v62 = vld [vmem:[%s11150_s23 + $0xb8] sm:$0xff]  }
 0x7a9   : > { %v3254_v26 = vmul.f32 %v10678_v50, %v12096_v33  ;;  %9808 = vmatmul.mubr.msk.bf16.vlgmr.msra.gmra.mrb[100].mxu0 %vm1616_vm2, %v3261_v51  ;;  %v3220_v63 = vpop.xlane.xlu1 %3219  ;;  %v10451_v51 = vld [vmem:[%s12208_s21 + $0x10] sm:$0xff]   ;;  %v10452_v50 = vld [vmem:[%s12208_s21 + $0x18] sm:$0xff]  }
 0x7aa   : > { %v10680_v0 = vpop.eup %10679  ;;  %9818 = vmatpush3.bf16.msra.mxu0 %v13792_v57  ;;  %10689 = vrcp.f32 %v3220_v63  ;;  %9819 = vmatprep.mubr.msk.bf16.mxu0 %vm10988_vm0, %v13789_v59 }
 0x7ab   : > { %v3264_v9 = vpack.c.bf16 %v3254_v26, %v3253_v1  ;;  %9829 = vmatprep.subr.bf16.mxu0 %v13789_v59  ;;  %v3251_v55 = vmul.f32 %v10680_v0, %v12100_v39  ;;  %v10453_v1 = vld [vmem:[%s12208_s21] sm:$0xff]  }
 0x7ac   : > { %v10682_v6 = vpop.eup %10681 }
 0x7ad   : > { %v3252_v33 = vmul.f32 %v10682_v6, %v12104_v29  ;;  %9826 = vmatmul.mubr.msk.bf16.vlgmr.msra.gmra.mrb[104].mxu1 %vm1616_vm2, %v3264_v9 }
 0x7ae   : > { %v10684_v42 = vpop.eup %10683  ;;  %9836 = vmatpush3.bf16.msra.mxu1 %v13793_v56  ;;  %9837 = vmatprep.mubr.msk.bf16.mxu1 %vm10988_vm0, %v13789_v59  ;;  %v10454_v56 = vld [vmem:[%s12208_s21 + $0x8] sm:$0xff]  }
 0x7af   : > { %v3263_v47 = vpack.c.bf16 %v3252_v33, %v3251_v55  ;;  %9881 = vmatprep.subr.bf16.mxu1 %v10435_v15  ;;  %v3257_v38 = vmul.f32 %v10684_v42, %v12108_v61 }
 0x7b0   : > { %v10686_v41 = vpop.eup %10685 }
 0x7b1   : > { %v3258_v39 = vmul.f32 %v10686_v41, %v12112_v54  ;;  %9820 = vmatmul.mubr.msk.bf16.vlgmr.msra.gmra.mrb[104].mxu0 %vm1616_vm2, %v3263_v47  ;;  %v10438_v54 = vld [vmem:[%s11144_s20 + $0x98] sm:$0xff]   ;;  %v10455_v47 = vld [vmem:[%s11246_s14 + $0x80] sm:$0xff]  }
 0x7b2   : > { %v10688_v29 = vpop.eup %10687  ;;  %9830 = vmatpush3.bf16.msra.mxu0 %v13794_v14  ;;  %9831 = vmatprep.mubr.msk.bf16.mxu0 %vm10988_vm0, %v13789_v59 }
 0x7b3   : > { %v3266_v8 = vpack.c.bf16 %v3258_v39, %v3257_v38  ;;  %v3255_v61 = vmul.f32 %v10688_v29, %v12116_v2  ;;  %v10439_v2 = vld [vmem:[%s11144_s20 + $0xa0] sm:$0xff]   ;;  %9841 = vmatprep.subr.bf16.mxu0 %v10451_v51 }
 0x7b4   : > { %v10690_v21 = vpop.eup %10689 }
 0x7b5   : > { %v3256_v22 = vmul.f32 %v10690_v21, %v12120_v11  ;;  %9838 = vmatmul.mubr.msk.bf16.vlgmr.msra.gmra.mrb[108].mxu1 %vm1616_vm2, %v3266_v8  ;;  %v10440_v11 = vld [vmem:[%s11144_s20 + $0xa8] sm:$0xff]  }
 0x7b6   : > { %9882 = vmatpush3.bf16.msra.mxu1 %v10435_v15  ;;  %9897 = vmatprep.mubr.bf16.mxu1 %v11254_v36 }
 0x7b7   : > { %9883 = vmatprep.subr.bf16.mxu1 %v10436_v24  ;;  %v3265_v30 = vpack.c.bf16 %v3256_v22, %v3255_v61 }
 0x7b9   : > { %9832 = vmatmul.mubr.msk.bf16.vlgmr.msra.gmra.mrb[108].mxu0 %vm1616_vm2, %v3265_v30 }
 0x7ba   : > { %9884 = vmatpush3.bf16.msra.mxu1 %v10436_v24  ;;  %9842 = vmatpush3.bf16.msra.mxu0 %v10451_v51 }
 0x7bb   : > { %9885 = vmatprep.subr.bf16.mxu1 %v10437_v5  ;;  %9843 = vmatprep.subr.bf16.mxu0 %v10452_v50 }
 0x7be   : > { %9886 = vmatpush3.bf16.msra.mxu1 %v10437_v5  ;;  %9844 = vmatpush3.bf16.msra.mxu0 %v10452_v50 }
 0x7bf   : > { %9887 = vmatprep.subr.bf16.mxu1 %v10438_v54  ;;  %9861 = vmatprep.subr.bf16.mxu0 %v10453_v1 }
 0x7c2   : > { %9888 = vmatpush3.bf16.msra.mxu1 %v10438_v54 }
 0x7c3   : > { %9889 = vmatprep.subr.bf16.mxu1 %v10439_v2 }
 0x7c6   : > { %9890 = vmatpush3.bf16.msra.mxu1 %v10439_v2 }
 0x7c7   : > { %9891 = vmatprep.subr.bf16.mxu1 %v10440_v11 }
 0x7ca   : > { %9892 = vmatpush3.bf16.msra.mxu1 %v10440_v11 }
 0x7cb   : > { %9893 = vmatprep.subr.bf16.mxu1 %v10441_v12 }
 0x7ce   : > { %9894 = vmatpush3.bf16.msra.mxu1 %v10441_v12 }
 0x7cf   : > { %9895 = vmatprep.subr.bf16.mxu1 %v10442_v13 }
 0x7d2   : > { %9896 = vmatpush3.bf16.msra.mxu1 %v10442_v13 }
 0x7d3   : > { %9913 = vmatprep.subr.bf16.mxu1 %v10443_v40 }
 0x7d5   : > { %9898 = vmatmul.mubr.bf16.vlgmr.msra.gmra.mrb[112].mxu1 %v11260_v58 }
 0x7d6   : > { %9901 = vmatprep.mubr.bf16.mxu1 %v11268_v7  ;;  %9914 = vmatpush3.bf16.msra.mxu1 %v10443_v40 }
 0x7d7   : > { %9915 = vmatprep.subr.bf16.mxu1 %v10444_v19 }
 0x7da   : > { %9916 = vmatpush3.bf16.msra.mxu1 %v10444_v19 }
 0x7db   : > { %9917 = vmatprep.subr.bf16.mxu1 %v10445_v44 }
 0x7dd   : > { %9902 = vmatmul.mubr.bf16.gmra.mrb[116].mxu1 %v11275_v18 }
 0x7de   : > { %9905 = vmatprep.mubr.bf16.mxu1 %v11282_v23  ;;  %9918 = vmatpush3.bf16.msra.mxu1 %v10445_v44 }
 0x7df   : > { %9919 = vmatprep.subr.bf16.mxu1 %v10446_v37 }
 0x7e2   : > { %9920 = vmatpush3.bf16.msra.mxu1 %v10446_v37 }
 0x7e3   : > { %9921 = vmatprep.subr.bf16.mxu1 %v10447_v3 }
 0x7e5   : > { %9906 = vmatmul.mubr.bf16.gmra.mrb[120].mxu1 %v11289_v17 }
 0x7e6   : > { %9909 = vmatprep.mubr.bf16.mxu1 %v11296_v27  ;;  %9922 = vmatpush3.bf16.msra.mxu1 %v10447_v3 }
 0x7e7   : > { %9923 = vmatprep.subr.bf16.mxu1 %v10448_v20 }
 0x7ea   : > { %9924 = vmatpush3.bf16.msra.mxu1 %v10448_v20 }
 0x7eb   : > { %9925 = vmatprep.subr.bf16.mxu1 %v10449_v25 }
 0x7ed   : > { %9910 = vmatmul.mubr.bf16.gmra.mrb[124].mxu1 %v11303_v34 }
 0x7ee   : > { %9926 = vmatpush3.bf16.msra.mxu1 %v10449_v25  ;;  %9929 = vmatprep.mubr.bf16.mxu1 %v11254_v36 }
 0x7ef   : > { %9927 = vmatprep.subr.bf16.mxu1 %v10450_v62 }
 0x7f2   : > { %9928 = vmatpush3.bf16.msra.mxu1 %v10450_v62 }
 0x7f3   : > { %9977 = vmatprep.subr.bf16.mxu1 %v13789_v59 }
 0x7f5   : > { %9930 = vmatmul.mubr.bf16.vlgmr.msra.gmra.mrb[128].mxu1 %v11260_v58 }
 0x7f6   : > { %9933 = vmatprep.mubr.bf16.mxu1 %v11268_v7 }
 0x7fd   : > { %9934 = vmatmul.mubr.bf16.gmra.mrb[132].mxu1 %v11275_v18 }
 0x7fe   : > { %9937 = vmatprep.mubr.bf16.mxu1 %v11282_v23 }
 0x805   : > { %9938 = vmatmul.mubr.bf16.gmra.mrb[136].mxu1 %v11289_v17 }
 0x806   : > { %9941 = vmatprep.mubr.bf16.mxu1 %v11296_v27 }
 0x80d   : > { %9942 = vmatmul.mubr.bf16.gmra.mrb[140].mxu1 %v11303_v34 }
 0x80e   : > { %9979 = vmatprep.mubr.msk.bf16.mxu1 %vm10988_vm0, %v13789_v59 }
 0x868   : > { %v3348_v26 = vpop.f32.mrb[96].mxu1 }
 0x869   : > { %v9803_v63 = vpop.f32.mrb[97].mxu1 }
 0x86a   : > { %v3351_v0 = vpop.f32.mrb[98].mxu1 }
 0x86b   : > { %v3620_v57 = vpack.c.bf16 %v3351_v0, %v3348_v26  ;;  %v9804_v9 = vpop.f32.mrb[99].mxu1  ;;  %v13795_v0 = vpack.c.bf16 %v11790_v46, %v11788_v10  ;;  %v10458_v10 = vld [vmem:[%s11246_s14 + $0x98] sm:$0xff]   ;;  %v13798_v46 = vpack.c.bf16 %v11796_v31, %v11794_v60  ;;  %v13800_v60 = vpack.c.bf16 %v11808_v48, %v11806_v16  ;;  %v10461_v16 = vld [vmem:[%s11246_s14 + $0xb0] sm:$0xff]  }
 0x86c   : > { %v3304_v15 = vpop.f32.mrb[96].mxu0  ;;  %v13796_v9 = vpack.c.bf16 %v11784_v45, %v11782_v43  ;;  %v13799_v43 = vpack.c.bf16 %v11814_v35, %v11812_v32  ;;  %v10459_v45 = vld [vmem:[%s11246_s14 + $0xa0] sm:$0xff]  }
 0x86d   : > { %v9797_v6 = vpop.f32.mrb[97].mxu0 }
 0x86e   : > { %v3307_v55 = vpop.f32.mrb[98].mxu0  ;;  %v10457_v6 = vld [vmem:[%s11246_s14 + $0x90] sm:$0xff]  }
 0x86f   : > { %v3619_v33 = vpack.c.bf16 %v3307_v55, %v3304_v15  ;;  %v9798_v42 = vpop.f32.mrb[99].mxu0  ;;  %v13797_v15 = vpack.c.bf16 %v11802_v53, %v11800_v52  ;;  %v8699_v53 = vld [vmem:[%s11329_s18 + $0x2] ss:$0 sm:$0xff]  ;;  %v10460_v55 = vld [vmem:[%s11246_s14 + $0xa8] sm:$0xff]  }
 0x871   : > { %9845 = vmatprep.mubr.msk.bf16.mxu0 %vm1239_vm1, %v3619_v33 }
 0x872   : > { %9846 = vmatmul.mubr.msk.bf16.vlgmr.msra.gmra.mrb[112].mxu0 %vm1239_vm1, %v3620_v57  ;;  %v10456_v57 = vld [vmem:[%s11246_s14 + $0x88] sm:$0xff]  }
 0x873   : > { %9862 = vmatpush3.bf16.msra.mxu0 %v10453_v1 }
 0x874   : > { %9863 = vmatprep.subr.bf16.mxu0 %v10454_v56 }
 0x877   : > { %9864 = vmatpush3.bf16.msra.mxu0 %v10454_v56  ;;  %v13801_v56 = vpack.c.bf16 %v11826_v49, %v11824_v4 }
 0x878   : > { %v3436_v41 = vpop.f32.mrb[100].mxu1  ;;  %9945 = vmatprep.subr.bf16.mxu0 %v10455_v47 }
 0x879   : > { %v9815_v38 = vpop.f32.mrb[101].mxu1 }
 0x87a   : > { %v3439_v39 = vpop.f32.mrb[102].mxu1 }
 0x87b   : > { %v3622_v29 = vpack.c.bf16 %v3439_v39, %v3436_v41  ;;  %v9816_v14 = vpop.f32.mrb[103].mxu1 }
 0x87c   : > { %v3392_v8 = vpop.f32.mrb[100].mxu0  ;;  %v13802_v14 = vld [vmem:[#allocation6_spill] sm:$0xff] }
 0x87d   : > { %v9809_v24 = vpop.f32.mrb[101].mxu0 }
 0x87e   : > { %v3395_v21 = vpop.f32.mrb[102].mxu0 }
 0x87f   : > { %v3621_v61 = vpack.c.bf16 %v3395_v21, %v3392_v8  ;;  %v9810_v22 = vpop.f32.mrb[103].mxu0  ;;  %v13803_v8 = vpack.c.bf16 %v11820_v28, %v13802_v14 }
 0x880   : > { %v3524_v30 = vpop.f32.mrb[104].mxu1 }
 0x881   : > { %v9827_v5 = vpop.f32.mrb[105].mxu1  ;;  %9849 = vmatprep.mubr.msk.bf16.mxu0 %vm1239_vm1, %v3621_v61 }
 0x882   : > { %v3527_v54 = vpop.f32.mrb[106].mxu1  ;;  %9850 = vmatmul.mubr.msk.bf16.gmra.mrb[116].mxu0 %vm1239_vm1, %v3622_v29  ;;  %v10462_v29 = vld [vmem:[%s11246_s14 + $0xb8] sm:$0xff]  }
 0x883   : > { %v3624_v2 = vpack.c.bf16 %v3527_v54, %v3524_v30  ;;  %v9828_v11 = vpop.f32.mrb[107].mxu1 }
 0x884   : > { %v3480_v12 = vpop.f32.mrb[104].mxu0 }
 0x885   : > { %v9821_v13 = vpop.f32.mrb[105].mxu0 }
 0x886   : > { %v3483_v40 = vpop.f32.mrb[106].mxu0 }
 0x887   : > { %v3623_v19 = vpack.c.bf16 %v3483_v40, %v3480_v12  ;;  %v9822_v44 = vpop.f32.mrb[107].mxu0 }
 0x888   : > { %v3612_v37 = vpop.f32.mrb[108].mxu1 }
 0x889   : > { %v9839_v3 = vpop.f32.mrb[109].mxu1  ;;  %9853 = vmatprep.mubr.msk.bf16.mxu0 %vm1239_vm1, %v3623_v19 }
 0x88a   : > { %v3615_v20 = vpop.f32.mrb[110].mxu1  ;;  %9854 = vmatmul.mubr.msk.bf16.gmra.mrb[120].mxu0 %vm1239_vm1, %v3624_v2 }
 0x88b   : > { %v3626_v25 = vpack.c.bf16 %v3615_v20, %v3612_v37  ;;  %v9840_v62 = vpop.f32.mrb[111].mxu1 }
 0x88c   : > { %v3568_v51 = vpop.f32.mrb[108].mxu0 }
 0x88d   : > { %v9833_v50 = vpop.f32.mrb[109].mxu0 }
 0x88e   : > { %v3571_v1 = vpop.f32.mrb[110].mxu0 }
 0x88f   : > { %v3625_v26 = vpack.c.bf16 %v3571_v1, %v3568_v51  ;;  %v9834_v63 = vpop.f32.mrb[111].mxu0 }
 0x891   : > { %9857 = vmatprep.mubr.msk.bf16.mxu0 %vm1239_vm1, %v3625_v26 }
 0x892   : > { %9858 = vmatmul.mubr.msk.bf16.gmra.mrb[124].mxu0 %vm1239_vm1, %v3626_v25 }
 0x893   : > { %9865 = vmatprep.mubr.msk.bf16.mxu0 %vm1239_vm1, %v13795_v0 }
 0x89a   : > { %9866 = vmatmul.mubr.msk.bf16.vlgmr.msra.gmra.mrb[112].mxu0 %vm1239_vm1, %v13796_v9 }
 0x89b   : > { %9869 = vmatprep.mubr.msk.bf16.mxu0 %vm1239_vm1, %v13797_v15  ;;  %9946 = vmatpush3.bf16.msra.mxu0 %v10455_v47  ;;  %v12331_v15 = vld [vmem:[%s11335_s22 + $0x2] ss:$0 sm:$0xff] }
 0x89c   : > { %9947 = vmatprep.subr.bf16.mxu0 %v10456_v57 }
 0x89f   : > { %9948 = vmatpush3.bf16.msra.mxu0 %v10456_v57 }
 0x8a0   : > { %9949 = vmatprep.subr.bf16.mxu0 %v10457_v6 }
 0x8a2   : > { %9870 = vmatmul.mubr.msk.bf16.gmra.mrb[116].mxu0 %vm1239_vm1, %v13798_v46 }
 0x8a3   : > { %9873 = vmatprep.mubr.msk.bf16.mxu0 %vm1239_vm1, %v13799_v43  ;;  %9950 = vmatpush3.bf16.msra.mxu0 %v10457_v6 }
 0x8a4   : > { %9951 = vmatprep.subr.bf16.mxu0 %v10458_v10 }
 0x8a7   : > { %9952 = vmatpush3.bf16.msra.mxu0 %v10458_v10 }
 0x8a8   : > { %v9899_v52 = vpop.f32.mrb[112].mxu1  ;;  %9953 = vmatprep.subr.bf16.mxu0 %v10459_v45 }
 0x8a9   : > { %v4010_v33 = vpop.f32.mrb[113].mxu1  ;;  %v12266_v31 = vadd.f32 %v9899_v52, %v8699_v53 }
 0x8aa   : > { %v9900_v42 = vpop.f32.mrb[114].mxu1  ;;  %9874 = vmatmul.mubr.msk.bf16.gmra.mrb[120].mxu0 %vm1239_vm1, %v13800_v60  ;;  %v12274_v47 = vadd.f32 %v8699_v53, %v4010_v33 }
 0x8ab   : > { %v12268_v32 = vadd.f32 %v9900_v42, %v8699_v53  ;;  %v4013_v35 = vpop.f32.mrb[115].mxu1  ;;  %9877 = vmatprep.mubr.msk.bf16.mxu0 %vm1239_vm1, %v13801_v56  ;;  %9954 = vmatpush3.bf16.msra.mxu0 %v10459_v45 }
 0x8ac   : > { %v12276_v41 = vadd.f32 %v8699_v53, %v4013_v35  ;;  %9955 = vmatprep.subr.bf16.mxu0 %v10460_v55 }
 0x8ad   : > { %v4416_v48 = vpack.c.bf16 %v12268_v32, %v12266_v31 }
 0x8ae   : > { %v4415_v38 = vpack.c.bf16 %v12276_v41, %v12274_v47 }
 0x8af   : > { %9956 = vmatpush3.bf16.msra.mxu0 %v10460_v55 }
 0x8b0   : > { %v9903_v39 = vpop.f32.mrb[116].mxu1  ;;  %9957 = vmatprep.subr.bf16.mxu0 %v10461_v16 }
 0x8b1   : > { %v4026_v4 = vpop.f32.mrb[117].mxu1  ;;  %v12288_v24 = vadd.f32 %v9903_v39, %v8699_v53 }
 0x8b2   : > { %v9904_v49 = vpop.f32.mrb[118].mxu1  ;;  %9878 = vmatmul.mubr.msk.bf16.gmra.mrb[124].mxu0 %vm1239_vm1, %v13803_v8  ;;  %v12293_v22 = vadd.f32 %v8699_v53, %v4026_v4 }
 0x8b3   : > { %v12290_v21 = vadd.f32 %v9904_v49, %v8699_v53  ;;  %v4029_v61 = vpop.f32.mrb[119].mxu1  ;;  %9958 = vmatpush3.bf16.msra.mxu0 %v10461_v16  ;;  %9961 = vmatprep.mubr.bf16.mxu0 %v11254_v36 }
 0x8b4   : > { %v12295_v30 = vadd.f32 %v8699_v53, %v4029_v61  ;;  %9959 = vmatprep.subr.bf16.mxu0 %v10462_v29 }
 0x8b5   : > { %v4418_v5 = vpack.c.bf16 %v12290_v21, %v12288_v24 }
 0x8b6   : > { %v4417_v28 = vpack.c.bf16 %v12295_v30, %v12293_v22 }
 0x8b7   : > { %9960 = vmatpush3.bf16.msra.mxu0 %v10462_v29 }
 0x8b8   : > { %v9907_v54 = vpop.f32.mrb[120].mxu1  ;;  %9983 = vmatprep.subr.bf16.mxu0 %v13789_v59 }
 0x8b9   : > { %v4042_v2 = vpop.f32.mrb[121].mxu1  ;;  %v12303_v12 = vadd.f32 %v9907_v54, %v8699_v53 }
 0x8ba   : > { %v9908_v11 = vpop.f32.mrb[122].mxu1  ;;  %9962 = vmatmul.mubr.bf16.vlgmr.msra.gmra.mrb[128].mxu0 %v11260_v58  ;;  %v12308_v19 = vadd.f32 %v8699_v53, %v4042_v2 }
 0x8bb   : > { %v12305_v13 = vadd.f32 %v9908_v11, %v8699_v53  ;;  %v4045_v40 = vpop.f32.mrb[123].mxu1  ;;  %9965 = vmatprep.mubr.bf16.mxu0 %v11268_v7 }
 0x8bc   : > { %v12310_v44 = vadd.f32 %v8699_v53, %v4045_v40 }
 0x8bd   : > { %v4420_v37 = vpack.c.bf16 %v12305_v13, %v12303_v12  ;;  %v8757_v13 = vld [vmem:[%s11435_s16 + $0x2] ss:$0 sm:$0xff] }
 0x8be   : > { %v4419_v3 = vpack.c.bf16 %v12310_v44, %v12308_v19 }
 0x8c0   : > { %v9911_v20 = vpop.f32.mrb[124].mxu1 }
 0x8c1   : > { %v4058_v25 = vpop.f32.mrb[125].mxu1  ;;  %v12317_v51 = vadd.f32 %v9911_v20, %v8699_v53 }
 0x8c2   : > { %v9912_v62 = vpop.f32.mrb[126].mxu1  ;;  %9966 = vmatmul.mubr.bf16.gmra.mrb[132].mxu0 %v11275_v18  ;;  %v12322_v26 = vadd.f32 %v8699_v53, %v4058_v25 }
 0x8c3   : > { %v12319_v50 = vadd.f32 %v9912_v62, %v8699_v53  ;;  %v4061_v1 = vpop.f32.mrb[127].mxu1  ;;  %9969 = vmatprep.mubr.bf16.mxu0 %v11282_v23 }
 0x8c4   : > { %v12324_v63 = vadd.f32 %v8699_v53, %v4061_v1 }
 0x8c5   : > { %v4422_v0 = vpack.c.bf16 %v12319_v50, %v12317_v51 }
 0x8c6   : > { %v4421_v57 = vpack.c.bf16 %v12324_v63, %v12322_v26 }
 0x8c8   : > { %v9931_v9 = vpop.f32.mrb[128].mxu1 }
 0x8c9   : > { %v4181_v6 = vpop.f32.mrb[129].mxu1  ;;  %v4190_v46 = vadd.f32 %v9931_v9, %v12331_v15 }
 0x8ca   : > { %v9932_v10 = vpop.f32.mrb[130].mxu1  ;;  %9970 = vmatmul.mubr.bf16.gmra.mrb[136].mxu0 %v11289_v17  ;;  %v4182_v52 = vadd.f32 %v12331_v15, %v4181_v6 }
 0x8cb   : > { %v4193_v43 = vadd.f32 %v9932_v10, %v12331_v15  ;;  %v4184_v45 = vpop.f32.mrb[131].mxu1  ;;  %9973 = vmatprep.mubr.bf16.mxu0 %v11296_v27 }
 0x8cc   : > { %v4185_v53 = vadd.f32 %v12331_v15, %v4184_v45 }
 0x8cd   : > { %v4424_v55 = vpack.c.bf16 %v4193_v43, %v4190_v46 }
 0x8ce   : > { %v4423_v33 = vpack.c.bf16 %v4185_v53, %v4182_v52 }
 0x8cf   : > { %v4490_v42 = vsel %vm1239_vm1, %v4424_v55, 0 }
 0x8d0   : > { %v9935_v60 = vpop.f32.mrb[132].mxu1  ;;  %9984 = vmatpush3.bf16.xpose.msra.mxu0 %v4490_v42  ;;  %v4443_v35 = vsel %vm1239_vm1, %v4423_v33, 0 }
 0x8d1   : > { %v4197_v56 = vpop.f32.mrb[133].mxu1  ;;  %9978 = vmatpush3.bf16.xpose.msra.mxu1 %v4443_v35  ;;  %9995 = vmatprep.subr.bf16.mxu0 %v13789_v59  ;;  %v4206_v39 = vadd.f32 %v9935_v60, %v12331_v15 }
 0x8d2   : > { %v9936_v16 = vpop.f32.mrb[134].mxu1  ;;  %9974 = vmatmul.mubr.bf16.gmra.mrb[140].mxu0 %v11303_v34  ;;  %9989 = vmatprep.subr.bf16.mxu1 %v13789_v59  ;;  %v4198_v49 = vadd.f32 %v12331_v15, %v4197_v56 }
 0x8d3   : > { %v4209_v29 = vadd.f32 %v9936_v16, %v12331_v15  ;;  %v4200_v4 = vpop.f32.mrb[135].mxu1  ;;  %9985 = vmatprep.mubr.msk.bf16.mxu0 %vm10988_vm0, %v13789_v59 }
 0x8d4   : > { %v4201_v14 = vadd.f32 %v12331_v15, %v4200_v4 }
 0x8d5   : > { %v4426_v8 = vpack.c.bf16 %v4209_v29, %v4206_v39 }
 0x8d6   : > { %v4425_v61 = vpack.c.bf16 %v4201_v14, %v4198_v49 }
 0x8d7   : > { %v4584_v20 = vsel %vm1239_vm1, %v4426_v8, 0 }
 0x8d8   : > { %v9939_v54 = vpop.f32.mrb[136].mxu1  ;;  %9980 = vmatmul.mubr.msk.bf16.vlgmr.msra.gmra.mrb[144].mxu1 %vm1239_vm1, %v4415_v38  ;;  %v4537_v2 = vsel %vm1239_vm1, %v4425_v61, 0 }
 0x8d9   : > { %v4213_v11 = vpop.f32.mrb[137].mxu1  ;;  %9990 = vmatpush3.bf16.xpose.msra.mxu1 %v4537_v2  ;;  %9991 = vmatprep.mubr.msk.bf16.mxu1 %vm10988_vm0, %v13789_v59  ;;  %v4222_v47 = vadd.f32 %v9939_v54, %v12331_v15 }
 0x8da   : > { %v9940_v40 = vpop.f32.mrb[138].mxu1  ;;  %9986 = vmatmul.mubr.msk.bf16.vlgmr.msra.gmra.mrb[144].mxu0 %vm1239_vm1, %v4416_v48  ;;  %10001 = vmatprep.subr.bf16.mxu1 %v13789_v59  ;;  %v4214_v25 = vadd.f32 %v12331_v15, %v4213_v11 }
 0x8db   : > { %v4225_v41 = vadd.f32 %v9940_v40, %v12331_v15  ;;  %v4216_v38 = vpop.f32.mrb[139].mxu1  ;;  %9996 = vmatpush3.bf16.xpose.msra.mxu0 %v4584_v20  ;;  %9997 = vmatprep.mubr.msk.bf16.mxu0 %vm10988_vm0, %v13789_v59 }
 0x8dc   : > { %v4217_v62 = vadd.f32 %v12331_v15, %v4216_v38  ;;  %10007 = vmatprep.subr.bf16.mxu0 %v13789_v59 }
 0x8dd   : > { %v4428_v31 = vpack.c.bf16 %v4225_v41, %v4222_v47 }
 0x8de   : > { %v4427_v32 = vpack.c.bf16 %v4217_v62, %v4214_v25 }
 0x8df   : > { %v4678_v10 = vsel %vm1239_vm1, %v4428_v31, 0 }
 0x8e0   : > { %v9943_v48 = vpop.f32.mrb[140].mxu1  ;;  %9992 = vmatmul.mubr.msk.bf16.vlgmr.msra.gmra.mrb[148].mxu1 %vm1239_vm1, %v4417_v28  ;;  %v4631_v1 = vsel %vm1239_vm1, %v4427_v32, 0 }
 0x8e1   : > { %v4229_v9 = vpop.f32.mrb[141].mxu1  ;;  %10002 = vmatpush3.bf16.xpose.msra.mxu1 %v4631_v1  ;;  %10003 = vmatprep.mubr.msk.bf16.mxu1 %vm10988_vm0, %v13789_v59  ;;  %v4238_v22 = vadd.f32 %v9943_v48, %v12331_v15 }
 0x8e2   : > { %v9944_v6 = vpop.f32.mrb[142].mxu1  ;;  %9998 = vmatmul.mubr.msk.bf16.vlgmr.msra.gmra.mrb[148].mxu0 %vm1239_vm1, %v4418_v5  ;;  %10013 = vmatprep.subr.bf16.mxu1 %v13789_v59  ;;  %v4230_v46 = vadd.f32 %v12331_v15, %v4229_v9 }
 0x8e3   : > { %v4241_v30 = vadd.f32 %v9944_v6, %v12331_v15  ;;  %v4232_v28 = vpop.f32.mrb[143].mxu1  ;;  %10008 = vmatpush3.bf16.xpose.msra.mxu0 %v4678_v10  ;;  %10009 = vmatprep.mubr.msk.bf16.mxu0 %vm10988_vm0, %v13789_v59 }
 0x8e4   : > { %v4233_v43 = vadd.f32 %v12331_v15, %v4232_v28  ;;  %10019 = vmatprep.subr.bf16.mxu0 %v13789_v59 }
 0x8e5   : > { %v4430_v24 = vpack.c.bf16 %v4241_v30, %v4238_v22 }
 0x8e6   : > { %v4429_v21 = vpack.c.bf16 %v4233_v43, %v4230_v46 }
 0x8e7   : > { %v4772_v15 = vsel %vm1239_vm1, %v4430_v24, 0 }
 0x8e8   : > { %10004 = vmatmul.mubr.msk.bf16.vlgmr.msra.gmra.mrb[152].mxu1 %vm1239_vm1, %v4419_v3  ;;  %v4725_v5 = vsel %vm1239_vm1, %v4429_v21, 0 }
 0x8e9   : > { %10014 = vmatpush3.bf16.xpose.msra.mxu1 %v4725_v5  ;;  %10015 = vmatprep.mubr.msk.bf16.mxu1 %vm10988_vm0, %v13789_v59 }
 0x8ea   : > { %10010 = vmatmul.mubr.msk.bf16.vlgmr.msra.gmra.mrb[152].mxu0 %vm1239_vm1, %v4420_v37  ;;  %10025 = vmatprep.subr.bf16.mxu1 %v13789_v59 }
 0x8eb   : > { %10020 = vmatpush3.bf16.xpose.msra.mxu0 %v4772_v15  ;;  %10021 = vmatprep.mubr.msk.bf16.mxu0 %vm10988_vm0, %v13789_v59 }
 0x8ec   : > { %10031 = vmatprep.subr.bf16.mxu0 %v13789_v59 }
 0x8f0   : > { %10016 = vmatmul.mubr.msk.bf16.vlgmr.msra.gmra.mrb[156].mxu1 %vm1239_vm1, %v4421_v57 }
 0x8f1   : > { %10027 = vmatprep.mubr.msk.bf16.mxu1 %vm10988_vm0, %v13789_v59 }
 0x8f2   : > { %10022 = vmatmul.mubr.msk.bf16.vlgmr.msra.gmra.mrb[156].mxu0 %vm1239_vm1, %v4422_v0 }
 0x8f3   : > { %10033 = vmatprep.mubr.msk.bf16.mxu0 %vm10988_vm0, %v13789_v59 }
 0x98d   : > { %v9963_v12 = vpop.f32.mrb[128].mxu0 }
 0x98e   : > { %v4352_v19 = vpop.f32.mrb[129].mxu0  ;;  %v4361_v37 = vadd.f32 %v9963_v12, %v8757_v13 }
 0x98f   : > { %v9964_v44 = vpop.f32.mrb[130].mxu0  ;;  %v4353_v63 = vadd.f32 %v8757_v13, %v4352_v19 }
 0x990   : > { %v4364_v3 = vadd.f32 %v9964_v44, %v8757_v13  ;;  %v4355_v26 = vpop.f32.mrb[131].mxu0 }
 0x991   : > { %v4356_v57 = vadd.f32 %v8757_v13, %v4355_v26 }
 0x992   : > { %v4432_v45 = vpack.c.bf16 %v4364_v3, %v4361_v37 }
 0x993   : > { %v4431_v52 = vpack.c.bf16 %v4356_v57, %v4353_v63 }
 0x994   : > { %10032 = vmatpush3.bf16.msra.mxu0 %v4432_v45 }
 0x995   : > { %v9967_v53 = vpop.f32.mrb[132].mxu0  ;;  %10026 = vmatpush3.bf16.msra.mxu1 %v4431_v52  ;;  %10043 = vmatprep.subr.bf16.mxu0 %v13789_v59 }
 0x996   : > { %v12420_v51 = vadd.f32 %v9967_v53, %v8757_v13  ;;  %v4368_v50 = vpop.f32.mrb[133].mxu0  ;;  %10037 = vmatprep.subr.bf16.mxu1 %v13789_v59 }
 0x997   : > { %v12423_v0 = vadd.f32 %v8757_v13, %v4368_v50  ;;  %v9968_v55 = vpop.f32.mrb[134].mxu0 }
 0x998   : > { %v12425_v33 = vadd.f32 %v9968_v55, %v8757_v13  ;;  %v4371_v42 = vpop.f32.mrb[135].mxu0 }
 0x999   : > { %v12427_v60 = vadd.f32 %v8757_v13, %v4371_v42 }
 0x99a   : > { %v4434_v35 = vpack.c.bf16 %v12425_v33, %v12420_v51 }
 0x99b   : > { %v4433_v56 = vpack.c.bf16 %v12427_v60, %v12423_v0 }
 0x99d   : > { %v9971_v16 = vpop.f32.mrb[136].mxu0 }
 0x99e   : > { %v12433_v39 = vadd.f32 %v9971_v16, %v8757_v13  ;;  %v4384_v29 = vpop.f32.mrb[137].mxu0 }
 0x99f   : > { %v12435_v4 = vadd.f32 %v8757_v13, %v4384_v29  ;;  %v9972_v49 = vpop.f32.mrb[138].mxu0 }
 0x9a0   : > { %v12437_v14 = vadd.f32 %v9972_v49, %v8757_v13  ;;  %v4387_v8 = vpop.f32.mrb[139].mxu0 }
 0x9a1   : > { %v12439_v61 = vadd.f32 %v8757_v13, %v4387_v8 }
 0x9a2   : > { %v4436_v54 = vpack.c.bf16 %v12437_v14, %v12433_v39 }
 0x9a3   : > { %v4435_v2 = vpack.c.bf16 %v12439_v61, %v12435_v4 }
 0x9a5   : > { %v9975_v11 = vpop.f32.mrb[140].mxu0 }
 0x9a6   : > { %v12445_v40 = vadd.f32 %v9975_v11, %v8757_v13  ;;  %v4400_v20 = vpop.f32.mrb[141].mxu0 }
 0x9a7   : > { %v12447_v47 = vadd.f32 %v8757_v13, %v4400_v20  ;;  %v9976_v41 = vpop.f32.mrb[142].mxu0 }
 0x9a8   : > { %v12449_v38 = vadd.f32 %v9976_v41, %v8757_v13  ;;  %v4403_v25 = vpop.f32.mrb[143].mxu0 }
 0x9a9   : > { %v12451_v62 = vadd.f32 %v8757_v13, %v4403_v25 }
 0x9aa   : > { %v4438_v31 = vpack.c.bf16 %v12449_v38, %v12445_v40  ;;  %v10465_v38 = vld [vmem:[%s11144_s20 + $0xd0] sm:$0xff]  }
 0x9ab   : > { %v4437_v32 = vpack.c.bf16 %v12451_v62, %v12447_v47  ;;  %v12457_v48 = vpop.f32.mrb[144].mxu1  ;;  %v10464_v62 = vld [vmem:[%s11144_s20 + $0xc8] sm:$0xff]  }
 0x9ac   : > { %v9981_v1 = vpop.f32.mrb[145].mxu1  ;;  %v4815_v9 = vsel %vm1616_vm2, %v12457_v48, -inf }
 0x9ad   : > { %4816 = vmax.xlane.f32.xlu0 %v4815_v9  ;;  %v12461_v6 = vpop.f32.mrb[146].mxu1  ;;  %v12463_v10 = vpop.f32.mrb[144].mxu0 }
 0x9ae   : > { %v9982_v22 = vpop.f32.mrb[147].mxu1  ;;  %v9987_v30 = vpop.f32.mrb[145].mxu0  ;;  %v4818_v28 = vsel %vm1616_vm2, %v12461_v6, -inf  ;;  %v4821_v46 = vsel %vm1616_vm2, %v12463_v10, -inf }
 0x9af   : > { %4819 = vmax.xlane.f32.xlu1 %v4818_v28  ;;  %v12469_v43 = vpop.f32.mrb[146].mxu0 }
 0x9b0   : > { %v9988_v24 = vpop.f32.mrb[147].mxu0  ;;  %v4824_v21 = vsel %vm1616_vm2, %v12469_v43, -inf }
 0x9b1   : > { %4822 = vmax.xlane.f32.xlu0 %v4821_v46 }
 0x9b3   : > { %4825 = vmax.xlane.f32.xlu1 %v4824_v21  ;;  %v12473_v5 = vpop.f32.mrb[148].mxu1 }
 0x9b4   : > { %v9993_v15 = vpop.f32.mrb[149].mxu1  ;;  %v4827_v12 = vsel %vm1616_vm2, %v12473_v5, -inf }
 0x9b5   : > { %4828 = vmax.xlane.f32.xlu0 %v4827_v12  ;;  %v12477_v13 = vpop.f32.mrb[150].mxu1  ;;  %v12479_v19 = vpop.f32.mrb[148].mxu0 }
 0x9b6   : > { %v9994_v44 = vpop.f32.mrb[151].mxu1  ;;  %v9999_v37 = vpop.f32.mrb[149].mxu0  ;;  %v4830_v3 = vsel %vm1616_vm2, %v12477_v13, -inf  ;;  %v4833_v26 = vsel %vm1616_vm2, %v12479_v19, -inf }
 0x9b7   : > { %4831 = vmax.xlane.f32.xlu1 %v4830_v3  ;;  %v12485_v63 = vpop.f32.mrb[150].mxu0 }
 0x9b8   : > { %v10000_v57 = vpop.f32.mrb[151].mxu0  ;;  %v4836_v45 = vsel %vm1616_vm2, %v12485_v63, -inf }
 0x9b9   : > { %4834 = vmax.xlane.f32.xlu0 %v4833_v26 }
 0x9bb   : > { %4837 = vmax.xlane.f32.xlu1 %v4836_v45  ;;  %v12489_v52 = vpop.f32.mrb[152].mxu1 }
 0x9bc   : > { %v10005_v53 = vpop.f32.mrb[153].mxu1  ;;  %v4839_v50 = vsel %vm1616_vm2, %v12489_v52, -inf }
 0x9bd   : > { %4840 = vmax.xlane.f32.xlu0 %v4839_v50  ;;  %v12493_v55 = vpop.f32.mrb[154].mxu1  ;;  %v12495_v42 = vpop.f32.mrb[152].mxu0 }
 0x9be   : > { %v10006_v16 = vpop.f32.mrb[155].mxu1  ;;  %v10011_v29 = vpop.f32.mrb[153].mxu0  ;;  %v4842_v49 = vsel %vm1616_vm2, %v12493_v55, -inf  ;;  %v4845_v8 = vsel %vm1616_vm2, %v12495_v42, -inf }
 0x9bf   : > { %4843 = vmax.xlane.f32.xlu1 %v4842_v49  ;;  %v12501_v11 = vpop.f32.mrb[154].mxu0 }
 0x9c0   : > { %v10012_v20 = vpop.f32.mrb[155].mxu0  ;;  %v4848_v41 = vsel %vm1616_vm2, %v12501_v11, -inf }
 0x9c1   : > { %4846 = vmax.xlane.f32.xlu0 %v4845_v8 }
 0x9c3   : > { %4849 = vmax.xlane.f32.xlu1 %v4848_v41  ;;  %v12505_v25 = vpop.f32.mrb[156].mxu1 }
 0x9c4   : > { %v10017_v1 = vpop.f32.mrb[157].mxu1  ;;  %v4851_v9 = vsel %vm1616_vm2, %v12505_v25, -inf }
 0x9c5   : > { %4852 = vmax.xlane.f32.xlu0 %v4851_v9  ;;  %v12509_v22 = vpop.f32.mrb[158].mxu1  ;;  %v12511_v30 = vpop.f32.mrb[156].mxu0 }
 0x9c6   : > { %v10018_v28 = vpop.f32.mrb[159].mxu1  ;;  %v10023_v46 = vpop.f32.mrb[157].mxu0  ;;  %v4854_v24 = vsel %vm1616_vm2, %v12509_v22, -inf  ;;  %v4857_v21 = vsel %vm1616_vm2, %v12511_v30, -inf }
 0x9c7   : > { %4855 = vmax.xlane.f32.xlu1 %v4854_v24  ;;  %v12517_v15 = vpop.f32.mrb[158].mxu0 }
 0x9c8   : > { %v10024_v12 = vpop.f32.mrb[159].mxu0  ;;  %v4860_v44 = vsel %vm1616_vm2, %v12517_v15, -inf }
 0x9c9   : > { %4858 = vmax.xlane.f32.xlu0 %v4857_v21 }
 0x9cb   : > { %4861 = vmax.xlane.f32.xlu1 %v4860_v44 }
 0xa3a   : > { %v4817_v37 = vpop.xlane.xlu0 %4816 }
 0xa3b   : > { %v4863_v3 = vsub.f32 %v12457_v48, %v4817_v37 }
 0xa3c   : > { %v4820_v26 = vpop.xlane.xlu1 %4819 }
 0xa3d   : > { %v4879_v57 = vmul.f32 1.442695, %v4863_v3  ;;  %v4864_v45 = vsub.f32 %v12461_v6, %v4820_v26 }
 0xa3e   : > { %v4823_v53 = vpop.xlane.xlu0 %4822 }
 0xa3f   : > { %10691 = vpow2.f32 %v4879_v57  ;;  %v4881_v50 = vmul.f32 1.442695, %v4864_v45  ;;  %v4865_v16 = vsub.f32 %v12463_v10, %v4823_v53 }
 0xa40   : > { %v4826_v29 = vpop.xlane.xlu1 %4825 }
 0xa41   : > { %10693 = vpow2.f32 %v4881_v50  ;;  %v4883_v49 = vmul.f32 1.442695, %v4865_v16  ;;  %v4866_v8 = vsub.f32 %v12469_v43, %v4826_v29 }
 0xa42   : > { %v4829_v20 = vpop.xlane.xlu0 %4828 }
 0xa43   : > { %10695 = vpow2.f32 %v4883_v49  ;;  %v4885_v41 = vmul.f32 1.442695, %v4866_v8  ;;  %v4867_v1 = vsub.f32 %v12473_v5, %v4829_v20 }
 0xa44   : > { %v4832_v48 = vpop.xlane.xlu1 %4831 }
 0xa45   : > { %10697 = vpow2.f32 %v4885_v41  ;;  %v4887_v9 = vmul.f32 1.442695, %v4867_v1  ;;  %v4868_v6 = vsub.f32 %v12477_v13, %v4832_v48 }
 0xa46   : > { %v4835_v28 = vpop.xlane.xlu0 %4834 }
 0xa47   : > { %10699 = vpow2.f32 %v4887_v9  ;;  %v4889_v46 = vmul.f32 1.442695, %v4868_v6  ;;  %v4869_v10 = vsub.f32 %v12479_v19, %v4835_v28 }
 0xa48   : > { %v4838_v24 = vpop.xlane.xlu1 %4837 }
 0xa49   : > { %v12528_v21 = vpop.eup %10691  ;;  %10701 = vpow2.f32 %v4889_v46  ;;  %v4891_v43 = vmul.f32 1.442695, %v4869_v10  ;;  %v4870_v12 = vsub.f32 %v12485_v63, %v4838_v24 }
 0xa4a   : > { %v4841_v44 = vpop.xlane.xlu0 %4840  ;;  %v4911_v5 = vsel %vm1616_vm2, %v12528_v21, 0.0 }
 0xa4b   : > { %v12533_v37 = vpop.eup %10693  ;;  %10703 = vpow2.f32 %v4891_v43  ;;  %v4893_v13 = vmul.f32 1.442695, %v4870_v12  ;;  %v4871_v3 = vsub.f32 %v12489_v52, %v4841_v44  ;;  %4912 = vadd.xlane.f32.xlu0 %v4911_v5 }
 0xa4c   : > { %v4844_v26 = vpop.xlane.xlu1 %4843  ;;  %v4914_v19 = vsel %vm1616_vm2, %v12533_v37, 0.0 }
 0xa4d   : > { %v12538_v57 = vpop.eup %10695  ;;  %10705 = vpow2.f32 %v4893_v13  ;;  %v4895_v45 = vmul.f32 1.442695, %v4871_v3  ;;  %v4872_v63 = vsub.f32 %v12493_v55, %v4844_v26  ;;  %4915 = vadd.xlane.f32.xlu1 %v4914_v19 }
 0xa4e   : > { %v4847_v53 = vpop.xlane.xlu0 %4846  ;;  %v4917_v50 = vsel %vm1616_vm2, %v12538_v57, 0.0 }
 0xa4f   : > { %v12543_v16 = vpop.eup %10697  ;;  %10707 = vpow2.f32 %v4895_v45  ;;  %v4897_v52 = vmul.f32 1.442695, %v4872_v63  ;;  %v4873_v29 = vsub.f32 %v12495_v42, %v4847_v53  ;;  %4918 = vadd.xlane.f32.xlu0 %v4917_v50 }
 0xa50   : > { %v4850_v49 = vpop.xlane.xlu1 %4849  ;;  %v4920_v8 = vsel %vm1616_vm2, %v12543_v16, 0.0 }
 0xa51   : > { %v12548_v20 = vpop.eup %10699  ;;  %10709 = vpow2.f32 %v4897_v52  ;;  %v4899_v55 = vmul.f32 1.442695, %v4873_v29  ;;  %v4874_v41 = vsub.f32 %v12501_v11, %v4850_v49  ;;  %4921 = vadd.xlane.f32.xlu1 %v4920_v8 }
 0xa52   : > { %v4853_v1 = vpop.xlane.xlu0 %4852  ;;  %v4923_v48 = vsel %vm1616_vm2, %v12548_v20, 0.0 }
 0xa53   : > { %v12553_v9 = vpop.eup %10701  ;;  %10711 = vpow2.f32 %v4899_v55  ;;  %v4901_v42 = vmul.f32 1.442695, %v4874_v41  ;;  %v4875_v6 = vsub.f32 %v12505_v25, %v4853_v1  ;;  %4924 = vadd.xlane.f32.xlu0 %v4923_v48 }
 0xa54   : > { %v4856_v28 = vpop.xlane.xlu1 %4855  ;;  %v4926_v46 = vsel %vm1616_vm2, %v12553_v9, 0.0 }
 0xa55   : > { %v12558_v10 = vpop.eup %10703  ;;  %10713 = vpow2.f32 %v4901_v42  ;;  %v4903_v11 = vmul.f32 1.442695, %v4875_v6  ;;  %v4876_v24 = vsub.f32 %v12509_v22, %v4856_v28  ;;  %4927 = vadd.xlane.f32.xlu1 %v4926_v46 }
 0xa56   : > { %v4859_v43 = vpop.xlane.xlu0 %4858  ;;  %v4929_v12 = vsel %vm1616_vm2, %v12558_v10, 0.0 }
 0xa57   : > { %v12563_v44 = vpop.eup %10705  ;;  %10715 = vpow2.f32 %v4903_v11  ;;  %v4905_v25 = vmul.f32 1.442695, %v4876_v24  ;;  %v4877_v5 = vsub.f32 %v12511_v30, %v4859_v43  ;;  %4930 = vadd.xlane.f32.xlu0 %v4929_v12 }
 0xa58   : > { %v4862_v13 = vpop.xlane.xlu1 %4861  ;;  %v4932_v3 = vsel %vm1616_vm2, %v12563_v44, 0.0 }
 0xa59   : > { %v12568_v26 = vpop.eup %10707  ;;  %10717 = vpow2.f32 %v4905_v25  ;;  %v4907_v22 = vmul.f32 1.442695, %v4877_v5  ;;  %v4878_v19 = vsub.f32 %v12517_v15, %v4862_v13  ;;  %4933 = vadd.xlane.f32.xlu1 %v4932_v3 }
 0xa5a   : > { %v4935_v45 = vsel %vm1616_vm2, %v12568_v26, 0.0 }
 0xa5b   : > { %v12573_v63 = vpop.eup %10709  ;;  %10719 = vpow2.f32 %v4907_v22  ;;  %v4909_v53 = vmul.f32 1.442695, %v4878_v19  ;;  %4936 = vadd.xlane.f32.xlu0 %v4935_v45 }
 0xa5c   : > { %v4938_v30 = vsel %vm1616_vm2, %v12573_v63, 0.0 }
 0xa5d   : > { %v12577_v50 = vpop.eup %10711  ;;  %10721 = vpow2.f32 %v4909_v53  ;;  %4939 = vadd.xlane.f32.xlu1 %v4938_v30 }
 0xa5e   : > { %v4941_v52 = vsel %vm1616_vm2, %v12577_v50, 0.0 }
 0xa5f   : > { %v12581_v15 = vpop.eup %10713  ;;  %4942 = vadd.xlane.f32.xlu0 %v4941_v52 }
 0xa60   : > { %v4944_v29 = vsel %vm1616_vm2, %v12581_v15, 0.0 }
 0xa61   : > { %v12585_v49 = vpop.eup %10715  ;;  %4945 = vadd.xlane.f32.xlu1 %v4944_v29 }
 0xa62   : > { %v4947_v8 = vsel %vm1616_vm2, %v12585_v49, 0.0 }
 0xa63   : > { %v12589_v55 = vpop.eup %10717  ;;  %4948 = vadd.xlane.f32.xlu0 %v4947_v8 }
 0xa64   : > { %v4950_v41 = vsel %vm1616_vm2, %v12589_v55, 0.0 }
 0xa65   : > { %v12593_v1 = vpop.eup %10719  ;;  %4951 = vadd.xlane.f32.xlu1 %v4950_v41 }
 0xa66   : > { %v4953_v48 = vsel %vm1616_vm2, %v12593_v1, 0.0 }
 0xa67   : > { %v12597_v42 = vpop.eup %10721  ;;  %4954 = vadd.xlane.f32.xlu0 %v4953_v48 }
 0xa68   : > { %v4956_v6 = vsel %vm1616_vm2, %v12597_v42, 0.0 }
 0xa69   : > { %4957 = vadd.xlane.f32.xlu1 %v4956_v6 }
 0xad8   : > { %v4913_v28 = vpop.xlane.xlu0 %4912 }
 0xad9   : > { %10723 = vrcp.f32 %v4913_v28 }
 0xada   : > { %v4916_v46 = vpop.xlane.xlu1 %4915 }
 0xadb   : > { %10725 = vrcp.f32 %v4916_v46 }
 0xadc   : > { %v4919_v11 = vpop.xlane.xlu0 %4918 }
 0xadd   : > { %10727 = vrcp.f32 %v4919_v11 }
 0xade   : > { %v4922_v24 = vpop.xlane.xlu1 %4921 }
 0xadf   : > { %10729 = vrcp.f32 %v4922_v24 }
 0xae0   : > { %v4925_v43 = vpop.xlane.xlu0 %4924 }
 0xae1   : > { %10731 = vrcp.f32 %v4925_v43 }
 0xae2   : > { %v4928_v12 = vpop.xlane.xlu1 %4927 }
 0xae3   : > { %v10724_v25 = vpop.eup %10723  ;;  %10733 = vrcp.f32 %v4928_v12 }
 0xae4   : > { %v4931_v5 = vpop.xlane.xlu0 %4930  ;;  %v4975_v3 = vmul.f32 %v10724_v25, %v12528_v21 }
 0xae5   : > { %v10726_v13 = vpop.eup %10725  ;;  %10735 = vrcp.f32 %v4931_v5 }
 0xae6   : > { %v4976_v22 = vmul.f32 %v10726_v13, %v12533_v37  ;;  %v4934_v19 = vpop.xlane.xlu1 %4933  ;;  %v10470_v13 = vld [vmem:[%s11144_s20 + $0xf8] sm:$0xff]  }
 0xae7   : > { %v10728_v45 = vpop.eup %10727  ;;  %10737 = vrcp.f32 %v4934_v19  ;;  %v10473_v19 = vld [vmem:[%s11246_s14 + $0xd0] sm:$0xff]  }
 0xae8   : > { %v4937_v53 = vpop.xlane.xlu0 %4936  ;;  %v4991_v30 = vpack.c.bf16 %v4976_v22, %v4975_v3  ;;  %v4977_v29 = vmul.f32 %v10728_v45, %v12538_v57  ;;  %v10471_v3 = vld [vmem:[%s11246_s14 + $0xc0] sm:$0xff]   ;;  %v10472_v22 = vld [vmem:[%s11246_s14 + $0xc8] sm:$0xff]   ;;  %v10474_v45 = vld [vmem:[%s11246_s14 + $0xd8] sm:$0xff]  }
 0xae9   : > { %v10730_v52 = vpop.eup %10729  ;;  %10739 = vrcp.f32 %v4937_v53  ;;  %v10475_v53 = vld [vmem:[%s11246_s14 + $0xe0] sm:$0xff]  }
 0xaea   : > { %v4978_v8 = vmul.f32 %v10730_v52, %v12543_v16  ;;  %10028 = vmatmul.mubr.msk.bf16.vlgmr.msra.gmra.mrb[160].mxu1 %vm1616_vm2, %v4991_v30  ;;  %v4940_v41 = vpop.xlane.xlu1 %4939  ;;  %v10476_v30 = vld [vmem:[%s11246_s14 + $0xe8] sm:$0xff]   ;;  %v10477_v52 = vld [vmem:[%s11246_s14 + $0xf0] sm:$0xff]  }
 0xaeb   : > { %v10732_v48 = vpop.eup %10731  ;;  %10038 = vmatpush3.bf16.msra.mxu1 %v4433_v56  ;;  %10741 = vrcp.f32 %v4940_v41  ;;  %10039 = vmatprep.mubr.msk.bf16.mxu1 %vm10988_vm0, %v13789_v59  ;;  %v10480_v41 = vld [vmem:[%s12208_s21 + $0x28] sm:$0xff]  }
 0xaec   : > { %v4943_v21 = vpop.xlane.xlu0 %4942  ;;  %v4992_v37 = vpack.c.bf16 %v4978_v8, %v4977_v29  ;;  %10049 = vmatprep.subr.bf16.mxu1 %v13789_v59  ;;  %v4979_v57 = vmul.f32 %v10732_v48, %v12548_v20  ;;  %v10478_v29 = vld [vmem:[%s11246_s14 + $0xf8] sm:$0xff]   ;;  %v10479_v8 = vld [vmem:[%s12208_s21 + $0x20] sm:$0xff]   ;;  %s7130_s14 = scalar_lea.vmem %s13771_s8, %s10977_s25 }
 0xaed   : > { %v10734_v6 = vpop.eup %10733  ;;  %10743 = vrcp.f32 %v4943_v21  ;;  %v10481_v48 = vld [vmem:[%s11150_s23 + $0xc0] sm:$0xff]  }
 0xaee   : > { %v4980_v16 = vmul.f32 %v10734_v6, %v12553_v9  ;;  %10034 = vmatmul.mubr.msk.bf16.vlgmr.msra.gmra.mrb[160].mxu0 %vm1616_vm2, %v4992_v37  ;;  %v4946_v28 = vpop.xlane.xlu1 %4945 }
 0xaef   : > { %v10736_v46 = vpop.eup %10735  ;;  %10044 = vmatpush3.bf16.msra.mxu0 %v4434_v35  ;;  %10745 = vrcp.f32 %v4946_v28  ;;  %10045 = vmatprep.mubr.msk.bf16.mxu0 %vm10988_vm0, %v13789_v59 }
 0xaf0   : > { %v4949_v0 = vpop.xlane.xlu0 %4948  ;;  %v4993_v60 = vpack.c.bf16 %v4980_v16, %v4979_v57  ;;  %10055 = vmatprep.subr.bf16.mxu0 %v13789_v59  ;;  %v4981_v20 = vmul.f32 %v10736_v46, %v12558_v10 }
 0xaf1   : > { %v10738_v56 = vpop.eup %10737  ;;  %10747 = vrcp.f32 %v4949_v0 }
 0xaf2   : > { %v4982_v9 = vmul.f32 %v10738_v56, %v12563_v44  ;;  %10040 = vmatmul.mubr.msk.bf16.vlgmr.msra.gmra.mrb[164].mxu1 %vm1616_vm2, %v4993_v60  ;;  %v4952_v11 = vpop.xlane.xlu1 %4951 }
 0xaf3   : > { %v10740_v24 = vpop.eup %10739  ;;  %10050 = vmatpush3.bf16.msra.mxu1 %v4435_v2  ;;  %10749 = vrcp.f32 %v4952_v11  ;;  %10051 = vmatprep.mubr.msk.bf16.mxu1 %vm10988_vm0, %v13789_v59  ;;  %v10463_v2 = vld [vmem:[%s11144_s20 + $0xc0] sm:$0xff]  }
 0xaf4   : > { %v4955_v51 = vpop.xlane.xlu0 %4954  ;;  %v4994_v33 = vpack.c.bf16 %v4982_v9, %v4981_v20  ;;  %10061 = vmatprep.subr.bf16.mxu1 %v13789_v59  ;;  %v4983_v10 = vmul.f32 %v10740_v24, %v12568_v26  ;;  %v10482_v20 = vld [vmem:[%s11150_s23 + $0xc8] sm:$0xff]  }
 0xaf5   : > { %v10742_v35 = vpop.eup %10741  ;;  %10751 = vrcp.f32 %v4955_v51 }
 0xaf6   : > { %v4984_v44 = vmul.f32 %v10742_v35, %v12573_v63  ;;  %10046 = vmatmul.mubr.msk.bf16.vlgmr.msra.gmra.mrb[164].mxu0 %vm1616_vm2, %v4994_v33  ;;  %v4958_v43 = vpop.xlane.xlu1 %4957  ;;  %v10483_v35 = vld [vmem:[%s11150_s23 + $0xd0] sm:$0xff]  }
 0xaf7   : > { %v10744_v4 = vpop.eup %10743  ;;  %10056 = vmatpush3.bf16.msra.mxu0 %v4436_v54  ;;  %10753 = vrcp.f32 %v4958_v43  ;;  %10057 = vmatprep.mubr.msk.bf16.mxu0 %vm10988_vm0, %v13789_v59 }
 0xaf8   : > { %v4995_v61 = vpack.c.bf16 %v4984_v44, %v4983_v10  ;;  %10067 = vmatprep.subr.bf16.mxu0 %v13789_v59  ;;  %v4985_v26 = vmul.f32 %v10744_v4, %v12577_v50 }
 0xaf9   : > { %v10746_v12 = vpop.eup %10745 }
 0xafa   : > { %v4986_v63 = vmul.f32 %v10746_v12, %v12581_v15  ;;  %10052 = vmatmul.mubr.msk.bf16.vlgmr.msra.gmra.mrb[168].mxu1 %vm1616_vm2, %v4995_v61 }
 0xafb   : > { %v10748_v25 = vpop.eup %10747  ;;  %10062 = vmatpush3.bf16.msra.mxu1 %v4437_v32  ;;  %10063 = vmatprep.mubr.msk.bf16.mxu1 %vm10988_vm0, %v13789_v59 }
 0xafc   : > { %v4996_v39 = vpack.c.bf16 %v4986_v63, %v4985_v26  ;;  %10093 = vmatprep.subr.bf16.mxu1 %v10463_v2  ;;  %v4987_v54 = vmul.f32 %v10748_v25, %v12585_v49 }
 0xafd   : > { %v10750_v14 = vpop.eup %10749 }
 0xafe   : > { %v4988_v50 = vmul.f32 %v10750_v14, %v12589_v55  ;;  %10058 = vmatmul.mubr.msk.bf16.vlgmr.msra.gmra.mrb[168].mxu0 %vm1616_vm2, %v4996_v39  ;;  %v10467_v55 = vld [vmem:[%s11144_s20 + $0xe0] sm:$0xff]  }
 0xaff   : > { %v10752_v15 = vpop.eup %10751  ;;  %10068 = vmatpush3.bf16.msra.mxu0 %v4438_v31  ;;  %10069 = vmatprep.mubr.msk.bf16.mxu0 %vm10988_vm0, %v13789_v59  ;;  %v10466_v31 = vld [vmem:[%s11144_s20 + $0xd8] sm:$0xff]   ;;  %v10485_v14 = vld [vmem:[%s11150_s23 + $0xe0] sm:$0xff]  }
 0xb00   : > { %v4997_v47 = vpack.c.bf16 %v4988_v50, %v4987_v54  ;;  %v4989_v49 = vmul.f32 %v10752_v15, %v12593_v1  ;;  %v10468_v1 = vld [vmem:[%s11144_s20 + $0xe8] sm:$0xff]   ;;  %10073 = vmatprep.subr.bf16.mxu0 %v10479_v8 }
 0xb01   : > { %v10754_v32 = vpop.eup %10753 }
 0xb02   : > { %v4990_v5 = vmul.f32 %v10754_v32, %v12597_v42  ;;  %10064 = vmatmul.mubr.msk.bf16.vlgmr.msra.gmra.mrb[172].mxu1 %vm1616_vm2, %v4997_v47  ;;  %v10469_v42 = vld [vmem:[%s11144_s20 + $0xf0] sm:$0xff]   ;;  %v10486_v32 = vld [vmem:[%s11150_s23 + $0xe8] sm:$0xff]  }
 0xb03   : > { %10094 = vmatpush3.bf16.msra.mxu1 %v10463_v2  ;;  %10109 = vmatprep.mubr.bf16.mxu1 %v11254_v36  ;;  %v10484_v2 = vld [vmem:[%s11150_s23 + $0xd8] sm:$0xff]  }
 0xb04   : > { %10095 = vmatprep.subr.bf16.mxu1 %v10464_v62  ;;  %v4998_v40 = vpack.c.bf16 %v4990_v5, %v4989_v49 }
 0xb06   : > { %10070 = vmatmul.mubr.msk.bf16.vlgmr.msra.gmra.mrb[172].mxu0 %vm1616_vm2, %v4998_v40 }
 0xb07   : > { %10096 = vmatpush3.bf16.msra.mxu1 %v10464_v62  ;;  %10074 = vmatpush3.bf16.msra.mxu0 %v10479_v8 }
 0xb08   : > { %10097 = vmatprep.subr.bf16.mxu1 %v10465_v38  ;;  %10075 = vmatprep.subr.bf16.mxu0 %v10480_v41 }
 0xb0b   : > { %10098 = vmatpush3.bf16.msra.mxu1 %v10465_v38  ;;  %10076 = vmatpush3.bf16.msra.mxu0 %v10480_v41 }
 0xb0c   : > { %10099 = vmatprep.subr.bf16.mxu1 %v10466_v31  ;;  %10125 = vmatprep.subr.bf16.mxu0 %v10481_v48 }
 0xb0f   : > { %10100 = vmatpush3.bf16.msra.mxu1 %v10466_v31 }
 0xb10   : > { %10101 = vmatprep.subr.bf16.mxu1 %v10467_v55 }
 0xb13   : > { %10102 = vmatpush3.bf16.msra.mxu1 %v10467_v55  ;;  %v10487_v55 = vld [vmem:[%s11150_s23 + $0xf0] sm:$0xff]  }
 0xb14   : > { %10103 = vmatprep.subr.bf16.mxu1 %v10468_v1 }
 0xb17   : > { %10104 = vmatpush3.bf16.msra.mxu1 %v10468_v1 }
 0xb18   : > { %10105 = vmatprep.subr.bf16.mxu1 %v10469_v42 }
 0xb1b   : > { %10106 = vmatpush3.bf16.msra.mxu1 %v10469_v42 }
 0xb1c   : > { %10107 = vmatprep.subr.bf16.mxu1 %v10470_v13 }
 0xb1f   : > { %10108 = vmatpush3.bf16.msra.mxu1 %v10470_v13 }
 0xb20   : > { %10157 = vmatprep.subr.bf16.mxu1 %v10471_v3 }
 0xb22   : > { %10110 = vmatmul.mubr.bf16.vlgmr.msra.gmra.mrb[176].mxu1 %v11260_v58 }
 0xb23   : > { %10113 = vmatprep.mubr.bf16.mxu1 %v11268_v7  ;;  %10158 = vmatpush3.bf16.msra.mxu1 %v10471_v3 }
 0xb24   : > { %10159 = vmatprep.subr.bf16.mxu1 %v10472_v22 }
 0xb27   : > { %10160 = vmatpush3.bf16.msra.mxu1 %v10472_v22 }
 0xb28   : > { %10161 = vmatprep.subr.bf16.mxu1 %v10473_v19 }
 0xb2a   : > { %10114 = vmatmul.mubr.bf16.gmra.mrb[180].mxu1 %v11275_v18 }
 0xb2b   : > { %10117 = vmatprep.mubr.bf16.mxu1 %v11282_v23  ;;  %10162 = vmatpush3.bf16.msra.mxu1 %v10473_v19  ;;  %v10488_v19 = vld [vmem:[%s11150_s23 + $0xf8] sm:$0xff]   ;;  %s7374_s23 = scalar_lea.vmem %s13773_s10, %s8920_s19 }
 0xb2c   : > { %10163 = vmatprep.subr.bf16.mxu1 %v10474_v45 }
 0xb2f   : > { %10164 = vmatpush3.bf16.msra.mxu1 %v10474_v45 }
 0xb30   : > { %10165 = vmatprep.subr.bf16.mxu1 %v10475_v53 }
 0xb32   : > { %10118 = vmatmul.mubr.bf16.gmra.mrb[184].mxu1 %v11289_v17 }
 0xb33   : > { %10121 = vmatprep.mubr.bf16.mxu1 %v11296_v27  ;;  %10166 = vmatpush3.bf16.msra.mxu1 %v10475_v53  ;;  %v8818_v53 = vld [vmem:[%s11329_s18 + $0x3] ss:$0 sm:$0xff]  ;;  %s8984_s18 = sshll.u32 %s10977_s25, 7 }
 0xb34   : > { %10167 = vmatprep.subr.bf16.mxu1 %v10476_v30  ;;  %s13176_s30 = scalar_lea.vmem %s13772_s9, %s8984_s18  ;;  %s13186_s17 = scalar_lea.vmem %s13774_s11, %s8984_s18 }
 0xb37   : > { %10168 = vmatpush3.bf16.msra.mxu1 %v10476_v30 }
 0xb38   : > { %10169 = vmatprep.subr.bf16.mxu1 %v10477_v52 }
 0xb3a   : > { %10122 = vmatmul.mubr.bf16.gmra.mrb[188].mxu1 %v11303_v34 }
 0xb3b   : > { %10170 = vmatpush3.bf16.msra.mxu1 %v10477_v52  ;;  %10173 = vmatprep.mubr.bf16.mxu1 %v11254_v36 }
 0xb3c   : > { %10171 = vmatprep.subr.bf16.mxu1 %v10478_v29 }
 0xb3f   : > { %10172 = vmatpush3.bf16.msra.mxu1 %v10478_v29 }
 0xb40   : > { %10207 = vmatprep.subr.bf16.mxu1 %v13789_v59 }
 0xb42   : > { %10174 = vmatmul.mubr.bf16.vlgmr.msra.gmra.mrb[192].mxu1 %v11260_v58 }
 0xb43   : > { %10177 = vmatprep.mubr.bf16.mxu1 %v11268_v7 }
 0xb4a   : > { %10178 = vmatmul.mubr.bf16.gmra.mrb[196].mxu1 %v11275_v18 }
 0xb4b   : > { %10181 = vmatprep.mubr.bf16.mxu1 %v11282_v23 }
 0xb52   : > { %10182 = vmatmul.mubr.bf16.gmra.mrb[200].mxu1 %v11289_v17 }
 0xb53   : > { %10185 = vmatprep.mubr.bf16.mxu1 %v11296_v27 }
 0xb5a   : > { %10186 = vmatmul.mubr.bf16.gmra.mrb[204].mxu1 %v11303_v34 }
 0xb5b   : > { %10209 = vmatprep.mubr.msk.bf16.mxu1 %vm10988_vm0, %v13789_v59 }
 0xbbd   : > { %v5036_v21 = vpop.f32.mrb[160].mxu1 }
 0xbbe   : > { %v10029_v37 = vpop.f32.mrb[161].mxu1 }
 0xbbf   : > { %v5039_v6 = vpop.f32.mrb[162].mxu1 }
 0xbc0   : > { %v5351_v57 = vpack.c.bf16 %v5039_v6, %v5036_v21  ;;  %v10030_v16 = vpop.f32.mrb[163].mxu1 }
 0xbc1   : > { %v5080_v28 = vpop.f32.mrb[160].mxu0 }
 0xbc2   : > { %v10035_v46 = vpop.f32.mrb[161].mxu0  ;;  %10077 = vmatprep.mubr.msk.bf16.mxu0 %vm1239_vm1, %v5351_v57 }
 0xbc3   : > { %v5083_v0 = vpop.f32.mrb[162].mxu0 }
 0xbc4   : > { %v5352_v60 = vpack.c.bf16 %v5083_v0, %v5080_v28  ;;  %v10036_v56 = vpop.f32.mrb[163].mxu0 }
 0xbc5   : > { %v5124_v9 = vpop.f32.mrb[164].mxu1 }
 0xbc6   : > { %v10041_v11 = vpop.f32.mrb[165].mxu1  ;;  %10078 = vmatmul.mubr.msk.bf16.vlgmr.msra.gmra.mrb[112].mxu0 %vm1239_vm1, %v5352_v60 }
 0xbc7   : > { %v5127_v24 = vpop.f32.mrb[166].mxu1  ;;  %10126 = vmatpush3.bf16.msra.mxu0 %v10481_v48 }
 0xbc8   : > { %v5353_v51 = vpack.c.bf16 %v5127_v24, %v5124_v9  ;;  %v10042_v33 = vpop.f32.mrb[167].mxu1  ;;  %10127 = vmatprep.subr.bf16.mxu0 %v10482_v20 }
 0xbc9   : > { %v5168_v10 = vpop.f32.mrb[164].mxu0 }
 0xbca   : > { %v10047_v44 = vpop.f32.mrb[165].mxu0  ;;  %10081 = vmatprep.mubr.msk.bf16.mxu0 %vm1239_vm1, %v5353_v51 }
 0xbcb   : > { %v5171_v43 = vpop.f32.mrb[166].mxu0  ;;  %10128 = vmatpush3.bf16.msra.mxu0 %v10482_v20 }
 0xbcc   : > { %v5354_v4 = vpack.c.bf16 %v5171_v43, %v5168_v10  ;;  %v10048_v61 = vpop.f32.mrb[167].mxu0  ;;  %10129 = vmatprep.subr.bf16.mxu0 %v10483_v35 }
 0xbcd   : > { %v5212_v12 = vpop.f32.mrb[168].mxu1 }
 0xbce   : > { %v10053_v26 = vpop.f32.mrb[169].mxu1  ;;  %10082 = vmatmul.mubr.msk.bf16.gmra.mrb[116].mxu0 %vm1239_vm1, %v5354_v4 }
 0xbcf   : > { %v5215_v63 = vpop.f32.mrb[170].mxu1  ;;  %10130 = vmatpush3.bf16.msra.mxu0 %v10483_v35 }
 0xbd0   : > { %v5355_v25 = vpack.c.bf16 %v5215_v63, %v5212_v12  ;;  %v10054_v39 = vpop.f32.mrb[171].mxu1  ;;  %10131 = vmatprep.subr.bf16.mxu0 %v10484_v2 }
 0xbd1   : > { %v5256_v54 = vpop.f32.mrb[168].mxu0 }
 0xbd2   : > { %v10059_v50 = vpop.f32.mrb[169].mxu0  ;;  %10085 = vmatprep.mubr.msk.bf16.mxu0 %vm1239_vm1, %v5355_v25  ;;  %v8876_v25 = vld [vmem:[%s11435_s16 + $0x3] ss:$0 sm:$0xff] }
 0xbd3   : > { %v5259_v15 = vpop.f32.mrb[170].mxu0  ;;  %10132 = vmatpush3.bf16.msra.mxu0 %v10484_v2 }
 0xbd4   : > { %v5356_v47 = vpack.c.bf16 %v5259_v15, %v5256_v54  ;;  %v10060_v62 = vpop.f32.mrb[171].mxu0  ;;  %10133 = vmatprep.subr.bf16.mxu0 %v10485_v14 }
 0xbd5   : > { %v5300_v49 = vpop.f32.mrb[172].mxu1 }
 0xbd6   : > { %v10065_v5 = vpop.f32.mrb[173].mxu1  ;;  %10086 = vmatmul.mubr.msk.bf16.gmra.mrb[120].mxu0 %vm1239_vm1, %v5356_v47 }
 0xbd7   : > { %v5303_v40 = vpop.f32.mrb[174].mxu1  ;;  %10134 = vmatpush3.bf16.msra.mxu0 %v10485_v14 }
 0xbd8   : > { %v5357_v38 = vpack.c.bf16 %v5303_v40, %v5300_v49  ;;  %v10066_v31 = vpop.f32.mrb[175].mxu1  ;;  %10135 = vmatprep.subr.bf16.mxu0 %v10486_v32 }
 0xbd9   : > { %v5344_v1 = vpop.f32.mrb[172].mxu0 }
 0xbda   : > { %v10071_v42 = vpop.f32.mrb[173].mxu0  ;;  %10089 = vmatprep.mubr.msk.bf16.mxu0 %vm1239_vm1, %v5357_v38 }
 0xbdb   : > { %v5347_v13 = vpop.f32.mrb[174].mxu0  ;;  %10136 = vmatpush3.bf16.msra.mxu0 %v10486_v32 }
 0xbdc   : > { %v5358_v3 = vpack.c.bf16 %v5347_v13, %v5344_v1  ;;  %v10072_v22 = vpop.f32.mrb[175].mxu0  ;;  %10137 = vmatprep.subr.bf16.mxu0 %v10487_v55 }
 0xbde   : > { %10090 = vmatmul.mubr.msk.bf16.gmra.mrb[124].mxu0 %vm1239_vm1, %v5358_v3 }
 0xbdf   : > { %10138 = vmatpush3.bf16.msra.mxu0 %v10487_v55  ;;  %10141 = vmatprep.mubr.bf16.mxu0 %v11254_v36 }
 0xbe0   : > { %10139 = vmatprep.subr.bf16.mxu0 %v10488_v19 }
 0xbe3   : > { %10140 = vmatpush3.bf16.msra.mxu0 %v10488_v19 }
 0xbe4   : > { %10189 = vmatprep.subr.bf16.mxu0 %v13789_v59 }
 0xbe6   : > { %10142 = vmatmul.mubr.bf16.vlgmr.msra.gmra.mrb[176].mxu0 %v11260_v58 }
 0xbe7   : > { %10145 = vmatprep.mubr.bf16.mxu0 %v11268_v7 }
 0xbee   : > { %10146 = vmatmul.mubr.bf16.gmra.mrb[180].mxu0 %v11275_v18 }
 0xbef   : > { %10149 = vmatprep.mubr.bf16.mxu0 %v11282_v23 }
 0xbf5   : > { %v10111_v45 = vpop.f32.mrb[176].mxu1 }
 0xbf6   : > { %v5625_v30 = vpop.f32.mrb[177].mxu1  ;;  %10150 = vmatmul.mubr.bf16.gmra.mrb[184].mxu0 %v11289_v17  ;;  %v12721_v36 = vadd.f32 %v10111_v45, %v8818_v53 }
 0xbf7   : > { %v10112_v52 = vpop.f32.mrb[178].mxu1  ;;  %10153 = vmatprep.mubr.bf16.mxu0 %v11296_v27  ;;  %v12725_v58 = vadd.f32 %v8818_v53, %v5625_v30 }
 0xbf8   : > { %v12723_v29 = vadd.f32 %v10112_v52, %v8818_v53  ;;  %v5628_v8 = vpop.f32.mrb[179].mxu1 }
 0xbf9   : > { %v12727_v7 = vadd.f32 %v8818_v53, %v5628_v8 }
 0xbfa   : > { %v6031_v18 = vpack.c.bf16 %v12723_v29, %v12721_v36 }
 0xbfb   : > { %v6030_v23 = vpack.c.bf16 %v12727_v7, %v12725_v58 }
 0xbfd   : > { %v10115_v41 = vpop.f32.mrb[180].mxu1 }
 0xbfe   : > { %v5641_v17 = vpop.f32.mrb[181].mxu1  ;;  %10154 = vmatmul.mubr.bf16.gmra.mrb[188].mxu0 %v11303_v34  ;;  %v12736_v48 = vadd.f32 %v10115_v41, %v8818_v53 }
 0xbff   : > { %v10116_v27 = vpop.f32.mrb[182].mxu1  ;;  %10191 = vmatprep.mubr.msk.bf16.mxu0 %vm10988_vm0, %v13789_v59  ;;  %v12740_v6 = vadd.f32 %v8818_v53, %v5641_v17 }
 0xc00   : > { %v12738_v21 = vadd.f32 %v10116_v27, %v8818_v53  ;;  %v5644_v37 = vpop.f32.mrb[183].mxu1 }
 0xc01   : > { %v12742_v57 = vadd.f32 %v8818_v53, %v5644_v37 }
 0xc02   : > { %v6033_v16 = vpack.c.bf16 %v12738_v21, %v12736_v48 }
 0xc03   : > { %v6032_v28 = vpack.c.bf16 %v12742_v57, %v12740_v6 }
 0xc05   : > { %v10119_v34 = vpop.f32.mrb[184].mxu1 }
 0xc06   : > { %v5657_v46 = vpop.f32.mrb[185].mxu1  ;;  %v12748_v60 = vadd.f32 %v10119_v34, %v8818_v53 }
 0xc07   : > { %v10120_v0 = vpop.f32.mrb[186].mxu1  ;;  %v12752_v9 = vadd.f32 %v8818_v53, %v5657_v46 }
 0xc08   : > { %v12750_v56 = vadd.f32 %v10120_v0, %v8818_v53  ;;  %v5660_v20 = vpop.f32.mrb[187].mxu1 }
 0xc09   : > { %v12754_v11 = vadd.f32 %v8818_v53, %v5660_v20 }
 0xc0a   : > { %v6035_v24 = vpack.c.bf16 %v12750_v56, %v12748_v60 }
 0xc0b   : > { %v6034_v51 = vpack.c.bf16 %v12754_v11, %v12752_v9 }
 0xc0d   : > { %v10123_v33 = vpop.f32.mrb[188].mxu1 }
 0xc0e   : > { %v5673_v35 = vpop.f32.mrb[189].mxu1  ;;  %v12760_v44 = vadd.f32 %v10123_v33, %v8818_v53 }
 0xc0f   : > { %v10124_v10 = vpop.f32.mrb[190].mxu1  ;;  %v12764_v61 = vadd.f32 %v8818_v53, %v5673_v35 }
 0xc10   : > { %v12762_v43 = vadd.f32 %v10124_v10, %v8818_v53  ;;  %v5676_v4 = vpop.f32.mrb[191].mxu1 }
 0xc11   : > { %v12766_v2 = vadd.f32 %v8818_v53, %v5676_v4 }
 0xc12   : > { %v6037_v12 = vpack.c.bf16 %v12762_v43, %v12760_v44 }
 0xc13   : > { %v6036_v26 = vpack.c.bf16 %v12766_v2, %v12764_v61 }
 0xc15   : > { %v10175_v63 = vpop.f32.mrb[192].mxu1 }
 0xc16   : > { %v5967_v39 = vpop.f32.mrb[193].mxu1  ;;  %v12773_v54 = vadd.f32 %v10175_v63, %v8876_v25 }
 0xc17   : > { %v10176_v14 = vpop.f32.mrb[194].mxu1  ;;  %v12777_v47 = vadd.f32 %v8876_v25, %v5967_v39 }
 0xc18   : > { %v12775_v50 = vadd.f32 %v10176_v14, %v8876_v25  ;;  %v5970_v15 = vpop.f32.mrb[195].mxu1 }
 0xc19   : > { %v12779_v62 = vadd.f32 %v8876_v25, %v5970_v15  ;;  %v8847_v15 = vld [vmem:[%s11335_s22 + $0x3] ss:$0 sm:$0xff]  ;;  %s7918_s22 = scalar_lea.vmem %s13775_s12, %s10977_s25 }
 0xc1a   : > { %v6047_v32 = vpack.c.bf16 %v12775_v50, %v12773_v54 }
 0xc1b   : > { %v6046_v49 = vpack.c.bf16 %v12779_v62, %v12777_v47 }
 0xc1d   : > { %v10179_v5 = vpop.f32.mrb[196].mxu1 }
 0xc1e   : > { %v12785_v40 = vadd.f32 %v10179_v5, %v8876_v25  ;;  %v5983_v38 = vpop.f32.mrb[197].mxu1 }
 0xc1f   : > { %v12787_v31 = vadd.f32 %v8876_v25, %v5983_v38  ;;  %v10180_v55 = vpop.f32.mrb[198].mxu1 }
 0xc20   : > { %v12789_v1 = vadd.f32 %v10180_v55, %v8876_v25  ;;  %v5986_v42 = vpop.f32.mrb[199].mxu1 }
 0xc21   : > { %v12791_v13 = vadd.f32 %v8876_v25, %v5986_v42 }
 0xc23   : > { %v6048_v22 = vpack.c.bf16 %v12791_v13, %v12787_v31 }
 0xc25   : > { %v10183_v19 = vpop.f32.mrb[200].mxu1 }
 0xc26   : > { %v12797_v45 = vadd.f32 %v10183_v19, %v8876_v25  ;;  %v5999_v53 = vpop.f32.mrb[201].mxu1 }
 0xc27   : > { %v12799_v30 = vadd.f32 %v8876_v25, %v5999_v53  ;;  %v10184_v52 = vpop.f32.mrb[202].mxu1 }
 0xc28   : > { %v12801_v8 = vadd.f32 %v10184_v52, %v8876_v25  ;;  %v6002_v41 = vpop.f32.mrb[203].mxu1 }
 0xc29   : > { %v12803_v17 = vadd.f32 %v8876_v25, %v6002_v41 }
 0xc2d   : > { %v10187_v34 = vpop.f32.mrb[204].mxu1 }
 0xc2e   : > { %v12809_v46 = vadd.f32 %v10187_v34, %v8876_v25  ;;  %v6015_v0 = vpop.f32.mrb[205].mxu1 }
 0xc2f   : > { %v12811_v20 = vadd.f32 %v8876_v25, %v6015_v0  ;;  %v10188_v33 = vpop.f32.mrb[206].mxu1 }
 0xc30   : > { %v12813_v35 = vadd.f32 %v10188_v33, %v8876_v25  ;;  %v6018_v10 = vpop.f32.mrb[207].mxu1 }
 0xc31   : > { %v12815_v4 = vadd.f32 %v8876_v25, %v6018_v10 }
 0xcb9   : > { %v10143_v14 = vpop.f32.mrb[176].mxu0 }
 0xcba   : > { %v5796_v5 = vpop.f32.mrb[177].mxu0  ;;  %v5805_v55 = vadd.f32 %v10143_v14, %v8847_v15 }
 0xcbb   : > { %v10144_v38 = vpop.f32.mrb[178].mxu0  ;;  %v5797_v53 = vadd.f32 %v8847_v15, %v5796_v5 }
 0xcbc   : > { %v5808_v42 = vadd.f32 %v10144_v38, %v8847_v15  ;;  %v5799_v19 = vpop.f32.mrb[179].mxu0 }
 0xcbd   : > { %v5800_v52 = vadd.f32 %v8847_v15, %v5799_v19 }
 0xcbe   : > { %v6039_v41 = vpack.c.bf16 %v5808_v42, %v5805_v55 }
 0xcbf   : > { %v6038_v34 = vpack.c.bf16 %v5800_v52, %v5797_v53 }
 0xcc0   : > { %v6105_v55 = vsel %vm1239_vm1, %v6039_v41, 0 }
 0xcc1   : > { %v10147_v0 = vpop.f32.mrb[180].mxu0  ;;  %v6058_v25 = vsel %vm1239_vm1, %v6038_v34, 0 }
 0xcc2   : > { %v5812_v33 = vpop.f32.mrb[181].mxu0  ;;  %10190 = vmatpush3.bf16.xpose.msra.mxu0 %v6058_v25  ;;  %v5821_v63 = vadd.f32 %v10147_v0, %v8847_v15 }
 0xcc3   : > { %v10148_v10 = vpop.f32.mrb[182].mxu0  ;;  %10195 = vmatprep.subr.bf16.mxu0 %v13789_v59  ;;  %v5813_v37 = vadd.f32 %v8847_v15, %v5812_v33 }
 0xcc4   : > { %v5824_v39 = vadd.f32 %v10148_v10, %v8847_v15  ;;  %v5815_v27 = vpop.f32.mrb[183].mxu0 }
 0xcc5   : > { %v5816_v3 = vadd.f32 %v8847_v15, %v5815_v27 }
 0xcc6   : > { %v6041_v14 = vpack.c.bf16 %v5824_v39, %v5821_v63 }
 0xcc7   : > { %v6040_v38 = vpack.c.bf16 %v5816_v3, %v5813_v37 }
 0xcc8   : > { %v6199_v5 = vsel %vm1239_vm1, %v6041_v14, 0 }
 0xcc9   : > { %v10151_v19 = vpop.f32.mrb[184].mxu0  ;;  %10192 = vmatmul.mubr.msk.bf16.vlgmr.msra.gmra.mrb[192].mxu0 %vm1239_vm1, %v6030_v23  ;;  %10208 = vmatpush3.bf16.xpose.msra.mxu1 %v6199_v5  ;;  %v6152_v41 = vsel %vm1239_vm1, %v6040_v38, 0 }
 0xcca   : > { %v5828_v42 = vpop.f32.mrb[185].mxu0  ;;  %10196 = vmatpush3.bf16.xpose.msra.mxu0 %v6105_v55  ;;  %10197 = vmatprep.mubr.msk.bf16.mxu0 %vm10988_vm0, %v13789_v59  ;;  %v5837_v3 = vadd.f32 %v10151_v19, %v8847_v15 }
 0xccb   : > { %v10152_v53 = vpop.f32.mrb[186].mxu0  ;;  %10219 = vmatprep.subr.bf16.mxu1 %v13789_v59  ;;  %10201 = vmatprep.subr.bf16.mxu0 %v13789_v59  ;;  %v5829_v63 = vadd.f32 %v8847_v15, %v5828_v42 }
 0xccc   : > { %v5840_v27 = vadd.f32 %v10152_v53, %v8847_v15  ;;  %v5831_v37 = vpop.f32.mrb[187].mxu0 }
 0xccd   : > { %v5832_v58 = vadd.f32 %v8847_v15, %v5831_v37 }
 0xcce   : > { %v6043_v7 = vpack.c.bf16 %v5840_v27, %v5837_v3 }
 0xccf   : > { %v6042_v23 = vpack.c.bf16 %v5832_v58, %v5829_v63 }
 0xcd0   : > { %10210 = vmatmul.mubr.msk.bf16.vlgmr.msra.gmra.mrb[208].mxu1 %vm1239_vm1, %v6033_v16  ;;  %v6293_v39 = vsel %vm1239_vm1, %v6043_v7, 0 }
 0xcd1   : > { %v10155_v52 = vpop.f32.mrb[188].mxu0  ;;  %10198 = vmatmul.mubr.msk.bf16.vlgmr.msra.gmra.mrb[196].mxu0 %vm1239_vm1, %v6031_v18  ;;  %10220 = vmatpush3.bf16.xpose.msra.mxu1 %v6293_v39  ;;  %v6246_v10 = vsel %vm1239_vm1, %v6042_v23, 0 }
 0xcd2   : > { %v5844_v34 = vpop.f32.mrb[189].mxu0  ;;  %10202 = vmatpush3.bf16.xpose.msra.mxu0 %v6152_v41  ;;  %10221 = vmatprep.mubr.msk.bf16.mxu1 %vm10988_vm0, %v13789_v59  ;;  %v5853_v48 = vadd.f32 %v10155_v52, %v8847_v15 }
 0xcd3   : > { %v10156_v0 = vpop.f32.mrb[190].mxu0  ;;  %10203 = vmatprep.mubr.msk.bf16.mxu0 %vm10988_vm0, %v13789_v59  ;;  %10231 = vmatprep.subr.bf16.mxu1 %v13789_v59  ;;  %v5845_v36 = vadd.f32 %v8847_v15, %v5844_v34 }
 0xcd4   : > { %v5856_v21 = vadd.f32 %v10156_v0, %v8847_v15  ;;  %v5847_v16 = vpop.f32.mrb[191].mxu0  ;;  %10213 = vmatprep.subr.bf16.mxu0 %v13789_v59 }
 0xcd5   : > { %v5848_v29 = vadd.f32 %v8847_v15, %v5847_v16 }
 0xcd6   : > { %v6045_v18 = vpack.c.bf16 %v5856_v21, %v5853_v48 }
 0xcd7   : > { %v6044_v25 = vpack.c.bf16 %v5848_v29, %v5845_v36 }
 0xcd8   : > { %10222 = vmatmul.mubr.msk.bf16.vlgmr.msra.gmra.mrb[212].mxu1 %vm1239_vm1, %v6035_v24  ;;  %v6387_v33 = vsel %vm1239_vm1, %v6045_v18, 0 }
 0xcd9   : > { %10204 = vmatmul.mubr.msk.bf16.vlgmr.msra.gmra.mrb[200].mxu0 %vm1239_vm1, %v6032_v28  ;;  %10232 = vmatpush3.bf16.xpose.msra.mxu1 %v6387_v33  ;;  %v6340_v6 = vsel %vm1239_vm1, %v6044_v25, 0 }
 0xcda   : > { %10214 = vmatpush3.bf16.xpose.msra.mxu0 %v6246_v10  ;;  %10233 = vmatprep.mubr.msk.bf16.mxu1 %vm10988_vm0, %v13789_v59 }
 0xcdb   : > { %10215 = vmatprep.mubr.msk.bf16.mxu0 %vm10988_vm0, %v13789_v59  ;;  %10243 = vmatprep.subr.bf16.mxu1 %v13789_v59 }
 0xcdc   : > { %10225 = vmatprep.subr.bf16.mxu0 %v13789_v59 }
 0xce0   : > { %10234 = vmatmul.mubr.msk.bf16.vlgmr.msra.gmra.mrb[216].mxu1 %vm1239_vm1, %v6037_v12 }
 0xce1   : > { %10216 = vmatmul.mubr.msk.bf16.vlgmr.msra.gmra.mrb[204].mxu0 %vm1239_vm1, %v6034_v51  ;;  %10244 = vmatpush3.bf16.msra.mxu1 %v6047_v32 }
 0xce2   : > { %10226 = vmatpush3.bf16.xpose.msra.mxu0 %v6340_v6  ;;  %10227 = vmatprep.mubr.msk.bf16.mxu0 %vm10988_vm0, %v13789_v59 }
 0xce3   : > { %10237 = vmatprep.subr.bf16.mxu0 %v13789_v59  ;;  %10245 = vmatprep.mubr.msk.bf16.mxu1 %vm10988_vm0, %v13789_v59 }
 0xce4   : > { %10255 = vmatprep.subr.bf16.mxu1 %v13789_v59 }
 0xce9   : > { %10228 = vmatmul.mubr.msk.bf16.vlgmr.msra.gmra.mrb[208].mxu0 %vm1239_vm1, %v6036_v26 }
 0xcea   : > { %10238 = vmatpush3.bf16.msra.mxu0 %v6046_v49  ;;  %10239 = vmatprep.mubr.msk.bf16.mxu0 %vm10988_vm0, %v13789_v59 }
 0xceb   : > { %10249 = vmatprep.subr.bf16.mxu0 %v13789_v59 }
 0xd9c   : > { %v12894_v57 = vpop.f32.mrb[192].mxu0 }
 0xd9d   : > { %v10193_v28 = vpop.f32.mrb[193].mxu0  ;;  %v6430_v60 = vsel %vm1616_vm2, %v12894_v57, -inf }
 0xd9e   : > { %6431 = vmax.xlane.f32.xlu0 %v6430_v60  ;;  %v12898_v56 = vpop.f32.mrb[194].mxu0 }
 0xd9f   : > { %v10194_v9 = vpop.f32.mrb[195].mxu0  ;;  %v6433_v11 = vsel %vm1616_vm2, %v12898_v56, -inf }
 0xda0   : > { %6434 = vmax.xlane.f32.xlu1 %v6433_v11 }
 0xda3   : > { %v12902_v24 = vpop.f32.mrb[208].mxu1 }
 0xda4   : > { %v12904_v51 = vpop.f32.mrb[196].mxu0  ;;  %v10211_v44 = vpop.f32.mrb[209].mxu1  ;;  %v6448_v42 = vsel %vm1616_vm2, %v12902_v24, -inf }
 0xda5   : > { %v10199_v43 = vpop.f32.mrb[197].mxu0  ;;  %v12906_v61 = vpop.f32.mrb[210].mxu1  ;;  %v6436_v2 = vsel %vm1616_vm2, %v12904_v51, -inf }
 0xda6   : > { %v10212_v12 = vpop.f32.mrb[211].mxu1  ;;  %6437 = vmax.xlane.f32.xlu0 %v6436_v2  ;;  %v6144_v26 = vpop.f32.mrb[198].mxu0  ;;  %v6451_v3 = vsel %vm1616_vm2, %v12906_v61, -inf }
 0xda7   : > { %v10200_v54 = vpop.f32.mrb[199].mxu0  ;;  %v6439_v50 = vsel %vm1616_vm2, %v6144_v26, -inf }
 0xda8   : > { %6440 = vmax.xlane.f32.xlu1 %v6439_v50 }
 0xdab   : > { %v12911_v47 = vpop.f32.mrb[212].mxu1 }
 0xdac   : > { %v12913_v62 = vpop.f32.mrb[200].mxu0  ;;  %v10223_v32 = vpop.f32.mrb[213].mxu1  ;;  %v6460_v34 = vsel %vm1616_vm2, %v12911_v47, -inf }
 0xdad   : > { %v10205_v49 = vpop.f32.mrb[201].mxu0  ;;  %v12915_v15 = vpop.f32.mrb[214].mxu1  ;;  %v6442_v14 = vsel %vm1616_vm2, %v12913_v62, -inf }
 0xdae   : > { %v10224_v38 = vpop.f32.mrb[215].mxu1  ;;  %6443 = vmax.xlane.f32.xlu0 %v6442_v14  ;;  %v12919_v5 = vpop.f32.mrb[202].mxu0  ;;  %v6463_v0 = vsel %vm1616_vm2, %v12915_v15, -inf }
 0xdaf   : > { %v10206_v19 = vpop.f32.mrb[203].mxu0  ;;  %v6445_v55 = vsel %vm1616_vm2, %v12919_v5, -inf }
 0xdb0   : > { %6446 = vmax.xlane.f32.xlu1 %v6445_v55 }
 0xdb2   : > { %6449 = vmax.xlane.f32.xlu0 %v6448_v42 }
 0xdb3   : > { %v12925_v53 = vpop.f32.mrb[216].mxu1 }
 0xdb4   : > { %v10235_v27 = vpop.f32.mrb[217].mxu1  ;;  %6452 = vmax.xlane.f32.xlu1 %v6451_v3  ;;  %v12929_v37 = vpop.f32.mrb[204].mxu0  ;;  %v6472_v25 = vsel %vm1616_vm2, %v12925_v53, -inf }
 0xdb5   : > { %v10217_v63 = vpop.f32.mrb[205].mxu0  ;;  %v12931_v58 = vpop.f32.mrb[218].mxu1  ;;  %v6454_v7 = vsel %vm1616_vm2, %v12929_v37, -inf }
 0xdb6   : > { %v10236_v23 = vpop.f32.mrb[219].mxu1  ;;  %6455 = vmax.xlane.f32.xlu0 %v6454_v7  ;;  %v12935_v39 = vpop.f32.mrb[206].mxu0  ;;  %v6475_v33 = vsel %vm1616_vm2, %v12931_v58, -inf }
 0xdb7   : > { %v10218_v52 = vpop.f32.mrb[207].mxu0  ;;  %v6457_v41 = vsel %vm1616_vm2, %v12935_v39, -inf }
 0xdb8   : > { %6458 = vmax.xlane.f32.xlu1 %v6457_v41 }
 0xdba   : > { %6461 = vmax.xlane.f32.xlu0 %v6460_v34 }
 0xdbc   : > { %6464 = vmax.xlane.f32.xlu1 %v6463_v0  ;;  %v12943_v48 = vpop.f32.mrb[208].mxu0 }
 0xdbd   : > { %v10229_v21 = vpop.f32.mrb[209].mxu0  ;;  %v6466_v16 = vsel %vm1616_vm2, %v12943_v48, -inf }
 0xdbe   : > { %6467 = vmax.xlane.f32.xlu0 %v6466_v16  ;;  %v12947_v36 = vpop.f32.mrb[210].mxu0 }
 0xdbf   : > { %v10230_v29 = vpop.f32.mrb[211].mxu0  ;;  %v6469_v18 = vsel %vm1616_vm2, %v12947_v36, -inf }
 0xdc0   : > { %6470 = vmax.xlane.f32.xlu1 %v6469_v18 }
 0xdc2   : > { %6473 = vmax.xlane.f32.xlu0 %v6472_v25 }
 0xdc4   : > { %6476 = vmax.xlane.f32.xlu1 %v6475_v33 }
 0xe2b   : > { %v6432_v10 = vpop.xlane.xlu0 %6431 }
 0xe2c   : > { %v6478_v6 = vsub.f32 %v12894_v57, %v6432_v10 }
 0xe2d   : > { %v6435_v28 = vpop.xlane.xlu1 %6434 }
 0xe2e   : > { %v6494_v60 = vmul.f32 1.442695, %v6478_v6  ;;  %v6479_v9 = vsub.f32 %v12898_v56, %v6435_v28 }
 0xe30   : > { %10755 = vpow2.f32 %v6494_v60  ;;  %v6496_v11 = vmul.f32 1.442695, %v6479_v9 }
 0xe32   : > { %10757 = vpow2.f32 %v6496_v11 }
 0xe33   : > { %v6438_v44 = vpop.xlane.xlu0 %6437 }
 0xe34   : > { %v6480_v43 = vsub.f32 %v12904_v51, %v6438_v44 }
 0xe35   : > { %v6441_v2 = vpop.xlane.xlu1 %6440 }
 0xe36   : > { %v6498_v12 = vmul.f32 1.442695, %v6480_v43  ;;  %v6481_v54 = vsub.f32 %v6144_v26, %v6441_v2 }
 0xe38   : > { %10759 = vpow2.f32 %v6498_v12  ;;  %v6500_v50 = vmul.f32 1.442695, %v6481_v54 }
 0xe3a   : > { %v12958_v32 = vpop.eup %10755  ;;  %10761 = vpow2.f32 %v6500_v50 }
 0xe3b   : > { %v6444_v49 = vpop.xlane.xlu0 %6443  ;;  %v6526_v57 = vsel %vm1616_vm2, %v12958_v32, 0.0 }
 0xe3c   : > { %v12962_v14 = vpop.eup %10757  ;;  %v6482_v56 = vsub.f32 %v12913_v62, %v6444_v49  ;;  %6527 = vadd.xlane.f32.xlu0 %v6526_v57 }
 0xe3d   : > { %v6447_v38 = vpop.xlane.xlu1 %6446  ;;  %v6529_v51 = vsel %vm1616_vm2, %v12962_v14, 0.0 }
 0xe3e   : > { %v6502_v19 = vmul.f32 1.442695, %v6482_v56  ;;  %v6483_v26 = vsub.f32 %v12919_v5, %v6447_v38  ;;  %6530 = vadd.xlane.f32.xlu1 %v6529_v51 }
 0xe3f   : > { %v6450_v55 = vpop.xlane.xlu0 %6449 }
 0xe40   : > { %10763 = vpow2.f32 %v6502_v19  ;;  %v6504_v42 = vmul.f32 1.442695, %v6483_v26  ;;  %v6484_v3 = vsub.f32 %v12902_v24, %v6450_v55 }
 0xe41   : > { %v6453_v27 = vpop.xlane.xlu1 %6452 }
 0xe42   : > { %v12969_v63 = vpop.eup %10759  ;;  %10765 = vpow2.f32 %v6504_v42  ;;  %v6506_v7 = vmul.f32 1.442695, %v6484_v3  ;;  %v6485_v62 = vsub.f32 %v12906_v61, %v6453_v27 }
 0xe43   : > { %v6456_v23 = vpop.xlane.xlu0 %6455  ;;  %v6532_v52 = vsel %vm1616_vm2, %v12969_v63, 0.0 }
 0xe44   : > { %v12974_v41 = vpop.eup %10761  ;;  %10767 = vpow2.f32 %v6506_v7  ;;  %v6508_v5 = vmul.f32 1.442695, %v6485_v62  ;;  %v6486_v34 = vsub.f32 %v12929_v37, %v6456_v23  ;;  %6533 = vadd.xlane.f32.xlu0 %v6532_v52 }
 0xe45   : > { %v6459_v0 = vpop.xlane.xlu1 %6458  ;;  %v6535_v24 = vsel %vm1616_vm2, %v12974_v41, 0.0 }
 0xe46   : > { %10769 = vpow2.f32 %v6508_v5  ;;  %v6510_v21 = vmul.f32 1.442695, %v6486_v34  ;;  %v6487_v16 = vsub.f32 %v12935_v39, %v6459_v0  ;;  %6536 = vadd.xlane.f32.xlu1 %v6535_v24 }
 0xe47   : > { %v6462_v61 = vpop.xlane.xlu0 %6461 }
 0xe48   : > { %10771 = vpow2.f32 %v6510_v21  ;;  %v6512_v29 = vmul.f32 1.442695, %v6487_v16  ;;  %v6488_v18 = vsub.f32 %v12911_v47, %v6462_v61 }
 0xe49   : > { %v6465_v25 = vpop.xlane.xlu1 %6464 }
 0xe4a   : > { %v12981_v33 = vpop.eup %10763  ;;  %10773 = vpow2.f32 %v6512_v29  ;;  %v6514_v37 = vmul.f32 1.442695, %v6488_v18  ;;  %v6489_v10 = vsub.f32 %v12915_v15, %v6465_v25 }
 0xe4b   : > { %v6468_v6 = vpop.xlane.xlu0 %6467  ;;  %v6538_v28 = vsel %vm1616_vm2, %v12981_v33, 0.0 }
 0xe4c   : > { %v12986_v60 = vpop.eup %10765  ;;  %10775 = vpow2.f32 %v6514_v37  ;;  %v6516_v39 = vmul.f32 1.442695, %v6489_v10  ;;  %v6490_v9 = vsub.f32 %v12943_v48, %v6468_v6  ;;  %6539 = vadd.xlane.f32.xlu0 %v6538_v28 }
 0xe4d   : > { %v6471_v11 = vpop.xlane.xlu1 %6470  ;;  %v6541_v47 = vsel %vm1616_vm2, %v12986_v60, 0.0 }
 0xe4e   : > { %v12991_v44 = vpop.eup %10767  ;;  %10777 = vpow2.f32 %v6516_v39  ;;  %v6518_v43 = vmul.f32 1.442695, %v6490_v9  ;;  %v6491_v15 = vsub.f32 %v12947_v36, %v6471_v11  ;;  %6542 = vadd.xlane.f32.xlu1 %v6541_v47 }
 0xe4f   : > { %v6474_v2 = vpop.xlane.xlu0 %6473  ;;  %v6544_v12 = vsel %vm1616_vm2, %v12991_v44, 0.0 }
 0xe50   : > { %v12996_v54 = vpop.eup %10769  ;;  %10779 = vpow2.f32 %v6518_v43  ;;  %v6520_v48 = vmul.f32 1.442695, %v6491_v15  ;;  %v6492_v50 = vsub.f32 %v12925_v53, %v6474_v2  ;;  %6545 = vadd.xlane.f32.xlu0 %v6544_v12 }
 0xe51   : > { %v6477_v49 = vpop.xlane.xlu1 %6476  ;;  %v6547_v57 = vsel %vm1616_vm2, %v12996_v54, 0.0 }
 0xe52   : > { %v13001_v56 = vpop.eup %10771  ;;  %10781 = vpow2.f32 %v6520_v48  ;;  %v6522_v36 = vmul.f32 1.442695, %v6492_v50  ;;  %v6493_v38 = vsub.f32 %v12931_v58, %v6477_v49  ;;  %6548 = vadd.xlane.f32.xlu1 %v6547_v57 }
 0xe53   : > { %v6550_v51 = vsel %vm1616_vm2, %v13001_v56, 0.0 }
 0xe54   : > { %v13006_v19 = vpop.eup %10773  ;;  %10783 = vpow2.f32 %v6522_v36  ;;  %v6524_v26 = vmul.f32 1.442695, %v6493_v38  ;;  %6551 = vadd.xlane.f32.xlu0 %v6550_v51 }
 0xe55   : > { %v6553_v53 = vsel %vm1616_vm2, %v13006_v19, 0.0 }
 0xe56   : > { %v13010_v55 = vpop.eup %10775  ;;  %10785 = vpow2.f32 %v6524_v26  ;;  %6554 = vadd.xlane.f32.xlu1 %v6553_v53 }
 0xe57   : > { %v6556_v42 = vsel %vm1616_vm2, %v13010_v55, 0.0 }
 0xe58   : > { %v13014_v58 = vpop.eup %10777  ;;  %6557 = vadd.xlane.f32.xlu0 %v6556_v42 }
 0xe59   : > { %v6559_v3 = vsel %vm1616_vm2, %v13014_v58, 0.0 }
 0xe5a   : > { %v13018_v27 = vpop.eup %10779  ;;  %6560 = vadd.xlane.f32.xlu1 %v6559_v3 }
 0xe5b   : > { %v6562_v7 = vsel %vm1616_vm2, %v13018_v27, 0.0 }
 0xe5c   : > { %v13022_v62 = vpop.eup %10781  ;;  %6563 = vadd.xlane.f32.xlu0 %v6562_v7 }
 0xe5d   : > { %v6565_v23 = vsel %vm1616_vm2, %v13022_v62, 0.0 }
 0xe5e   : > { %v13026_v52 = vpop.eup %10783  ;;  %6566 = vadd.xlane.f32.xlu1 %v6565_v23 }
 0xe5f   : > { %v6568_v5 = vsel %vm1616_vm2, %v13026_v52, 0.0 }
 0xe60   : > { %v13030_v34 = vpop.eup %10785  ;;  %6569 = vadd.xlane.f32.xlu0 %v6568_v5  ;;  %v13807_v5 = vpack.c.bf16 %v12815_v4, %v12811_v20 }
 0xe61   : > { %v6571_v0 = vsel %vm1616_vm2, %v13030_v34, 0.0 }
 0xe62   : > { %6572 = vadd.xlane.f32.xlu1 %v6571_v0 }
 0xec9   : > { %v6528_v24 = vpop.xlane.xlu0 %6527 }
 0xeca   : > { %10787 = vrcp.f32 %v6528_v24  ;;  %v13808_v24 = vpack.c.bf16 %v12813_v35, %v12809_v46 }
 0xecb   : > { %v6531_v21 = vpop.xlane.xlu1 %6530 }
 0xecc   : > { %10789 = vrcp.f32 %v6531_v21 }
 0xed1   : > { %v6534_v16 = vpop.xlane.xlu0 %6533 }
 0xed2   : > { %10791 = vrcp.f32 %v6534_v16 }
 0xed3   : > { %v6537_v61 = vpop.xlane.xlu1 %6536 }
 0xed4   : > { %v10788_v29 = vpop.eup %10787  ;;  %10793 = vrcp.f32 %v6537_v61  ;;  %v10490_v61 = vld [vmem:[%s12208_s21 + $0x38] sm:$0xff]  }
 0xed5   : > { %v6590_v25 = vmul.f32 %v10788_v29, %v12958_v32 }
 0xed6   : > { %v10790_v18 = vpop.eup %10789 }
 0xed7   : > { %v6591_v37 = vmul.f32 %v10790_v18, %v12962_v14 }
 0xed9   : > { %v6540_v10 = vpop.xlane.xlu0 %6539  ;;  %v6606_v6 = vpack.c.bf16 %v6591_v37, %v6590_v25 }
 0xeda   : > { %10795 = vrcp.f32 %v6540_v10 }
 0xedb   : > { %10240 = vmatmul.mubr.msk.bf16.vlgmr.msra.gmra.mrb[212].mxu0 %vm1616_vm2, %v6606_v6  ;;  %v6543_v28 = vpop.xlane.xlu1 %6542 }
 0xedc   : > { %v10792_v39 = vpop.eup %10791  ;;  %10250 = vmatpush3.bf16.msra.mxu0 %v6048_v22  ;;  %10797 = vrcp.f32 %v6543_v28  ;;  %10251 = vmatprep.mubr.msk.bf16.mxu0 %vm10988_vm0, %v13789_v59  ;;  %v13804_v22 = vpack.c.bf16 %v12789_v1, %v12785_v40 }
 0xedd   : > { %v6546_v9 = vpop.xlane.xlu0 %6545  ;;  %10261 = vmatprep.subr.bf16.mxu0 %v13789_v59  ;;  %v6592_v14 = vmul.f32 %v10792_v39, %v12969_v63 }
 0xede   : > { %v10794_v32 = vpop.eup %10793  ;;  %10799 = vrcp.f32 %v6546_v9 }
 0xedf   : > { %v6593_v11 = vmul.f32 %v10794_v32, %v12974_v41  ;;  %v6549_v47 = vpop.xlane.xlu1 %6548 }
 0xee0   : > { %10801 = vrcp.f32 %v6549_v47 }
 0xee1   : > { %v6552_v43 = vpop.xlane.xlu0 %6551  ;;  %v6607_v15 = vpack.c.bf16 %v6593_v11, %v6592_v14 }
 0xee2   : > { %10803 = vrcp.f32 %v6552_v43 }
 0xee3   : > { %10246 = vmatmul.mubr.msk.bf16.vlgmr.msra.gmra.mrb[220].mxu1 %vm1616_vm2, %v6607_v15  ;;  %v6555_v31 = vpop.xlane.xlu1 %6554 }
 0xee4   : > { %v10796_v13 = vpop.eup %10795  ;;  %10256 = vmatpush3.bf16.msra.mxu1 %v13804_v22  ;;  %10805 = vrcp.f32 %v6555_v31  ;;  %10257 = vmatprep.mubr.msk.bf16.mxu1 %vm10988_vm0, %v13789_v59 }
 0xee5   : > { %v6558_v63 = vpop.xlane.xlu0 %6557  ;;  %10267 = vmatprep.subr.bf16.mxu1 %v13789_v59  ;;  %v6594_v2 = vmul.f32 %v10796_v13, %v12981_v33  ;;  %v13805_v33 = vpack.c.bf16 %v12803_v17, %v12799_v30  ;;  %v13806_v30 = vpack.c.bf16 %v12801_v8, %v12797_v45 }
 0xee6   : > { %v10798_v41 = vpop.eup %10797  ;;  %10807 = vrcp.f32 %v6558_v63 }
 0xee7   : > { %v6595_v12 = vmul.f32 %v10798_v41, %v12986_v60  ;;  %v6561_v48 = vpop.xlane.xlu1 %6560 }
 0xee8   : > { %v10800_v50 = vpop.eup %10799  ;;  %10809 = vrcp.f32 %v6561_v48 }
 0xee9   : > { %v6564_v49 = vpop.xlane.xlu0 %6563  ;;  %v6608_v57 = vpack.c.bf16 %v6595_v12, %v6594_v2  ;;  %v6596_v1 = vmul.f32 %v10800_v50, %v12991_v44 }
 0xeea   : > { %v10802_v40 = vpop.eup %10801  ;;  %10811 = vrcp.f32 %v6564_v49 }
 0xeeb   : > { %v6597_v36 = vmul.f32 %v10802_v40, %v12996_v54  ;;  %10252 = vmatmul.mubr.msk.bf16.vlgmr.msra.gmra.mrb[216].mxu0 %vm1616_vm2, %v6608_v57  ;;  %v6567_v38 = vpop.xlane.xlu1 %6566 }
 0xeec   : > { %v10804_v51 = vpop.eup %10803  ;;  %10262 = vmatpush3.bf16.msra.mxu0 %v13805_v33  ;;  %10813 = vrcp.f32 %v6567_v38  ;;  %10263 = vmatprep.mubr.msk.bf16.mxu0 %vm10988_vm0, %v13789_v59 }
 0xeed   : > { %v6570_v60 = vpop.xlane.xlu0 %6569  ;;  %v6609_v26 = vpack.c.bf16 %v6597_v36, %v6596_v1  ;;  %10273 = vmatprep.subr.bf16.mxu0 %v13789_v59  ;;  %v6598_v44 = vmul.f32 %v10804_v51, %v13001_v56 }
 0xeee   : > { %v10806_v53 = vpop.eup %10805  ;;  %10815 = vrcp.f32 %v6570_v60 }
 0xeef   : > { %v6599_v54 = vmul.f32 %v10806_v53, %v13006_v19  ;;  %10258 = vmatmul.mubr.msk.bf16.vlgmr.msra.gmra.mrb[224].mxu1 %vm1616_vm2, %v6609_v26  ;;  %v6573_v42 = vpop.xlane.xlu1 %6572 }
 0xef0   : > { %v10808_v3 = vpop.eup %10807  ;;  %10268 = vmatpush3.bf16.msra.mxu1 %v13806_v30  ;;  %10817 = vrcp.f32 %v6573_v42  ;;  %10269 = vmatprep.mubr.msk.bf16.mxu1 %vm10988_vm0, %v13789_v59 }
 0xef1   : > { %v6610_v17 = vpack.c.bf16 %v6599_v54, %v6598_v44  ;;  %10279 = vmatprep.subr.bf16.mxu1 %v13789_v59  ;;  %v6600_v56 = vmul.f32 %v10808_v3, %v13010_v55  ;;  %v13106_v44 = vld [vmem:[%s7130_s14] ss:$0 sm:$0xff] }
 0xef2   : > { %v10810_v7 = vpop.eup %10809 }
 0xef3   : > { %v6601_v19 = vmul.f32 %v10810_v7, %v13014_v58  ;;  %10264 = vmatmul.mubr.msk.bf16.vlgmr.msra.gmra.mrb[220].mxu0 %vm1616_vm2, %v6610_v17 }
 0xef4   : > { %v10812_v23 = vpop.eup %10811  ;;  %10274 = vmatpush3.bf16.msra.mxu0 %v13807_v5  ;;  %10275 = vmatprep.mubr.msk.bf16.mxu0 %vm10988_vm0, %v13789_v59 }
 0xef5   : > { %v6611_v45 = vpack.c.bf16 %v6601_v19, %v6600_v56  ;;  %v6602_v0 = vmul.f32 %v10812_v23, %v13018_v27  ;;  %v10915_v56 = vld [vmem:[#allocation2] sm:$0xff] }
 0xef6   : > { %v10814_v8 = vpop.eup %10813 }
 0xef7   : > { %v6603_v55 = vmul.f32 %v10814_v8, %v13022_v62  ;;  %10270 = vmatmul.mubr.msk.bf16.vlgmr.msra.gmra.mrb[228].mxu1 %vm1616_vm2, %v6611_v45  ;;  %v10489_v62 = vld [vmem:[%s12208_s21 + $0x30] sm:$0xff]   ;;  %v10916_v45 = vld [vmem:[#allocation2 + $0x8] sm:$0xff] }
 0xef8   : > { %v10816_v58 = vpop.eup %10815  ;;  %10280 = vmatpush3.bf16.msra.mxu1 %v13808_v24  ;;  %10281 = vmatprep.mubr.msk.bf16.mxu1 %vm10988_vm0, %v13789_v59 }
 0xef9   : > { %v6612_v20 = vpack.c.bf16 %v6603_v55, %v6602_v0  ;;  %v6604_v21 = vmul.f32 %v10816_v58, %v13026_v52  ;;  %10285 = vmatprep.subr.bf16.mxu0 %v10489_v62  ;;  %v10917_v0 = vld [vmem:[#allocation2 + $0x10] sm:$0xff]  ;;  %v10918_v58 = vld [vmem:[#allocation2 + $0x18] sm:$0xff] }
 0xefa   : > { %v10818_v4 = vpop.eup %10817 }
 0xefb   : > { %v6605_v16 = vmul.f32 %v10818_v4, %v13030_v34  ;;  %10276 = vmatmul.mubr.msk.bf16.vlgmr.msra.gmra.mrb[224].mxu0 %vm1616_vm2, %v6612_v20 }
 0xefc   : > { %10286 = vmatpush3.bf16.msra.mxu0 %v10489_v62 }
 0xefd   : > { %v6613_v27 = vpack.c.bf16 %v6605_v16, %v6604_v21  ;;  %10287 = vmatprep.subr.bf16.mxu0 %v10490_v61 }
 0xeff   : > { %10282 = vmatmul.mubr.msk.bf16.vlgmr.msra.gmra.mrb[232].mxu1 %vm1616_vm2, %v6613_v27 }
 0xf00   : > { %10288 = vmatpush3.bf16.msra.mxu0 %v10490_v61  ;;  %v10919_v61 = vld [vmem:[#allocation2 + $0x20] sm:$0xff] }
 0xfae   : > { %v6651_v46 = vpop.f32.mrb[212].mxu0 }
 0xfaf   : > { %v10241_v35 = vpop.f32.mrb[213].mxu0 }
 0xfb0   : > { %v6654_v59 = vpop.f32.mrb[214].mxu0 }
 0xfb1   : > { %v6966_v29 = vpack.c.bf16 %v6654_v59, %v6651_v46  ;;  %v10242_v18 = vpop.f32.mrb[215].mxu0 }
 0xfb3   : > { %10289 = vmatprep.mubr.msk.bf16.mxu0 %vm1239_vm1, %v6966_v29  ;;  %v10920_v29 = vld [vmem:[#allocation2 + $0x28] sm:$0xff] }
 0xfb6   : > { %v6695_v52 = vpop.f32.mrb[220].mxu1 }
 0xfb7   : > { %v10247_v34 = vpop.f32.mrb[221].mxu1 }
 0xfb8   : > { %v6698_v25 = vpop.f32.mrb[222].mxu1 }
 0xfb9   : > { %v6967_v37 = vpack.c.bf16 %v6698_v25, %v6695_v52  ;;  %v10248_v10 = vpop.f32.mrb[223].mxu1  ;;  %v10921_v52 = vld [vmem:[#allocation2 + $0x30] sm:$0xff] }
 0xfba   : > { %v10922_v10 = vld [vmem:[#allocation2 + $0x38] sm:$0xff] }
 0xfbb   : > { %10290 = vmatmul.mubr.msk.bf16.vlgmr.msra.gmra.mrb[112].mxu0 %vm1239_vm1, %v6967_v37 }
 0xfbe   : > { %v6739_v6 = vpop.f32.mrb[216].mxu0 }
 0xfbf   : > { %v10253_v28 = vpop.f32.mrb[217].mxu0 }
 0xfc0   : > { %v6742_v39 = vpop.f32.mrb[218].mxu0 }
 0xfc1   : > { %v6968_v9 = vpack.c.bf16 %v6742_v39, %v6739_v6  ;;  %v10254_v32 = vpop.f32.mrb[219].mxu0 }
 0xfc2   : > { %v6783_v14 = vpop.f32.mrb[224].mxu1 }
 0xfc3   : > { %v10259_v11 = vpop.f32.mrb[225].mxu1  ;;  %10293 = vmatprep.mubr.msk.bf16.mxu0 %vm1239_vm1, %v6968_v9 }
 0xfc4   : > { %v6786_v47 = vpop.f32.mrb[226].mxu1 }
 0xfc5   : > { %v6969_v43 = vpack.c.bf16 %v6786_v47, %v6783_v14  ;;  %v10260_v15 = vpop.f32.mrb[227].mxu1  ;;  %v10923_v14 = vld [vmem:[#allocation2 + $0x40] sm:$0xff] }
 0xfc6   : > { %v6827_v31 = vpop.f32.mrb[220].mxu0  ;;  %v10924_v15 = vld [vmem:[#allocation2 + $0x48] sm:$0xff] }
 0xfc7   : > { %v10265_v13 = vpop.f32.mrb[221].mxu0  ;;  %10294 = vmatmul.mubr.msk.bf16.gmra.mrb[116].mxu0 %vm1239_vm1, %v6969_v43 }
 0xfc8   : > { %v6830_v22 = vpop.f32.mrb[222].mxu0  ;;  %v10925_v13 = vld [vmem:[#allocation2 + $0x50] sm:$0xff] }
 0xfc9   : > { %v6970_v63 = vpack.c.bf16 %v6830_v22, %v6827_v31  ;;  %v10266_v41 = vpop.f32.mrb[223].mxu0 }
 0xfca   : > { %v6871_v2 = vpop.f32.mrb[228].mxu1 }
 0xfcb   : > { %v10271_v12 = vpop.f32.mrb[229].mxu1  ;;  %10297 = vmatprep.mubr.msk.bf16.mxu0 %vm1239_vm1, %v6970_v63 }
 0xfcc   : > { %v6874_v48 = vpop.f32.mrb[230].mxu1 }
 0xfcd   : > { %v6971_v50 = vpack.c.bf16 %v6874_v48, %v6871_v2  ;;  %v10272_v49 = vpop.f32.mrb[231].mxu1  ;;  %v10926_v2 = vld [vmem:[#allocation2 + $0x58] sm:$0xff] }
 0xfce   : > { %v6915_v57 = vpop.f32.mrb[224].mxu0 }
 0xfcf   : > { %v10277_v40 = vpop.f32.mrb[225].mxu0  ;;  %10298 = vmatmul.mubr.msk.bf16.gmra.mrb[120].mxu0 %vm1239_vm1, %v6971_v50 }
 0xfd0   : > { %v6918_v1 = vpop.f32.mrb[226].mxu0  ;;  %v10927_v40 = vld [vmem:[#allocation2 + $0x60] sm:$0xff] }
 0xfd1   : > { %v6972_v36 = vpack.c.bf16 %v6918_v1, %v6915_v57  ;;  %v10278_v38 = vpop.f32.mrb[227].mxu0 }
 0xfd2   : > { %v6959_v51 = vpop.f32.mrb[232].mxu1 }
 0xfd3   : > { %v10283_v33 = vpop.f32.mrb[233].mxu1  ;;  %10301 = vmatprep.mubr.msk.bf16.mxu0 %vm1239_vm1, %v6972_v36 }
 0xfd4   : > { %v6962_v60 = vpop.f32.mrb[234].mxu1 }
 0xfd5   : > { %v6973_v26 = vpack.c.bf16 %v6962_v60, %v6959_v51  ;;  %v10284_v53 = vpop.f32.mrb[235].mxu1  ;;  %v10928_v51 = vld [vmem:[#allocation2 + $0x68] sm:$0xff]  ;;  %v10929_v60 = vld [vmem:[#allocation2 + $0x70] sm:$0xff] }
 0xfd6   : > { %v10930_v53 = vld [vmem:[#allocation2 + $0x78] sm:$0xff] }
 0xfd7   : > { %10302 = vmatmul.mubr.msk.bf16.gmra.mrb[124].mxu0 %vm1239_vm1, %v6973_v26 }
0x108e   : > { %v10291_v54 = vpop.f32.mrb[112].mxu0 }
0x108f   : > { %v7051_v42 = vpop.f32.mrb[113].mxu0  ;;  %v7140_v7 = vadd.f32 %v10291_v54, %v13106_v44 }
0x1090   : > { %v7138_v3 = vadd.f32 %v13106_v44, %v7051_v42  ;;  %v10292_v30 = vpop.f32.mrb[114].mxu0  ;;  %v10493_v42 = vld [vmem:[%s13176_s30 + $0x4] ss:$8 sps:$4 sm:$0xff]  }
0x1091   : > { %v7054_v17 = vpop.f32.mrb[115].mxu0  ;;  %v7141_v5 = vadd.f32 %v10292_v30, %v13106_v44  ;;  %v13117_v55 = vadd.f32 %v10917_v0, %v7140_v7  ;;  %7467 = vmatprep.subr.bf16.mxu1 %v10493_v42  ;;  %v10494_v30 = vld [vmem:[%s13176_s30 + $0x10] ss:$8 sps:$4 sm:$0xff]   ;;  %v10497_v7 = vld [vmem:[%s13176_s30 + $0x20] ss:$8 sps:$4 sm:$0xff]  }
0x1092   : > { %v13110_v19 = vadd.f32 %v10915_v56, %v7138_v3  ;;  %v7139_v23 = vadd.f32 %v13106_v44, %v7054_v17  ;;  %v10496_v3 = vld [vmem:[%s13176_s30 + $0x14] ss:$8 sps:$4 sm:$0xff]   ;;  %v10499_v17 = vld [vmem:[%s13176_s30 + $0x24] ss:$8 sps:$4 sm:$0xff]  }
0x1093   : > { %v13120_v24 = vadd.f32 %v10918_v58, %v7141_v5  ;;  %v10505_v42 = vld [vmem:[%s13176_s30 + $0x44] ss:$8 sps:$4 sm:$0xff]  }
0x1094   : > { %v13114_v8 = vadd.f32 %v10916_v45, %v7139_v23  ;;  %7170 = vadd.xlane.f32.xlu0 %v13110_v19 }
0x1096   : > { %7172 = vadd.xlane.f32.xlu1 %v13114_v8 }
0x1098   : > { %7174 = vadd.xlane.f32.xlu0 %v13117_v55 }
0x109a   : > { %7176 = vadd.xlane.f32.xlu1 %v13120_v24  ;;  %v10295_v20 = vpop.f32.mrb[116].mxu0 }
0x109b   : > { %v7067_v4 = vpop.f32.mrb[117].mxu0  ;;  %v7144_v62 = vadd.f32 %v10295_v20, %v13106_v44 }
0x109c   : > { %v7142_v21 = vadd.f32 %v13106_v44, %v7067_v4  ;;  %v10296_v16 = vpop.f32.mrb[118].mxu0 }
0x109d   : > { %v7070_v27 = vpop.f32.mrb[119].mxu0  ;;  %v7145_v59 = vadd.f32 %v10296_v16, %v13106_v44  ;;  %v13133_v34 = vadd.f32 %v10921_v52, %v7144_v62 }
0x109e   : > { %v13126_v46 = vadd.f32 %v10919_v61, %v7142_v21  ;;  %v7143_v35 = vadd.f32 %v13106_v44, %v7070_v27 }
0x109f   : > { %v13136_v6 = vadd.f32 %v10922_v10, %v7145_v59 }
0x10a0   : > { %v13130_v18 = vadd.f32 %v10920_v29, %v7143_v35  ;;  %7178 = vadd.xlane.f32.xlu0 %v13126_v46 }
0x10a2   : > { %7180 = vadd.xlane.f32.xlu1 %v13130_v18  ;;  %v10299_v25 = vpop.f32.mrb[120].mxu0 }
0x10a3   : > { %v7083_v37 = vpop.f32.mrb[121].mxu0  ;;  %v7148_v32 = vadd.f32 %v10299_v25, %v13106_v44 }
0x10a4   : > { %v7146_v28 = vadd.f32 %v13106_v44, %v7083_v37  ;;  %7182 = vadd.xlane.f32.xlu0 %v13133_v34  ;;  %v10300_v39 = vpop.f32.mrb[122].mxu0 }
0x10a5   : > { %v7086_v9 = vpop.f32.mrb[123].mxu0  ;;  %v7149_v43 = vadd.f32 %v10300_v39, %v13106_v44  ;;  %v13149_v22 = vadd.f32 %v10925_v13, %v7148_v32 }
0x10a6   : > { %v13141_v11 = vadd.f32 %v10923_v14, %v7146_v28  ;;  %v7147_v47 = vadd.f32 %v13106_v44, %v7086_v9  ;;  %7184 = vadd.xlane.f32.xlu1 %v13136_v6 }
0x10a7   : > { %13810 = vst [vmem:[#allocation7_spill] sm:$0xff] %v13149_v22  ;;  %v13152_v12 = vadd.f32 %v10926_v2, %v7149_v43 }
0x10a8   : > { %v13146_v31 = vadd.f32 %v10924_v15, %v7147_v47  ;;  %7186 = vadd.xlane.f32.xlu0 %v13141_v11 }
0x10a9   : > { %13811 = vst [vmem:[#allocation8_spill] sm:$0xff] %v13152_v12 }
0x10aa   : > { %13809 = vst [vmem:[#allocation6_spill] sm:$0xff] %v13146_v31  ;;  %7188 = vadd.xlane.f32.xlu1 %v13146_v31  ;;  %v10303_v63 = vpop.f32.mrb[124].mxu0 }
0x10ab   : > { %v7099_v41 = vpop.f32.mrb[125].mxu0  ;;  %v7152_v57 = vadd.f32 %v10303_v63, %v13106_v44 }
0x10ac   : > { %v7150_v48 = vadd.f32 %v13106_v44, %v7099_v41  ;;  %7190 = vadd.xlane.f32.xlu0 %v13149_v22  ;;  %v10304_v50 = vpop.f32.mrb[126].mxu0 }
0x10ad   : > { %v7102_v49 = vpop.f32.mrb[127].mxu0  ;;  %v7153_v38 = vadd.f32 %v10304_v50, %v13106_v44  ;;  %v13165_v26 = vadd.f32 %v10929_v60, %v7152_v57  ;;  %v10502_v50 = vld [vmem:[%s13176_s30 + $0x34] ss:$8 sps:$4 sm:$0xff]   ;;  %v10500_v57 = vld [vmem:[%s13176_s30 + $0x30] ss:$8 sps:$4 sm:$0xff]  }
0x10ae   : > { %v13157_v1 = vadd.f32 %v10927_v40, %v7150_v48  ;;  %v7151_v36 = vadd.f32 %v13106_v44, %v7102_v49  ;;  %7192 = vadd.xlane.f32.xlu1 %v13152_v12  ;;  %v10491_v44 = vld [vmem:[%s13176_s30] ss:$8 sps:$4 sm:$0xff]  }
0x10af   : > { %13814 = vst [vmem:[#allocation11_spill] sm:$0xff] %v13165_v26  ;;  %v13168_v54 = vadd.f32 %v10930_v53, %v7153_v38  ;;  %7468 = vmatpush1.bf16.msra.mxu1 %v10491_v44 }
0x10b0   : > { %13812 = vst [vmem:[#allocation9_spill] sm:$0xff] %v13157_v1  ;;  %v13162_v33 = vadd.f32 %v10928_v51, %v7151_v36  ;;  %7194 = vadd.xlane.f32.xlu0 %v13157_v1  ;;  %7469 = vmatprep.subr.bf16.mxu1 %v10496_v3 }
0x10b1   : > { %13815 = vst [vmem:[#allocation12_spill] sm:$0xff] %v13168_v54 }
0x10b2   : > { %13813 = vst [vmem:[#allocation10_spill] sm:$0xff] %v13162_v33  ;;  %7196 = vadd.xlane.f32.xlu1 %v13162_v33 }
0x10b3   : > { %7470 = vmatpush1.bf16.msra.mxu1 %v10494_v30  ;;  %v10503_v30 = vld [vmem:[%s13176_s30 + $0x40] ss:$8 sps:$4 sm:$0xff]  }
0x10b4   : > { %7198 = vadd.xlane.f32.xlu0 %v13165_v26  ;;  %7471 = vmatprep.subr.bf16.mxu1 %v10499_v17 }
0x10b6   : > { %7200 = vadd.xlane.f32.xlu1 %v13168_v54 }
0x10b7   : > { %7472 = vmatpush1.bf16.msra.mxu1 %v10497_v7 }
0x10b8   : > { %7473 = vmatprep.subr.bf16.mxu1 %v10502_v50 }
0x10bb   : > { %7474 = vmatpush1.bf16.msra.mxu1 %v10500_v57 }
0x10bc   : > { %7475 = vmatprep.subr.bf16.mxu1 %v10505_v42 }
0x10bf   : > { %7476 = vmatpush1.bf16.msra.mxu1 %v10503_v30 }
0x1121   : > { %v7171_v56 = vpop.xlane.xlu0 %7170 }
0x1122   : > { %v7202_v23 = vmul.f32 0.0078125, %v7171_v56 }
0x1123   : > { %v7173_v5 = vpop.xlane.xlu1 %7172 }
0x1124   : > { %v13190_v45 = vsub.f32 %v13110_v19, %v7202_v23  ;;  %v7203_v0 = vmul.f32 0.0078125, %v7173_v5 }
0x1125   : > { %v7175_v58 = vpop.xlane.xlu0 %7174 }
0x1126   : > { %v13193_v20 = vsub.f32 %v13114_v8, %v7203_v0  ;;  %v7204_v4 = vmul.f32 0.0078125, %v7175_v58  ;;  %v7234_v21 = vmul.f32 %v13190_v45, %v13190_v45 }
0x1127   : > { %v7177_v16 = vpop.xlane.xlu1 %7176 }
0x1128   : > { %v13198_v27 = vsub.f32 %v13117_v55, %v7204_v4  ;;  %v7205_v62 = vmul.f32 0.0078125, %v7177_v16  ;;  %7250 = vadd.xlane.f32.xlu0 %v7234_v21  ;;  %v7235_v61 = vmul.f32 %v13193_v20, %v13193_v20  ;;  %v10508_v4 = vld [vmem:[%s13176_s30 + $0x54] ss:$8 sps:$4 sm:$0xff]   ;;  %v10506_v16 = vld [vmem:[%s13176_s30 + $0x50] ss:$8 sps:$4 sm:$0xff]  }
0x1129   : > { %7477 = vmatprep.subr.bf16.mxu1 %v10508_v4 }
0x112a   : > { %v13203_v35 = vsub.f32 %v13120_v24, %v7205_v62  ;;  %7252 = vadd.xlane.f32.xlu1 %v7235_v61  ;;  %v7236_v59 = vmul.f32 %v13198_v27, %v13198_v27  ;;  %7478 = vmatpush1.bf16.msra.mxu1 %v10506_v16 }
0x112c   : > { %7254 = vadd.xlane.f32.xlu0 %v7236_v59  ;;  %v7237_v29 = vmul.f32 %v13203_v35, %v13203_v35 }
0x112d   : > { %v7179_v52 = vpop.xlane.xlu0 %7178 }
0x112e   : > { %v7206_v25 = vmul.f32 0.0078125, %v7179_v52  ;;  %7256 = vadd.xlane.f32.xlu1 %v7237_v29 }
0x112f   : > { %v7181_v37 = vpop.xlane.xlu1 %7180 }
0x1130   : > { %v13210_v10 = vsub.f32 %v13126_v46, %v7206_v25  ;;  %v7207_v28 = vmul.f32 0.0078125, %v7181_v37 }
0x1131   : > { %v7183_v39 = vpop.xlane.xlu0 %7182 }
0x1132   : > { %v13213_v9 = vsub.f32 %v13130_v18, %v7207_v28  ;;  %v7208_v32 = vmul.f32 0.0078125, %v7183_v39  ;;  %v7238_v14 = vmul.f32 %v13210_v10, %v13210_v10  ;;  %v10511_v28 = vld [vmem:[%s13176_s30 + $0x64] ss:$8 sps:$4 sm:$0xff]  }
0x1133   : > { %v7185_v47 = vpop.xlane.xlu1 %7184  ;;  %7479 = vmatprep.subr.bf16.mxu1 %v10511_v28 }
0x1134   : > { %v13218_v43 = vsub.f32 %v13133_v34, %v7208_v32  ;;  %v7209_v15 = vmul.f32 0.0078125, %v7185_v47  ;;  %7258 = vadd.xlane.f32.xlu0 %v7238_v14  ;;  %v7239_v13 = vmul.f32 %v13213_v9, %v13213_v9  ;;  %v10509_v32 = vld [vmem:[%s13176_s30 + $0x60] ss:$8 sps:$4 sm:$0xff]  }
0x1135   : > { %v7187_v63 = vpop.xlane.xlu0 %7186  ;;  %7480 = vmatpush1.bf16.msra.mxu1 %v10509_v32 }
0x1136   : > { %v13223_v41 = vsub.f32 %v13136_v6, %v7209_v15  ;;  %v7210_v2 = vmul.f32 0.0078125, %v7187_v63  ;;  %7260 = vadd.xlane.f32.xlu1 %v7239_v13  ;;  %v7240_v48 = vmul.f32 %v13218_v43, %v13218_v43 }
0x1137   : > { %v7189_v49 = vpop.xlane.xlu1 %7188 }
0x1138   : > { %v13230_v40 = vsub.f32 %v13141_v11, %v7210_v2  ;;  %v7211_v36 = vmul.f32 0.0078125, %v7189_v49  ;;  %7262 = vadd.xlane.f32.xlu0 %v7240_v48  ;;  %v7241_v38 = vmul.f32 %v13223_v41, %v13223_v41  ;;  %v10514_v2 = vld [vmem:[%s13176_s30 + $0x74] ss:$8 sps:$4 sm:$0xff]   ;;  %v10512_v48 = vld [vmem:[%s13176_s30 + $0x70] ss:$8 sps:$4 sm:$0xff]   ;;  %v10989_v49 = vmov 0  }
0x1139   : > { %v7191_v51 = vpop.xlane.xlu0 %7190  ;;  %7481 = vmatprep.subr.bf16.mxu1 %v10514_v2  ;;  %7499 = vmatprep.mubr.bf16.mxu1 %v10989_v49 }
0x113a   : > { %v13235_v60 = vsub.f32 %v13146_v31, %v7211_v36  ;;  %v7212_v53 = vmul.f32 0.0078125, %v7191_v51  ;;  %7264 = vadd.xlane.f32.xlu1 %v7241_v38  ;;  %v7242_v44 = vmul.f32 %v13230_v40, %v13230_v40  ;;  %7482 = vmatpush1.bf16.msra.mxu1 %v10512_v48 }
0x113b   : > { %v7193_v3 = vpop.xlane.xlu1 %7192 }
0x113c   : > { %v13242_v17 = vsub.f32 %v13149_v22, %v7212_v53  ;;  %v7213_v7 = vmul.f32 0.0078125, %v7193_v3  ;;  %7266 = vadd.xlane.f32.xlu0 %v7242_v44  ;;  %v7243_v56 = vmul.f32 %v13235_v60, %v13235_v60 }
0x113d   : > { %v7195_v23 = vpop.xlane.xlu0 %7194 }
0x113e   : > { %v13247_v5 = vsub.f32 %v13152_v12, %v7213_v7  ;;  %v7214_v0 = vmul.f32 0.0078125, %v7195_v23  ;;  %7268 = vadd.xlane.f32.xlu1 %v7243_v56  ;;  %v7244_v58 = vmul.f32 %v13242_v17, %v13242_v17 }
0x113f   : > { %v7197_v21 = vpop.xlane.xlu1 %7196 }
0x1140   : > { %v13254_v62 = vsub.f32 %v13157_v1, %v7214_v0  ;;  %v7215_v61 = vmul.f32 0.0078125, %v7197_v21  ;;  %7270 = vadd.xlane.f32.xlu0 %v7244_v58  ;;  %v7245_v59 = vmul.f32 %v13247_v5, %v13247_v5 }
0x1141   : > { %v7199_v29 = vpop.xlane.xlu0 %7198 }
0x1142   : > { %v13259_v52 = vsub.f32 %v13162_v33, %v7215_v61  ;;  %v7216_v25 = vmul.f32 0.0078125, %v7199_v29  ;;  %7272 = vadd.xlane.f32.xlu1 %v7245_v59  ;;  %v7246_v37 = vmul.f32 %v13254_v62, %v13254_v62 }
0x1143   : > { %v7201_v39 = vpop.xlane.xlu1 %7200 }
0x1144   : > { %v13266_v14 = vsub.f32 %v13165_v26, %v7216_v25  ;;  %v7217_v47 = vmul.f32 0.0078125, %v7201_v39  ;;  %7274 = vadd.xlane.f32.xlu0 %v7246_v37  ;;  %v7247_v15 = vmul.f32 %v13259_v52, %v13259_v52 }
0x1146   : > { %v13271_v13 = vsub.f32 %v13168_v54, %v7217_v47  ;;  %7276 = vadd.xlane.f32.xlu1 %v7247_v15  ;;  %v7248_v63 = vmul.f32 %v13266_v14, %v13266_v14 }
0x1148   : > { %7278 = vadd.xlane.f32.xlu0 %v7248_v63  ;;  %v7249_v50 = vmul.f32 %v13271_v13, %v13271_v13 }
0x114a   : > { %7280 = vadd.xlane.f32.xlu1 %v7249_v50 }
0x11b5   : > { %v7251_v57 = vpop.xlane.xlu0 %7250 }
0x11b6   : > { %v7282_v36 = vmul.f32 0.0078125, %v7251_v57 }
0x11b7   : > { %v7253_v38 = vpop.xlane.xlu1 %7252 }
0x11b8   : > { %v7298_v51 = vadd.f32 1e-05, %v7282_v36  ;;  %v7283_v53 = vmul.f32 0.0078125, %v7253_v38 }
0x11b9   : > { %v7255_v44 = vpop.xlane.xlu0 %7254 }
0x11ba   : > { %10819 = vrsqrt.f32 %v7298_v51  ;;  %v7299_v42 = vadd.f32 1e-05, %v7283_v53  ;;  %v7284_v3 = vmul.f32 0.0078125, %v7255_v44 }
0x11bb   : > { %v7257_v30 = vpop.xlane.xlu1 %7256 }
0x11bc   : > { %10821 = vrsqrt.f32 %v7299_v42  ;;  %v7285_v7 = vmul.f32 0.0078125, %v7257_v30  ;;  %v7300_v56 = vadd.f32 1e-05, %v7284_v3 }
0x11be   : > { %v7301_v23 = vadd.f32 1e-05, %v7285_v7 }
0x11c0   : > { %10823 = vrsqrt.f32 %v7301_v23 }
0x11c1   : > { %v7259_v0 = vpop.xlane.xlu0 %7258  ;;  %10825 = vrsqrt.f32 %v7300_v56 }
0x11c2   : > { %v7286_v58 = vmul.f32 0.0078125, %v7259_v0 }
0x11c3   : > { %v7261_v4 = vpop.xlane.xlu1 %7260 }
0x11c4   : > { %v10820_v21 = vpop.eup %10819  ;;  %v7287_v16 = vmul.f32 0.0078125, %v7261_v4  ;;  %v7302_v59 = vadd.f32 1e-05, %v7286_v58 }
0x11c5   : > { %v7263_v25 = vpop.xlane.xlu0 %7262  ;;  %v7330_v28 = vmul.f32 %v10820_v21, %v13190_v45 }
0x11c6   : > { %v10822_v61 = vpop.eup %10821  ;;  %v7303_v29 = vadd.f32 1e-05, %v7287_v16  ;;  %v7288_v63 = vmul.f32 0.0078125, %v7263_v25 }
0x11c7   : > { %v7265_v37 = vpop.xlane.xlu1 %7264  ;;  %v7331_v39 = vmul.f32 %v10822_v61, %v13193_v20 }
0x11c8   : > { %10827 = vrsqrt.f32 %v7303_v29  ;;  %v7289_v32 = vmul.f32 0.0078125, %v7265_v37  ;;  %v7304_v36 = vadd.f32 1e-05, %v7288_v63 }
0x11c9   : > { %v7346_v47 = vpack.c.bf16 %v7331_v39, %v7330_v28  ;;  %10829 = vrsqrt.f32 %v7302_v59  ;;  %v7267_v38 = vpop.xlane.xlu0 %7266 }
0x11ca   : > { %v10824_v15 = vpop.eup %10823  ;;  %v7305_v48 = vadd.f32 1e-05, %v7289_v32  ;;  %v7290_v44 = vmul.f32 0.0078125, %v7267_v38 }
0x11cb   : > { %7500 = vmatmul.mubr.bf16.vlgmr.msra.gmra.mrb[236].mxu1 %v7346_v47  ;;  %v10826_v2 = vpop.eup %10825  ;;  %v7269_v50 = vpop.xlane.xlu1 %7268  ;;  %v7333_v57 = vmul.f32 %v10824_v15, %v13203_v35 }
0x11cc   : > { %7509 = vmatprep.mubr.bf16.mxu1 %v10989_v49  ;;  %v7332_v45 = vmul.f32 %v10826_v2, %v13198_v27  ;;  %10831 = vrsqrt.f32 %v7305_v48  ;;  %v7291_v20 = vmul.f32 0.0078125, %v7269_v50  ;;  %v7306_v56 = vadd.f32 1e-05, %v7290_v44 }
0x11cd   : > { %10833 = vrsqrt.f32 %v7304_v36  ;;  %v7271_v35 = vpop.xlane.xlu0 %7270 }
0x11ce   : > { %v7347_v51 = vpack.c.bf16 %v7333_v57, %v7332_v45  ;;  %v7307_v3 = vadd.f32 1e-05, %v7291_v20  ;;  %v7292_v4 = vmul.f32 0.0078125, %v7271_v35 }
0x11cf   : > { %v7273_v30 = vpop.xlane.xlu1 %7272 }
0x11d0   : > { %10835 = vrsqrt.f32 %v7307_v3  ;;  %v7293_v27 = vmul.f32 0.0078125, %v7273_v30  ;;  %v7308_v29 = vadd.f32 1e-05, %v7292_v4  ;;  %v10524_v4 = vld [vmem:[%s13186_s17 + $0x20] sm:$0xff]  }
0x11d1   : > { %10837 = vrsqrt.f32 %v7306_v56 }
0x11d2   : > { %v10828_v53 = vpop.eup %10827  ;;  %v7309_v16 = vadd.f32 1e-05, %v7293_v27  ;;  %v10518_v27 = vld [vmem:[%s13186_s17 + $0x8] sm:$0xff]  }
0x11d3   : > { %7510 = vmatmul.mubr.bf16.gmra.mrb[240].mxu1 %v7347_v51  ;;  %v10830_v42 = vpop.eup %10829  ;;  %v7335_v7 = vmul.f32 %v10828_v53, %v13213_v9  ;;  %v7277_v61 = vpop.xlane.xlu1 %7276 }
0x11d4   : > { %7519 = vmatprep.mubr.bf16.mxu1 %v10989_v49  ;;  %v7334_v23 = vmul.f32 %v10830_v42, %v13210_v10  ;;  %v7275_v9 = vpop.xlane.xlu0 %7274  ;;  %10839 = vrsqrt.f32 %v7309_v16  ;;  %v7295_v10 = vmul.f32 0.0078125, %v7277_v61  ;;  %v10526_v16 = vld [vmem:[%s13186_s17 + $0x28] sm:$0xff]   ;;  %v10527_v61 = vld [vmem:[%s13186_s17 + $0x70] sm:$0xff]  }
0x11d5   : > { %10841 = vrsqrt.f32 %v7308_v29  ;;  %v7294_v39 = vmul.f32 0.0078125, %v7275_v9  ;;  %v10529_v29 = vld [vmem:[%s13186_s17 + $0x78] sm:$0xff]  }
0x11d6   : > { %v7348_v0 = vpack.c.bf16 %v7335_v7, %v7334_v23  ;;  %v10832_v58 = vpop.eup %10831  ;;  %v7311_v47 = vadd.f32 1e-05, %v7295_v10  ;;  %v10516_v23 = vld [vmem:[%s13186_s17] sm:$0xff]   ;;  %v10530_v9 = vld [vmem:[%s13186_s17 + $0x38] sm:$0xff]  }
0x11d7   : > { %v10834_v21 = vpop.eup %10833  ;;  %v7337_v59 = vmul.f32 %v10832_v58, %v13223_v41  ;;  %v7281_v15 = vpop.xlane.xlu1 %7280  ;;  %v7310_v2 = vadd.f32 1e-05, %v7294_v39  ;;  %v10523_v58 = vld [vmem:[%s13186_s17 + $0x60] sm:$0xff]  }
0x11d8   : > { %v7336_v25 = vmul.f32 %v10834_v21, %v13218_v43  ;;  %v7279_v41 = vpop.xlane.xlu0 %7278  ;;  %10843 = vrsqrt.f32 %v7311_v47  ;;  %v7297_v43 = vmul.f32 0.0078125, %v7281_v15  ;;  %v10525_v21 = vld [vmem:[%s13186_s17 + $0x68] sm:$0xff]  }
0x11d9   : > { %10845 = vrsqrt.f32 %v7310_v2  ;;  %v7296_v36 = vmul.f32 0.0078125, %v7279_v41 }
0x11da   : > { %v7349_v37 = vpack.c.bf16 %v7337_v59, %v7336_v25  ;;  %v10836_v28 = vpop.eup %10835  ;;  %v7313_v45 = vadd.f32 1e-05, %v7297_v43  ;;  %v10528_v59 = vld [vmem:[%s13186_s17 + $0x30] sm:$0xff]   ;;  %v7377_v25 = vlaneseq }
0x11db   : > { %7520 = vmatmul.mubr.bf16.gmra.mrb[244].mxu1 %v7348_v0  ;;  %v10838_v32 = vpop.eup %10837  ;;  %v7339_v63 = vmul.f32 %v10836_v28, %v13235_v60  ;;  %v7312_v51 = vadd.f32 1e-05, %v7296_v36  ;;  %v10522_v0 = vld [vmem:[%s13186_s17 + $0x18] sm:$0xff]   ;;  %v7375_v28 = vld [vmem:[%s7374_s23] sm:$0x3] }
0x11dc   : > { %7529 = vmatprep.mubr.bf16.mxu1 %v10989_v49  ;;  %v7338_v48 = vmul.f32 %v10838_v32, %v13230_v40  ;;  %10847 = vrsqrt.f32 %v7313_v45  ;;  %v7378_v10 = vshrl.u32 %v7377_v25, 7 }
0x11dd   : > { %10849 = vrsqrt.f32 %v7312_v51 }
0x11de   : > { %v7350_v50 = vpack.c.bf16 %v7339_v63, %v7338_v48  ;;  %v10840_v57 = vpop.eup %10839  ;;  %v7383_v39 = vsub.s32 1, %v7378_v10 }
0x11df   : > { %v10842_v38 = vpop.eup %10841  ;;  %v7341_v20 = vmul.f32 %v10840_v57, %v13247_v5 }
0x11e0   : > { %v7340_v60 = vmul.f32 %v10842_v38, %v13242_v17  ;;  %v13325_v47 = vrot.slane %v7375_v28, %v7383_v39 }
0x11e2   : > { %v7351_v53 = vpack.c.bf16 %v7341_v20, %v7340_v60  ;;  %v10844_v44 = vpop.eup %10843 }
0x11e3   : > { %7530 = vmatmul.mubr.bf16.gmra.mrb[248].mxu1 %v7349_v37  ;;  %v10846_v40 = vpop.eup %10845  ;;  %v7343_v42 = vmul.f32 %v10844_v44, %v13259_v52  ;;  %v10515_v52 = vld [vmem:[%s13186_s17 + $0x40] sm:$0xff]   ;;  %v7379_v37 = vsub.s32 0, %v7378_v10 }
0x11e4   : > { %7539 = vmatprep.mubr.bf16.mxu1 %v10989_v49  ;;  %v7342_v3 = vmul.f32 %v10846_v40, %v13254_v62  ;;  %9393 = vmatprep.subr.bf16.mxu0 %v10515_v52  ;;  %v10517_v62 = vld [vmem:[%s13186_s17 + $0x48] sm:$0xff]  }
0x11e5   : > { %9394 = vmatpush3.bf16.msra.mxu0 %v10516_v23  ;;  %v13323_v32 = vrot.slane %v7375_v28, %v7379_v37 }
0x11e6   : > { %v7352_v5 = vpack.c.bf16 %v7343_v42, %v7342_v3  ;;  %v10848_v30 = vpop.eup %10847  ;;  %9395 = vmatprep.subr.bf16.mxu0 %v10517_v62 }
0x11e7   : > { %v10850_v17 = vpop.eup %10849  ;;  %v7345_v7 = vmul.f32 %v10848_v30, %v13271_v13  ;;  %v10520_v13 = vld [vmem:[%s13186_s17 + $0x10] sm:$0xff]  }
0x11e8   : > { %v7344_v56 = vmul.f32 %v10850_v17, %v13266_v14  ;;  %v10521_v14 = vld [vmem:[%s13186_s17 + $0x58] sm:$0xff]  }
0x11e9   : > { %9396 = vmatpush3.bf16.msra.mxu0 %v10518_v27 }
0x11ea   : > { %v7353_v35 = vpack.c.bf16 %v7345_v7, %v7344_v56 }
0x11eb   : > { %7540 = vmatmul.mubr.bf16.gmra.mrb[252].mxu1 %v7350_v50 }
0x11ec   : > { %7549 = vmatprep.mubr.bf16.mxu1 %v10989_v49 }
0x11f3   : > { %7550 = vmatmul.mubr.bf16.gmra.mrb[0].mxu1 %v7351_v53 }
0x11f4   : > { %7559 = vmatprep.mubr.bf16.mxu1 %v10989_v49 }
0x11fb   : > { %7560 = vmatmul.mubr.bf16.gmra.mrb[4].mxu1 %v7352_v5 }
0x11fc   : > { %7569 = vmatprep.mubr.bf16.mxu1 %v10989_v49  ;;  %v10519_v49 = vld [vmem:[%s13186_s17 + $0x50] sm:$0xff]  }
0x11fd   : > { %9397 = vmatprep.subr.bf16.mxu0 %v10519_v49 }
0x11fe   : > { %9398 = vmatpush3.bf16.msra.mxu0 %v10520_v13 }
0x11ff   : > { %9399 = vmatprep.subr.bf16.mxu0 %v10521_v14 }
0x1202   : > { %9400 = vmatpush3.bf16.msra.mxu0 %v10522_v0 }
0x1203   : > { %7570 = vmatmul.mubr.bf16.gmra.mrb[8].mxu1 %v7353_v35  ;;  %9401 = vmatprep.subr.bf16.mxu0 %v10523_v58 }
0x1206   : > { %9402 = vmatpush3.bf16.msra.mxu0 %v10524_v4 }
0x1207   : > { %9403 = vmatprep.subr.bf16.mxu0 %v10525_v21 }
0x120a   : > { %9404 = vmatpush3.bf16.msra.mxu0 %v10526_v16 }
0x120b   : > { %9405 = vmatprep.subr.bf16.mxu0 %v10527_v61 }
0x120e   : > { %9406 = vmatpush3.bf16.msra.mxu0 %v10528_v59 }
0x120f   : > { %9407 = vmatprep.subr.bf16.mxu0 %v10529_v29 }
0x1212   : > { %9408 = vmatpush3.bf16.msra.mxu0 %v10530_v9 }
0x129e   : > { %v7501_v15 = vpop.f32.mrb[236].mxu1 }
0x129f   : > { %v13328_v63 = vadd.f32 %v7501_v15, %v13323_v32  ;;  %v7503_v2 = vpop.f32.mrb[237].mxu1 }
0x12a0   : > { %v13331_v41 = vadd.f32 %v7503_v2, %v13325_v47  ;;  %v7505_v48 = vpop.f32.mrb[238].mxu1 }
0x12a1   : > { %v7580_v43 = vmul.f32 %v13328_v63, %v13328_v63  ;;  %v13336_v50 = vadd.f32 %v7505_v48, %v13323_v32  ;;  %v7507_v57 = vpop.f32.mrb[239].mxu1 }
0x12a2   : > { %v7581_v36 = vmul.f32 %v13331_v41, %v13331_v41  ;;  %v13341_v38 = vadd.f32 %v7507_v57, %v13325_v47 }
0x12a3   : > { %v7612_v45 = vmul.f32 %v7580_v43, %v13328_v63  ;;  %v7582_v20 = vmul.f32 %v13336_v50, %v13336_v50 }
0x12a4   : > { %v7613_v51 = vmul.f32 %v7581_v36, %v13331_v41  ;;  %v7583_v60 = vmul.f32 %v13341_v38, %v13341_v38 }
0x12a5   : > { %v7644_v53 = vmul.f32 0.044715, %v7612_v45  ;;  %v7614_v44 = vmul.f32 %v7582_v20, %v13336_v50 }
0x12a6   : > { %v7645_v40 = vmul.f32 0.044715, %v7613_v51  ;;  %v7615_v42 = vmul.f32 %v7583_v60, %v13341_v38  ;;  %v7511_v3 = vpop.f32.mrb[240].mxu1 }
0x12a7   : > { %v7676_v5 = vadd.f32 %v7644_v53, %v13328_v63  ;;  %v7646_v30 = vmul.f32 0.044715, %v7614_v44  ;;  %v13353_v17 = vadd.f32 %v7511_v3, %v13323_v32  ;;  %v7513_v7 = vpop.f32.mrb[241].mxu1 }
0x12a8   : > { %v7677_v56 = vadd.f32 %v7645_v40, %v13331_v41  ;;  %v7647_v35 = vmul.f32 0.044715, %v7615_v42  ;;  %v13357_v52 = vadd.f32 %v7513_v7, %v13325_v47  ;;  %v7515_v23 = vpop.f32.mrb[242].mxu1 }
0x12a9   : > { %v7708_v62 = vmul.f32 0.7978846, %v7676_v5  ;;  %v7678_v27 = vadd.f32 %v7646_v30, %v13336_v50  ;;  %v7584_v49 = vmul.f32 %v13353_v17, %v13353_v17  ;;  %v13363_v13 = vadd.f32 %v7515_v23, %v13323_v32  ;;  %v7517_v14 = vpop.f32.mrb[243].mxu1 }
0x12aa   : > { %v7709_v0 = vmul.f32 0.7978846, %v7677_v56  ;;  %v7679_v58 = vadd.f32 %v7647_v35, %v13341_v38  ;;  %v7585_v4 = vmul.f32 %v13357_v52, %v13357_v52  ;;  %v13369_v21 = vadd.f32 %v7517_v14, %v13325_v47 }
0x12ab   : > { %10851 = vtanh.f32 %v7708_v62  ;;  %v7710_v16 = vmul.f32 0.7978846, %v7678_v27  ;;  %v7616_v61 = vmul.f32 %v7584_v49, %v13353_v17  ;;  %v7586_v59 = vmul.f32 %v13363_v13, %v13363_v13 }
0x12ac   : > { %10853 = vtanh.f32 %v7709_v0  ;;  %v7711_v29 = vmul.f32 0.7978846, %v7679_v58  ;;  %v7617_v9 = vmul.f32 %v7585_v4, %v13357_v52  ;;  %v7587_v25 = vmul.f32 %v13369_v21, %v13369_v21 }
0x12ad   : > { %10855 = vtanh.f32 %v7710_v16  ;;  %v7648_v10 = vmul.f32 0.044715, %v7616_v61  ;;  %v7618_v37 = vmul.f32 %v7586_v59, %v13363_v13 }
0x12ae   : > { %v7649_v28 = vmul.f32 0.044715, %v7617_v9  ;;  %v7619_v39 = vmul.f32 %v7587_v25, %v13369_v21  ;;  %v7521_v15 = vpop.f32.mrb[244].mxu1  ;;  %10857 = vtanh.f32 %v7711_v29 }
0x12af   : > { %v7680_v2 = vadd.f32 %v7648_v10, %v13353_v17  ;;  %v7650_v48 = vmul.f32 0.044715, %v7618_v37  ;;  %v13381_v43 = vadd.f32 %v7521_v15, %v13323_v32  ;;  %v7523_v57 = vpop.f32.mrb[245].mxu1 }
0x12b0   : > { %v7681_v36 = vadd.f32 %v7649_v28, %v13357_v52  ;;  %v7651_v45 = vmul.f32 0.044715, %v7619_v39  ;;  %v13385_v20 = vadd.f32 %v7523_v57, %v13325_v47  ;;  %v7525_v51 = vpop.f32.mrb[246].mxu1 }
0x12b1   : > { %v7712_v60 = vmul.f32 0.7978846, %v7680_v2  ;;  %v7682_v53 = vadd.f32 %v7650_v48, %v13363_v13  ;;  %v7588_v44 = vmul.f32 %v13381_v43, %v13381_v43  ;;  %v13391_v40 = vadd.f32 %v7525_v51, %v13323_v32  ;;  %v7527_v42 = vpop.f32.mrb[247].mxu1 }
0x12b2   : > { %v7713_v3 = vmul.f32 0.7978846, %v7681_v36  ;;  %v7683_v5 = vadd.f32 %v7651_v45, %v13369_v21  ;;  %v7589_v30 = vmul.f32 %v13385_v20, %v13385_v20  ;;  %v13397_v7 = vadd.f32 %v7527_v42, %v13325_v47 }
0x12b3   : > { %10859 = vtanh.f32 %v7712_v60  ;;  %v7714_v56 = vmul.f32 0.7978846, %v7682_v53  ;;  %v7620_v35 = vmul.f32 %v7588_v44, %v13381_v43  ;;  %v7590_v23 = vmul.f32 %v13391_v40, %v13391_v40 }
0x12b4   : > { %10861 = vtanh.f32 %v7713_v3  ;;  %v7715_v62 = vmul.f32 0.7978846, %v7683_v5  ;;  %v7621_v27 = vmul.f32 %v7589_v30, %v13385_v20  ;;  %v7591_v49 = vmul.f32 %v13397_v7, %v13397_v7 }
0x12b5   : > { %v10852_v14 = vpop.eup %10851  ;;  %10863 = vtanh.f32 %v7714_v56  ;;  %v7652_v0 = vmul.f32 0.044715, %v7620_v35  ;;  %v7622_v58 = vmul.f32 %v7590_v23, %v13391_v40 }
0x12b6   : > { %v10854_v4 = vpop.eup %10853  ;;  %v7772_v16 = vadd.f32 1.0, %v10852_v14  ;;  %10865 = vtanh.f32 %v7715_v62  ;;  %v7653_v61 = vmul.f32 0.044715, %v7621_v27  ;;  %v7623_v59 = vmul.f32 %v7591_v49, %v13397_v7  ;;  %v7531_v29 = vpop.f32.mrb[248].mxu1 }
0x12b7   : > { %v10856_v9 = vpop.eup %10855  ;;  %v7684_v25 = vadd.f32 %v7652_v0, %v13381_v43  ;;  %v7654_v10 = vmul.f32 0.044715, %v7622_v58  ;;  %v13409_v37 = vadd.f32 %v7531_v29, %v13323_v32  ;;  %v7533_v28 = vpop.f32.mrb[249].mxu1  ;;  %v7773_v39 = vadd.f32 1.0, %v10854_v4 }
0x12b8   : > { %v7804_v15 = vmul.f32 0.5, %v7772_v16  ;;  %v7774_v2 = vadd.f32 1.0, %v10856_v9  ;;  %v7685_v48 = vadd.f32 %v7653_v61, %v13385_v20  ;;  %v7655_v57 = vmul.f32 0.044715, %v7623_v59  ;;  %v7535_v36 = vpop.f32.mrb[250].mxu1  ;;  %v10858_v42 = vpop.eup %10857 }
0x12b9   : > { %v7716_v45 = vmul.f32 0.7978846, %v7684_v25  ;;  %v7686_v51 = vadd.f32 %v7654_v10, %v13391_v40  ;;  %v7592_v60 = vmul.f32 %v13409_v37, %v13409_v37  ;;  %v13416_v53 = vadd.f32 %v7533_v28, %v13325_v47  ;;  %v7537_v44 = vpop.f32.mrb[251].mxu1 }
0x12ba   : > { %v13419_v3 = vmul.f32 %v7804_v15, %v13328_v63  ;;  %v7806_v5 = vmul.f32 0.5, %v7774_v2  ;;  %v7717_v30 = vmul.f32 0.7978846, %v7685_v48  ;;  %v7687_v56 = vadd.f32 %v7655_v57, %v13397_v7 }
0x12bb   : > { %10867 = vtanh.f32 %v7716_v45  ;;  %v7718_v35 = vmul.f32 0.7978846, %v7686_v51  ;;  %v7624_v23 = vmul.f32 %v7592_v60, %v13409_v37  ;;  %v7593_v62 = vmul.f32 %v13416_v53, %v13416_v53 }
0x12bc   : > { %v13426_v27 = vmul.f32 %v7806_v5, %v13336_v50  ;;  %10869 = vtanh.f32 %v7717_v30  ;;  %v7719_v49 = vmul.f32 0.7978846, %v7687_v56  ;;  %v13429_v14 = vadd.f32 %v7535_v36, %v13323_v32 }
0x12bd   : > { %v13431_v63 = vpop.eup %10859  ;;  %10871 = vtanh.f32 %v7718_v35  ;;  %v7656_v0 = vmul.f32 0.044715, %v7624_v23  ;;  %v7625_v58 = vmul.f32 %v7593_v62, %v13416_v53  ;;  %v13435_v4 = vadd.f32 %v7537_v44, %v13325_v47 }
0x12be   : > { %v13437_v16 = vpop.eup %10861  ;;  %10873 = vtanh.f32 %v7719_v49  ;;  %v7594_v61 = vmul.f32 %v13429_v14, %v13429_v14  ;;  %v7541_v59 = vpop.f32.mrb[252].mxu1  ;;  %v7775_v29 = vadd.f32 1.0, %v10858_v42  ;;  %v7805_v51 = vmul.f32 0.5, %v7773_v39 }
0x12bf   : > { %v13443_v9 = vpop.eup %10863  ;;  %v7688_v25 = vadd.f32 %v7656_v0, %v13409_v37  ;;  %v7657_v10 = vmul.f32 0.044715, %v7625_v58  ;;  %v7595_v28 = vmul.f32 %v13435_v4, %v13435_v4  ;;  %v13449_v15 = vadd.f32 %v7541_v59, %v13323_v32  ;;  %v7543_v2 = vpop.f32.mrb[253].mxu1 }
0x12c0   : > { %v13451_v48 = vpop.eup %10865  ;;  %v7626_v57 = vmul.f32 %v7594_v61, %v13429_v14  ;;  %v13455_v36 = vadd.f32 %v7543_v2, %v13325_v47  ;;  %v7545_v45 = vpop.f32.mrb[254].mxu1  ;;  %v7807_v60 = vmul.f32 0.5, %v7775_v29 }
0x12c1   : > { %v7720_v44 = vmul.f32 0.7978846, %v7688_v25  ;;  %v7689_v42 = vadd.f32 %v7657_v10, %v13416_v53  ;;  %v7627_v5 = vmul.f32 %v7595_v28, %v13435_v4  ;;  %v7596_v30 = vmul.f32 %v13449_v15, %v13449_v15  ;;  %v7547_v56 = vpop.f32.mrb[255].mxu1 }
0x12c2   : > { %v7658_v35 = vmul.f32 0.044715, %v7626_v57  ;;  %v7597_v23 = vmul.f32 %v13455_v36, %v13455_v36  ;;  %v13464_v62 = vadd.f32 %v7545_v45, %v13323_v32  ;;  %v13467_v49 = vadd.f32 %v7547_v56, %v13325_v47 }
0x12c3   : > { %10875 = vtanh.f32 %v7720_v44  ;;  %v7721_v39 = vmul.f32 0.7978846, %v7689_v42  ;;  %v7659_v0 = vmul.f32 0.044715, %v7627_v5  ;;  %v7628_v58 = vmul.f32 %v7596_v30, %v13449_v15 }
0x12c4   : > { %v7690_v61 = vadd.f32 %v7658_v35, %v13429_v14  ;;  %v7629_v59 = vmul.f32 %v7597_v23, %v13455_v36  ;;  %v7598_v29 = vmul.f32 %v13464_v62, %v13464_v62  ;;  %v7599_v25 = vmul.f32 %v13467_v49, %v13467_v49 }
0x12c5   : > { %v13476_v10 = vpop.eup %10867  ;;  %10877 = vtanh.f32 %v7721_v39  ;;  %v7691_v28 = vadd.f32 %v7659_v0, %v13435_v4  ;;  %v7660_v2 = vmul.f32 0.044715, %v7628_v58  ;;  %v7837_v57 = vmul.f32 %v7805_v51, %v13331_v41 }
0x12c6   : > { %v13480_v45 = vpop.eup %10869  ;;  %v7722_v44 = vmul.f32 0.7978846, %v7690_v61  ;;  %v7661_v42 = vmul.f32 0.044715, %v7629_v59  ;;  %v7630_v5 = vmul.f32 %v7598_v29, %v13464_v62  ;;  %v7631_v30 = vmul.f32 %v7599_v25, %v13467_v49  ;;  %v7551_v56 = vpop.f32.mrb[0].mxu1 }
0x12c7   : > { %v13484_v35 = vpop.eup %10871  ;;  %v7723_v23 = vmul.f32 0.7978846, %v7691_v28  ;;  %v7692_v50 = vadd.f32 %v7660_v2, %v13449_v15  ;;  %v7839_v39 = vmul.f32 %v7807_v60, %v13341_v38  ;;  %v13489_v0 = vadd.f32 %v7551_v56, %v13323_v32  ;;  %v7553_v41 = vpop.f32.mrb[1].mxu1 }
0x12c8   : > { %v13491_v51 = vpop.eup %10873  ;;  %10879 = vtanh.f32 %v7722_v44  ;;  %v7693_v58 = vadd.f32 %v7661_v42, %v13455_v36  ;;  %v7662_v61 = vmul.f32 0.044715, %v7630_v5  ;;  %v7663_v59 = vmul.f32 0.044715, %v7631_v30  ;;  %v7555_v29 = vpop.f32.mrb[2].mxu1 }
0x12c9   : > { %10881 = vtanh.f32 %v7723_v23  ;;  %v7724_v25 = vmul.f32 0.7978846, %v7692_v50  ;;  %v7869_v54 = vpack.c.bf16 %v7839_v39, %v7837_v57  ;;  %v7600_v28 = vmul.f32 %v13489_v0, %v13489_v0  ;;  %v7557_v2 = vpop.f32.mrb[3].mxu1 }
0x12ca   : > { %v7725_v38 = vmul.f32 0.7978846, %v7693_v58  ;;  %v7694_v60 = vadd.f32 %v7662_v61, %v13464_v62  ;;  %v7695_v56 = vadd.f32 %v7663_v59, %v13467_v49  ;;  %v13499_v26 = vadd.f32 %v7553_v41, %v13325_v47 }
0x12cb   : > { %10883 = vtanh.f32 %v7724_v25  ;;  %8054 = vmatprep.mubr.bf16.mxu0 %v7869_v54  ;;  %v7632_v44 = vmul.f32 %v7600_v28, %v13489_v0  ;;  %v13503_v42 = vadd.f32 %v7555_v29, %v13323_v32  ;;  %v13506_v50 = vadd.f32 %v7557_v2, %v13325_v47 }
0x12cc   : > { %10885 = vtanh.f32 %v7725_v38  ;;  %v7726_v57 = vmul.f32 0.7978846, %v7694_v60  ;;  %v7727_v5 = vmul.f32 0.7978846, %v7695_v56  ;;  %v13816_v30 = vpack.c.bf16 %v13426_v27, %v13419_v3 }
0x12cd   : > { %v7601_v23 = vmul.f32 %v13499_v26, %v13499_v26  ;;  %v13513_v39 = vpop.eup %10875  ;;  %v7664_v54 = vmul.f32 0.044715, %v7632_v44  ;;  %v7602_v41 = vmul.f32 %v13503_v42, %v13503_v42  ;;  %v7603_v58 = vmul.f32 %v13506_v50, %v13506_v50 }
0x12ce   : > { %8055 = vmatmul.mubr.bf16.vlgmr.msra.gmra.mrb[228].mxu0 %v13816_v30  ;;  %v7777_v61 = vadd.f32 1.0, %v13437_v16  ;;  %10887 = vtanh.f32 %v7726_v57  ;;  %v7779_v3 = vadd.f32 1.0, %v13451_v48  ;;  %v7776_v27 = vadd.f32 1.0, %v13431_v63  ;;  %v7561_v29 = vpop.f32.mrb[4].mxu1 }
0x12cf   : > { %v7633_v59 = vmul.f32 %v7601_v23, %v13499_v26  ;;  %v13523_v25 = vpop.eup %10877  ;;  %10889 = vtanh.f32 %v7727_v5  ;;  %v7696_v28 = vadd.f32 %v7664_v54, %v13489_v0  ;;  %v7634_v2 = vmul.f32 %v7602_v41, %v13503_v42  ;;  %v7563_v60 = vpop.f32.mrb[5].mxu1 }
0x12d0   : > { %v7635_v38 = vmul.f32 %v7603_v58, %v13506_v50  ;;  %v7809_v16 = vmul.f32 0.5, %v7777_v61  ;;  %v7811_v44 = vmul.f32 0.5, %v7779_v3  ;;  %v7778_v57 = vadd.f32 1.0, %v13443_v9  ;;  %v7565_v30 = vpop.f32.mrb[6].mxu1 }
0x12d1   : > { %v7665_v56 = vmul.f32 0.044715, %v7633_v59  ;;  %v7728_v48 = vmul.f32 0.7978846, %v7696_v28  ;;  %v7666_v23 = vmul.f32 0.044715, %v7634_v2  ;;  %v13530_v33 = vadd.f32 %v7561_v29, %v13323_v32 }
0x12d2   : > { %v7667_v63 = vmul.f32 0.044715, %v7635_v38  ;;  %v13532_v5 = vpop.eup %10879  ;;  %v7841_v41 = vmul.f32 %v7809_v16, %v13357_v52  ;;  %v7843_v58 = vmul.f32 %v7811_v44, %v13369_v21  ;;  %v7808_v59 = vmul.f32 0.5, %v7776_v27  ;;  %v7567_v61 = vpop.f32.mrb[7].mxu1 }
0x12d3   : > { %v7697_v54 = vadd.f32 %v7665_v56, %v13499_v26  ;;  %v13537_v3 = vpop.eup %10881  ;;  %10891 = vtanh.f32 %v7728_v48  ;;  %v7698_v9 = vadd.f32 %v7666_v23, %v13503_v42  ;;  %v7810_v2 = vmul.f32 0.5, %v7778_v57 }
0x12d4   : > { %v7699_v28 = vadd.f32 %v7667_v63, %v13506_v50  ;;  %v7871_v38 = vpack.c.bf16 %v7843_v58, %v7841_v41  ;;  %v7840_v1 = vmul.f32 %v7808_v59, %v13353_v17  ;;  %v7604_v56 = vmul.f32 %v13530_v33, %v13530_v33 }
0x12d5   : > { %v7729_v29 = vmul.f32 0.7978846, %v7697_v54  ;;  %v13544_v52 = vpop.eup %10883  ;;  %v7730_v21 = vmul.f32 0.7978846, %v7698_v9  ;;  %v7842_v16 = vmul.f32 %v7810_v2, %v13363_v13  ;;  %v13548_v44 = vadd.f32 %v7563_v60, %v13325_v47 }
0x12d6   : > { %v7731_v27 = vmul.f32 0.7978846, %v7699_v28  ;;  %v13550_v48 = vpop.eup %10885  ;;  %8062 = vmatprep.mubr.bf16.mxu0 %v7871_v38  ;;  %v7636_v57 = vmul.f32 %v7604_v56, %v13530_v33  ;;  %v13554_v17 = vadd.f32 %v7565_v30, %v13323_v32  ;;  %v13557_v23 = vadd.f32 %v7567_v61, %v13325_v47  ;;  %v7571_v63 = vpop.f32.mrb[8].mxu1 }
0x12d7   : > { %10893 = vtanh.f32 %v7729_v29  ;;  %v7870_v54 = vpack.c.bf16 %v7842_v16, %v7840_v1  ;;  %v7605_v13 = vmul.f32 %v13548_v44, %v13548_v44  ;;  %v7781_v60 = vadd.f32 1.0, %v13480_v45  ;;  %v7573_v41 = vpop.f32.mrb[9].mxu1 }
0x12d8   : > { %10895 = vtanh.f32 %v7730_v21  ;;  %v13562_v58 = vpop.eup %10887  ;;  %v7668_v59 = vmul.f32 0.044715, %v7636_v57  ;;  %v7606_v30 = vmul.f32 %v13554_v17, %v13554_v17  ;;  %v7607_v61 = vmul.f32 %v13557_v23, %v13557_v23  ;;  %v7575_v9 = vpop.f32.mrb[10].mxu1 }
0x12d9   : > { %10897 = vtanh.f32 %v7731_v27  ;;  %v13568_v28 = vpop.eup %10889  ;;  %8063 = vmatmul.mubr.bf16.gmra.mrb[232].mxu0 %v7870_v54  ;;  %v7637_v1 = vmul.f32 %v7605_v13, %v13548_v44  ;;  %v7783_v2 = vadd.f32 1.0, %v13491_v51  ;;  %v7813_v45 = vmul.f32 0.5, %v7781_v60  ;;  %v7577_v38 = vpop.f32.mrb[11].mxu1 }
0x12da   : > { %v7780_v29 = vadd.f32 1.0, %v13476_v10  ;;  %v7700_v56 = vadd.f32 %v7668_v59, %v13530_v33  ;;  %v7638_v21 = vmul.f32 %v7606_v30, %v13554_v17  ;;  %v7639_v27 = vmul.f32 %v7607_v61, %v13557_v23 }
0x12db   : > { %v7782_v16 = vadd.f32 1.0, %v13484_v35  ;;  %v7669_v57 = vmul.f32 0.044715, %v7637_v1  ;;  %v7815_v12 = vmul.f32 0.5, %v7783_v2  ;;  %v7845_v54 = vmul.f32 %v7813_v45, %v13385_v20 }
0x12dc   : > { %v7812_v22 = vmul.f32 0.5, %v7780_v29  ;;  %v7732_v13 = vmul.f32 0.7978846, %v7700_v56  ;;  %v7670_v31 = vmul.f32 0.044715, %v7638_v21  ;;  %v13579_v60 = vadd.f32 %v7571_v63, %v13323_v32 }
0x12dd   : > { %v7671_v51 = vmul.f32 0.044715, %v7639_v27  ;;  %v13581_v10 = vpop.eup %10891  ;;  %v7701_v59 = vadd.f32 %v7669_v57, %v13548_v44  ;;  %v7847_v30 = vmul.f32 %v7815_v12, %v13397_v7  ;;  %v7814_v61 = vmul.f32 0.5, %v7782_v16 }
0x12de   : > { %v7844_v35 = vmul.f32 %v7812_v22, %v13381_v43  ;;  %10899 = vtanh.f32 %v7732_v13  ;;  %v7702_v1 = vadd.f32 %v7670_v31, %v13554_v17  ;;  %v7608_v2 = vmul.f32 %v13579_v60, %v13579_v60 }
0x12df   : > { %v7703_v20 = vadd.f32 %v7671_v51, %v13557_v23  ;;  %v7733_v45 = vmul.f32 0.7978846, %v7701_v59  ;;  %v7873_v63 = vpack.c.bf16 %v7847_v30, %v7845_v54  ;;  %v7846_v29 = vmul.f32 %v7814_v61, %v13391_v40 }
0x12e0   : > { %v13592_v56 = vadd.f32 %v7573_v41, %v13325_v47  ;;  %v7734_v12 = vmul.f32 0.7978846, %v7702_v1  ;;  %v7640_v22 = vmul.f32 %v7608_v2, %v13579_v60  ;;  %v13598_v31 = vadd.f32 %v7575_v9, %v13323_v32 }
0x12e1   : > { %v13594_v21 = vpop.eup %10893  ;;  %v7735_v7 = vmul.f32 0.7978846, %v7703_v20  ;;  %10901 = vtanh.f32 %v7733_v45  ;;  %8070 = vmatprep.mubr.bf16.mxu0 %v7873_v63  ;;  %v7872_v27 = vpack.c.bf16 %v7846_v29, %v7844_v35  ;;  %v13605_v41 = vadd.f32 %v7577_v38, %v13325_v47 }
0x12e2   : > { %v13600_v43 = vpop.eup %10895  ;;  %v7609_v40 = vmul.f32 %v13592_v56, %v13592_v56  ;;  %10903 = vtanh.f32 %v7734_v12  ;;  %v7672_v57 = vmul.f32 0.044715, %v7640_v22  ;;  %v7610_v54 = vmul.f32 %v13598_v31, %v13598_v31 }
0x12e3   : > { %v10898_v16 = vpop.eup %10897  ;;  %v7785_v32 = vadd.f32 1.0, %v13523_v25  ;;  %10905 = vtanh.f32 %v7735_v7  ;;  %8071 = vmatmul.mubr.bf16.gmra.mrb[236].mxu0 %v7872_v27  ;;  %v7611_v13 = vmul.f32 %v13605_v41, %v13605_v41  ;;  %v7787_v51 = vadd.f32 1.0, %v13537_v3 }
0x12e4   : > { %v7641_v9 = vmul.f32 %v7609_v40, %v13592_v56  ;;  %v7704_v47 = vadd.f32 %v7672_v57, %v13579_v60  ;;  %v7642_v38 = vmul.f32 %v7610_v54, %v13598_v31  ;;  %v7784_v30 = vadd.f32 1.0, %v13513_v39 }
0x12e5   : > { %v7817_v59 = vmul.f32 0.5, %v7785_v32  ;;  %v7643_v35 = vmul.f32 %v7611_v13, %v13605_v41  ;;  %v7819_v25 = vmul.f32 0.5, %v7787_v51  ;;  %v7786_v1 = vadd.f32 1.0, %v13532_v5 }
0x12e6   : > { %v7673_v61 = vmul.f32 0.044715, %v7641_v9  ;;  %v7736_v20 = vmul.f32 0.7978846, %v7704_v47  ;;  %v7674_v2 = vmul.f32 0.044715, %v7642_v38 }
0x12e7   : > { %v7849_v45 = vmul.f32 %v7817_v59, %v13416_v53  ;;  %v7816_v63 = vmul.f32 0.5, %v7784_v30  ;;  %v7675_v29 = vmul.f32 0.044715, %v7643_v35  ;;  %v7851_v12 = vmul.f32 %v7819_v25, %v13435_v4 }
0x12e8   : > { %v7705_v3 = vadd.f32 %v7673_v61, %v13592_v56  ;;  %v7818_v7 = vmul.f32 0.5, %v7786_v1  ;;  %v10900_v22 = vpop.eup %10899  ;;  %10907 = vtanh.f32 %v7736_v20  ;;  %v7706_v39 = vadd.f32 %v7674_v2, %v13598_v31 }
0x12e9   : > { %v7848_v27 = vmul.f32 %v7816_v63, %v13409_v37  ;;  %v7789_v40 = vadd.f32 1.0, %v13550_v48  ;;  %v7707_v57 = vadd.f32 %v7675_v29, %v13605_v41  ;;  %v7875_v54 = vpack.c.bf16 %v7851_v12, %v7849_v45 }
0x12ea   : > { %v7737_v5 = vmul.f32 0.7978846, %v7705_v3  ;;  %v7850_v53 = vmul.f32 %v7818_v7, %v13429_v14  ;;  %v7738_v32 = vmul.f32 0.7978846, %v7706_v39  ;;  %v7791_v9 = vadd.f32 1.0, %v13568_v28 }
0x12eb   : > { %v7821_v13 = vmul.f32 0.5, %v7789_v40  ;;  %v7788_v4 = vadd.f32 1.0, %v13544_v52  ;;  %v10902_v51 = vpop.eup %10901  ;;  %v7739_v47 = vmul.f32 0.7978846, %v7707_v57  ;;  %8078 = vmatprep.mubr.bf16.mxu0 %v7875_v54  ;;  %v7790_v37 = vadd.f32 1.0, %v13562_v58 }
0x12ec   : > { %10909 = vtanh.f32 %v7737_v5  ;;  %v7874_v38 = vpack.c.bf16 %v7850_v53, %v7848_v27  ;;  %v10904_v48 = vpop.eup %10903  ;;  %v7823_v59 = vmul.f32 0.5, %v7791_v9  ;;  %v7793_v35 = vadd.f32 1.0, %v13594_v21 }
0x12ed   : > { %10911 = vtanh.f32 %v7738_v32  ;;  %v7853_v30 = vmul.f32 %v7821_v13, %v13455_v36  ;;  %v7820_v61 = vmul.f32 0.5, %v7788_v4  ;;  %v10906_v14 = vpop.eup %10905  ;;  %v7822_v28 = vmul.f32 0.5, %v7790_v37 }
0x12ee   : > { %10913 = vtanh.f32 %v7739_v47  ;;  %8079 = vmatmul.mubr.bf16.gmra.mrb[240].mxu0 %v7874_v38  ;;  %v7795_v52 = vadd.f32 1.0, %v10898_v16  ;;  %v7855_v25 = vmul.f32 %v7823_v59, %v13467_v49  ;;  %v7792_v20 = vadd.f32 1.0, %v13581_v10 }
0x12ef   : > { %v7852_v1 = vmul.f32 %v7820_v61, %v13449_v15  ;;  %v7794_v58 = vadd.f32 1.0, %v13600_v43  ;;  %v7854_v2 = vmul.f32 %v7822_v28, %v13464_v62  ;;  %v7825_v45 = vmul.f32 0.5, %v7793_v35 }
0x12f0   : > { %v7827_v36 = vmul.f32 0.5, %v7795_v52  ;;  %v7797_v63 = vadd.f32 1.0, %v10902_v51  ;;  %v7877_v3 = vpack.c.bf16 %v7855_v25, %v7853_v30  ;;  %v7824_v29 = vmul.f32 0.5, %v7792_v20  ;;  %v13653_v52 = vld [vmem:[%s7918_s22] ss:$0 sm:$0xff] }
0x12f1   : > { %v7826_v12 = vmul.f32 0.5, %v7794_v58  ;;  %v7799_v7 = vadd.f32 1.0, %v10906_v14  ;;  %v7876_v39 = vpack.c.bf16 %v7854_v2, %v7852_v1  ;;  %v7857_v21 = vmul.f32 %v7825_v45, %v13499_v26 }
0x12f2   : > { %v7859_v49 = vmul.f32 %v7827_v36, %v13506_v50  ;;  %v7829_v16 = vmul.f32 0.5, %v7797_v63  ;;  %v10908_v15 = vpop.eup %10907  ;;  %8086 = vmatprep.mubr.bf16.mxu0 %v7877_v3  ;;  %v7856_v10 = vmul.f32 %v7824_v29, %v13489_v0  ;;  %v7796_v27 = vadd.f32 1.0, %v10900_v22 }
0x12f3   : > { %v7858_v43 = vmul.f32 %v7826_v12, %v13503_v42  ;;  %v7831_v62 = vmul.f32 0.5, %v7799_v7  ;;  %v7800_v40 = vadd.f32 1.0, %v10908_v15  ;;  %v7798_v57 = vadd.f32 1.0, %v10904_v48 }
0x12f4   : > { %v7879_v5 = vpack.c.bf16 %v7859_v49, %v7857_v21  ;;  %v7861_v53 = vmul.f32 %v7829_v16, %v13548_v44  ;;  %v7828_v26 = vmul.f32 0.5, %v7796_v27 }
0x12f5   : > { %v7878_v54 = vpack.c.bf16 %v7858_v43, %v7856_v10  ;;  %v7863_v32 = vmul.f32 %v7831_v62, %v13557_v23  ;;  %v7830_v50 = vmul.f32 0.5, %v7798_v57  ;;  %v7832_v42 = vmul.f32 0.5, %v7800_v40 }
0x12f6   : > { %v10910_v9 = vpop.eup %10909  ;;  %8087 = vmatmul.mubr.bf16.gmra.mrb[244].mxu0 %v7876_v39  ;;  %v7860_v22 = vmul.f32 %v7828_v26, %v13530_v33 }
0x12f7   : > { %v10912_v13 = vpop.eup %10911  ;;  %8094 = vmatprep.mubr.bf16.mxu0 %v7879_v5  ;;  %v7881_v4 = vpack.c.bf16 %v7863_v32, %v7861_v53  ;;  %v7801_v0 = vadd.f32 1.0, %v10910_v9  ;;  %v7862_v38 = vmul.f32 %v7830_v50, %v13554_v17  ;;  %v7864_v30 = vmul.f32 %v7832_v42, %v13579_v60 }
0x12f8   : > { %v10914_v51 = vpop.eup %10913  ;;  %v7802_v47 = vadd.f32 1.0, %v10912_v13 }
0x12f9   : > { %v7803_v37 = vadd.f32 1.0, %v10914_v51  ;;  %v7833_v44 = vmul.f32 0.5, %v7801_v0  ;;  %v7880_v23 = vpack.c.bf16 %v7862_v38, %v7860_v22 }
0x12fa   : > { %v7834_v48 = vmul.f32 0.5, %v7802_v47 }
0x12fb   : > { %v7835_v59 = vmul.f32 0.5, %v7803_v37  ;;  %v7865_v14 = vmul.f32 %v7833_v44, %v13592_v56 }
0x12fc   : > { %v7866_v61 = vmul.f32 %v7834_v48, %v13598_v31 }
0x12fd   : > { %v7867_v28 = vmul.f32 %v7835_v59, %v13605_v41 }
0x12fe   : > { %v7882_v35 = vpack.c.bf16 %v7866_v61, %v7864_v30  ;;  %8095 = vmatmul.mubr.bf16.gmra.mrb[248].mxu0 %v7878_v54 }
0x12ff   : > { %8102 = vmatprep.mubr.bf16.mxu0 %v7881_v4  ;;  %v7883_v33 = vpack.c.bf16 %v7867_v28, %v7865_v14  ;;  %v13818_v14 = vld [vmem:[#allocation7_spill] sm:$0xff] }
0x1306   : > { %8103 = vmatmul.mubr.bf16.gmra.mrb[252].mxu0 %v7880_v23 }
0x1307   : > { %8110 = vmatprep.mubr.bf16.mxu0 %v7883_v33 }
0x130e   : > { %8111 = vmatmul.mubr.bf16.gmra.mrb[0].mxu0 %v7882_v35 }
0x13a1   : > { %v9409_v17 = vpop.f32.mrb[228].mxu0 }
0x13a2   : > { %v9410_v60 = vpop.f32.mrb[229].mxu0 }
0x13a3   : > { %v9411_v31 = vadd.f32 %v9410_v60, %v9409_v17  ;;  %v9412_v25 = vpop.f32.mrb[230].mxu0 }
0x13a4   : > { %v9413_v56 = vpop.f32.mrb[231].mxu0 }
0x13a5   : > { %v8057_v41 = vadd.f32 %v9411_v31, %v13653_v52  ;;  %v9414_v1 = vadd.f32 %v9413_v56, %v9412_v25 }
0x13a7   : > { %v13657_v20 = vadd.f32 %v8057_v41, %v13110_v19  ;;  %v8060_v58 = vadd.f32 %v9414_v1, %v13653_v52 }
0x13a9   : > { %8135 = vst [vmem:[#allocation2] sm:$0xff] %v13657_v20  ;;  %v13662_v2 = vadd.f32 %v8060_v58, %v13114_v8  ;;  %v13820_v58 = vld [vmem:[#allocation9_spill] sm:$0xff] }
0x13ab   : > { %8136 = vst [vmem:[#allocation2 + $0x8] sm:$0xff] %v13662_v2 }
0x13ac   : > { %v9415_v45 = vpop.f32.mrb[232].mxu0 }
0x13ad   : > { %v9416_v36 = vpop.f32.mrb[233].mxu0 }
0x13ae   : > { %v9417_v63 = vadd.f32 %v9416_v36, %v9415_v45  ;;  %v9418_v3 = vpop.f32.mrb[234].mxu0 }
0x13af   : > { %v9419_v29 = vpop.f32.mrb[235].mxu0 }
0x13b0   : > { %v8065_v12 = vadd.f32 %v9417_v63, %v13653_v52  ;;  %v9420_v7 = vadd.f32 %v9419_v29, %v9418_v3  ;;  %v13821_v63 = vld [vmem:[#allocation10_spill] sm:$0xff] }
0x13b2   : > { %v13667_v19 = vadd.f32 %v8065_v12, %v13117_v55  ;;  %v8068_v39 = vadd.f32 %v9420_v7, %v13653_v52 }
0x13b4   : > { %8137 = vst [vmem:[#allocation2 + $0x10] sm:$0xff] %v13667_v19  ;;  %v13672_v8 = vadd.f32 %v8068_v39, %v13120_v24 }
0x13b6   : > { %8138 = vst [vmem:[#allocation2 + $0x18] sm:$0xff] %v13672_v8  ;;  %v9421_v21 = vpop.f32.mrb[236].mxu0 }
0x13b7   : > { %v9422_v49 = vpop.f32.mrb[237].mxu0 }
0x13b8   : > { %v9423_v16 = vadd.f32 %v9422_v49, %v9421_v21  ;;  %v9424_v15 = vpop.f32.mrb[238].mxu0 }
0x13b9   : > { %v9425_v10 = vpop.f32.mrb[239].mxu0 }
0x13ba   : > { %v8073_v43 = vadd.f32 %v9423_v16, %v13653_v52  ;;  %v9426_v62 = vadd.f32 %v9425_v10, %v9424_v15  ;;  %v13822_v15 = vld [vmem:[#allocation11_spill] sm:$0xff] }
0x13bc   : > { %v13677_v55 = vadd.f32 %v8073_v43, %v13126_v46  ;;  %v8076_v27 = vadd.f32 %v9426_v62, %v13653_v52  ;;  %v13823_v62 = vld [vmem:[#allocation12_spill] sm:$0xff] }
0x13be   : > { %8139 = vst [vmem:[#allocation2 + $0x20] sm:$0xff] %v13677_v55  ;;  %v13682_v24 = vadd.f32 %v8076_v27, %v13130_v18 }
0x13c0   : > { %8140 = vst [vmem:[#allocation2 + $0x28] sm:$0xff] %v13682_v24 }
0x13c1   : > { %v9427_v40 = vpop.f32.mrb[240].mxu0 }
0x13c2   : > { %v9428_v5 = vpop.f32.mrb[241].mxu0 }
0x13c3   : > { %v9429_v57 = vadd.f32 %v9428_v5, %v9427_v40  ;;  %v9430_v54 = vpop.f32.mrb[242].mxu0  ;;  %v8155_v40 = vadd.f32 (!%p8955_p5), %v13662_v2, %v13657_v20  ;;  %v8162_v5 = vadd.f32 (!%p8955_p5), %v13672_v8, %v13667_v19 }
0x13c4   : > { %v9431_v53 = vpop.f32.mrb[243].mxu0 }
0x13c5   : > { %v8081_v32 = vadd.f32 %v9429_v57, %v13653_v52  ;;  %v9432_v26 = vadd.f32 %v9431_v53, %v9430_v54  ;;  %v8169_v57 = vadd.f32 (!%p8955_p5), %v13682_v24, %v13677_v55 }
0x13c7   : > { %v8125_v46 = vadd.f32 %v8081_v32, %v13133_v34  ;;  %v8084_v9 = vadd.f32 %v9432_v26, %v13653_v52  ;;  %v13817_v34 = vld [vmem:[#allocation6_spill] sm:$0xff] }
0x13c9   : > { %8141 = vst [vmem:[#allocation2 + $0x30] sm:$0xff] %v8125_v46  ;;  %v8126_v50 = vadd.f32 %v8084_v9, %v13136_v6  ;;  %v9433_v13 = vpop.f32.mrb[244].mxu0  ;;  %v8156_v9 = vrot.slane (!%p8955_p5), %v8155_v40, 4 }
0x13ca   : > { %v9434_v18 = vpop.f32.mrb[245].mxu0 }
0x13cb   : > { %8142 = vst [vmem:[#allocation2 + $0x38] sm:$0xff] %v8126_v50  ;;  %v9435_v4 = vadd.f32 %v9434_v18, %v9433_v13  ;;  %v9436_v0 = vpop.f32.mrb[246].mxu0  ;;  %v8176_v54 = vadd.f32 (!%p8955_p5), %v8126_v50, %v8125_v46  ;;  %v8163_v13 = vrot.slane (!%p8955_p5), %v8162_v5, 4  ;;  %v8170_v18 = vrot.slane (!%p8955_p5), %v8169_v57, 4 }
0x13cc   : > { %v9437_v51 = vpop.f32.mrb[247].mxu0  ;;  %v8157_v20 = vadd.f32 (!%p8955_p5), %v8156_v9, %v8155_v40 }
0x13cd   : > { %v8089_v42 = vadd.f32 %v9435_v4, %v13653_v52  ;;  %v9438_v47 = vadd.f32 %v9437_v51, %v9436_v0  ;;  %v8177_v4 = vrot.slane (!%p8955_p5), %v8176_v54, 4  ;;  %v8164_v2 = vadd.f32 (!%p8955_p5), %v8163_v13, %v8162_v5 }
0x13ce   : > { %v8158_v46 = vrot.slane (!%p8955_p5), %v8157_v20, 2 }
0x13cf   : > { %v8127_v22 = vadd.f32 %v8089_v42, %v13141_v11  ;;  %v8092_v38 = vadd.f32 %v9438_v47, %v13653_v52  ;;  %v13819_v11 = vld [vmem:[#allocation8_spill] sm:$0xff]  ;;  %v8178_v19 = vadd.f32 (!%p8955_p5), %v8177_v4, %v8176_v54  ;;  %v8165_v50 = vrot.slane (!%p8955_p5), %v8164_v2, 2 }
0x13d1   : > { %8143 = vst [vmem:[#allocation2 + $0x40] sm:$0xff] %v8127_v22  ;;  %v8128_v37 = vadd.f32 %v8092_v38, %v13817_v34  ;;  %v9439_v44 = vpop.f32.mrb[248].mxu0  ;;  %v8171_v38 = vadd.f32 (!%p8955_p5), %v8170_v18, %v8169_v57 }
0x13d2   : > { %v9440_v48 = vpop.f32.mrb[249].mxu0 }
0x13d3   : > { %8144 = vst [vmem:[#allocation2 + $0x48] sm:$0xff] %v8128_v37  ;;  %v9441_v6 = vadd.f32 %v9440_v48, %v9439_v44  ;;  %v9442_v23 = vpop.f32.mrb[250].mxu0  ;;  %v8183_v53 = vadd.f32 (!%p8955_p5), %v8128_v37, %v8127_v22  ;;  %v8172_v22 = vrot.slane (!%p8955_p5), %v8171_v38, 2  ;;  %v8179_v37 = vrot.slane (!%p8955_p5), %v8178_v19, 2 }
0x13d4   : > { %v9443_v59 = vpop.f32.mrb[251].mxu0 }
0x13d5   : > { %v8097_v30 = vadd.f32 %v9441_v6, %v13653_v52  ;;  %v9444_v61 = vadd.f32 %v9443_v59, %v9442_v23  ;;  %v8184_v0 = vrot.slane (!%p8955_p5), %v8183_v53, 4  ;;  %v8159_v59 = vadd.f32 (!%p8955_p5), %v8158_v46, %v8157_v20 }
0x13d7   : > { %v8129_v28 = vadd.f32 %v8097_v30, %v13818_v14  ;;  %v8100_v35 = vadd.f32 %v9444_v61, %v13653_v52  ;;  %v8185_v8 = vadd.f32 (!%p8955_p5), %v8184_v0, %v8183_v53  ;;  %v8166_v30 = vadd.f32 (!%p8955_p5), %v8165_v50, %v8164_v2 }
0x13d8   : > { %v8173_v61 = vadd.f32 (!%p8955_p5), %v8172_v22, %v8171_v38  ;;  %v8180_v14 = vadd.f32 (!%p8955_p5), %v8179_v37, %v8178_v19 }
0x13d9   : > { %8145 = vst [vmem:[#allocation2 + $0x50] sm:$0xff] %v8129_v28  ;;  %v8130_v33 = vadd.f32 %v8100_v35, %v13819_v11  ;;  %v9445_v17 = vpop.f32.mrb[252].mxu0  ;;  %v8186_v44 = vrot.slane (!%p8955_p5), %v8185_v8, 2 }
0x13da   : > { %v9446_v60 = vpop.f32.mrb[253].mxu0 }
0x13db   : > { %8146 = vst [vmem:[#allocation2 + $0x58] sm:$0xff] %v8130_v33  ;;  %v9447_v31 = vadd.f32 %v9446_v60, %v9445_v17  ;;  %v9448_v25 = vpop.f32.mrb[254].mxu0  ;;  %v8190_v32 = vadd.f32 (!%p8955_p5), %v8130_v33, %v8129_v28  ;;  %v8187_v28 = vadd.f32 (!%p8955_p5), %v8186_v44, %v8185_v8  ;;  %v8160_v17 = vrot.slane (!%p8955_p5), %v8159_v59, 1 }
0x13dc   : > { %v9449_v56 = vpop.f32.mrb[255].mxu0  ;;  %v8167_v60 = vrot.slane (!%p8955_p5), %v8166_v30, 1 }
0x13dd   : > { %v8105_v41 = vadd.f32 %v9447_v31, %v13653_v52  ;;  %v9450_v1 = vadd.f32 %v9449_v56, %v9448_v25  ;;  %v8191_v51 = vrot.slane (!%p8955_p5), %v8190_v32, 4  ;;  %v8174_v31 = vrot.slane (!%p8955_p5), %v8173_v61, 1 }
0x13de   : > { %v8181_v25 = vrot.slane (!%p8955_p5), %v8180_v14, 1  ;;  %v8188_v56 = vrot.slane (!%p8955_p5), %v8187_v28, 1 }
0x13df   : > { %v8131_v45 = vadd.f32 %v8105_v41, %v13820_v58  ;;  %v8108_v36 = vadd.f32 %v9450_v1, %v13653_v52  ;;  %v8192_v34 = vadd.f32 (!%p8955_p5), %v8191_v51, %v8190_v32 }
0x13e1   : > { %8147 = vst [vmem:[#allocation2 + $0x60] sm:$0xff] %v8131_v45  ;;  %v8132_v3 = vadd.f32 %v8108_v36, %v13821_v63  ;;  %v9451_v29 = vpop.f32.mrb[0].mxu0  ;;  %v8193_v48 = vrot.slane (!%p8955_p5), %v8192_v34, 2  ;;  %v8168_v36 = vadd.f32 (!%p8955_p5), %v8167_v60, %v8166_v30  ;;  %v8175_v63 = vadd.f32 (!%p8955_p5), %v8174_v31, %v8173_v61 }
0x13e2   : > { %v9452_v12 = vpop.f32.mrb[1].mxu0 }
0x13e3   : > { %8148 = vst [vmem:[#allocation2 + $0x68] sm:$0xff] %v8132_v3  ;;  %v9453_v7 = vadd.f32 %v9452_v12, %v9451_v29  ;;  %v9454_v39 = vpop.f32.mrb[2].mxu0  ;;  %v8194_v35 = vadd.f32 (!%p8955_p5), %v8193_v48, %v8192_v34  ;;  %v8189_v29 = vadd.f32 (!%p8955_p5), %v8188_v56, %v8187_v28 }
0x13e4   : > { %v9455_v21 = vpop.f32.mrb[3].mxu0 }
0x13e5   : > { %v8113_v49 = vadd.f32 %v9453_v7, %v13653_v52  ;;  %v9456_v16 = vadd.f32 %v9455_v21, %v9454_v39  ;;  %8154 = sbr.rel (%p8955_p5) target bundleno = 5293 (0x14ad), region = 80  ;;  %v8195_v41 = vrot.slane (!%p8955_p5), %v8194_v35, 1 }
0x13e7   : > { %v8133_v10 = vadd.f32 %v8113_v49, %v13822_v15  ;;  %v8116_v43 = vadd.f32 %v9456_v16, %v13653_v52  ;;  %v8197_v52 = vadd.f32 (!%p8955_p5), %v8132_v3, %v8131_v45  ;;  %v8161_v45 = vadd.f32 (!%p8955_p5), %v8160_v17, %v8159_v59 }
0x13e8   : > { %v8182_v3 = vadd.f32 (!%p8955_p5), %v8181_v25, %v8180_v14  ;;  %v8196_v12 = vadd.f32 (!%p8955_p5), %v8195_v41, %v8194_v35  ;;  %v8213_v49 = vmul.f32 (!%p8955_p5), 0.0625, %v8168_v36  ;;  %v8214_v16 = vmul.f32 (!%p8955_p5), 0.0625, %v8175_v63 }
0x13e9   : > { %8149 = vst [vmem:[#allocation2 + $0x70] sm:$0xff] %v8133_v10  ;;  %v8134_v27 = vadd.f32 %v8116_v43, %v13823_v62  ;;  %v8198_v42 = vrot.slane (!%p8955_p5), %v8197_v52, 4  ;;  %v8212_v21 = vmul.f32 (!%p8955_p5), 0.0625, %v8161_v45 }
0x13ea   : > { %v8215_v15 = vmul.f32 (!%p8955_p5), 0.0625, %v8182_v3  ;;  %v8217_v43 = vmul.f32 (!%p8955_p5), 0.0625, %v8196_v12  ;;  %v8221_v40 = vmul.f32 (!%p8955_p5), %v8213_v49, %v8213_v49  ;;  %v8222_v5 = vmul.f32 (!%p8955_p5), %v8214_v16, %v8214_v16 }
0x13eb   : > { %8150 = vst [vmem:[#allocation2 + $0x78] sm:$0xff] %v8134_v27  ;;  %v8204_v26 = vadd.f32 (!%p8955_p5), %v8134_v27, %v8133_v10  ;;  %v8199_v55 = vadd.f32 (!%p8955_p5), %v8198_v42, %v8197_v52  ;;  %v8216_v10 = vmul.f32 (!%p8955_p5), 0.0625, %v8189_v29  ;;  %v8220_v27 = vmul.f32 (!%p8955_p5), %v8212_v21, %v8212_v21 }
0x13ec   : > { %v8223_v54 = vmul.f32 %v8215_v15, %v8215_v15  ;;  %v8225_v32 = vmul.f32 %v8217_v43, %v8217_v43 }
0x13ed   : > { %v8205_v47 = vrot.slane %v8204_v26, 4  ;;  %v8200_v6 = vrot.slane %v8199_v55, 2  ;;  %v8224_v53 = vmul.f32 %v8216_v10, %v8216_v10  ;;  %v8237_v52 = vsel %vm8236_vm3, %v8221_v40, %v8220_v27 }
0x13ee   : > { %v8239_v9 = vsel %vm8238_vm4, %v8222_v5, %v8237_v52 }
0x13ef   : > { %v8206_v24 = vadd.f32 %v8205_v47, %v8204_v26  ;;  %v8201_v11 = vadd.f32 %v8200_v6, %v8199_v55  ;;  %v8241_v18 = vsel %vm8240_vm5, %v8223_v54, %v8239_v9 }
0x13f0   : > { %v8243_v4 = vsel %vm8242_vm6, %v8224_v53, %v8241_v18 }
0x13f1   : > { %v8207_v23 = vrot.slane %v8206_v24, 2  ;;  %v8202_v1 = vrot.slane %v8201_v11, 1  ;;  %v8245_v0 = vsel %vm8244_vm7, %v8225_v32, %v8243_v4 }
0x13f3   : > { %v8208_v33 = vadd.f32 %v8207_v23, %v8206_v24  ;;  %v8203_v7 = vadd.f32 %v8202_v1, %v8201_v11 }
0x13f5   : > { %v8209_v58 = vrot.slane %v8208_v33, 1  ;;  %v8218_v62 = vmul.f32 0.0625, %v8203_v7 }
0x13f7   : > { %v8210_v39 = vadd.f32 %v8209_v58, %v8208_v33  ;;  %v8226_v26 = vmul.f32 %v8218_v62, %v8218_v62 }
0x13f9   : > { %v8219_v57 = vmul.f32 0.0625, %v8210_v39  ;;  %v8247_v51 = vsel %vm8246_vm8, %v8226_v26, %v8245_v0 }
0x13fb   : > { %v8227_v13 = vmul.f32 %v8219_v57, %v8219_v57 }
0x13fd   : > { %v8249_v42 = vsel %vm8248_vm9, %v8227_v13, %v8247_v51 }
0x13fe   : > { %8251 = vadd.xlane.f32.xlu0 %v8249_v42 }
0x148b   : > { %v8252_v47 = vpop.xlane.xlu0 %8251 }
0x148c   : > { %v8253_v20 = vadd.f32 1e-12, %v8252_v47 }
0x148e   : > { %10931 = vrsqrt.f32 %v8253_v20 }
0x1498   : > { %v10932_v2 = vpop.eup %10931 }
0x1499   : > { %v8256_v38 = vrot.slane %v10932_v2, 1  ;;  %v8257_v19 = vrot.slane %v10932_v2, 2  ;;  %v8258_v8 = vrot.slane %v10932_v2, 3  ;;  %v8259_v34 = vrot.slane %v10932_v2, 4 }
0x149a   : > { %v8260_v55 = vrot.slane %v10932_v2, 5  ;;  %v8261_v24 = vrot.slane %v10932_v2, 6  ;;  %v8262_v46 = vrot.slane %v10932_v2, 7  ;;  %v8271_v50 = vmul.f32 %v10932_v2, %v8212_v21 }
0x149b   : > { %v8272_v22 = vmul.f32 %v8256_v38, %v8213_v49  ;;  %v8273_v37 = vmul.f32 %v8257_v19, %v8214_v16  ;;  %v8274_v44 = vmul.f32 %v8258_v8, %v8215_v15  ;;  %v8275_v48 = vmul.f32 %v8259_v34, %v8216_v10 }
0x149c   : > { %v8276_v6 = vmul.f32 %v8260_v55, %v8217_v43  ;;  %v8277_v23 = vmul.f32 %v8261_v24, %v8218_v62  ;;  %v8278_v59 = vmul.f32 %v8262_v46, %v8219_v57  ;;  %v8986_v30 = vpack.c.bf16 %v8271_v50, %v8271_v50 }
0x149d   : > { %v8987_v61 = vpack.c.bf16 %v8272_v22, %v8272_v22  ;;  %v8988_v14 = vpack.c.bf16 %v8273_v37, %v8273_v37  ;;  %v8989_v28 = vpack.c.bf16 %v8274_v44, %v8274_v44  ;;  %v8990_v35 = vpack.c.bf16 %v8275_v48, %v8275_v48 }
0x149e   : > { %v8991_v11 = vpack.c.bf16 %v8276_v6, %v8276_v6  ;;  %v8992_v33 = vpack.c.bf16 %v8277_v23, %v8277_v23  ;;  %v8993_v17 = vpack.c.bf16 %v8278_v59, %v8278_v59  ;;  %v8311_v41 = vunpack.c.l.b16 %v8986_v30 }
0x149f   : > { %v8312_v60 = vunpack.c.l.b16 %v8987_v61  ;;  %v8313_v31 = vunpack.c.l.b16 %v8988_v14  ;;  %v8314_v25 = vunpack.c.l.b16 %v8989_v28  ;;  %v8315_v56 = vunpack.c.l.b16 %v8990_v35 }
0x14a0   : > { %v8316_v1 = vunpack.c.l.b16 %v8991_v11  ;;  %v8317_v36 = vunpack.c.l.b16 %v8992_v33  ;;  %v8318_v63 = vunpack.c.l.b16 %v8993_v17 }
0x14a1   : > { %v8319_v58 = vrot.slane %v8312_v60, 7  ;;  %v8321_v45 = vrot.slane %v8313_v31, 6  ;;  %v8323_v29 = vrot.slane %v8314_v25, 5  ;;  %v8325_v7 = vrot.slane %v8315_v56, 4 }
0x14a2   : > { %v8327_v21 = vrot.slane %v8316_v1, 3  ;;  %v8329_v16 = vrot.slane %v8317_v36, 2  ;;  %v8331_v10 = vrot.slane %v8318_v63, 1 }
0x14a3   : > { %v8320_v3 = vsel %vm8236_vm3, %v8319_v58, %v8311_v41 }
0x14a4   : > { %v8322_v12 = vsel %vm8238_vm4, %v8321_v45, %v8320_v3 }
0x14a5   : > { %v8324_v39 = vsel %vm8240_vm5, %v8323_v29, %v8322_v12 }
0x14a6   : > { %v8326_v49 = vsel %vm8242_vm6, %v8325_v7, %v8324_v39 }
0x14a7   : > { %v8328_v15 = vsel %vm8244_vm7, %v8327_v21, %v8326_v49 }
0x14a8   : > { %v8330_v43 = vsel %vm8246_vm8, %v8329_v16, %v8328_v15 }
0x14a9   : > { %v8332_v62 = vsel %vm8248_vm9, %v8331_v10, %v8330_v43 }
0x14aa   : > { %v8333_v27 = vpack.c.b16 %v8332_v62, %v8332_v62 }
0x14ac   : > { %8335 = vst [vmem:[#allocation3] sm:$0xf] %v8333_v27 }
0x14ad PF: > { %p13728_p6 = scmp.eq.s32.totalorder %s8495_s28, 1  ;;  %s10990_s24 = smov [#allocation3]  }
0x14ae   : > { %s8345_s30 = sshll.u32 %s10990_s24, 4  ;;  %s8346_s30 = int_to_ptr.vmem [resolvable:$true] %s8345_s30 }
0x14af   : > { %s10933_s16 = scalar_lea.vmem %s8346_s30, 64  ;;  %p10940_p10 = scmp.lt.s32.totalorder %s8346_s30, %s8346_s30 }
0x14b0   : > { %p10934_p7 = scmp.ne.s32.totalorder %s8346_s30, %s10933_s16  ;;  %p10941_p11 = scmp.lt.s32.totalorder %s10933_s16, %s10933_s16 }
0x14b2   : > { %p10935_p8 = pnand %p10934_p7, %p13728_p6  ;;  %p10942_p12 = por %p10941_p11, %p10940_p10 }
0x14b4   : > { %p10936_p9 = pneg %p10935_p8 }
0x14b6   : > { %p10943_p13 = pnand %p10942_p12, %p10936_p9 }
0x14b8   : > { %10946 = shalt.err (!%p10943_p13)
}
0x14b9   : > { %s10947_s28 = scalar_lea.hbm %s13776_s13, 64 }
0x14ba   : > { %p10948_p0 = scmp.ne.s32.totalorder %s13776_s13, %s10947_s28  ;;  %p10953_p3 = scmp.lt.u32.totalorder %s10947_s28, %s13776_s13 }
0x14bc   : > { %p10949_p1 = pnand %p10948_p0, %p13728_p6 }
0x14be   : > { %p10950_p2 = pneg %p10949_p1 }
0x14c0   : > { %p10955_p4 = pnand %p10953_p3, %p10950_p2 }
0x14c2   : > { %10958 = shalt.err (!%p10955_p4)
}
0x14c3   : > { %10354 = dma.vmem_to_hbm [thread:$0]  (%p13728_p6), %s8346_s30, 64, %s13776_s13, [#allocation4]  }
0x14c4   : > { %10972 = dma.done.wait (%p13728_p6), [#allocation4], 64  }
0x14c5   : > { %10974 = vsyncadd (%p13728_p6), [#allocation4], 4294967232 }
0x14c6 PF: > { %s24_s27 = sadd.s32 1, %s10985_s27   ;;  %s13825_s25 = smov %s10981_s26 }
0x14c7   : > { %p21_p5 = scmp.ge.s32.totalorder %s24_s27, 4   ;;  %s13826_s26 = smov %s13828_s29 }
0x14c9   :  { %23 = sbr.rel (!%p21_p5) target bundleno = 2 (0x2), region = 141 }
0x14d0   :  { %8358 = vsyncpa [#allocation4], 1 }
0x14d1   :  { %8360 = vsyncpa [#allocation4 + $0x1], 1 }

</bundles_post_ra>
